<compile_context>
chip_gen: v5e
topology: v5e:2x2
jax: 0.10.0
libtpu: 0.0.40
codegen_flags: <defaults>
</compile_context>

<pallas_src>
import functools

import jax
import jax.numpy as jnp
from jax.experimental import pallas as pl
from jax.experimental.pallas import tpu as pltpu


# --------------------------- conv core ----------------------------------------

def _conv3x3_kfold(h, get_w, *, N, W, mcl, mcr, mrt, mrb):
    """3x3 same-padding conv as 3 MXU matmuls with K = 3*Cin (kw folded into K).

    h:      (N, Cin) activation (bf16 or f32); N = H*W, rows flattened row-major.
    get_w:  get_w(kh_idx) -> (3*Cin, Cout) bf16 packed weights; K blocks are
            ordered [kw=-1, kw=0, kw=+1] to match the operand built below.
    mcl/mcr: (N,1) f32 column-border masks (j>=1 / j<=W-2).
    mrt/mrb: (N,1) f32 row-border masks   (i>=1 / i<=H-2).
    Returns (N, Cout) f32.
    """
    xf = h.astype(jnp.float32)
    # Column (kw) taps gathered once into a fused (N, 3*Cin) operand.
    # roll semantics: roll(x, s)[r] = x[(r - s) % N]
    left = pltpu.roll(xf, shift=1, axis=0) * mcl          # x[i, j-1]
    right = pltpu.roll(xf, shift=N - 1, axis=0) * mcr     # x[i, j+1]
    xcb = jnp.concatenate([left, xf, right], axis=-1).astype(jnp.bfloat16)

    # kh = 0
    acc = jnp.dot(xcb, get_w(1), preferred_element_type=jnp.float32)
    # kh = -1: output row r needs the source-row result at r - W (mask i>=1).
    p_top = jnp.dot(xcb, get_w(0), preferred_element_type=jnp.float32)
    acc = acc + pltpu.roll(p_top, shift=W % N, axis=0) * mrt
    # kh = +1: output row r needs the source-row result at r + W (mask i<=H-2).
    p_bot = jnp.dot(xcb, get_w(2), preferred_element_type=jnp.float32)
    acc = acc + pltpu.roll(p_bot, shift=(N - W) % N, axis=0) * mrb
    return acc


# --------------------------- fused kernel --------------------------------------

def _retina_reg_head_kernel(x_ref, w0_ref, wr_ref, pv_ref, avg_ref,
                            wh_ref, bh_ref, o_ref, *, num_layers, eps):
    """Whole head (4x [conv3x3 + GN + ReLU] + fused reg/ctr conv) for one image.

    x_ref:  (1, H, W, Cin0) bf16
    w0_ref: (3, 3*Cin0, C)  bf16   layer-0 packed weights
    wr_ref: (L-1, 3, 3*C, C) bf16  layers 1..L-1 packed weights
    pv_ref: (L, 3, C) f32          rows = [conv bias, GN gamma, GN beta]
    avg_ref:(C, C) f32             block-diagonal group-averaging matrix (1/n baked in)
    wh_ref: (3, 3*C, Cpad) bf16    fused reg+centerness head, Cout zero-padded
    bh_ref: (1, Cpad) f32
    o_ref:  (1, H, W, Cpad) f32
    """
    _, H, W, Cin0 = x_ref.shape
    Cpad = o_ref.shape[-1]
    N = H * W

    # Border masks shared by every conv in the stack (hoisted out of the loop).
    ii = jax.lax.broadcasted_iota(jnp.int32, (H, W, 1), 0).reshape(N, 1)
    jj = jax.lax.broadcasted_iota(jnp.int32, (H, W, 1), 1).reshape(N, 1)
    mcl = (jj >= 1).astype(jnp.float32)
    mcr = (jj <= W - 2).astype(jnp.float32)
    mrt = (ii >= 1).astype(jnp.float32)
    mrb = (ii <= H - 2).astype(jnp.float32)

    avg = avg_ref[...]  # hoisted load, reused by every layer

    conv = functools.partial(_conv3x3_kfold, N=N, W=W,
                             mcl=mcl, mcr=mcr, mrt=mrt, mrb=mrb)

    h = x_ref[0].astype(jnp.float32).reshape(N, Cin0)
    for l in range(num_layers):
        if l == 0:
            acc = conv(h, lambda k: w0_ref[k])
        else:
            acc = conv(h, lambda k, l=l: wr_ref[l - 1, k])

        p = pv_ref[l]                                  # (3, C)
        bias, gamma, beta = p[0:1, :], p[1:2, :], p[2:3, :]
        # NOTE: a per-channel conv bias is NOT generally cancelled by the GN
        # mean subtraction (only a bias uniform within each group would be).
        acc = acc + bias

        # GroupNorm over (H, W, channels-in-group): per-channel sums mixed via
        # the precomputed block-diagonal averaging matrix.
        # TODO(synk): could be a (1,C)->(G,cpg) lane reduction instead of this
        # tiny M=1 matmul; kept as a matmul for robust lowering (cost is
        # negligible next to the conv matmuls).
        ch_sum = jnp.sum(acc, axis=0, keepdims=True)         # (1, C)
        ch_sq = jnp.sum(acc * acc, axis=0, keepdims=True)    # (1, C)
        mean = jnp.dot(ch_sum, avg, preferred_element_type=jnp.float32)
        mean_sq = jnp.dot(ch_sq, avg, preferred_element_type=jnp.float32)
        var = mean_sq - mean * mean
        inv = jax.lax.rsqrt(var + eps)

        y = (acc - mean) * inv * gamma + beta
        h = jnp.maximum(y, 0.0).astype(jnp.bfloat16)

    # Fused reg + centerness head (Cout zero-padded to a lane multiple).
    acc = conv(h, lambda k: wh_ref[k]) + bh_ref[...]
    o_ref[...] = acc.reshape(1, H, W, Cpad)


# --------------------------- wrapper --------------------------------------------

def _vmem_limit_bytes():
    """Generation-aware VMEM limit: 75% of physical, capped at 96 MiB."""
    try:
        phys = int(pltpu.get_tpu_info().vmem_capacity_bytes)
    except Exception:
        phys = 64 * 1024 * 1024
    return min(96 * 1024 * 1024, (phys * 3) // 4)


def retina_reg_head_fused(x, w0, wr, pv, avg, wh, bh, *, eps=1e-5):
    B, H, W, Cin0 = x.shape
    num_layers = pv.shape[0]
    C = pv.shape[-1]
    Cpad = wh.shape[-1]
    N = H * W

    flops = 2 * 9 * N * (Cin0 * C + max(num_layers - 1, 0) * C * C + C * Cpad) * B
    bytes_accessed = (x.size * x.dtype.itemsize
                      + w0.size * w0.dtype.itemsize
                      + wr.size * wr.dtype.itemsize
                      + pv.size * pv.dtype.itemsize
                      + avg.size * avg.dtype.itemsize
                      + wh.size * wh.dtype.itemsize
                      + bh.size * bh.dtype.itemsize
                      + B * N * Cpad * 4)

    kernel = functools.partial(_retina_reg_head_kernel,
                               num_layers=num_layers, eps=eps)
    return pl.pallas_call(
        kernel,
        out_shape=jax.ShapeDtypeStruct((B, H, W, Cpad), jnp.float32),
        grid=(B,),
        in_specs=[
            pl.BlockSpec((1, H, W, Cin0), lambda b: (b, 0, 0, 0)),
            pl.BlockSpec(w0.shape, lambda b: (0, 0, 0)),
            pl.BlockSpec(wr.shape, lambda b: (0, 0, 0, 0)),
            pl.BlockSpec(pv.shape, lambda b: (0, 0, 0)),
            pl.BlockSpec(avg.shape, lambda b: (0, 0)),
            pl.BlockSpec(wh.shape, lambda b: (0, 0, 0)),
            pl.BlockSpec(bh.shape, lambda b: (0, 0)),
        ],
        out_specs=pl.BlockSpec((1, H, W, Cpad), lambda b: (b, 0, 0, 0)),
        compiler_params=pltpu.CompilerParams(
            dimension_semantics=("parallel",),
            vmem_limit_bytes=_vmem_limit_bytes()),
        cost_estimate=pl.CostEstimate(
            flops=flops,
            transcendentals=B * num_layers * C,
            bytes_accessed=bytes_accessed),
    )(x, w0, wr, pv, avg, wh, bh)


# --------------------------- module ---------------------------------------------

class RetinaRegHeadPallas:
    """Deterministically-initialized Pallas implementation of RetinaRegHead."""

    def __init__(self, in_channel, inner_channel=256, num_anchors=9,
                 num_layers=4, num_groups=32, key=None):
        if key is None:
            key = jax.random.PRNGKey(0)
        assert inner_channel % num_groups == 0
        assert num_layers >= 1
        self.num_anchors = num_anchors
        self.num_groups = num_groups
        self.inner_channel = inner_channel
        self.num_layers = num_layers

        cpg = inner_channel // num_groups
        gid = jnp.arange(inner_channel, dtype=jnp.int32) // cpg
        # (C, C) block-diagonal group membership; scaled by 1/n at call time.
        self.group_mask = (gid[:, None] == gid[None, :]).astype(jnp.float32)

        def pack(w):  # HWIO (3,3,Cin,Cout) -> (3, 3*Cin, Cout); K order [kw=-1,0,+1]
            return w.reshape(3, 3 * w.shape[2], w.shape[3])

        ws, pvs = [], []
        cin = in_channel
        for _ in range(num_layers):
            key, kw = jax.random.split(key)
            w = 0.01 * jax.random.normal(kw, (3, 3, cin, inner_channel), jnp.float32)
            ws.append(pack(w).astype(jnp.bfloat16))
            pvs.append(jnp.stack([
                jnp.zeros((inner_channel,), jnp.float32),   # conv bias (init 0)
                jnp.ones((inner_channel,), jnp.float32),    # GN gamma
                jnp.zeros((inner_channel,), jnp.float32),   # GN beta
            ], axis=0))
            cin = inner_channel
        self.w0 = ws[0]
        if num_layers > 1:
            self.wr = jnp.stack(ws[1:], axis=0)              # (L-1, 3, 3*C, C)
        else:  # dummy (unused) so the kernel signature stays fixed
            self.wr = jnp.zeros((1, 3, 3 * inner_channel, inner_channel), jnp.bfloat16)
        self.pv = jnp.stack(pvs, axis=0)                     # (L, 3, C)

        # Fused reg (A*4) + centerness (A) head; Cout zero-padded to a multiple
        # of 128 so the kernel's output stores are lane-dense.
        A = num_anchors
        c_real = A * 5
        self.head_cout = ((c_real + 127) // 128) * 128
        key, kr = jax.random.split(key)
        w_reg = 0.01 * jax.random.normal(kr, (3, 3, inner_channel, A * 4), jnp.float32)
        key, kc = jax.random.split(key)
        w_ctr = 0.01 * jax.random.normal(kc, (3, 3, inner_channel, A), jnp.float32)
        w_head = jnp.concatenate([w_reg, w_ctr], axis=-1)
        w_head = jnp.pad(w_head, ((0, 0), (0, 0), (0, 0), (0, self.head_cout - c_real)))
        self.wh = pack(w_head).astype(jnp.bfloat16)
        self.bh = jnp.zeros((1, self.head_cout), jnp.float32)

    def __call__(self, x_nchw):
        A = self.num_anchors
        x = jnp.transpose(x_nchw, (0, 2, 3, 1)).astype(jnp.bfloat16)  # NCHW -> NHWC
        B, H, W, _ = x.shape
        cpg = self.inner_channel // self.num_groups
        avg = self.group_mask * jnp.float32(1.0 / (H * W * cpg))
        y = retina_reg_head_fused(x, self.w0, self.wr, self.pv, avg, self.wh, self.bh)
        # NHWC channel order == PyTorch permute(0,2,3,1): anchor-major, 4 coords each.
        x_reg = y[..., : A * 4].reshape(B, H * W * A, 4)
        x_ctr = y[..., A * 4: A * 5].reshape(B, H * W * A)
        return x_reg, x_ctr


# --------------------------- pure-JAX reference ----------------------------------

def _ref_forward(head: RetinaRegHeadPallas, x_nchw):
    """XLA reference mirroring the kernel's dtype policy (bf16 acts/weights, f32 math)."""
    dn = ("NHWC", "HWIO", "NHWC")

    def unpack(wp):  # (3, 3*Cin, Cout) -> (3, 3, Cin, Cout)
        return wp.reshape(3, 3, wp.shape[1] // 3, wp.shape[2])

    def conv(x, wp, bias):
        w = unpack(wp).astype(jnp.float32)
        y = jax.lax.conv_general_dilated(
            x.astype(jnp.float32), w, (1, 1), ((1, 1), (1, 1)), dimension_numbers=dn)
        return y + bias.reshape(1, 1, 1, -1)

    x = jnp.transpose(x_nchw, (0, 2, 3, 1)).astype(jnp.bfloat16)
    G = head.num_groups
    for l in range(head.num_layers):
        wp = head.w0 if l == 0 else head.wr[l - 1]
        bias, gamma, beta = head.pv[l, 0], head.pv[l, 1], head.pv[l, 2]
        y = conv(x, wp, bias)
        B, H, W, C = y.shape
        yg = y.reshape(B, H, W, G, C // G)
        mean = yg.mean(axis=(1, 2, 4), keepdims=True)
        var = ((yg - mean) ** 2).mean(axis=(1, 2, 4), keepdims=True)
        yg = (yg - mean) * jax.lax.rsqrt(var + 1e-5)
        y = yg.reshape(B, H, W, C) * gamma.reshape(1, 1, 1, -1) + beta.reshape(1, 1, 1, -1)
        x = jnp.maximum(y, 0.0).astype(jnp.bfloat16)

    A = head.num_anchors
    yh = conv(x, head.wh, head.bh[0])
    B, H, W, _ = yh.shape
    reg = yh[..., : A * 4].reshape(B, H * W * A, 4)
    ctr = yh[..., A * 4: A * 5].reshape(B, H * W * A)
    return reg, ctr


# --------------------------- main -------------------------------------------------

if __name__ == "__main__":
    key = jax.random.PRNGKey(0)
    k_x, k_p = jax.random.split(key)

    B, C_in, H, W = 2, 8, 16, 16
    x = jax.random.normal(k_x, (B, C_in, H, W), jnp.float32)  # NCHW like PyTorch

    head = RetinaRegHeadPallas(in_channel=C_in, inner_channel=32, num_anchors=9,
                               num_layers=4, num_groups=8, key=k_p)

    x_reg, x_ctr = head(x)
    jax.block_until_ready((x_reg, x_ctr))

    assert x_reg.shape == (B, H * W * 9, 4), x_reg.shape
    assert x_ctr.shape == (B, H * W * 9), x_ctr.shape

    # Numerical check against a pure-JAX/XLA reference with matching dtype policy.
    r_reg, r_ctr = _ref_forward(head, x)
    scale = float(jnp.maximum(jnp.max(jnp.abs(r_reg)), jnp.max(jnp.abs(r_ctr)))) + 1e-6
    err = float(jnp.maximum(jnp.max(jnp.abs(x_reg - r_reg)),
                            jnp.max(jnp.abs(x_ctr - r_ctr)))) / scale
    assert err < 5e-2, f"relative error too large: {err}"

    print("KERNEL_OK")
</pallas_src>

<mosaic_0001>
module attributes {stable_mosaic.version = 11 : i64} {
  func.func @_retina_reg_head_kernel(%arg0: i32, %arg1: memref<1x16x16x8xbf16, #tpu.memory_space<vmem>>, %arg2: memref<3x24x32xbf16, #tpu.memory_space<vmem>>, %arg3: memref<3x3x96x32xbf16, #tpu.memory_space<vmem>>, %arg4: memref<4x3x32xf32, #tpu.memory_space<vmem>>, %arg5: memref<32x32xf32, #tpu.memory_space<vmem>>, %arg6: memref<3x96x128xbf16, #tpu.memory_space<vmem>>, %arg7: memref<1x128xf32, #tpu.memory_space<vmem>>, %arg8: memref<1x16x16x128xf32, #tpu.memory_space<vmem>>) attributes {dimension_semantics = [#tpu.dimension_semantics<parallel>], iteration_bounds = array<i64: 2>, scalar_prefetch = 0 : i64, scratch_operands = 0 : i64, tpu.core_type = #tpu.core_type<tc>, window_params = [{transform_indices = @transform_0, window_bounds = array<i64: 1, 16, 16, 8>}, {pipeline_mode = #tpu.pipeline_mode<synchronous>, transform_indices = @transform_1, window_bounds = array<i64: 3, 24, 32>}, {pipeline_mode = #tpu.pipeline_mode<synchronous>, transform_indices = @transform_2, window_bounds = array<i64: 3, 3, 96, 32>}, {pipeline_mode = #tpu.pipeline_mode<synchronous>, transform_indices = @transform_3, window_bounds = array<i64: 4, 3, 32>}, {pipeline_mode = #tpu.pipeline_mode<synchronous>, transform_indices = @transform_4, window_bounds = array<i64: 32, 32>}, {pipeline_mode = #tpu.pipeline_mode<synchronous>, transform_indices = @transform_5, window_bounds = array<i64: 3, 96, 128>}, {pipeline_mode = #tpu.pipeline_mode<synchronous>, transform_indices = @transform_6, window_bounds = array<i64: 1, 128>}, {transform_indices = @transform_7, window_bounds = array<i64: 1, 16, 16, 128>}]} {
    %0 = tpu.iota {dimensions = array<i32: 0>} : vector<16x16x1xi32>
    %1 = vector.shape_cast %0 : vector<16x16x1xi32> to vector<256x1xi32>
    %2 = tpu.iota {dimensions = array<i32: 1>} : vector<16x16x1xi32>
    %3 = vector.shape_cast %2 : vector<16x16x1xi32> to vector<256x1xi32>
    %c1_i32 = arith.constant 1 : i32
    %4 = vector.broadcast %c1_i32 : i32 to vector<256x1xi32>
    %5 = arith.cmpi sge, %3, %4 : vector<256x1xi32>
    %6 = arith.extui %5 : vector<256x1xi1> to vector<256x1xi32>
    %7 = arith.sitofp %6 : vector<256x1xi32> to vector<256x1xf32>
    %c14_i32 = arith.constant 14 : i32
    %8 = vector.broadcast %c14_i32 : i32 to vector<256x1xi32>
    %9 = arith.cmpi sle, %3, %8 : vector<256x1xi32>
    %10 = arith.extui %9 : vector<256x1xi1> to vector<256x1xi32>
    %11 = arith.sitofp %10 : vector<256x1xi32> to vector<256x1xf32>
    %c1_i32_0 = arith.constant 1 : i32
    %12 = vector.broadcast %c1_i32_0 : i32 to vector<256x1xi32>
    %13 = arith.cmpi sge, %1, %12 : vector<256x1xi32>
    %14 = arith.extui %13 : vector<256x1xi1> to vector<256x1xi32>
    %15 = arith.sitofp %14 : vector<256x1xi32> to vector<256x1xf32>
    %c14_i32_1 = arith.constant 14 : i32
    %16 = vector.broadcast %c14_i32_1 : i32 to vector<256x1xi32>
    %17 = arith.cmpi sle, %1, %16 : vector<256x1xi32>
    %18 = arith.extui %17 : vector<256x1xi1> to vector<256x1xi32>
    %19 = arith.sitofp %18 : vector<256x1xi32> to vector<256x1xf32>
    %c0 = arith.constant 0 : index
    %c0_2 = arith.constant 0 : index
    %20 = vector.load %arg5[%c0, %c0_2] : memref<32x32xf32, #tpu.memory_space<vmem>>, vector<32x32xf32>
    %c0_3 = arith.constant 0 : index
    %c0_4 = arith.constant 0 : index
    %c0_5 = arith.constant 0 : index
    %c0_6 = arith.constant 0 : index
    %21 = vector.load %arg1[%c0_3, %c0_4, %c0_5, %c0_6] : memref<1x16x16x8xbf16, #tpu.memory_space<vmem>>, vector<1x16x16x8xbf16>
    %22 = vector.shape_cast %21 : vector<1x16x16x8xbf16> to vector<16x16x8xbf16>
    %23 = arith.extf %22 : vector<16x16x8xbf16> to vector<16x16x8xf32>
    %24 = vector.shape_cast %23 : vector<16x16x8xf32> to vector<256x8xf32>
    %c1_i32_7 = arith.constant 1 : i32
    %25 = tpu.dynamic_rotate %24 by %c1_i32_7 dim 0 : vector<256x8xf32>, i32 -> vector<256x8xf32>
    %26 = vector.broadcast %7 : vector<256x1xf32> to vector<256x8xf32>
    %27 = arith.mulf %25, %26 : vector<256x8xf32>
    %c255_i32 = arith.constant 255 : i32
    %28 = tpu.dynamic_rotate %24 by %c255_i32 dim 0 : vector<256x8xf32>, i32 -> vector<256x8xf32>
    %29 = vector.broadcast %11 : vector<256x1xf32> to vector<256x8xf32>
    %30 = arith.mulf %28, %29 : vector<256x8xf32>
    %31 = tpu.concatenate %27, %24, %30 in 1 : vector<256x8xf32>, vector<256x8xf32>, vector<256x8xf32> -> vector<256x24xf32>
    %32 = arith.truncf %31 : vector<256x24xf32> to vector<256x24xbf16>
    %c1 = arith.constant 1 : index
    %c0_8 = arith.constant 0 : index
    %c0_9 = arith.constant 0 : index
    %33 = vector.load %arg2[%c1, %c0_8, %c0_9] : memref<3x24x32xbf16, #tpu.memory_space<vmem>>, vector<1x24x32xbf16>
    %34 = vector.shape_cast %33 : vector<1x24x32xbf16> to vector<24x32xbf16>
    %cst = arith.constant dense<0.000000e+00> : vector<256x32xf32>
    %35 = tpu.matmul %32, %34, %cst {dimension_numbers = #tpu.dot_dimension_numbers<[1], [0], [0], [1], [0, 0, 1, 1], [], []>} : vector<256x24xbf16>, vector<24x32xbf16>, vector<256x32xf32> -> vector<256x32xf32>
    %c0_10 = arith.constant 0 : index
    %c0_11 = arith.constant 0 : index
    %c0_12 = arith.constant 0 : index
    %36 = vector.load %arg2[%c0_10, %c0_11, %c0_12] : memref<3x24x32xbf16, #tpu.memory_space<vmem>>, vector<1x24x32xbf16>
    %37 = vector.shape_cast %36 : vector<1x24x32xbf16> to vector<24x32xbf16>
    %cst_13 = arith.constant dense<0.000000e+00> : vector<256x32xf32>
    %38 = tpu.matmul %32, %37, %cst_13 {dimension_numbers = #tpu.dot_dimension_numbers<[1], [0], [0], [1], [0, 0, 1, 1], [], []>} : vector<256x24xbf16>, vector<24x32xbf16>, vector<256x32xf32> -> vector<256x32xf32>
    %c16_i32 = arith.constant 16 : i32
    %39 = tpu.dynamic_rotate %38 by %c16_i32 dim 0 : vector<256x32xf32>, i32 -> vector<256x32xf32>
    %40 = vector.broadcast %15 : vector<256x1xf32> to vector<256x32xf32>
    %41 = arith.mulf %39, %40 : vector<256x32xf32>
    %42 = arith.addf %35, %41 : vector<256x32xf32>
    %c2 = arith.constant 2 : index
    %c0_14 = arith.constant 0 : index
    %c0_15 = arith.constant 0 : index
    %43 = vector.load %arg2[%c2, %c0_14, %c0_15] : memref<3x24x32xbf16, #tpu.memory_space<vmem>>, vector<1x24x32xbf16>
    %44 = vector.shape_cast %43 : vector<1x24x32xbf16> to vector<24x32xbf16>
    %cst_16 = arith.constant dense<0.000000e+00> : vector<256x32xf32>
    %45 = tpu.matmul %32, %44, %cst_16 {dimension_numbers = #tpu.dot_dimension_numbers<[1], [0], [0], [1], [0, 0, 1, 1], [], []>} : vector<256x24xbf16>, vector<24x32xbf16>, vector<256x32xf32> -> vector<256x32xf32>
    %c240_i32 = arith.constant 240 : i32
    %46 = tpu.dynamic_rotate %45 by %c240_i32 dim 0 : vector<256x32xf32>, i32 -> vector<256x32xf32>
    %47 = vector.broadcast %19 : vector<256x1xf32> to vector<256x32xf32>
    %48 = arith.mulf %46, %47 : vector<256x32xf32>
    %49 = arith.addf %42, %48 : vector<256x32xf32>
    %c0_17 = arith.constant 0 : index
    %c0_18 = arith.constant 0 : index
    %c0_19 = arith.constant 0 : index
    %50 = vector.load %arg4[%c0_17, %c0_18, %c0_19] : memref<4x3x32xf32, #tpu.memory_space<vmem>>, vector<1x3x32xf32>
    %51 = vector.shape_cast %50 : vector<1x3x32xf32> to vector<3x32xf32>
    %52 = vector.extract_strided_slice %51 {offsets = [0, 0], sizes = [1, 32], strides = [1, 1]} : vector<3x32xf32> to vector<1x32xf32>
    %53 = vector.extract_strided_slice %51 {offsets = [1, 0], sizes = [1, 32], strides = [1, 1]} : vector<3x32xf32> to vector<1x32xf32>
    %54 = vector.extract_strided_slice %51 {offsets = [2, 0], sizes = [1, 32], strides = [1, 1]} : vector<3x32xf32> to vector<1x32xf32>
    %55 = vector.broadcast %52 : vector<1x32xf32> to vector<256x32xf32>
    %56 = arith.addf %49, %55 : vector<256x32xf32>
    %cst_20 = arith.constant dense<0.000000e+00> : vector<32xf32>
    %57 = vector.multi_reduction <add>, %56, %cst_20 [0] : vector<256x32xf32> to vector<32xf32>
    %58 = vector.shape_cast %57 : vector<32xf32> to vector<1x32xf32>
    %59 = arith.mulf %56, %56 : vector<256x32xf32>
    %cst_21 = arith.constant dense<0.000000e+00> : vector<32xf32>
    %60 = vector.multi_reduction <add>, %59, %cst_21 [0] : vector<256x32xf32> to vector<32xf32>
    %61 = vector.shape_cast %60 : vector<32xf32> to vector<1x32xf32>
    %cst_22 = arith.constant dense<0.000000e+00> : vector<1x32xf32>
    %62 = tpu.matmul %58, %20, %cst_22 {dimension_numbers = #tpu.dot_dimension_numbers<[1], [0], [0], [1], [0, 0, 1, 1], [], []>} : vector<1x32xf32>, vector<32x32xf32>, vector<1x32xf32> -> vector<1x32xf32>
    %cst_23 = arith.constant dense<0.000000e+00> : vector<1x32xf32>
    %63 = tpu.matmul %61, %20, %cst_23 {dimension_numbers = #tpu.dot_dimension_numbers<[1], [0], [0], [1], [0, 0, 1, 1], [], []>} : vector<1x32xf32>, vector<32x32xf32>, vector<1x32xf32> -> vector<1x32xf32>
    %64 = arith.mulf %62, %62 : vector<1x32xf32>
    %65 = arith.subf %63, %64 : vector<1x32xf32>
    %cst_24 = arith.constant 9.99999974E-6 : f32
    %66 = vector.broadcast %cst_24 : f32 to vector<1x32xf32>
    %67 = arith.addf %65, %66 : vector<1x32xf32>
    %68 = math.rsqrt %67 : vector<1x32xf32>
    %69 = vector.broadcast %62 : vector<1x32xf32> to vector<256x32xf32>
    %70 = arith.subf %56, %69 : vector<256x32xf32>
    %71 = vector.broadcast %68 : vector<1x32xf32> to vector<256x32xf32>
    %72 = arith.mulf %70, %71 : vector<256x32xf32>
    %73 = vector.broadcast %53 : vector<1x32xf32> to vector<256x32xf32>
    %74 = arith.mulf %72, %73 : vector<256x32xf32>
    %75 = vector.broadcast %54 : vector<1x32xf32> to vector<256x32xf32>
    %76 = arith.addf %74, %75 : vector<256x32xf32>
    %cst_25 = arith.constant 0.000000e+00 : f32
    %77 = vector.broadcast %cst_25 : f32 to vector<256x32xf32>
    %78 = arith.maximumf %76, %77 : vector<256x32xf32>
    %79 = arith.truncf %78 : vector<256x32xf32> to vector<256x32xbf16>
    %80 = arith.extf %79 : vector<256x32xbf16> to vector<256x32xf32>
    %c1_i32_26 = arith.constant 1 : i32
    %81 = tpu.dynamic_rotate %80 by %c1_i32_26 dim 0 : vector<256x32xf32>, i32 -> vector<256x32xf32>
    %82 = vector.broadcast %7 : vector<256x1xf32> to vector<256x32xf32>
    %83 = arith.mulf %81, %82 : vector<256x32xf32>
    %c255_i32_27 = arith.constant 255 : i32
    %84 = tpu.dynamic_rotate %80 by %c255_i32_27 dim 0 : vector<256x32xf32>, i32 -> vector<256x32xf32>
    %85 = vector.broadcast %11 : vector<256x1xf32> to vector<256x32xf32>
    %86 = arith.mulf %84, %85 : vector<256x32xf32>
    %87 = tpu.concatenate %83, %80, %86 in 1 : vector<256x32xf32>, vector<256x32xf32>, vector<256x32xf32> -> vector<256x96xf32>
    %88 = arith.truncf %87 : vector<256x96xf32> to vector<256x96xbf16>
    %c0_28 = arith.constant 0 : index
    %c1_29 = arith.constant 1 : index
    %c0_30 = arith.constant 0 : index
    %c0_31 = arith.constant 0 : index
    %89 = vector.load %arg3[%c0_28, %c1_29, %c0_30, %c0_31] : memref<3x3x96x32xbf16, #tpu.memory_space<vmem>>, vector<1x1x96x32xbf16>
    %90 = vector.shape_cast %89 : vector<1x1x96x32xbf16> to vector<96x32xbf16>
    %cst_32 = arith.constant dense<0.000000e+00> : vector<256x32xf32>
    %91 = tpu.matmul %88, %90, %cst_32 {dimension_numbers = #tpu.dot_dimension_numbers<[1], [0], [0], [1], [0, 0, 1, 1], [], []>} : vector<256x96xbf16>, vector<96x32xbf16>, vector<256x32xf32> -> vector<256x32xf32>
    %c0_33 = arith.constant 0 : index
    %c0_34 = arith.constant 0 : index
    %c0_35 = arith.constant 0 : index
    %c0_36 = arith.constant 0 : index
    %92 = vector.load %arg3[%c0_33, %c0_34, %c0_35, %c0_36] : memref<3x3x96x32xbf16, #tpu.memory_space<vmem>>, vector<1x1x96x32xbf16>
    %93 = vector.shape_cast %92 : vector<1x1x96x32xbf16> to vector<96x32xbf16>
    %cst_37 = arith.constant dense<0.000000e+00> : vector<256x32xf32>
    %94 = tpu.matmul %88, %93, %cst_37 {dimension_numbers = #tpu.dot_dimension_numbers<[1], [0], [0], [1], [0, 0, 1, 1], [], []>} : vector<256x96xbf16>, vector<96x32xbf16>, vector<256x32xf32> -> vector<256x32xf32>
    %c16_i32_38 = arith.constant 16 : i32
    %95 = tpu.dynamic_rotate %94 by %c16_i32_38 dim 0 : vector<256x32xf32>, i32 -> vector<256x32xf32>
    %96 = vector.broadcast %15 : vector<256x1xf32> to vector<256x32xf32>
    %97 = arith.mulf %95, %96 : vector<256x32xf32>
    %98 = arith.addf %91, %97 : vector<256x32xf32>
    %c0_39 = arith.constant 0 : index
    %c2_40 = arith.constant 2 : index
    %c0_41 = arith.constant 0 : index
    %c0_42 = arith.constant 0 : index
    %99 = vector.load %arg3[%c0_39, %c2_40, %c0_41, %c0_42] : memref<3x3x96x32xbf16, #tpu.memory_space<vmem>>, vector<1x1x96x32xbf16>
    %100 = vector.shape_cast %99 : vector<1x1x96x32xbf16> to vector<96x32xbf16>
    %cst_43 = arith.constant dense<0.000000e+00> : vector<256x32xf32>
    %101 = tpu.matmul %88, %100, %cst_43 {dimension_numbers = #tpu.dot_dimension_numbers<[1], [0], [0], [1], [0, 0, 1, 1], [], []>} : vector<256x96xbf16>, vector<96x32xbf16>, vector<256x32xf32> -> vector<256x32xf32>
    %c240_i32_44 = arith.constant 240 : i32
    %102 = tpu.dynamic_rotate %101 by %c240_i32_44 dim 0 : vector<256x32xf32>, i32 -> vector<256x32xf32>
    %103 = vector.broadcast %19 : vector<256x1xf32> to vector<256x32xf32>
    %104 = arith.mulf %102, %103 : vector<256x32xf32>
    %105 = arith.addf %98, %104 : vector<256x32xf32>
    %c1_45 = arith.constant 1 : index
    %c0_46 = arith.constant 0 : index
    %c0_47 = arith.constant 0 : index
    %106 = vector.load %arg4[%c1_45, %c0_46, %c0_47] : memref<4x3x32xf32, #tpu.memory_space<vmem>>, vector<1x3x32xf32>
    %107 = vector.shape_cast %106 : vector<1x3x32xf32> to vector<3x32xf32>
    %108 = vector.extract_strided_slice %107 {offsets = [0, 0], sizes = [1, 32], strides = [1, 1]} : vector<3x32xf32> to vector<1x32xf32>
    %109 = vector.extract_strided_slice %107 {offsets = [1, 0], sizes = [1, 32], strides = [1, 1]} : vector<3x32xf32> to vector<1x32xf32>
    %110 = vector.extract_strided_slice %107 {offsets = [2, 0], sizes = [1, 32], strides = [1, 1]} : vector<3x32xf32> to vector<1x32xf32>
    %111 = vector.broadcast %108 : vector<1x32xf32> to vector<256x32xf32>
    %112 = arith.addf %105, %111 : vector<256x32xf32>
    %cst_48 = arith.constant dense<0.000000e+00> : vector<32xf32>
    %113 = vector.multi_reduction <add>, %112, %cst_48 [0] : vector<256x32xf32> to vector<32xf32>
    %114 = vector.shape_cast %113 : vector<32xf32> to vector<1x32xf32>
    %115 = arith.mulf %112, %112 : vector<256x32xf32>
    %cst_49 = arith.constant dense<0.000000e+00> : vector<32xf32>
    %116 = vector.multi_reduction <add>, %115, %cst_49 [0] : vector<256x32xf32> to vector<32xf32>
    %117 = vector.shape_cast %116 : vector<32xf32> to vector<1x32xf32>
    %cst_50 = arith.constant dense<0.000000e+00> : vector<1x32xf32>
    %118 = tpu.matmul %114, %20, %cst_50 {dimension_numbers = #tpu.dot_dimension_numbers<[1], [0], [0], [1], [0, 0, 1, 1], [], []>} : vector<1x32xf32>, vector<32x32xf32>, vector<1x32xf32> -> vector<1x32xf32>
    %cst_51 = arith.constant dense<0.000000e+00> : vector<1x32xf32>
    %119 = tpu.matmul %117, %20, %cst_51 {dimension_numbers = #tpu.dot_dimension_numbers<[1], [0], [0], [1], [0, 0, 1, 1], [], []>} : vector<1x32xf32>, vector<32x32xf32>, vector<1x32xf32> -> vector<1x32xf32>
    %120 = arith.mulf %118, %118 : vector<1x32xf32>
    %121 = arith.subf %119, %120 : vector<1x32xf32>
    %cst_52 = arith.constant 9.99999974E-6 : f32
    %122 = vector.broadcast %cst_52 : f32 to vector<1x32xf32>
    %123 = arith.addf %121, %122 : vector<1x32xf32>
    %124 = math.rsqrt %123 : vector<1x32xf32>
    %125 = vector.broadcast %118 : vector<1x32xf32> to vector<256x32xf32>
    %126 = arith.subf %112, %125 : vector<256x32xf32>
    %127 = vector.broadcast %124 : vector<1x32xf32> to vector<256x32xf32>
    %128 = arith.mulf %126, %127 : vector<256x32xf32>
    %129 = vector.broadcast %109 : vector<1x32xf32> to vector<256x32xf32>
    %130 = arith.mulf %128, %129 : vector<256x32xf32>
    %131 = vector.broadcast %110 : vector<1x32xf32> to vector<256x32xf32>
    %132 = arith.addf %130, %131 : vector<256x32xf32>
    %cst_53 = arith.constant 0.000000e+00 : f32
    %133 = vector.broadcast %cst_53 : f32 to vector<256x32xf32>
    %134 = arith.maximumf %132, %133 : vector<256x32xf32>
    %135 = arith.truncf %134 : vector<256x32xf32> to vector<256x32xbf16>
    %136 = arith.extf %135 : vector<256x32xbf16> to vector<256x32xf32>
    %c1_i32_54 = arith.constant 1 : i32
    %137 = tpu.dynamic_rotate %136 by %c1_i32_54 dim 0 : vector<256x32xf32>, i32 -> vector<256x32xf32>
    %138 = vector.broadcast %7 : vector<256x1xf32> to vector<256x32xf32>
    %139 = arith.mulf %137, %138 : vector<256x32xf32>
    %c255_i32_55 = arith.constant 255 : i32
    %140 = tpu.dynamic_rotate %136 by %c255_i32_55 dim 0 : vector<256x32xf32>, i32 -> vector<256x32xf32>
    %141 = vector.broadcast %11 : vector<256x1xf32> to vector<256x32xf32>
    %142 = arith.mulf %140, %141 : vector<256x32xf32>
    %143 = tpu.concatenate %139, %136, %142 in 1 : vector<256x32xf32>, vector<256x32xf32>, vector<256x32xf32> -> vector<256x96xf32>
    %144 = arith.truncf %143 : vector<256x96xf32> to vector<256x96xbf16>
    %c1_56 = arith.constant 1 : index
    %c1_57 = arith.constant 1 : index
    %c0_58 = arith.constant 0 : index
    %c0_59 = arith.constant 0 : index
    %145 = vector.load %arg3[%c1_56, %c1_57, %c0_58, %c0_59] : memref<3x3x96x32xbf16, #tpu.memory_space<vmem>>, vector<1x1x96x32xbf16>
    %146 = vector.shape_cast %145 : vector<1x1x96x32xbf16> to vector<96x32xbf16>
    %cst_60 = arith.constant dense<0.000000e+00> : vector<256x32xf32>
    %147 = tpu.matmul %144, %146, %cst_60 {dimension_numbers = #tpu.dot_dimension_numbers<[1], [0], [0], [1], [0, 0, 1, 1], [], []>} : vector<256x96xbf16>, vector<96x32xbf16>, vector<256x32xf32> -> vector<256x32xf32>
    %c1_61 = arith.constant 1 : index
    %c0_62 = arith.constant 0 : index
    %c0_63 = arith.constant 0 : index
    %c0_64 = arith.constant 0 : index
    %148 = vector.load %arg3[%c1_61, %c0_62, %c0_63, %c0_64] : memref<3x3x96x32xbf16, #tpu.memory_space<vmem>>, vector<1x1x96x32xbf16>
    %149 = vector.shape_cast %148 : vector<1x1x96x32xbf16> to vector<96x32xbf16>
    %cst_65 = arith.constant dense<0.000000e+00> : vector<256x32xf32>
    %150 = tpu.matmul %144, %149, %cst_65 {dimension_numbers = #tpu.dot_dimension_numbers<[1], [0], [0], [1], [0, 0, 1, 1], [], []>} : vector<256x96xbf16>, vector<96x32xbf16>, vector<256x32xf32> -> vector<256x32xf32>
    %c16_i32_66 = arith.constant 16 : i32
    %151 = tpu.dynamic_rotate %150 by %c16_i32_66 dim 0 : vector<256x32xf32>, i32 -> vector<256x32xf32>
    %152 = vector.broadcast %15 : vector<256x1xf32> to vector<256x32xf32>
    %153 = arith.mulf %151, %152 : vector<256x32xf32>
    %154 = arith.addf %147, %153 : vector<256x32xf32>
    %c1_67 = arith.constant 1 : index
    %c2_68 = arith.constant 2 : index
    %c0_69 = arith.constant 0 : index
    %c0_70 = arith.constant 0 : index
    %155 = vector.load %arg3[%c1_67, %c2_68, %c0_69, %c0_70] : memref<3x3x96x32xbf16, #tpu.memory_space<vmem>>, vector<1x1x96x32xbf16>
    %156 = vector.shape_cast %155 : vector<1x1x96x32xbf16> to vector<96x32xbf16>
    %cst_71 = arith.constant dense<0.000000e+00> : vector<256x32xf32>
    %157 = tpu.matmul %144, %156, %cst_71 {dimension_numbers = #tpu.dot_dimension_numbers<[1], [0], [0], [1], [0, 0, 1, 1], [], []>} : vector<256x96xbf16>, vector<96x32xbf16>, vector<256x32xf32> -> vector<256x32xf32>
    %c240_i32_72 = arith.constant 240 : i32
    %158 = tpu.dynamic_rotate %157 by %c240_i32_72 dim 0 : vector<256x32xf32>, i32 -> vector<256x32xf32>
    %159 = vector.broadcast %19 : vector<256x1xf32> to vector<256x32xf32>
    %160 = arith.mulf %158, %159 : vector<256x32xf32>
    %161 = arith.addf %154, %160 : vector<256x32xf32>
    %c2_73 = arith.constant 2 : index
    %c0_74 = arith.constant 0 : index
    %c0_75 = arith.constant 0 : index
    %162 = vector.load %arg4[%c2_73, %c0_74, %c0_75] : memref<4x3x32xf32, #tpu.memory_space<vmem>>, vector<1x3x32xf32>
    %163 = vector.shape_cast %162 : vector<1x3x32xf32> to vector<3x32xf32>
    %164 = vector.extract_strided_slice %163 {offsets = [0, 0], sizes = [1, 32], strides = [1, 1]} : vector<3x32xf32> to vector<1x32xf32>
    %165 = vector.extract_strided_slice %163 {offsets = [1, 0], sizes = [1, 32], strides = [1, 1]} : vector<3x32xf32> to vector<1x32xf32>
    %166 = vector.extract_strided_slice %163 {offsets = [2, 0], sizes = [1, 32], strides = [1, 1]} : vector<3x32xf32> to vector<1x32xf32>
    %167 = vector.broadcast %164 : vector<1x32xf32> to vector<256x32xf32>
    %168 = arith.addf %161, %167 : vector<256x32xf32>
    %cst_76 = arith.constant dense<0.000000e+00> : vector<32xf32>
    %169 = vector.multi_reduction <add>, %168, %cst_76 [0] : vector<256x32xf32> to vector<32xf32>
    %170 = vector.shape_cast %169 : vector<32xf32> to vector<1x32xf32>
    %171 = arith.mulf %168, %168 : vector<256x32xf32>
    %cst_77 = arith.constant dense<0.000000e+00> : vector<32xf32>
    %172 = vector.multi_reduction <add>, %171, %cst_77 [0] : vector<256x32xf32> to vector<32xf32>
    %173 = vector.shape_cast %172 : vector<32xf32> to vector<1x32xf32>
    %cst_78 = arith.constant dense<0.000000e+00> : vector<1x32xf32>
    %174 = tpu.matmul %170, %20, %cst_78 {dimension_numbers = #tpu.dot_dimension_numbers<[1], [0], [0], [1], [0, 0, 1, 1], [], []>} : vector<1x32xf32>, vector<32x32xf32>, vector<1x32xf32> -> vector<1x32xf32>
    %cst_79 = arith.constant dense<0.000000e+00> : vector<1x32xf32>
    %175 = tpu.matmul %173, %20, %cst_79 {dimension_numbers = #tpu.dot_dimension_numbers<[1], [0], [0], [1], [0, 0, 1, 1], [], []>} : vector<1x32xf32>, vector<32x32xf32>, vector<1x32xf32> -> vector<1x32xf32>
    %176 = arith.mulf %174, %174 : vector<1x32xf32>
    %177 = arith.subf %175, %176 : vector<1x32xf32>
    %cst_80 = arith.constant 9.99999974E-6 : f32
    %178 = vector.broadcast %cst_80 : f32 to vector<1x32xf32>
    %179 = arith.addf %177, %178 : vector<1x32xf32>
    %180 = math.rsqrt %179 : vector<1x32xf32>
    %181 = vector.broadcast %174 : vector<1x32xf32> to vector<256x32xf32>
    %182 = arith.subf %168, %181 : vector<256x32xf32>
    %183 = vector.broadcast %180 : vector<1x32xf32> to vector<256x32xf32>
    %184 = arith.mulf %182, %183 : vector<256x32xf32>
    %185 = vector.broadcast %165 : vector<1x32xf32> to vector<256x32xf32>
    %186 = arith.mulf %184, %185 : vector<256x32xf32>
    %187 = vector.broadcast %166 : vector<1x32xf32> to vector<256x32xf32>
    %188 = arith.addf %186, %187 : vector<256x32xf32>
    %cst_81 = arith.constant 0.000000e+00 : f32
    %189 = vector.broadcast %cst_81 : f32 to vector<256x32xf32>
    %190 = arith.maximumf %188, %189 : vector<256x32xf32>
    %191 = arith.truncf %190 : vector<256x32xf32> to vector<256x32xbf16>
    %192 = arith.extf %191 : vector<256x32xbf16> to vector<256x32xf32>
    %c1_i32_82 = arith.constant 1 : i32
    %193 = tpu.dynamic_rotate %192 by %c1_i32_82 dim 0 : vector<256x32xf32>, i32 -> vector<256x32xf32>
    %194 = vector.broadcast %7 : vector<256x1xf32> to vector<256x32xf32>
    %195 = arith.mulf %193, %194 : vector<256x32xf32>
    %c255_i32_83 = arith.constant 255 : i32
    %196 = tpu.dynamic_rotate %192 by %c255_i32_83 dim 0 : vector<256x32xf32>, i32 -> vector<256x32xf32>
    %197 = vector.broadcast %11 : vector<256x1xf32> to vector<256x32xf32>
    %198 = arith.mulf %196, %197 : vector<256x32xf32>
    %199 = tpu.concatenate %195, %192, %198 in 1 : vector<256x32xf32>, vector<256x32xf32>, vector<256x32xf32> -> vector<256x96xf32>
    %200 = arith.truncf %199 : vector<256x96xf32> to vector<256x96xbf16>
    %c2_84 = arith.constant 2 : index
    %c1_85 = arith.constant 1 : index
    %c0_86 = arith.constant 0 : index
    %c0_87 = arith.constant 0 : index
    %201 = vector.load %arg3[%c2_84, %c1_85, %c0_86, %c0_87] : memref<3x3x96x32xbf16, #tpu.memory_space<vmem>>, vector<1x1x96x32xbf16>
    %202 = vector.shape_cast %201 : vector<1x1x96x32xbf16> to vector<96x32xbf16>
    %cst_88 = arith.constant dense<0.000000e+00> : vector<256x32xf32>
    %203 = tpu.matmul %200, %202, %cst_88 {dimension_numbers = #tpu.dot_dimension_numbers<[1], [0], [0], [1], [0, 0, 1, 1], [], []>} : vector<256x96xbf16>, vector<96x32xbf16>, vector<256x32xf32> -> vector<256x32xf32>
    %c2_89 = arith.constant 2 : index
    %c0_90 = arith.constant 0 : index
    %c0_91 = arith.constant 0 : index
    %c0_92 = arith.constant 0 : index
    %204 = vector.load %arg3[%c2_89, %c0_90, %c0_91, %c0_92] : memref<3x3x96x32xbf16, #tpu.memory_space<vmem>>, vector<1x1x96x32xbf16>
    %205 = vector.shape_cast %204 : vector<1x1x96x32xbf16> to vector<96x32xbf16>
    %cst_93 = arith.constant dense<0.000000e+00> : vector<256x32xf32>
    %206 = tpu.matmul %200, %205, %cst_93 {dimension_numbers = #tpu.dot_dimension_numbers<[1], [0], [0], [1], [0, 0, 1, 1], [], []>} : vector<256x96xbf16>, vector<96x32xbf16>, vector<256x32xf32> -> vector<256x32xf32>
    %c16_i32_94 = arith.constant 16 : i32
    %207 = tpu.dynamic_rotate %206 by %c16_i32_94 dim 0 : vector<256x32xf32>, i32 -> vector<256x32xf32>
    %208 = vector.broadcast %15 : vector<256x1xf32> to vector<256x32xf32>
    %209 = arith.mulf %207, %208 : vector<256x32xf32>
    %210 = arith.addf %203, %209 : vector<256x32xf32>
    %c2_95 = arith.constant 2 : index
    %c2_96 = arith.constant 2 : index
    %c0_97 = arith.constant 0 : index
    %c0_98 = arith.constant 0 : index
    %211 = vector.load %arg3[%c2_95, %c2_96, %c0_97, %c0_98] : memref<3x3x96x32xbf16, #tpu.memory_space<vmem>>, vector<1x1x96x32xbf16>
    %212 = vector.shape_cast %211 : vector<1x1x96x32xbf16> to vector<96x32xbf16>
    %cst_99 = arith.constant dense<0.000000e+00> : vector<256x32xf32>
    %213 = tpu.matmul %200, %212, %cst_99 {dimension_numbers = #tpu.dot_dimension_numbers<[1], [0], [0], [1], [0, 0, 1, 1], [], []>} : vector<256x96xbf16>, vector<96x32xbf16>, vector<256x32xf32> -> vector<256x32xf32>
    %c240_i32_100 = arith.constant 240 : i32
    %214 = tpu.dynamic_rotate %213 by %c240_i32_100 dim 0 : vector<256x32xf32>, i32 -> vector<256x32xf32>
    %215 = vector.broadcast %19 : vector<256x1xf32> to vector<256x32xf32>
    %216 = arith.mulf %214, %215 : vector<256x32xf32>
    %217 = arith.addf %210, %216 : vector<256x32xf32>
    %c3 = arith.constant 3 : index
    %c0_101 = arith.constant 0 : index
    %c0_102 = arith.constant 0 : index
    %218 = vector.load %arg4[%c3, %c0_101, %c0_102] : memref<4x3x32xf32, #tpu.memory_space<vmem>>, vector<1x3x32xf32>
    %219 = vector.shape_cast %218 : vector<1x3x32xf32> to vector<3x32xf32>
    %220 = vector.extract_strided_slice %219 {offsets = [0, 0], sizes = [1, 32], strides = [1, 1]} : vector<3x32xf32> to vector<1x32xf32>
    %221 = vector.extract_strided_slice %219 {offsets = [1, 0], sizes = [1, 32], strides = [1, 1]} : vector<3x32xf32> to vector<1x32xf32>
    %222 = vector.extract_strided_slice %219 {offsets = [2, 0], sizes = [1, 32], strides = [1, 1]} : vector<3x32xf32> to vector<1x32xf32>
    %223 = vector.broadcast %220 : vector<1x32xf32> to vector<256x32xf32>
    %224 = arith.addf %217, %223 : vector<256x32xf32>
    %cst_103 = arith.constant dense<0.000000e+00> : vector<32xf32>
    %225 = vector.multi_reduction <add>, %224, %cst_103 [0] : vector<256x32xf32> to vector<32xf32>
    %226 = vector.shape_cast %225 : vector<32xf32> to vector<1x32xf32>
    %227 = arith.mulf %224, %224 : vector<256x32xf32>
    %cst_104 = arith.constant dense<0.000000e+00> : vector<32xf32>
    %228 = vector.multi_reduction <add>, %227, %cst_104 [0] : vector<256x32xf32> to vector<32xf32>
    %229 = vector.shape_cast %228 : vector<32xf32> to vector<1x32xf32>
    %cst_105 = arith.constant dense<0.000000e+00> : vector<1x32xf32>
    %230 = tpu.matmul %226, %20, %cst_105 {dimension_numbers = #tpu.dot_dimension_numbers<[1], [0], [0], [1], [0, 0, 1, 1], [], []>} : vector<1x32xf32>, vector<32x32xf32>, vector<1x32xf32> -> vector<1x32xf32>
    %cst_106 = arith.constant dense<0.000000e+00> : vector<1x32xf32>
    %231 = tpu.matmul %229, %20, %cst_106 {dimension_numbers = #tpu.dot_dimension_numbers<[1], [0], [0], [1], [0, 0, 1, 1], [], []>} : vector<1x32xf32>, vector<32x32xf32>, vector<1x32xf32> -> vector<1x32xf32>
    %232 = arith.mulf %230, %230 : vector<1x32xf32>
    %233 = arith.subf %231, %232 : vector<1x32xf32>
    %cst_107 = arith.constant 9.99999974E-6 : f32
    %234 = vector.broadcast %cst_107 : f32 to vector<1x32xf32>
    %235 = arith.addf %233, %234 : vector<1x32xf32>
    %236 = math.rsqrt %235 : vector<1x32xf32>
    %237 = vector.broadcast %230 : vector<1x32xf32> to vector<256x32xf32>
    %238 = arith.subf %224, %237 : vector<256x32xf32>
    %239 = vector.broadcast %236 : vector<1x32xf32> to vector<256x32xf32>
    %240 = arith.mulf %238, %239 : vector<256x32xf32>
    %241 = vector.broadcast %221 : vector<1x32xf32> to vector<256x32xf32>
    %242 = arith.mulf %240, %241 : vector<256x32xf32>
    %243 = vector.broadcast %222 : vector<1x32xf32> to vector<256x32xf32>
    %244 = arith.addf %242, %243 : vector<256x32xf32>
    %cst_108 = arith.constant 0.000000e+00 : f32
    %245 = vector.broadcast %cst_108 : f32 to vector<256x32xf32>
    %246 = arith.maximumf %244, %245 : vector<256x32xf32>
    %247 = arith.truncf %246 : vector<256x32xf32> to vector<256x32xbf16>
    %248 = arith.extf %247 : vector<256x32xbf16> to vector<256x32xf32>
    %c1_i32_109 = arith.constant 1 : i32
    %249 = tpu.dynamic_rotate %248 by %c1_i32_109 dim 0 : vector<256x32xf32>, i32 -> vector<256x32xf32>
    %250 = vector.broadcast %7 : vector<256x1xf32> to vector<256x32xf32>
    %251 = arith.mulf %249, %250 : vector<256x32xf32>
    %c255_i32_110 = arith.constant 255 : i32
    %252 = tpu.dynamic_rotate %248 by %c255_i32_110 dim 0 : vector<256x32xf32>, i32 -> vector<256x32xf32>
    %253 = vector.broadcast %11 : vector<256x1xf32> to vector<256x32xf32>
    %254 = arith.mulf %252, %253 : vector<256x32xf32>
    %255 = tpu.concatenate %251, %248, %254 in 1 : vector<256x32xf32>, vector<256x32xf32>, vector<256x32xf32> -> vector<256x96xf32>
    %256 = arith.truncf %255 : vector<256x96xf32> to vector<256x96xbf16>
    %c1_111 = arith.constant 1 : index
    %c0_112 = arith.constant 0 : index
    %c0_113 = arith.constant 0 : index
    %257 = vector.load %arg6[%c1_111, %c0_112, %c0_113] : memref<3x96x128xbf16, #tpu.memory_space<vmem>>, vector<1x96x128xbf16>
    %258 = vector.shape_cast %257 : vector<1x96x128xbf16> to vector<96x128xbf16>
    %cst_114 = arith.constant dense<0.000000e+00> : vector<256x128xf32>
    %259 = tpu.matmul %256, %258, %cst_114 {dimension_numbers = #tpu.dot_dimension_numbers<[1], [0], [0], [1], [0, 0, 1, 1], [], []>} : vector<256x96xbf16>, vector<96x128xbf16>, vector<256x128xf32> -> vector<256x128xf32>
    %c0_115 = arith.constant 0 : index
    %c0_116 = arith.constant 0 : index
    %c0_117 = arith.constant 0 : index
    %260 = vector.load %arg6[%c0_115, %c0_116, %c0_117] : memref<3x96x128xbf16, #tpu.memory_space<vmem>>, vector<1x96x128xbf16>
    %261 = vector.shape_cast %260 : vector<1x96x128xbf16> to vector<96x128xbf16>
    %cst_118 = arith.constant dense<0.000000e+00> : vector<256x128xf32>
    %262 = tpu.matmul %256, %261, %cst_118 {dimension_numbers = #tpu.dot_dimension_numbers<[1], [0], [0], [1], [0, 0, 1, 1], [], []>} : vector<256x96xbf16>, vector<96x128xbf16>, vector<256x128xf32> -> vector<256x128xf32>
    %c16_i32_119 = arith.constant 16 : i32
    %263 = tpu.dynamic_rotate %262 by %c16_i32_119 dim 0 : vector<256x128xf32>, i32 -> vector<256x128xf32>
    %264 = vector.broadcast %15 : vector<256x1xf32> to vector<256x128xf32>
    %265 = arith.mulf %263, %264 : vector<256x128xf32>
    %266 = arith.addf %259, %265 : vector<256x128xf32>
    %c2_120 = arith.constant 2 : index
    %c0_121 = arith.constant 0 : index
    %c0_122 = arith.constant 0 : index
    %267 = vector.load %arg6[%c2_120, %c0_121, %c0_122] : memref<3x96x128xbf16, #tpu.memory_space<vmem>>, vector<1x96x128xbf16>
    %268 = vector.shape_cast %267 : vector<1x96x128xbf16> to vector<96x128xbf16>
    %cst_123 = arith.constant dense<0.000000e+00> : vector<256x128xf32>
    %269 = tpu.matmul %256, %268, %cst_123 {dimension_numbers = #tpu.dot_dimension_numbers<[1], [0], [0], [1], [0, 0, 1, 1], [], []>} : vector<256x96xbf16>, vector<96x128xbf16>, vector<256x128xf32> -> vector<256x128xf32>
    %c240_i32_124 = arith.constant 240 : i32
    %270 = tpu.dynamic_rotate %269 by %c240_i32_124 dim 0 : vector<256x128xf32>, i32 -> vector<256x128xf32>
    %271 = vector.broadcast %19 : vector<256x1xf32> to vector<256x128xf32>
    %272 = arith.mulf %270, %271 : vector<256x128xf32>
    %273 = arith.addf %266, %272 : vector<256x128xf32>
    %c0_125 = arith.constant 0 : index
    %c0_126 = arith.constant 0 : index
    %274 = vector.load %arg7[%c0_125, %c0_126] : memref<1x128xf32, #tpu.memory_space<vmem>>, vector<1x128xf32>
    %275 = vector.broadcast %274 : vector<1x128xf32> to vector<256x128xf32>
    %276 = arith.addf %273, %275 : vector<256x128xf32>
    %277 = vector.shape_cast %276 : vector<256x128xf32> to vector<1x16x16x128xf32>
    %c0_127 = arith.constant 0 : index
    %c0_128 = arith.constant 0 : index
    %c0_129 = arith.constant 0 : index
    %c0_130 = arith.constant 0 : index
    %278 = vector.load %arg8[%c0_127, %c0_128, %c0_129, %c0_130] : memref<1x16x16x128xf32, #tpu.memory_space<vmem>>, vector<1x16x16x128xf32>
    tpu.vector_store %arg8[%c0_127, %c0_128, %c0_129, %c0_130], %277 {strides = array<i32>} : memref<1x16x16x128xf32, #tpu.memory_space<vmem>>, vector<1x16x16x128xf32>,
    return
  }
  func.func @transform_0(%arg0: i32) -> (i32, i32, i32, i32) {
    %c0_i32 = arith.constant 0 : i32
    %c0_i32_0 = arith.constant 0 : i32
    %c0_i32_1 = arith.constant 0 : i32
    %c0_i32_2 = arith.constant 0 : i32
    return %arg0, %c0_i32, %c0_i32_0, %c0_i32_1 : i32, i32, i32, i32
  }
  func.func @transform_1(%arg0: i32) -> (i32, i32, i32) {
    %c0_i32 = arith.constant 0 : i32
    %c0_i32_0 = arith.constant 0 : i32
    %c0_i32_1 = arith.constant 0 : i32
    %c0_i32_2 = arith.constant 0 : i32
    return %c0_i32, %c0_i32_0, %c0_i32_1 : i32, i32, i32
  }
  func.func @transform_2(%arg0: i32) -> (i32, i32, i32, i32) {
    %c0_i32 = arith.constant 0 : i32
    %c0_i32_0 = arith.constant 0 : i32
    %c0_i32_1 = arith.constant 0 : i32
    %c0_i32_2 = arith.constant 0 : i32
    %c0_i32_3 = arith.constant 0 : i32
    return %c0_i32, %c0_i32_0, %c0_i32_1, %c0_i32_2 : i32, i32, i32, i32
  }
  func.func @transform_3(%arg0: i32) -> (i32, i32, i32) {
    %c0_i32 = arith.constant 0 : i32
    %c0_i32_0 = arith.constant 0 : i32
    %c0_i32_1 = arith.constant 0 : i32
    %c0_i32_2 = arith.constant 0 : i32
    return %c0_i32, %c0_i32_0, %c0_i32_1 : i32, i32, i32
  }
  func.func @transform_4(%arg0: i32) -> (i32, i32) {
    %c0_i32 = arith.constant 0 : i32
    %c0_i32_0 = arith.constant 0 : i32
    %c0_i32_1 = arith.constant 0 : i32
    return %c0_i32, %c0_i32_0 : i32, i32
  }
  func.func @transform_5(%arg0: i32) -> (i32, i32, i32) {
    %c0_i32 = arith.constant 0 : i32
    %c0_i32_0 = arith.constant 0 : i32
    %c0_i32_1 = arith.constant 0 : i32
    %c0_i32_2 = arith.constant 0 : i32
    return %c0_i32, %c0_i32_0, %c0_i32_1 : i32, i32, i32
  }
  func.func @transform_6(%arg0: i32) -> (i32, i32) {
    %c0_i32 = arith.constant 0 : i32
    %c0_i32_0 = arith.constant 0 : i32
    %c0_i32_1 = arith.constant 0 : i32
    return %c0_i32, %c0_i32_0 : i32, i32
  }
  func.func @transform_7(%arg0: i32) -> (i32, i32, i32, i32) {
    %c0_i32 = arith.constant 0 : i32
    %c0_i32_0 = arith.constant 0 : i32
    %c0_i32_1 = arith.constant 0 : i32
    %c0_i32_2 = arith.constant 0 : i32
    return %arg0, %c0_i32, %c0_i32_0, %c0_i32_1 : i32, i32, i32, i32
  }
}

</mosaic_0001>

<bundles_post_ra>
// kernel: tpu_custom_call.1
= control target key start
LH: loop header
LB: loop body
LE: loop exit
PB: predicated region body
PF: predicated region fallthrough
CT: control target
= control target key end

     0   :  { %12 = vsyncpa [#allocation3], 0  ;;  %s16562_s0 = inlined_call_operand.vmem [shape: bf16[2,16,16,8], index: 0, kind: input, shape index: {}]   ;;  %s16563_s1 = inlined_call_operand.vmem [shape: bf16[3,24,32], index: 1, kind: input, shape index: {}]   ;;  %s16564_s2 = inlined_call_operand.vmem [shape: bf16[3,3,96,32], index: 2, kind: input, shape index: {}]   ;;  %s16565_s3 = inlined_call_operand.vmem [shape: f32[4,3,32], index: 3, kind: input, shape index: {}]   ;;  %s16566_s4 = inlined_call_operand.vmem [shape: f32[32,32], index: 4, kind: input, shape index: {}]   ;;  %s16567_s5 = inlined_call_operand.vmem [shape: bf16[3,96,128], index: 5, kind: input, shape index: {}]   ;;  %s16568_s6 = inlined_call_operand.vmem [shape: f32[1,128], index: 6, kind: input, shape index: {}]   ;;  %s16569_s7 = inlined_call_operand.hbm [shape: f32[2,16,16,128], index: 7, kind: output, shape index: {}]  }
   0x1   :  { %14 = vsyncpa [#allocation3 + $0x1], 0  ;;  %s9638_s24 = smov 0   ;;  %s9640_s25 = smov 0  }
   0x2   :  { %s9642_s26 = smov 0   ;;  %s9644_s27 = smov 0  }
   0x3 LB: > { %s9659_s28 = sadd.s32 4294967295, %s9590_s27   ;;  %s7813_s29 = sadd.s32 4294967294, %s9590_s27   ;;  %s9590_s27 = sphi %s9644_s27, %s16785_s27   ;;  %s9586_s26 = sphi %s9642_s26, %s16784_s26   ;;  %s9582_s25 = sphi %s9640_s25, %s16783_s25   ;;  %s9578_s24 = sphi %s9638_s24, %s16782_s24  }
   0x4   : > { %s9663_s30 = sadd.s32 1, %s9590_s27   ;;  %s179_s8 = sadd.s32 1, %s9586_s26 }
   0x5   : > { %s176_s9 = ssub.s32 %s9590_s27, %s9663_s30  ;;  %p189_p0 = scmp.ne.s32.totalorder %s9586_s26, %s9582_s25 }
   0x6   : > { %p177_p1 = scmp.eq.s32.totalorder %s176_s9, 0  ;;  %p190_p2 = scmp.eq.s32.totalorder %s9659_s28, 1 }
   0x7   : > { %p195_p3 = scmp.ne.s32.totalorder %s9582_s25, %s9578_s24  ;;  %p196_p4 = scmp.eq.s32.totalorder %s7813_s29, 1 }
   0x8   : > { %s9674_s10 = scalar_select %p177_p1, %s9586_s26, %s179_s8  }
   0x9   : > { %p9676_p5 = por %p190_p2, %p189_p0  ;;  %p9680_p6 = por %p196_p4, %p195_p3 }
   0xa   : > { %p7816_p7 = scmp.ge.s32.totalorder %s9590_s27, 1  ;;  %p240_p8 = scmp.lt.s32.totalorder %s9590_s27, 3 }
   0xc   : > { %p241_p9 = pnand %p7816_p7, %p240_p8 }
   0xe   : > { %244 = sbr.rel (%p241_p9) target bundleno = 3554 (0xde2), region = 48 }
  0x13   : > { %p272_p10 = scmp.lt.s32.totalorder %s9659_s28, 1  ;;  %v278_v0 = vlaneseq  ;;  %v9592_v3 = vmov 0.0   ;;  %s9593_s18 = smov 8   ;;  %vm960_vm4 = vcmask 1043456   ;;  %vm813_vm5 = vcmask 64512  }
  0x14   : > { %s9594_s19 = smov 16   ;;  %vm846_vm6 = vcmask 130048   ;;  %vm911_vm7 = vcmask 195584   ;;  %vm1389_vm8 = vcmask 261120   ;;  %s9596_s8 = smov 64   ;;  %vm2327_vm12 = vcmask 523264  }
  0x15   : > { %s273_s13 = scalar_select %p272_p10, %s9659_s28, 1  ;;  %v9688_v1 = vshrl.u32 %v278_v0, 7  ;;  %vm2437_vm13 = vcmask 785408  }
  0x16   : > { %s8580_s21 = sshll.u32 %s9659_s28, 8  ;;  %s9548_s20 = scalar_lea.hbm %s16569_s7, 512 }
  0x17   : > { %16619 = vst [vmem:[#allocation5_spill] sm:$0xff] %v9688_v1  ;;  %s8504_s14 = sshll.u32 %s273_s13, 7  ;;  %v280_v2 = vadd.s32 8, %v9688_v1  ;;  %vm281_vm0 = vcmp.ge.s32.totalorder %v9688_v1, 1  ;;  %vm492_vm2 = vcmp.lt.s32.totalorder %v9688_v1, 7  ;;  %vm395_vm3 = vcmp.lt.s32.totalorder %v9688_v1, 1  ;;  %s7747_s29 = scalar_lea.hbm %s16569_s7, %s8580_s21 }
  0x18   : > { %s9695_s17 = scalar_lea.vmem %s16562_s0, %s8504_s14  ;;  %v9697_v4 = vsel %vm281_vm0, 1.0, %v9592_v3  ;;  %s7750_s28 = sshll.u32 %s7747_s29, 4  ;;  %s7751_s28 = int_to_ptr.hbm [resolvable:$true] %s7750_s28 }
  0x19   : > { %16620 = vst [vmem:[#allocation6_spill] sm:$0xff] %v9697_v4  ;;  %v8645_v5 = vld [vmem:[%s9695_s17 + $0x8] sm:$0xff]   ;;  %v8582_v6 = vld [vmem:[%s9695_s17] sm:$0xff]   ;;  %vm288_vm1 = vcmp.le.s32.totalorder %v280_v2, 14  ;;  %v8646_v12 = vld [vmem:[%s9695_s17 + $0x10] sm:$0xff]   ;;  %s9542_s14 = sshra.s32 %s7751_s28, 4  ;;  %s9543_s14 = int_to_ptr.hbm [resolvable:$true] %s9542_s14 }
  0x1a   : > { %v9701_v7 = vunpack.c.l.bf16 %v8645_v5  ;;  %v9703_v8 = vunpack.c.h.bf16 %v8645_v5  ;;  %v9705_v9 = vunpack.c.l.bf16 %v8582_v6  ;;  %v9707_v10 = vunpack.c.h.bf16 %v8582_v6  ;;  %v8656_v11 = vld [vmem:[%s9695_s17 + $0x60] sm:$0xff]   ;;  %v8657_v24 = vld [vmem:[%s9695_s17 + $0x68] sm:$0xff]   ;;  %v8658_v27 = vld [vmem:[%s9695_s17 + $0x70] sm:$0xff]   ;;  %s9544_s15 = scalar_lea.hbm %s9543_s14, 256  ;;  %p9549_p0 = scmp.lt.s32.totalorder %s9543_s14, %s16569_s7 }
  0x1b   : > { %v9716_v16 = vunpack.c.l.bf16 %v8656_v11  ;;  %v9718_v17 = vunpack.c.h.bf16 %v8656_v11  ;;  %v9722_v18 = vsel %vm288_vm1, 1.0, %v9592_v3  ;;  %v9726_v21 = vunpack.c.l.bf16 %v8646_v12  ;;  %v8647_v40 = vld [vmem:[%s9695_s17 + $0x18] sm:$0xff]   ;;  %v8648_v50 = vld [vmem:[%s9695_s17 + $0x20] sm:$0xff]   ;;  %p9545_p11 = scmp.ne.s32.totalorder %s9543_s14, %s9544_s15  ;;  %p9550_p1 = scmp.lt.s32.totalorder %s9548_s20, %s9544_s15 }
  0x1c   : > { %v8721_v13 = vpack.i.bf16 %v9703_v8, %v9701_v7  ;;  %v462_v14 = vrot.slane %v9701_v7, 1  ;;  %v8711_v15 = vpack.i.bf16 %v9707_v10, %v9705_v9  ;;  %16621 = vst [vmem:[#allocation7_spill] sm:$0xff] %v9722_v18  ;;  %v460_v19 = vrot.slane %v9705_v9, 1  ;;  %v8659_v49 = vld [vmem:[%s9695_s17 + $0x78] sm:$0xff]  }
  0x1d   : > { %v461_v20 = vrot.slane %v9707_v10, 1  ;;  %v463_v25 = vrot.slane %v9703_v8, 1  ;;  %v464_v26 = vrot.slane %v9726_v21, 1  ;;  %v9740_v29 = vunpack.c.l.bf16 %v8657_v24  ;;  %p9546_p12 = pnand %p9545_p11, %p9676_p5  ;;  %p9551_p2 = por %p9550_p1, %p9549_p0 }
  0x1e   : > { %8722 = vrot.lane.b32.xlu1 %v8721_v13, %s9593_s18  ;;  %8712 = vrot.lane.b32.xlu0 %v8711_v15, %s9593_s18  ;;  %v8726_v30 = vpack.i.bf16 %v9718_v17, %v9716_v16  ;;  %v9748_v34 = vunpack.c.h.bf16 %v8657_v24  ;;  %v9751_v36 = vunpack.c.l.bf16 %v8658_v27  ;;  %v484_v37 = vrot.slane %v9716_v16, 1 }
  0x1f   : > { %v522_v22 = vsel %vm492_vm2, %v461_v20, %v462_v14  ;;  %v523_v23 = vsel %vm492_vm2, %v460_v19, %v461_v20  ;;  %v520_v31 = vsel %vm492_vm2, %v463_v25, %v464_v26  ;;  %v521_v32 = vsel %vm492_vm2, %v462_v14, %v463_v25  ;;  %p9547_p13 = pneg %p9546_p12 }
  0x20   : > { %v526_v28 = vmul.f32 %v9722_v18, %v522_v22  ;;  %v528_v35 = vmul.f32 %v9722_v18, %v520_v31  ;;  %v486_v39 = vrot.slane %v9740_v29, 1  ;;  %v485_v41 = vrot.slane %v9718_v17, 1 }
  0x21   : > { %v9758_v42 = vunpack.c.h.bf16 %v8646_v12  ;;  %v487_v43 = vrot.slane %v9748_v34, 1  ;;  %v488_v44 = vrot.slane %v9751_v36, 1  ;;  %v9766_v46 = vunpack.c.l.bf16 %v8647_v40  ;;  %v8649_v12 = vld [vmem:[%s9695_s17 + $0x28] sm:$0xff]   ;;  %p9552_p3 = pnand %p9551_p2, %p9547_p13 }
  0x22   : > { %v8716_v33 = vpack.i.bf16 %v526_v28, %v523_v23  ;;  %v8731_v38 = vpack.i.bf16 %v528_v35, %v521_v32  ;;  %v498_v45 = vsel %vm492_vm2, %v485_v41, %v486_v39  ;;  %v499_v47 = vsel %vm492_vm2, %v484_v37, %v485_v41  ;;  %v8650_v32 = vld [vmem:[%s9695_s17 + $0x30] sm:$0xff]  }
  0x23   : > { %v550_v48 = vmul.f32 %v9722_v18, %v498_v45  ;;  %v465_v51 = vrot.slane %v9758_v42, 1  ;;  %v8741_v52 = vpack.i.bf16 %v9758_v42, %v9726_v21  ;;  %v8746_v53 = vpack.i.bf16 %v9748_v34, %v9740_v29 }
  0x24   : > { %8732 = vrot.lane.b32.xlu2 %v8731_v38, %s9594_s19  ;;  %v466_v54 = vrot.slane %v9766_v46, 1  ;;  %v496_v55 = vsel %vm492_vm2, %v487_v43, %v488_v44  ;;  %v9783_v57 = vunpack.c.h.bf16 %v8658_v27  ;;  %v9785_v58 = vunpack.c.l.bf16 %v8659_v49 }
  0x25   : > { %v8736_v56 = vpack.i.bf16 %v550_v48, %v499_v47  ;;  %v9787_v59 = vunpack.c.l.bf16 %v8648_v50  ;;  %v552_v61 = vmul.f32 %v9722_v18, %v496_v55  ;;  %v9793_v62 = vunpack.c.h.bf16 %v8647_v40 }
  0x26   : > { %8727 = vrot.lane.b32.xlu1 %v8726_v30, %s9593_s18  ;;  %8717 = vrot.lane.b32.xlu0 %v8716_v33, %s9594_s19  ;;  %v518_v60 = vsel %vm492_vm2, %v465_v51, %v466_v54  ;;  %v497_v63 = vsel %vm492_vm2, %v486_v39, %v487_v43  ;;  %v489_v0 = vrot.slane %v9783_v57, 1  ;;  %v490_v2 = vrot.slane %v9785_v58, 1 }
  0x27   : > { %v530_v3 = vmul.f32 %v9722_v18, %v518_v60  ;;  %v467_v5 = vrot.slane %v9793_v62, 1  ;;  %v468_v6 = vrot.slane %v9787_v59, 1  ;;  %v519_v11 = vsel %vm492_vm2, %v464_v26, %v465_v51  ;;  %v8651_v51 = vld [vmem:[%s9695_s17 + $0x38] sm:$0xff]  }
  0x28   : > { %v8756_v13 = vpack.i.bf16 %v552_v61, %v497_v63  ;;  %v8761_v14 = vpack.i.bf16 %v9793_v62, %v9766_v46  ;;  %v494_v15 = vsel %vm492_vm2, %v489_v0, %v490_v2  ;;  %v9811_v22 = vunpack.c.h.bf16 %v8648_v50 }
  0x29   : > { %v8751_v20 = vpack.i.bf16 %v530_v3, %v519_v11  ;;  %v9813_v23 = vunpack.c.l.bf16 %v8649_v12  ;;  %v516_v24 = vsel %vm492_vm2, %v467_v5, %v468_v6  ;;  %v554_v25 = vmul.f32 %v9722_v18, %v494_v15 }
  0x2a   : > { %v495_v26 = vsel %vm492_vm2, %v488_v44, %v489_v0  ;;  %v532_v27 = vmul.f32 %v9722_v18, %v516_v24  ;;  %v469_v28 = vrot.slane %v9811_v22, 1  ;;  %v517_v31 = vsel %vm492_vm2, %v466_v54, %v467_v5 }
  0x2b   : > { %v470_v30 = vrot.slane %v9813_v23, 1  ;;  %v8776_v33 = vpack.i.bf16 %v554_v25, %v495_v26  ;;  %v8766_v35 = vpack.i.bf16 %v9783_v57, %v9751_v36  ;;  %v9833_v40 = vunpack.c.h.bf16 %v8649_v12 }
  0x2c   : > { %8737 = vrot.lane.b32.xlu2 %v8736_v56, %s9594_s19  ;;  %v8771_v38 = vpack.i.bf16 %v532_v27, %v517_v31  ;;  %v9835_v41 = vunpack.c.l.bf16 %v8650_v32  ;;  %v9838_v43 = vunpack.c.h.bf16 %v8659_v49  ;;  %v515_v45 = vsel %vm492_vm2, %v468_v6, %v469_v28 }
  0x2d   : > { %v514_v39 = vsel %vm492_vm2, %v469_v28, %v470_v30  ;;  %v471_v47 = vrot.slane %v9833_v40, 1  ;;  %v9859_v56 = vunpack.c.h.bf16 %v8650_v32  ;;  %v9861_v60 = vunpack.c.l.bf16 %v8651_v51  ;;  %v901_v28 = vld [vmem:[%s16563_s1 + $0x8] sm:$0xf] }
  0x2e   : > { %8747 = vrot.lane.b32.xlu1 %v8746_v53, %s9593_s18  ;;  %8742 = vrot.lane.b32.xlu0 %v8741_v52, %s9593_s18  ;;  %v534_v44 = vmul.f32 %v9722_v18, %v514_v39  ;;  %v472_v48 = vrot.slane %v9835_v41, 1  ;;  %v491_v50 = vrot.slane %v9838_v43, 1  ;;  %v8786_v49 = vpack.i.bf16 %v9838_v43, %v9785_v58 }
  0x2f   : > { %v8781_v53 = vpack.i.bf16 %v9811_v22, %v9787_v59  ;;  %v513_v0 = vsel %vm492_vm2, %v470_v30, %v471_v47  ;;  %v473_v3 = vrot.slane %v9859_v56, 1  ;;  %v474_v5 = vrot.slane %v9861_v60, 1 }
  0x30   : > { %v8791_v52 = vpack.i.bf16 %v534_v44, %v515_v45  ;;  %v512_v54 = vsel %vm492_vm2, %v471_v47, %v472_v48  ;;  %v524_v55 = vsel %vm492_vm2, %v491_v50, %v460_v19  ;;  %v493_v19 = vsel %vm492_vm2, %v490_v2, %v491_v50 }
  0x31   : > { %v536_v61 = vmul.f32 %v9722_v18, %v512_v54  ;;  %v556_v63 = vmul.f32 %v9722_v18, %v524_v55  ;;  %v8801_v12 = vpack.i.bf16 %v9833_v40, %v9813_v23  ;;  %v394_v24 = vrot.slane %v9838_v43, 7 }
  0x32   : > { %v364_v25 = vrot.slane %v9707_v10, 7  ;;  %v9897_v27 = vunpack.c.h.bf16 %v8651_v51  ;;  %v907_v30 = vunpack.c.l.b16 %v901_v28  ;;  %v7867_v10 = vld [vmem:[%s16563_s1 + $0x20] sm:$0xf]  ;;  %v387_v51 = vrot.slane %v9716_v16, 7 }
  0x33   : > { %v8806_v6 = vpack.i.bf16 %v536_v61, %v513_v0  ;;  %v8796_v11 = vpack.i.bf16 %v556_v63, %v493_v19  ;;  %v365_v55 = vrot.slane %v9701_v7, 7  ;;  %v8652_v61 = vld [vmem:[%s9695_s17 + $0x40] sm:$0xff]   ;;  %v8653_v63 = vld [vmem:[%s9695_s17 + $0x48] sm:$0xff]   ;;  %v366_v0 = vrot.slane %v9703_v8, 7 }
  0x34   : > { %8752 = vrot.lane.b32.xlu2 %v8751_v20, %s9594_s19  ;;  %v363_v20 = vrot.slane %v9705_v9, 7  ;;  %v7824_v9 = vld [vmem:[%s16563_s1 + $0x14] sm:$0xf]  ;;  %v9945_v19 = vunpack.c.h.bf16 %v8652_v61  ;;  %v372_v43 = vrot.slane %v9811_v22, 7 }
  0x35   : > { %v1090_v31 = vunpack.c.l.b16 %v7824_v9  ;;  %v390_v9 = vrot.slane %v9748_v34, 7 }
  0x36   : > { %8762 = vrot.lane.b32.xlu1 %v8761_v14, %s9593_s18  ;;  %8757 = vrot.lane.b32.xlu0 %v8756_v13, %s9594_s19  ;;  %v510_v13 = vsel %vm492_vm2, %v473_v3, %v474_v5  ;;  %v511_v14 = vsel %vm492_vm2, %v472_v48, %v473_v3  ;;  %v9895_v26 = vsel %vm395_vm3, %v394_v24, %v363_v20  ;;  %v388_v48 = vrot.slane %v9718_v17, 7  ;;  %v9929_v17 = vld [vmem:[%s16563_s1 + $0x18] sm:$0xff] }
  0x37   : > { %v538_v2 = vmul.f32 %v9722_v18, %v510_v13  ;;  %v9910_v32 = vsel %vm395_vm3, %v363_v20, %v364_v25  ;;  %v1092_v39 = vpack.c.b16 %v1090_v31, %v1090_v31  ;;  %v9947_v3 = vunpack.c.l.bf16 %v8653_v63 }
  0x38   : > { %v9937_v54 = vsel %vm395_vm3, %v387_v51, %v388_v48  ;;  %v475_v31 = vrot.slane %v9897_v27, 1 }
  0x39   : > { %v8816_v15 = vpack.i.bf16 %v538_v2, %v511_v14  ;;  %v1095_v47 = vsel %vm960_vm4, %v1092_v39, 0  ;;  %v478_v7 = vrot.slane %v9947_v3, 1  ;;  %v424_v14 = vsel %vm395_vm3, %v365_v55, %v366_v0 }
  0x3a   : > { %1103 = vmatpush.bf16.msra.mxu1 %v1095_v47 }
  0x3c   : > { %8767 = vrot.lane.b32.xlu2 %v8766_v35, %s9593_s18  ;;  %v1195_v35 = vunpack.c.l.b16 %v7867_v10 }
  0x3e   : > { %8777 = vrot.lane.b32.xlu1 %v8776_v33, %s9594_s19  ;;  %8772 = vrot.lane.b32.xlu0 %v8771_v38, %s9594_s19  ;;  %v8821_v33 = vpack.i.bf16 %v9897_v27, %v9861_v60  ;;  %v909_v38 = vpack.c.b16 %v907_v30, %v907_v30  ;;  %v1197_v44 = vpack.c.b16 %v1195_v35, %v1195_v35  ;;  %v9970_v30 = vld [vmem:[%s9695_s17 + $0x58] sm:$0xff]  }
  0x40   : > { %v962_v45 = vsel %vm960_vm4, %v909_v38, 0  ;;  %v9916_v50 = vsel %vm960_vm4, %v1197_v44, 0  ;;  %v9984_v38 = vunpack.c.h.bf16 %v9970_v30 }
  0x41   : > { %970 = vmatpush.bf16.msra.mxu0 %v962_v45  ;;  %1208 = vmatpush.bf16.msra.mxu2 %v9916_v50 }
  0x42   : > { %8660 = vmatpush.bf16.msra.mxu3 %v962_v45 }
  0x44   : > { %8782 = vrot.lane.b32.xlu2 %v8781_v53, %s9593_s18  ;;  %v8811_v53 = vpack.i.bf16 %v9859_v56, %v9835_v41 }
  0x45   : > { %1209 = vmatpush.bf16.msra.mxu2 %v9929_v17 }
  0x46   : > { %8792 = vrot.lane.b32.xlu1 %v8791_v52, %s9594_s19  ;;  %8787 = vrot.lane.b32.xlu0 %v8786_v49, %s9593_s18  ;;  %v8506_v52 = vld [vmem:[%s16563_s1] sm:$0xff]  ;;  %v8505_v49 = vld [vmem:[%s16563_s1 + $0xc] sm:$0xff] }
  0x47   : > { %971 = vmatpush.bf16.msra.mxu0 %v8506_v52  ;;  %1104 = vmatpush.bf16.msra.mxu1 %v8505_v49 }
  0x48   : > { %8661 = vmatpush.bf16.msra.mxu3 %v8506_v52 }
  0x4c   : > { %8797 = vrot.lane.b32.xlu2 %v8796_v11, %s9594_s19  ;;  %8662 = vmatpush.bf16.msrb.mxu3 %v1095_v47  ;;  %v477_v11 = vrot.slane %v9945_v19, 1  ;;  %v9994_v47 = vld [vmem:[%s9695_s17 + $0x50] sm:$0xff]  }
  0x4e   : > { %8807 = vrot.lane.b32.xlu1 %v8806_v6, %s9594_s19  ;;  %8802 = vrot.lane.b32.xlu0 %v8801_v12, %s9593_s18  ;;  %v9949_v6 = vunpack.c.l.bf16 %v8652_v61  ;;  %v425_v12 = vsel %vm395_vm3, %v364_v25, %v365_v55  ;;  %v506_v2 = vsel %vm492_vm2, %v477_v11, %v478_v7  ;;  %v389_v25 = vrot.slane %v9740_v29, 7 }
  0x4f   : > { %v509_v29 = vsel %vm492_vm2, %v474_v5, %v475_v31  ;;  %v430_v52 = vmul.f32 %v9697_v4, %v425_v12  ;;  %v10001_v5 = vunpack.c.l.bf16 %v9994_v47 }
  0x50   : > { %8663 = vmatpush.bf16.msrb.mxu3 %v8505_v49  ;;  %v8831_v13 = vpack.i.bf16 %v9945_v19, %v9949_v6  ;;  %v476_v8 = vrot.slane %v9949_v6, 1  ;;  %v9975_v10 = vsel %vm395_vm3, %v388_v48, %v389_v25  ;;  %v9991_v44 = vsel %vm395_vm3, %v389_v25, %v390_v9 }
  0x51   : > { %v367_v48 = vrot.slane %v9726_v21, 7  ;;  %v9998_v49 = vunpack.c.h.bf16 %v8653_v63  ;;  %v480_v63 = vrot.slane %v10001_v5, 1 }
  0x52   : > { %v507_v20 = vsel %vm492_vm2, %v476_v8, %v477_v11  ;;  %v508_v35 = vsel %vm492_vm2, %v475_v31, %v476_v8 }
  0x53   : > { %v540_v39 = vmul.f32 %v9722_v18, %v508_v35  ;;  %v479_v21 = vrot.slane %v9998_v49, 1 }
  0x54   : > { %8812 = vrot.lane.b32.xlu2 %v8811_v53, %s9593_s18  ;;  %v368_v53 = vrot.slane %v9758_v42, 7 }
  0x55   : > { %v8826_v45 = vpack.i.bf16 %v540_v39, %v509_v29  ;;  %v504_v25 = vsel %vm492_vm2, %v479_v21, %v480_v63  ;;  %v505_v35 = vsel %vm492_vm2, %v478_v7, %v479_v21 }
  0x56   : > { %8817 = vrot.lane.b32.xlu0 %v8816_v15, %s9594_s19  ;;  %8822 = vrot.lane.b32.xlu1 %v8821_v33, %s9593_s18  ;;  %v542_v15 = vmul.f32 %v9722_v18, %v506_v2  ;;  %v544_v39 = vmul.f32 %v9722_v18, %v504_v25 }
  0x58   : > { %v8836_v28 = vpack.i.bf16 %v542_v15, %v507_v20 }
  0x5c   : > { %8827 = vrot.lane.b32.xlu2 %v8826_v45, %s9594_s19  ;;  %v422_v45 = vsel %vm395_vm3, %v367_v48, %v368_v53 }
  0x5e   : > { %8832 = vrot.lane.b32.xlu0 %v8831_v13, %s9593_s18  ;;  %8837 = vrot.lane.b32.xlu1 %v8836_v28, %s9594_s19  ;;  %v386_v13 = vrot.slane %v9984_v38, 7 }
  0x60   : > { %v403_v28 = vsel %vm395_vm3, %v386_v13, %v387_v51  ;;  %v423_v51 = vsel %vm395_vm3, %v366_v0, %v367_v48 }
  0x61   : > { %v452_v7 = vmul.f32 %v9697_v4, %v403_v28 }
  0x7e   : > { %v8733_v33 = vpop.permute.xlu2 %8732 }
  0x7f   : > { %v8735_v61 = vunpack.i.h.bf16 %v8733_v33  ;;  %v8734_v11 = vunpack.i.l.bf16 %v8733_v33 }
  0x90   : > { %v8723_v55 = vpop.permute.xlu1 %8722  ;;  %v8713_v15 = vpop.permute.xlu0 %8712 }
  0x91   : > { %v8725_v8 = vunpack.i.h.bf16 %v8723_v55  ;;  %v8724_v2 = vunpack.i.l.bf16 %v8723_v55  ;;  %v8715_v55 = vunpack.i.h.bf16 %v8713_v15 }
  0x93   : > { %v816_v12 = vsel %vm813_vm5, %v430_v52, %v8724_v2  ;;  %v817_v20 = vsel %vm813_vm5, %v424_v14, %v8725_v8  ;;  %v8738_v14 = vpop.permute.xlu2 %8737  ;;  %v428_v52 = vmul.f32 %v9697_v4, %v9895_v26  ;;  %v815_v26 = vsel %vm813_vm5, %v9910_v32, %v8715_v55 }
  0x94   : > { %v849_v31 = vsel %vm846_vm6, %v816_v12, %v8734_v11  ;;  %v850_v33 = vsel %vm846_vm6, %v817_v20, %v8735_v61  ;;  %v8714_v61 = vunpack.i.l.bf16 %v8713_v15  ;;  %v8846_v11 = vpack.i.bf16 %v544_v39, %v505_v35 }
  0x95   : > { %v10024_v29 = vpack.c.bf16 %v850_v33, %v849_v31  ;;  %v8740_v2 = vunpack.i.h.bf16 %v8738_v14  ;;  %v8739_v21 = vunpack.i.l.bf16 %v8738_v14  ;;  %v369_v32 = vrot.slane %v9766_v46, 7 }
  0x96   : > { %8847 = vrot.lane.b32.xlu0 %v8846_v11, %s9594_s19  ;;  %v814_v0 = vsel %vm813_vm5, %v428_v52, %v8714_v61  ;;  %v370_v11 = vrot.slane %v9793_v62, 7  ;;  %v432_v55 = vmul.f32 %v9697_v4, %v423_v51  ;;  %v8841_v46 = vpack.i.bf16 %v9998_v49, %v9947_v3 }
  0x98   : > { %v8728_v8 = vpop.permute.xlu1 %8727  ;;  %v8718_v25 = vpop.permute.xlu0 %8717  ;;  %8842 = vrot.lane.b32.xlu2 %v8841_v46, %s9593_s18 }
  0x99   : > { %v8730_v12 = vunpack.i.h.bf16 %v8728_v8  ;;  %v8729_v20 = vunpack.i.l.bf16 %v8728_v8  ;;  %v8720_v31 = vunpack.i.h.bf16 %v8718_v25  ;;  %v8719_v33 = vunpack.i.l.bf16 %v8718_v25 }
  0x9b   : > { %v838_v48 = vsel %vm813_vm5, %v452_v7, %v8729_v20  ;;  %v839_v15 = vsel %vm813_vm5, %v9937_v54, %v8730_v12  ;;  %v847_v28 = vsel %vm846_vm6, %v814_v0, %v8719_v33  ;;  %v848_v35 = vsel %vm846_vm6, %v815_v26, %v8720_v31  ;;  %v8753_v61 = vpop.permute.xlu2 %8752 }
  0x9c   : > { %v871_v14 = vsel %vm846_vm6, %v838_v48, %v8739_v21  ;;  %v872_v39 = vsel %vm846_vm6, %v839_v15, %v8740_v2  ;;  %v879_v8 = vpack.c.bf16 %v848_v35, %v847_v28  ;;  %v10058_v7 = vunpack.c.h.bf16 %v9994_v47 }
  0x9d   : > { %v10048_v52 = vpack.c.bf16 %v872_v39, %v871_v14  ;;  %v8755_v21 = vunpack.i.h.bf16 %v8753_v61  ;;  %v8754_v12 = vunpack.i.l.bf16 %v8753_v61  ;;  %v420_v20 = vsel %vm395_vm3, %v369_v32, %v370_v11 }
  0x9e   : > { %7829 = vmatmul.msk.bf16.vlgmr.msra.gmra.mxu0 %vm911_vm7, %v879_v8  ;;  %7849 = vmatmul.msk.bf16.vlgmr.msra.gmra.mxu1 %vm911_vm7, %v879_v8  ;;  %v454_v47 = vmul.f32 %v9697_v4, %v9975_v10  ;;  %v8851_v0 = vpack.i.bf16 %v10058_v7, %v10001_v5  ;;  %v421_v10 = vsel %vm395_vm3, %v368_v53, %v369_v32 }
  0x9f   : > { %7872 = vmatmul.msk.bf16.vlgmr.msra.gmra.mxu2 %vm911_vm7, %v879_v8  ;;  %7841 = vmatmul.msk.bf16.vlgmr.msra.gmra.mxu3 %vm911_vm7, %v10048_v52  ;;  %v434_v32 = vmul.f32 %v9697_v4, %v421_v10 }
  0xa0   : > { %v8748_v54 = vpop.permute.xlu1 %8747  ;;  %v8743_v2 = vpop.permute.xlu0 %8742  ;;  %8664 = vmatpush.bf16.msra.mxu3 %v9916_v50  ;;  %8852 = vrot.lane.b32.xlu1 %v8851_v0, %s9593_s18 }
  0xa1   : > { %v8745_v25 = vunpack.i.h.bf16 %v8743_v2  ;;  %v8744_v31 = vunpack.i.l.bf16 %v8743_v2  ;;  %v8750_v26 = vunpack.i.h.bf16 %v8748_v54  ;;  %v8749_v48 = vunpack.i.l.bf16 %v8748_v54 }
  0xa3   : > { %v818_v51 = vsel %vm813_vm5, %v432_v55, %v8744_v31  ;;  %v819_v33 = vsel %vm813_vm5, %v422_v45, %v8745_v25  ;;  %v840_v14 = vsel %vm813_vm5, %v454_v47, %v8749_v48  ;;  %v841_v39 = vsel %vm813_vm5, %v9991_v44, %v8750_v26  ;;  %v8768_v53 = vpop.permute.xlu2 %8767 }
  0xa4   : > { %v851_v15 = vsel %vm846_vm6, %v818_v51, %v8754_v12  ;;  %v852_v50 = vsel %vm846_vm6, %v819_v33, %v8755_v21  ;;  %8665 = vmatpush.bf16.msra.mxu3 %v9929_v17  ;;  %v391_v17 = vrot.slane %v9751_v36, 7  ;;  %v392_v36 = vrot.slane %v9783_v57, 7 }
  0xa5   : > { %v10077_v28 = vpack.c.bf16 %v852_v50, %v851_v15  ;;  %v8770_v12 = vunpack.i.h.bf16 %v8768_v53  ;;  %v8769_v46 = vunpack.i.l.bf16 %v8768_v53  ;;  %v10107_v25 = vunpack.c.l.bf16 %v9970_v30 }
  0xa6   : > { %v399_v44 = vsel %vm395_vm3, %v390_v9, %v391_v17  ;;  %v483_v9 = vrot.slane %v9984_v38, 1  ;;  %v398_v15 = vsel %vm395_vm3, %v391_v17, %v392_v36 }
  0xa7   : > { %v456_v31 = vmul.f32 %v9697_v4, %v399_v44  ;;  %v8861_v26 = vpack.i.bf16 %v9984_v38, %v10107_v25  ;;  %v482_v48 = vrot.slane %v10107_v25, 1 }
  0xa8   : > { %v8763_v45 = vpop.permute.xlu1 %8762  ;;  %v8758_v35 = vpop.permute.xlu0 %8757  ;;  %v500_v50 = vsel %vm492_vm2, %v483_v9, %v484_v37 }
  0xa9   : > { %v8760_v8 = vunpack.i.h.bf16 %v8758_v35  ;;  %v8759_v61 = vunpack.i.l.bf16 %v8758_v35  ;;  %v8765_v42 = vunpack.i.h.bf16 %v8763_v45  ;;  %v8764_v21 = vunpack.i.l.bf16 %v8763_v45  ;;  %8862 = vrot.lane.b32.xlu0 %v8861_v26, %s9593_s18 }
  0xaa   : > { %v501_v35 = vsel %vm492_vm2, %v482_v48, %v483_v9  ;;  %v842_v37 = vsel %vm813_vm5, %v456_v31, %v8769_v46 }
  0xab   : > { %v873_v54 = vsel %vm846_vm6, %v840_v14, %v8759_v61  ;;  %v874_v55 = vsel %vm846_vm6, %v841_v39, %v8760_v8  ;;  %v820_v51 = vsel %vm813_vm5, %v434_v32, %v8764_v21  ;;  %v821_v57 = vsel %vm813_vm5, %v420_v20, %v8765_v42 }
  0xac   : > { %v10090_v2 = vpack.c.bf16 %v874_v55, %v873_v54  ;;  %v548_v39 = vmul.f32 %v9722_v18, %v500_v50  ;;  %v843_v61 = vsel %vm813_vm5, %v398_v15, %v8770_v12  ;;  %v8783_v55 = vpop.permute.xlu2 %8782  ;;  %v393_v32 = vrot.slane %v9785_v58, 7 }
  0xad   : > { %v8785_v26 = vunpack.i.h.bf16 %v8783_v55 }
  0xae   : > { %7830 = vmatmul.msk.bf16.gmra.mxu0 %vm911_vm7, %v10024_v29  ;;  %7850 = vmatmul.msk.bf16.gmra.mxu1 %vm911_vm7, %v10024_v29  ;;  %v8866_v54 = vpack.i.bf16 %v548_v39, %v501_v35  ;;  %v397_v44 = vsel %vm395_vm3, %v392_v36, %v393_v32  ;;  %v396_v31 = vsel %vm395_vm3, %v393_v32, %v394_v24  ;;  %v375_v32 = vrot.slane %v9835_v41, 7 }
  0xaf   : > { %7873 = vmatmul.msk.bf16.gmra.mxu2 %vm911_vm7, %v10024_v29  ;;  %7842 = vmatmul.msk.bf16.gmra.mxu3 %vm911_vm7, %v10090_v2  ;;  %v481_v29 = vrot.slane %v10058_v7, 1  ;;  %v458_v58 = vmul.f32 %v9697_v4, %v397_v44 }
  0xb0   : > { %v8778_v34 = vpop.permute.xlu1 %8777  ;;  %v8773_v47 = vpop.permute.xlu0 %8772  ;;  %8867 = vrot.lane.b32.xlu1 %v8866_v54, %s9594_s19 }
  0xb1   : > { %v8775_v33 = vunpack.i.h.bf16 %v8773_v47  ;;  %v8774_v0 = vunpack.i.l.bf16 %v8773_v47  ;;  %v8780_v30 = vunpack.i.h.bf16 %v8778_v34  ;;  %v8779_v10 = vunpack.i.l.bf16 %v8778_v34 }
  0xb2   : > { %v502_v8 = vsel %vm492_vm2, %v481_v29, %v482_v48  ;;  %v503_v16 = vsel %vm492_vm2, %v480_v63, %v481_v29  ;;  %v8784_v48 = vunpack.i.l.bf16 %v8783_v55 }
  0xb3   : > { %v853_v20 = vsel %vm846_vm6, %v820_v51, %v8774_v0  ;;  %v854_v45 = vsel %vm846_vm6, %v821_v57, %v8775_v33  ;;  %v546_v17 = vmul.f32 %v9722_v18, %v502_v8  ;;  %v875_v21 = vsel %vm846_vm6, %v842_v37, %v8779_v10 }
  0xb4   : > { %v882_v14 = vpack.c.bf16 %v854_v45, %v853_v20  ;;  %v876_v53 = vsel %vm846_vm6, %v843_v61, %v8780_v30  ;;  %v8798_v9 = vpop.permute.xlu2 %8797  ;;  %v371_v33 = vrot.slane %v9787_v59, 7  ;;  %v373_v45 = vrot.slane %v9813_v23, 7 }
  0xb5   : > { %v8856_v42 = vpack.i.bf16 %v546_v17, %v503_v16  ;;  %v10143_v63 = vpack.c.bf16 %v876_v53, %v875_v21  ;;  %v8800_v47 = vunpack.i.h.bf16 %v8798_v9  ;;  %v8799_v51 = vunpack.i.l.bf16 %v8798_v9 }
  0xb6   : > { %v419_v24 = vsel %vm395_vm3, %v370_v11, %v371_v33  ;;  %v418_v15 = vsel %vm395_vm3, %v371_v33, %v372_v43  ;;  %v417_v39 = vsel %vm395_vm3, %v372_v43, %v373_v45  ;;  %v377_v33 = vrot.slane %v9861_v60, 7 }
  0xb7   : > { %8857 = vrot.lane.b32.xlu2 %v8856_v42, %s9594_s19  ;;  %v436_v59 = vmul.f32 %v9697_v4, %v419_v24  ;;  %v823_v62 = vsel %vm813_vm5, %v418_v15, %v8785_v26  ;;  %v438_v16 = vmul.f32 %v9697_v4, %v417_v39  ;;  %v378_v24 = vrot.slane %v9897_v27, 7  ;;  %s9595_s19 = smov 32  }
  0xb8   : > { %v8788_v12 = vpop.permute.xlu0 %8787  ;;  %v8793_v30 = vpop.permute.xlu1 %8792 }
  0xb9   : > { %v8790_v46 = vunpack.i.h.bf16 %v8788_v12  ;;  %v8789_v34 = vunpack.i.l.bf16 %v8788_v12  ;;  %v8795_v50 = vunpack.i.h.bf16 %v8793_v30  ;;  %v8794_v22 = vunpack.i.l.bf16 %v8793_v30 }
  0xba   : > { %v822_v10 = vsel %vm813_vm5, %v436_v59, %v8784_v48  ;;  %v376_v12 = vrot.slane %v9859_v56, 7  ;;  %v412_v27 = vsel %vm395_vm3, %v377_v33, %v378_v24 }
  0xbb   : > { %v845_v36 = vsel %vm813_vm5, %v396_v31, %v8790_v46  ;;  %v844_v57 = vsel %vm813_vm5, %v458_v58, %v8789_v34  ;;  %v855_v11 = vsel %vm846_vm6, %v822_v10, %v8794_v22  ;;  %v856_v20 = vsel %vm846_vm6, %v823_v62, %v8795_v50 }
  0xbc   : > { %v878_v29 = vsel %vm846_vm6, %v845_v36, %v8800_v47  ;;  %v883_v35 = vpack.c.bf16 %v856_v20, %v855_v11  ;;  %v8813_v46 = vpop.permute.xlu2 %8812  ;;  %v414_v56 = vsel %vm395_vm3, %v375_v32, %v376_v12  ;;  %v413_v59 = vsel %vm395_vm3, %v376_v12, %v377_v33 }
  0xbd   : > { %v8815_v9 = vunpack.i.h.bf16 %v8813_v46  ;;  %v8814_v41 = vunpack.i.l.bf16 %v8813_v46  ;;  %v442_v48 = vmul.f32 %v9697_v4, %v413_v59  ;;  %v382_v12 = vrot.slane %v9998_v49, 7 }
  0xbe   : > { %7831 = vmatmul.msk.bf16.gmra.mxu0 %vm911_vm7, %v10077_v28  ;;  %7851 = vmatmul.msk.bf16.gmra.mxu1 %vm911_vm7, %v10077_v28 }
  0xbf   : > { %7874 = vmatmul.msk.bf16.gmra.mxu2 %vm911_vm7, %v10077_v28  ;;  %7843 = vmatmul.msk.bf16.gmra.mxu3 %vm911_vm7, %v10143_v63  ;;  %v877_v28 = vsel %vm846_vm6, %v844_v57, %v8799_v51  ;;  %v827_v36 = vsel %vm813_vm5, %v414_v56, %v8815_v9 }
  0xc0   : > { %v10165_v0 = vpack.c.bf16 %v878_v29, %v877_v28  ;;  %v8803_v8 = vpop.permute.xlu0 %8802  ;;  %v8808_v61 = vpop.permute.xlu1 %8807 }
  0xc1   : > { %v8805_v37 = vunpack.i.h.bf16 %v8803_v8  ;;  %v8804_v23 = vunpack.i.l.bf16 %v8803_v8  ;;  %v8810_v17 = vunpack.i.h.bf16 %v8808_v61  ;;  %v8809_v54 = vunpack.i.l.bf16 %v8808_v61 }
  0xc3   : > { %v824_v42 = vsel %vm813_vm5, %v438_v16, %v8804_v23 }
  0xc4   : > { %v857_v21 = vsel %vm846_vm6, %v824_v42, %v8809_v54  ;;  %v8828_v15 = vpop.permute.xlu2 %8827 }
  0xc5   : > { %v8830_v50 = vunpack.i.h.bf16 %v8828_v15  ;;  %v8829_v22 = vunpack.i.l.bf16 %v8828_v15  ;;  %v384_v15 = vrot.slane %v10058_v7, 7 }
  0xc8   : > { %v8818_v31 = vpop.permute.xlu0 %8817  ;;  %v8823_v26 = vpop.permute.xlu1 %8822 }
  0xc9   : > { %v8820_v47 = vunpack.i.h.bf16 %v8818_v31  ;;  %v8819_v51 = vunpack.i.l.bf16 %v8818_v31  ;;  %v8825_v30 = vunpack.i.h.bf16 %v8823_v26  ;;  %v8824_v60 = vunpack.i.l.bf16 %v8823_v26 }
  0xcb   : > { %v860_v29 = vsel %vm846_vm6, %v827_v36, %v8820_v47  ;;  %v829_v62 = vsel %vm813_vm5, %v412_v27, %v8825_v30  ;;  %v828_v10 = vsel %vm813_vm5, %v442_v48, %v8824_v60 }
  0xcc   : > { %v861_v11 = vsel %vm846_vm6, %v828_v10, %v8829_v22  ;;  %v862_v20 = vsel %vm846_vm6, %v829_v62, %v8830_v50 }
  0xce   : > { %7832 = vmatmul.msk.bf16.gmra.mxu0 %vm911_vm7, %v882_v14  ;;  %7852 = vmatmul.msk.bf16.gmra.mxu1 %vm911_vm7, %v882_v14 }
  0xcf   : > { %7875 = vmatmul.msk.bf16.gmra.mxu2 %vm911_vm7, %v882_v14  ;;  %7844 = vmatmul.msk.bf16.gmra.mxu3 %vm911_vm7, %v10165_v0  ;;  %v374_v14 = vrot.slane %v9833_v40, 7 }
  0xd0   : > { %v8833_v8 = vpop.permute.xlu0 %8832  ;;  %v8838_v23 = vpop.permute.xlu1 %8837 }
  0xd1   : > { %v416_v40 = vsel %vm395_vm3, %v373_v45, %v374_v14  ;;  %v415_v58 = vsel %vm395_vm3, %v374_v14, %v375_v32  ;;  %v379_v45 = vrot.slane %v9949_v6, 7  ;;  %v380_v14 = vrot.slane %v9945_v19, 7 }
  0xd2   : > { %v825_v55 = vsel %vm813_vm5, %v416_v40, %v8805_v37  ;;  %v440_v34 = vmul.f32 %v9697_v4, %v415_v58  ;;  %v8835_v37 = vunpack.i.h.bf16 %v8833_v8  ;;  %v8834_v6 = vunpack.i.l.bf16 %v8833_v8 }
  0xd3   : > { %v858_v53 = vsel %vm846_vm6, %v825_v55, %v8810_v17  ;;  %v411_v39 = vsel %vm395_vm3, %v378_v24, %v379_v45  ;;  %v410_v19 = vsel %vm395_vm3, %v379_v45, %v380_v14  ;;  %v8840_v61 = vunpack.i.h.bf16 %v8838_v23 }
  0xd4   : > { %v884_v44 = vpack.c.bf16 %v858_v53, %v857_v21  ;;  %v826_v57 = vsel %vm813_vm5, %v440_v34, %v8814_v41  ;;  %v444_v16 = vmul.f32 %v9697_v4, %v411_v39  ;;  %v8839_v40 = vunpack.i.l.bf16 %v8838_v23 }
  0xd5   : > { %v859_v28 = vsel %vm846_vm6, %v826_v57, %v8819_v51  ;;  %v831_v17 = vsel %vm813_vm5, %v410_v19, %v8835_v37  ;;  %v381_v21 = vrot.slane %v9947_v3, 7 }
  0xd6   : > { %v885_v43 = vpack.c.bf16 %v860_v29, %v859_v28  ;;  %v830_v54 = vsel %vm813_vm5, %v444_v16, %v8834_v6  ;;  %v864_v42 = vsel %vm846_vm6, %v831_v17, %v8840_v61  ;;  %v385_v6 = vrot.slane %v10107_v25, 7 }
  0xd7   : > { %v863_v55 = vsel %vm846_vm6, %v830_v54, %v8839_v40  ;;  %v409_v58 = vsel %vm395_vm3, %v380_v14, %v381_v21  ;;  %v408_v49 = vsel %vm395_vm3, %v381_v21, %v382_v12 }
  0xd8   : > { %v887_v53 = vpack.c.bf16 %v864_v42, %v863_v55  ;;  %v446_v3 = vmul.f32 %v9697_v4, %v409_v58  ;;  %v405_v55 = vsel %vm395_vm3, %v384_v15, %v385_v6 }
  0xd9   : > { %v450_v25 = vmul.f32 %v9697_v4, %v405_v55 }
  0xde   : > { %7833 = vmatmul.msk.bf16.gmra.mxu0 %vm911_vm7, %v883_v35  ;;  %7853 = vmatmul.msk.bf16.gmra.mxu1 %vm911_vm7, %v883_v35 }
  0xdf   : > { %7876 = vmatmul.msk.bf16.gmra.mxu2 %vm911_vm7, %v883_v35  ;;  %7861 = vmatmul.msk.bf16.vlgmr.msrb.gmra.mxu3 %vm911_vm7, %v10048_v52  ;;  %v886_v35 = vpack.c.bf16 %v862_v20, %v861_v11 }
  0xee   : > { %7834 = vmatmul.msk.bf16.gmra.mxu0 %vm911_vm7, %v884_v44  ;;  %7854 = vmatmul.msk.bf16.gmra.mxu1 %vm911_vm7, %v884_v44 }
  0xef   : > { %7877 = vmatmul.msk.bf16.gmra.mxu2 %vm911_vm7, %v884_v44  ;;  %7862 = vmatmul.msk.bf16.gmra.mxu3 %vm911_vm7, %v10090_v2 }
  0xf2   : > { %v8843_v46 = vpop.permute.xlu2 %8842 }
  0xf3   : > { %v8845_v34 = vunpack.i.h.bf16 %v8843_v46  ;;  %v8844_v9 = vunpack.i.l.bf16 %v8843_v46 }
  0xf5   : > { %v832_v28 = vsel %vm813_vm5, %v446_v3, %v8844_v9 }
  0xfe   : > { %7835 = vmatmul.msk.bf16.gmra.mxu0 %vm911_vm7, %v885_v43  ;;  %7855 = vmatmul.msk.bf16.gmra.mxu1 %vm911_vm7, %v885_v43 }
  0xff   : > { %7878 = vmatmul.msk.bf16.gmra.mxu2 %vm911_vm7, %v885_v43  ;;  %7863 = vmatmul.msk.bf16.gmra.mxu3 %vm911_vm7, %v10143_v63  ;;  %v383_v43 = vrot.slane %v10001_v5, 7 }
 0x101   : > { %v407_v27 = vsel %vm395_vm3, %v382_v12, %v383_v43  ;;  %v406_v7 = vsel %vm395_vm3, %v383_v43, %v384_v15  ;;  %v404_v12 = vsel %vm395_vm3, %v385_v6, %v386_v13 }
 0x102   : > { %v448_v5 = vmul.f32 %v9697_v4, %v407_v27 }
 0x108   : > { %v8848_v41 = vpop.permute.xlu0 %8847 }
 0x109   : > { %v8850_v36 = vunpack.i.h.bf16 %v8848_v41  ;;  %v8849_v57 = vunpack.i.l.bf16 %v8848_v41 }
 0x10b   : > { %v865_v29 = vsel %vm846_vm6, %v832_v28, %v8849_v57 }
 0x10e   : > { %7836 = vmatmul.msk.bf16.gmra.mxu0 %vm911_vm7, %v886_v35  ;;  %7856 = vmatmul.msk.bf16.gmra.mxu1 %vm911_vm7, %v886_v35 }
 0x10f   : > { %7879 = vmatmul.msk.bf16.gmra.mxu2 %vm911_vm7, %v886_v35  ;;  %7864 = vmatmul.msk.bf16.gmra.mxu3 %vm911_vm7, %v10165_v0 }
 0x111   : > { %v8858_v10 = vpop.permute.xlu2 %8857 }
 0x112   : > { %v8853_v50 = vpop.permute.xlu1 %8852  ;;  %v8860_v14 = vunpack.i.h.bf16 %v8858_v10  ;;  %v8859_v39 = vunpack.i.l.bf16 %v8858_v10 }
 0x113   : > { %v8855_v22 = vunpack.i.h.bf16 %v8853_v50  ;;  %v8854_v62 = vunpack.i.l.bf16 %v8853_v50 }
 0x115   : > { %v835_v8 = vsel %vm813_vm5, %v406_v7, %v8855_v22 }
 0x116   : > { %v868_v37 = vsel %vm846_vm6, %v835_v8, %v8860_v14 }
 0x11b   : > { %v973_v32 = vpop.f32.mrf.mxu0  ;;  %v10249_v44 = vpop.f32.mrf.mxu1 }
 0x11c   : > { %v8863_v42 = vpop.permute.xlu0 %8862 }
 0x11d   : > { %v8865_v21 = vunpack.i.h.bf16 %v8863_v42 }
 0x11e   : > { %7837 = vmatmul.msk.bf16.gmra.mxu0 %vm911_vm7, %v887_v53  ;;  %7857 = vmatmul.msk.bf16.gmra.mxu1 %vm911_vm7, %v887_v53 }
 0x11f   : > { %7880 = vmatmul.msk.bf16.gmra.mxu2 %vm911_vm7, %v887_v53  ;;  %7884 = vmatmul.msk.bf16.vlgmr.msra.gmra.mxu3 %vm911_vm7, %v10048_v52  ;;  %v833_v52 = vsel %vm813_vm5, %v408_v49, %v8845_v34  ;;  %v8864_v53 = vunpack.i.l.bf16 %v8863_v42  ;;  %v837_v49 = vsel %vm813_vm5, %v404_v12, %v8865_v21 }
 0x120   : > { %v866_v33 = vsel %vm846_vm6, %v833_v52, %v8850_v36 }
 0x121   : > { %v888_v26 = vpack.c.bf16 %v866_v33, %v865_v29  ;;  %v836_v36 = vsel %vm813_vm5, %v450_v25, %v8864_v53 }
 0x122   : > { %v10262_v31 = vpop.f32.mrf.mxu2  ;;  %v10264_v56 = vpop.f32.mrf.mxu3 }
 0x123   : > { %16622 = vst [vmem:[#allocation8_spill] sm:$0xff] %v10262_v31  ;;  %v10266_v47 = vpop.f32.mrf.mxu0  ;;  %v10268_v51 = vpop.f32.mrf.mxu1 }
 0x12a   : > { %v10275_v24 = vpop.f32.mrf.mxu2  ;;  %v10277_v59 = vpop.f32.mrf.mxu3 }
 0x12b   : > { %16623 = vst [vmem:[#allocation9_spill] sm:$0xff] %v10275_v24  ;;  %v978_v48 = vpop.f32.mrf.mxu0  ;;  %v1111_v30 = vpop.f32.mrf.mxu1 }
 0x12c   : > { %v1112_v60 = vadd.f32 %v1111_v30, %v973_v32  ;;  %v8868_v32 = vpop.permute.xlu1 %8867 }
 0x12d   : > { %v8869_v41 = vunpack.i.l.bf16 %v8868_v32 }
 0x12e   : > { %7838 = vmatmul.msk.bf16.gmra.mxu0 %vm911_vm7, %v888_v26  ;;  %7858 = vmatmul.msk.bf16.gmra.mxu1 %vm911_vm7, %v888_v26 }
 0x12f   : > { %7881 = vmatmul.msk.bf16.gmra.mxu2 %vm911_vm7, %v888_v26  ;;  %7885 = vmatmul.msk.bf16.gmra.mxu3 %vm911_vm7, %v10090_v2  ;;  %v834_v2 = vsel %vm813_vm5, %v448_v5, %v8854_v62  ;;  %v869_v38 = vsel %vm846_vm6, %v836_v36, %v8869_v41 }
 0x130   : > { %v867_v16 = vsel %vm846_vm6, %v834_v2, %v8859_v39 }
 0x131   : > { %v889_v61 = vpack.c.bf16 %v868_v37, %v867_v16 }
 0x132   : > { %v1216_v11 = vpop.f32.mrf.mxu2  ;;  %v10290_v20 = vpop.f32.mrf.mxu3 }
 0x133   : > { %v10292_v45 = vpop.f32.mrf.mxu0  ;;  %v10294_v35 = vpop.f32.mrf.mxu1 }
 0x13a   : > { %v10301_v23 = vpop.f32.mrf.mxu2  ;;  %v10303_v19 = vpop.f32.mrf.mxu3 }
 0x13b   : > { %v983_v40 = vpop.f32.mrf.mxu0  ;;  %v1116_v17 = vpop.f32.mrf.mxu1 }
 0x13c   : > { %v1117_v54 = vadd.f32 %v1116_v17, %v978_v48 }
 0x13e   : > { %7839 = vmatmul.msk.bf16.gmra.mxu0 %vm911_vm7, %v889_v61  ;;  %7859 = vmatmul.msk.bf16.gmra.mxu1 %vm911_vm7, %v889_v61 }
 0x13f   : > { %7882 = vmatmul.msk.bf16.gmra.mxu2 %vm911_vm7, %v889_v61  ;;  %7886 = vmatmul.msk.bf16.gmra.mxu3 %vm911_vm7, %v10143_v63  ;;  %v8870_v63 = vunpack.i.h.bf16 %v8868_v32 }
 0x141   : > { %v870_v57 = vsel %vm846_vm6, %v837_v49, %v8870_v63 }
 0x142   : > { %v1221_v58 = vpop.f32.mrf.mxu2  ;;  %v10317_v46 = vpop.f32.mrf.mxu3  ;;  %v890_v28 = vpack.c.bf16 %v870_v57, %v869_v38 }
 0x143   : > { %16624 = vst [vmem:[#allocation10_spill] sm:$0xff] %v10317_v46  ;;  %v10319_v3 = vadd.f32 %v1221_v58, %v1112_v60  ;;  %v10321_v34 = vpop.f32.mrf.mxu0  ;;  %v10323_v9 = vpop.f32.mrf.mxu1 }
 0x14a   : > { %v10329_v13 = vpop.f32.mrf.mxu2  ;;  %v10331_v52 = vpop.f32.mrf.mxu3 }
 0x14b   : > { %16625 = vst [vmem:[#allocation11_spill] sm:$0xff] %v10331_v52  ;;  %v988_v29 = vpop.f32.mrf.mxu0  ;;  %v1121_v33 = vpop.f32.mrf.mxu1  ;;  %v1119_v52 = vadd.f32 %v10323_v9, %v10292_v45 }
 0x14c   : > { %v1122_v43 = vadd.f32 %v1121_v33, %v983_v40 }
 0x14e   : > { %7840 = vmatmul.msk.bf16.gmra.mxu0 %vm911_vm7, %v890_v28  ;;  %7860 = vmatmul.msk.bf16.gmra.mxu1 %vm911_vm7, %v890_v28 }
 0x14f   : > { %7883 = vmatmul.msk.bf16.gmra.mxu2 %vm911_vm7, %v890_v28  ;;  %7887 = vmatmul.msk.bf16.gmra.mxu3 %vm911_vm7, %v10165_v0 }
 0x152   : > { %v1226_v26 = vpop.f32.mrf.mxu2  ;;  %v1048_v48 = vpop.f32.mrf.mxu3 }
 0x153   : > { %v10338_v30 = vadd.f32 %v1226_v26, %v1117_v54  ;;  %v1053_v60 = vmul.f32 0.0, %v1048_v48  ;;  %v10340_v15 = vpop.f32.mrf.mxu0  ;;  %v10342_v27 = vpop.f32.mrf.mxu1 }
 0x155   : > { %v1107_v50 = vadd.f32 %v10249_v44, %v1053_v60 }
 0x157   : > { %v1323_v5 = vadd.f32 %v1216_v11, %v1107_v50 }
 0x15a   : > { %v10345_v22 = vpop.f32.mrf.mxu2  ;;  %v1050_v62 = vpop.f32.mrf.mxu3 }
 0x15b   : > { %v993_v10 = vpop.f32.mrf.mxu0  ;;  %v1126_v7 = vpop.f32.mrf.mxu1  ;;  %v1054_v60 = vmul.f32 0.0, %v1050_v62 }
 0x15c   : > { %v1127_v14 = vadd.f32 %v1126_v7, %v988_v29 }
 0x15d   : > { %v1109_v7 = vadd.f32 %v10268_v51, %v1054_v60 }
 0x162   : > { %v1231_v39 = vpop.f32.mrf.mxu2  ;;  %v10347_v0 = vpop.f32.mrf.mxu3 }
 0x163   : > { %v10349_v8 = vadd.f32 %v1231_v39, %v1122_v43  ;;  %v10351_v2 = vpop.f32.mrf.mxu0  ;;  %v10353_v16 = vpop.f32.mrf.mxu1 }
 0x16a   : > { %v10355_v37 = vpop.f32.mrf.mxu2  ;;  %v10357_v6 = vpop.f32.mrf.mxu3 }
 0x16b   : > { %v998_v44 = vpop.f32.mrf.mxu0  ;;  %v1131_v11 = vpop.f32.mrf.mxu1 }
 0x16c   : > { %v1132_v61 = vadd.f32 %v1131_v11, %v993_v10  ;;  %v1324_v11 = vadd.f32 %v10301_v23, %v1109_v7  ;;  %v1114_v23 = vadd.f32 %v10294_v35, %v10266_v47  ;;  %v10451_v47 = vld [vmem:[%s16566_s4 + $0x18] sm:$0xff] }
 0x16d   : > { %16632 = vst [vmem:[#allocation18_spill] sm:$0xff] %v10451_v47  ;;  %1575 = vmatpush.msrb.mxu3 %v10451_v47  ;;  %3154 = vmatpush.msrb.mxu2 %v10451_v47  ;;  %v1129_v47 = vadd.f32 %v10353_v16, %v10340_v15  ;;  %v10521_v15 = vld [vmem:[%s16566_s4 + $0x10] sm:$0xff] }
 0x16f   : > { %1576 = vmatpush.msrb.mxu3 %v10521_v15  ;;  %3155 = vmatpush.msrb.mxu2 %v10521_v15 }
 0x172   : > { %v1236_v40 = vpop.f32.mrf.mxu2  ;;  %v10359_v17 = vpop.f32.mrf.mxu3 }
 0x173   : > { %v10361_v54 = vadd.f32 %v1236_v40, %v1127_v14  ;;  %v10363_v55 = vpop.f32.mrf.mxu0  ;;  %v10365_v42 = vpop.f32.mrf.mxu1 }
 0x17a   : > { %v10367_v25 = vpop.f32.mrf.mxu2  ;;  %v10369_v21 = vpop.f32.mrf.mxu3 }
 0x17b   : > { %v10371_v53 = vpop.f32.mrf.mxu0  ;;  %v1136_v32 = vpop.f32.mrf.mxu1 }
 0x17c   : > { %v10373_v12 = vadd.f32 %v1136_v32, %v998_v44  ;;  %v10411_v44 = vld [vmem:[%s16565_s3] sm:$0x7] }
 0x17d   : > { %16628 = vst [vmem:[#allocation14_spill] sm:$0xff] %v10411_v44 }
 0x182   : > { %v1241_v58 = vpop.f32.mrf.mxu2  ;;  %v10375_v63 = vpop.f32.mrf.mxu3 }
 0x183   : > { %v10377_v41 = vadd.f32 %v1241_v58, %v1132_v61  ;;  %v10379_v49 = vpop.f32.mrf.mxu0  ;;  %v10381_v36 = vpop.f32.mrf.mxu1  ;;  %v10415_v61 = vperm.slane %v10411_v44, 0 }
 0x185   : > { %v10422_v51 = vadd.f32 %v10415_v61, %v1324_v11  ;;  %v10429_v60 = vadd.f32 %v10415_v61, %v1323_v5  ;;  %v10437_v4 = vadd.f32 %v10415_v61, %v10319_v3  ;;  %v1326_v11 = vadd.f32 %v10329_v13, %v1114_v23 }
 0x187   : > { %16629 = vst [vmem:[#allocation15_spill] sm:$0xff] %v10422_v51  ;;  %v1460_v7 = vmul.f32 %v10422_v51, %v10422_v51  ;;  %v1459_v18 = vmul.f32 %v10429_v60, %v10429_v60  ;;  %v1391_v5 = vsel %vm1389_vm8, %v10422_v51, 0.0  ;;  %v1390_v35 = vsel %vm1389_vm8, %v10429_v60, 0.0 }
 0x188   : > { %16630 = vst [vmem:[#allocation16_spill] sm:$0xff] %v10429_v60  ;;  %v1392_v51 = vadd.f32 %v1391_v5, %v1390_v35  ;;  %v1461_v24 = vmul.f32 %v10437_v4, %v10437_v4  ;;  %v10465_v31 = vadd.f32 %v10415_v61, %v1326_v11  ;;  %v10477_v35 = vadd.f32 %v10415_v61, %v10338_v30 }
 0x189   : > { %16631 = vst [vmem:[#allocation17_spill] sm:$0xff] %v10437_v4  ;;  %v1492_v3 = vsel %vm1389_vm8, %v1460_v7, 0.0  ;;  %v1393_v7 = vsel %vm1389_vm8, %v10437_v4, 0.0  ;;  %v1328_v11 = vadd.f32 %v10345_v22, %v1119_v52 }
 0x18a   : > { %v10383_v38 = vpop.f32.mrf.mxu2  ;;  %v10385_v57 = vpop.f32.mrf.mxu3  ;;  %16633 = vst [vmem:[#allocation19_spill] sm:$0xff] %v10465_v31  ;;  %v1494_v46 = vsel %vm1389_vm8, %v1461_v24, 0.0  ;;  %v1462_v5 = vmul.f32 %v10465_v31, %v10465_v31  ;;  %v1395_v45 = vsel %vm1389_vm8, %v10465_v31, 0.0  ;;  %v1397_v31 = vsel %vm1389_vm8, %v10477_v35, 0.0 }
 0x18b   : > { %v10387_v28 = vpop.f32.mrf.mxu0  ;;  %v10389_v29 = vpop.f32.mrf.mxu1  ;;  %v10496_v52 = vadd.f32 %v10415_v61, %v1328_v11 }
 0x18c   : > { %v1496_v30 = vsel %vm1389_vm8, %v1462_v5, 0.0 }
 0x18d   : > { %v1399_v16 = vsel %vm1389_vm8, %v10496_v52, 0.0 }
 0x192   : > { %v10391_v33 = vpop.f32.mrf.mxu2  ;;  %v10393_v43 = vpop.f32.mrf.mxu3 }
 0x193   : > { %16626 = vst [vmem:[#allocation12_spill] sm:$0xff] %v10393_v43  ;;  %v10395_v26 = vpop.f32.mrf.mxu0  ;;  %v10397_v48 = vpop.f32.mrf.mxu1  ;;  %v1394_v43 = vadd.f32 %v1393_v7, %v1392_v51  ;;  %v1124_v51 = vadd.f32 %v10342_v27, %v10321_v34  ;;  %v1464_v27 = vmul.f32 %v10496_v52, %v10496_v52 }
 0x195   : > { %v1396_v7 = vadd.f32 %v1395_v45, %v1394_v43  ;;  %v10508_v43 = vadd.f32 %v10415_v61, %v10349_v8 }
 0x197   : > { %v1398_v4 = vadd.f32 %v1397_v31, %v1396_v7  ;;  %v10536_v7 = vadd.f32 %v10415_v61, %v10361_v54  ;;  %v10550_v54 = vadd.f32 %v10415_v61, %v10377_v41 }
 0x199   : > { %16634 = vst [vmem:[#allocation20_spill] sm:$0xff] %v10536_v7 }
 0x19a   : > { %v10399_v50 = vpop.f32.mrf.mxu2  ;;  %v10401_v10 = vpop.f32.mrf.mxu3 }
 0x19b   : > { %16627 = vst [vmem:[#allocation13_spill] sm:$0xff] %v10401_v10  ;;  %v10404_v14 = vpop.f32.mrf.mxu0  ;;  %v10406_v39 = vpop.f32.mrf.mxu1  ;;  %v1491_v10 = vsel %vm1389_vm8, %v1459_v18, 0.0 }
 0x19c   : > { %v1493_v60 = vadd.f32 %v1492_v3, %v1491_v10 }
 0x19e   : > { %v1495_v18 = vadd.f32 %v1494_v46, %v1493_v60  ;;  %v1463_v46 = vmul.f32 %v10477_v35, %v10477_v35  ;;  %v1330_v60 = vadd.f32 %v10355_v37, %v1124_v51  ;;  %v1332_v37 = vadd.f32 %v10367_v25, %v1129_v47 }
 0x19f   : > { %v1400_v25 = vadd.f32 %v1399_v16, %v1398_v4  ;;  %v1500_v47 = vsel %vm1389_vm8, %v1464_v27, 0.0  ;;  %v1465_v51 = vmul.f32 %v10508_v43, %v10508_v43  ;;  %v1401_v4 = vsel %vm1389_vm8, %v10508_v43, 0.0 }
 0x1a0   : > { %v1497_v22 = vadd.f32 %v1496_v30, %v1495_v18  ;;  %v1498_v34 = vsel %vm1389_vm8, %v1463_v46, 0.0  ;;  %v10511_v11 = vadd.f32 %v10415_v61, %v1330_v60  ;;  %v1134_v30 = vadd.f32 %v10365_v42, %v10351_v2 }
 0x1a1   : > { %v10543_v60 = vadd.f32 %v10415_v61, %v1332_v37  ;;  %v1402_v27 = vadd.f32 %v1401_v4, %v1400_v25  ;;  %v1335_v2 = vadd.f32 %v10391_v33, %v10373_v12  ;;  %v1502_v42 = vsel %vm1389_vm8, %v1465_v51, 0.0 }
 0x1a2   : > { %v10417_v62 = vpop.f32.mrf.mxu2  ;;  %v10419_v40 = vpop.f32.mrf.mxu3  ;;  %v1499_v5 = vadd.f32 %v1498_v34, %v1497_v22  ;;  %v1466_v22 = vmul.f32 %v10511_v11, %v10511_v11  ;;  %v1334_v34 = vadd.f32 %v10383_v38, %v1134_v30  ;;  %v1467_v37 = vmul.f32 %v10536_v7, %v10536_v7 }
 0x1a3   : > { %v10424_v32 = vpop.f32.mrf.mxu0  ;;  %v10426_v58 = vpop.f32.mrf.mxu1  ;;  %16635 = vst [vmem:[#allocation21_spill] sm:$0xff] %v10543_v60  ;;  %v1139_v16 = vadd.f32 %v10381_v36, %v10363_v55  ;;  %v1468_v41 = vmul.f32 %v10543_v60, %v10543_v60  ;;  %v1405_v12 = vsel %vm1389_vm8, %v10536_v7, 0.0  ;;  %v1142_v51 = vadd.f32 %v10389_v29, %v10371_v53 }
 0x1a4   : > { %v1501_v46 = vadd.f32 %v1500_v47, %v1499_v5  ;;  %v1403_v5 = vsel %vm1389_vm8, %v10511_v11, 0.0  ;;  %v1504_v25 = vsel %vm1389_vm8, %v1466_v22, 0.0  ;;  %v10567_v33 = vadd.f32 %v10415_v61, %v1334_v34 }
 0x1a5   : > { %v1336_v30 = vadd.f32 %v10399_v50, %v1139_v16  ;;  %v1404_v36 = vadd.f32 %v1403_v5, %v1402_v27  ;;  %v10579_v22 = vadd.f32 %v10415_v61, %v1335_v2  ;;  %v1144_v34 = vadd.f32 %v10397_v48, %v10379_v49 }
 0x1a6   : > { %v1503_v38 = vadd.f32 %v1502_v42, %v1501_v46  ;;  %v1469_v46 = vmul.f32 %v10550_v54, %v10550_v54  ;;  %v1506_v53 = vsel %vm1389_vm8, %v1467_v37, 0.0  ;;  %v1407_v29 = vsel %vm1389_vm8, %v10543_v60, 0.0 }
 0x1a7   : > { %v1337_v50 = vadd.f32 %v10417_v62, %v1142_v51  ;;  %v1406_v27 = vadd.f32 %v1405_v12, %v1404_v36  ;;  %v1508_v5 = vsel %vm1389_vm8, %v1468_v41, 0.0  ;;  %v1409_v2 = vsel %vm1389_vm8, %v10550_v54, 0.0 }
 0x1a8   : > { %v1505_v16 = vadd.f32 %v1504_v25, %v1503_v38  ;;  %v1470_v49 = vmul.f32 %v10567_v33, %v10567_v33  ;;  %v10596_v48 = vadd.f32 %v10415_v61, %v1336_v30  ;;  %v1147_v37 = vadd.f32 %v10406_v39, %v10387_v28 }
 0x1a9   : > { %v1408_v62 = vadd.f32 %v1407_v29, %v1406_v27  ;;  %v1510_v38 = vsel %vm1389_vm8, %v1469_v46, 0.0  ;;  %v1471_v25 = vmul.f32 %v10579_v22, %v10579_v22  ;;  %v10606_v41 = vadd.f32 %v10415_v61, %v1337_v50 }
 0x1aa   : > { %v10444_v1 = vpop.f32.mrf.mxu2  ;;  %v10446_v44 = vpop.f32.mrf.mxu3  ;;  %v1507_v60 = vadd.f32 %v1506_v53, %v1505_v16  ;;  %v1149_v12 = vadd.f32 %v10426_v58, %v10395_v26  ;;  %v1413_v53 = vsel %vm1389_vm8, %v10579_v22, 0.0  ;;  %v1472_v29 = vmul.f32 %v10596_v48, %v10596_v48 }
 0x1ab   : > { %v10456_v13 = vpop.f32.mrf.mxu0  ;;  %v10458_v23 = vpop.f32.mrf.mxu1  ;;  %v1338_v7 = vadd.f32 %v10444_v1, %v1144_v34  ;;  %v1411_v1 = vsel %vm1389_vm8, %v10567_v33, 0.0  ;;  %v1410_v28 = vadd.f32 %v1409_v2, %v1408_v62  ;;  %v1512_v34 = vsel %vm1389_vm8, %v1470_v49, 0.0 }
 0x1ac   : > { %v1509_v30 = vadd.f32 %v1508_v5, %v1507_v60  ;;  %v1152_v36 = vadd.f32 %v10458_v23, %v10404_v14  ;;  %v1415_v14 = vsel %vm1389_vm8, %v10596_v48, 0.0  ;;  %v1473_v23 = vmul.f32 %v10606_v41, %v10606_v41 }
 0x1ad   : > { %v10612_v39 = vadd.f32 %v10415_v61, %v1338_v7  ;;  %v1412_v60 = vadd.f32 %v1411_v1, %v1410_v28  ;;  %v1514_v7 = vsel %vm1389_vm8, %v1471_v25, 0.0  ;;  %v1417_v62 = vsel %vm1389_vm8, %v10606_v41, 0.0 }
 0x1af   : > { %v1414_v2 = vadd.f32 %v1413_v53, %v1412_v60  ;;  %v1474_v49 = vmul.f32 %v10612_v39, %v10612_v39 }
 0x1b2   : > { %v10480_v10 = vpop.f32.mrf.mxu2  ;;  %v10482_v3 = vpop.f32.mrf.mxu3 }
 0x1b3   : > { %v10486_v9 = vpop.f32.mrf.mxu0  ;;  %v10488_v24 = vpop.f32.mrf.mxu1  ;;  %v1339_v51 = vadd.f32 %v10480_v10, %v1147_v37  ;;  %v1511_v10 = vadd.f32 %v1510_v38, %v1509_v30 }
 0x1b4   : > { %v1154_v5 = vadd.f32 %v10488_v24, %v10424_v32  ;;  %v1518_v24 = vsel %vm1389_vm8, %v1473_v23, 0.0 }
 0x1b5   : > { %v10628_v27 = vadd.f32 %v10415_v61, %v1339_v51  ;;  %v1419_v51 = vsel %vm1389_vm8, %v10612_v39, 0.0 }
 0x1b7   : > { %v1475_v30 = vmul.f32 %v10628_v27, %v10628_v27  ;;  %v1421_v53 = vsel %vm1389_vm8, %v10628_v27, 0.0 }
 0x1b9   : > { %v1522_v23 = vsel %vm1389_vm8, %v1475_v30, 0.0 }
 0x1ba   : > { %v10514_v18 = vpop.f32.mrf.mxu2  ;;  %v10516_v31 = vpop.f32.mrf.mxu3 }
 0x1bb   : > { %v10525_v8 = vpop.f32.mrf.mxu0  ;;  %v10527_v45 = vpop.f32.mrf.mxu1  ;;  %v1340_v26 = vadd.f32 %v10514_v18, %v1149_v12  ;;  %v1513_v18 = vadd.f32 %v1512_v34, %v1511_v10  ;;  %v1416_v12 = vadd.f32 %v1415_v14, %v1414_v2 }
 0x1bc   : > { %v1157_v28 = vadd.f32 %v10527_v45, %v10456_v13 }
 0x1bd   : > { %v10640_v38 = vadd.f32 %v10415_v61, %v1340_v26  ;;  %v1515_v1 = vadd.f32 %v1514_v7, %v1513_v18  ;;  %v1418_v34 = vadd.f32 %v1417_v62, %v1416_v12 }
 0x1bf   : > { %v1476_v26 = vmul.f32 %v10640_v38, %v10640_v38  ;;  %v1420_v13 = vadd.f32 %v1419_v51, %v1418_v34 }
 0x1c2   : > { %v1261_v47 = vpop.f32.mrf.mxu2  ;;  %v10583_v42 = vpop.f32.mrf.mxu3 }
 0x1c3   : > { %v10572_v4 = vpop.f32.mrf.mxu0  ;;  %v10574_v55 = vpop.f32.mrf.mxu1  ;;  %v1341_v50 = vadd.f32 %v1261_v47, %v1152_v36  ;;  %v1516_v47 = vsel %vm1389_vm8, %v1472_v29, 0.0 }
 0x1c4   : > { %v1517_v36 = vadd.f32 %v1516_v47, %v1515_v1 }
 0x1c5   : > { %v10643_v32 = vadd.f32 %v10415_v61, %v1341_v50 }
 0x1c6   : > { %v1519_v14 = vadd.f32 %v1518_v24, %v1517_v36 }
 0x1c7   : > { %v1477_v45 = vmul.f32 %v10643_v32, %v10643_v32  ;;  %v1425_v1 = vsel %vm1389_vm8, %v10643_v32, 0.0 }
 0x1c9   : > { %v1526_v30 = vsel %vm1389_vm8, %v1477_v45, 0.0  ;;  %v16637_v45 = vld [vmem:[#allocation12_spill] sm:$0xff] }
 0x1ca   : > { %v1263_v46 = vpop.f32.mrf.mxu2  ;;  %v10634_v37 = vpop.f32.mrf.mxu3 }
 0x1cb   : > { %v1161_v58 = vpop.f32.mrf.mxu1  ;;  %v1028_v16 = vpop.f32.mrf.mxu0  ;;  %v1342_v25 = vadd.f32 %v1263_v46, %v1154_v5  ;;  %v1520_v46 = vsel %vm1389_vm8, %v1474_v49, 0.0  ;;  %v1423_v5 = vsel %vm1389_vm8, %v10640_v38, 0.0  ;;  %v1422_v49 = vadd.f32 %v1421_v53, %v1420_v13  ;;  %v16636_v13 = vld [vmem:[#allocation10_spill] sm:$0xff] }
 0x1cc   : > { %v1162_v60 = vadd.f32 %v1161_v58, %v10525_v8  ;;  %v1172_v8 = vadd.f32 %v10359_v17, %v10264_v56  ;;  %v1521_v58 = vadd.f32 %v1520_v46, %v1519_v14  ;;  %v1167_v47 = vadd.f32 %v10347_v0, %v1028_v16 }
 0x1cd   : > { %v10658_v10 = vadd.f32 %v10415_v61, %v1342_v25  ;;  %v1524_v25 = vsel %vm1389_vm8, %v1476_v26, 0.0  ;;  %v1159_v56 = vadd.f32 %v10574_v55, %v10486_v9 }
 0x1ce   : > { %v1345_v24 = vadd.f32 %v10419_v40, %v1162_v60  ;;  %v1523_v51 = vadd.f32 %v1522_v23, %v1521_v58  ;;  %v1174_v40 = vadd.f32 %v10369_v21, %v10277_v59  ;;  %v1347_v53 = vadd.f32 %v10482_v3, %v1167_v47 }
 0x1cf   : > { %v1478_v12 = vmul.f32 %v10658_v10, %v10658_v10  ;;  %v1427_v0 = vsel %vm1389_vm8, %v10658_v10, 0.0  ;;  %v1179_v59 = vadd.f32 %v10385_v57, %v10303_v19  ;;  %v1182_v23 = vadd.f32 %v16637_v45, %v16636_v13  ;;  %v296_v19 = vld [vmem:[%s16566_s4 + $0x8] sm:$0xff]  ;;  %v295_v57 = vld [vmem:[%s16566_s4] sm:$0xff] }
 0x1d0   : > { %v1525_v34 = vadd.f32 %v1524_v25, %v1523_v51  ;;  %v10693_v55 = vadd.f32 %v10415_v61, %v1345_v24  ;;  %1577 = vmatpush.msrb.mxu3 %v296_v19  ;;  %3156 = vmatpush.msrb.mxu2 %v296_v19 }
 0x1d1   : > { %v1528_v9 = vsel %vm1389_vm8, %v1478_v12, 0.0 }
 0x1d2   : > { %v1266_v29 = vpop.f32.mrf.mxu2  ;;  %v1286_v17 = vpop.f32.mrf.mxu3  ;;  %v1527_v21 = vadd.f32 %v1526_v30, %v1525_v34  ;;  %v1433_v12 = vsel %vm1389_vm8, %v10693_v55, 0.0  ;;  %1578 = vmatpush.msrb.mxu3 %v295_v57  ;;  %3157 = vmatpush.msrb.mxu2 %v295_v57 }
 0x1d3   : > { %v1343_v7 = vadd.f32 %v1266_v29, %v1157_v28  ;;  %v1163_v50 = vpop.f32.mrf.mxu1  ;;  %v1030_v62 = vpop.f32.mrf.mxu0 }
 0x1d4   : > { %v1164_v2 = vadd.f32 %v1163_v50, %v10572_v4  ;;  %v1424_v4 = vadd.f32 %v1423_v5, %v1422_v49  ;;  %v1169_v28 = vadd.f32 %v10357_v6, %v1030_v62  ;;  %v1177_v6 = vadd.f32 %v10375_v63, %v10290_v20  ;;  %v16639_v49 = vld [vmem:[#allocation13_spill] sm:$0xff] }
 0x1d5   : > { %v10667_v18 = vadd.f32 %v10415_v61, %v1343_v7  ;;  %v1349_v20 = vadd.f32 %v10583_v42, %v1172_v8  ;;  %v1529_v63 = vadd.f32 %v1528_v9, %v1527_v21  ;;  %v16638_v8 = vld [vmem:[#allocation11_spill] sm:$0xff]  ;;  %v1350_v62 = vadd.f32 %v10634_v37, %v1174_v40 }
 0x1d6   : > { %v1346_v36 = vadd.f32 %v10446_v44, %v1164_v2  ;;  %v1426_v46 = vadd.f32 %v1425_v1, %v1424_v4  ;;  %v1348_v7 = vadd.f32 %v10516_v31, %v1169_v28  ;;  %v10719_v31 = vadd.f32 %v10415_v61, %v1347_v53 }
 0x1d7   : > { %v1479_v16 = vmul.f32 %v10667_v18, %v10667_v18  ;;  %v1429_v26 = vsel %vm1389_vm8, %v10667_v18, 0.0  ;;  %v1481_v2 = vmul.f32 %v10693_v55, %v10693_v55  ;;  %v1184_v47 = vadd.f32 %v16639_v49, %v16638_v8 }
 0x1d8   : > { %v1428_v44 = vadd.f32 %v1427_v0, %v1426_v46  ;;  %v10704_v50 = vadd.f32 %v10415_v61, %v1346_v36  ;;  %v10733_v24 = vadd.f32 %v10415_v61, %v1348_v7  ;;  %v10739_v30 = vadd.f32 %v10415_v61, %v1349_v20  ;;  %v16641_v46 = vld [vmem:[#allocation8_spill] sm:$0xff] }
 0x1d9   : > { %v1530_v3 = vsel %vm1389_vm8, %v1479_v16, 0.0  ;;  %v16640_v16 = vld [vmem:[#allocation18_spill] sm:$0xff]  ;;  %v1483_v28 = vmul.f32 %v10719_v31, %v10719_v31  ;;  %v1534_v36 = vsel %vm1389_vm8, %v1481_v2, 0.0  ;;  %v1351_v40 = vadd.f32 %v1286_v17, %v1177_v6 }
 0x1da   : > { %v1268_v29 = vpop.f32.mrf.mxu2  ;;  %v1430_v5 = vadd.f32 %v1429_v26, %v1428_v44  ;;  %v1531_v25 = vadd.f32 %v1530_v3, %v1529_v63  ;;  %v1482_v51 = vmul.f32 %v10704_v50, %v10704_v50  ;;  %v1288_v0 = vpop.f32.mrf.mxu3  ;;  %1598 = vmatpush.msra.mxu3 %v16640_v16  ;;  %3177 = vmatpush.msra.mxu2 %v16640_v16  ;;  %v1435_v34 = vsel %vm1389_vm8, %v10704_v50, 0.0  ;;  %v16642_v44 = vld [vmem:[#allocation9_spill] sm:$0xff] }
 0x1db   : > { %v1344_v60 = vadd.f32 %v1268_v29, %v1159_v56  ;;  %v1321_v53 = vmul.f32 0.0, %v16641_v46  ;;  %v10750_v29 = vadd.f32 %v10415_v61, %v1350_v62  ;;  %v1484_v17 = vmul.f32 %v10733_v24, %v10733_v24 }
 0x1dc   : > { %1599 = vmatpush.msra.mxu3 %v10521_v15  ;;  %3178 = vmatpush.msra.mxu2 %v10521_v15  ;;  %v1536_v6 = vsel %vm1389_vm8, %v1482_v51, 0.0  ;;  %v1352_v21 = vadd.f32 %v1288_v0, %v1179_v59  ;;  %v1322_v3 = vmul.f32 0.0, %v16642_v44  ;;  %v1485_v20 = vmul.f32 %v10739_v30, %v10739_v30 }
 0x1dd   : > { %v10707_v14 = vadd.f32 %v10415_v61, %v1344_v60  ;;  %v1437_v60 = vsel %vm1389_vm8, %v10719_v31, 0.0  ;;  %v1353_v7 = vadd.f32 %v1321_v53, %v1182_v23  ;;  %v1538_v15 = vsel %vm1389_vm8, %v1483_v28, 0.0 }
 0x1de   : > { %1600 = vmatpush.msra.mxu3 %v296_v19  ;;  %3179 = vmatpush.msra.mxu2 %v296_v19  ;;  %v10764_v63 = vadd.f32 %v10415_v61, %v1351_v40  ;;  %v1354_v2 = vadd.f32 %v1322_v3, %v1184_v47  ;;  %v1441_v23 = vsel %vm1389_vm8, %v10739_v30, 0.0  ;;  %v1486_v19 = vmul.f32 %v10750_v29, %v10750_v29 }
 0x1df   : > { %v1431_v58 = vsel %vm1389_vm8, %v10707_v14, 0.0  ;;  %v1480_v42 = vmul.f32 %v10707_v14, %v10707_v14  ;;  %v10774_v8 = vadd.f32 %v10415_v61, %v1352_v21  ;;  %v1542_v47 = vsel %vm1389_vm8, %v1485_v20, 0.0 }
 0x1e0   : > { %v1432_v1 = vadd.f32 %v1431_v58, %v1430_v5  ;;  %v1439_v5 = vsel %vm1389_vm8, %v10733_v24, 0.0  ;;  %1601 = vmatpush.msra.mxu3 %v295_v57  ;;  %3180 = vmatpush.msra.mxu2 %v295_v57  ;;  %v1443_v57 = vsel %vm1389_vm8, %v10750_v29, 0.0 }
 0x1e1   : > { %v1532_v4 = vsel %vm1389_vm8, %v1480_v42, 0.0  ;;  %v1540_v42 = vsel %vm1389_vm8, %v1484_v17, 0.0  ;;  %v1488_v0 = vmul.f32 %v10774_v8, %v10774_v8 }
 0x1e2   : > { %v1434_v56 = vadd.f32 %v1433_v12, %v1432_v1  ;;  %v1533_v37 = vadd.f32 %v1532_v4, %v1531_v25  ;;  %v10777_v25 = vadd.f32 %v10415_v61, %v1353_v7  ;;  %v1487_v1 = vmul.f32 %v10764_v63, %v10764_v63 }
 0x1e3   : > { %v10785_v4 = vadd.f32 %v10415_v61, %v1354_v2 }
 0x1e4   : > { %v1436_v9 = vadd.f32 %v1435_v34, %v1434_v56  ;;  %v1535_v26 = vadd.f32 %v1534_v36, %v1533_v37  ;;  %v1544_v56 = vsel %vm1389_vm8, %v1486_v19, 0.0  ;;  %v1445_v37 = vsel %vm1389_vm8, %v10764_v63, 0.0 }
 0x1e5   : > { %v1489_v36 = vmul.f32 %v10777_v25, %v10777_v25  ;;  %v1546_v40 = vsel %vm1389_vm8, %v1487_v1, 0.0  ;;  %v1447_v34 = vsel %vm1389_vm8, %v10774_v8, 0.0  ;;  %v1449_v53 = vsel %vm1389_vm8, %v10777_v25, 0.0 }
 0x1e6   : > { %v1438_v13 = vadd.f32 %v1437_v60, %v1436_v9  ;;  %v1537_v45 = vadd.f32 %v1536_v6, %v1535_v26  ;;  %v1490_v9 = vmul.f32 %v10785_v4, %v10785_v4  ;;  %v1548_v26 = vsel %vm1389_vm8, %v1488_v0, 0.0 }
 0x1e7   : > { %v1550_v6 = vsel %vm1389_vm8, %v1489_v36, 0.0  ;;  %v1451_v21 = vsel %vm1389_vm8, %v10785_v4, 0.0  ;;  %v16643_v36 = vld [vmem:[#allocation14_spill] sm:$0xff] }
 0x1e8   : > { %v1539_v59 = vadd.f32 %v1538_v15, %v1537_v45  ;;  %v1440_v58 = vadd.f32 %v1439_v5, %v1438_v13  ;;  %v1552_v7 = vsel %vm1389_vm8, %v1490_v9, 0.0  ;;  %v16645_v9 = vld [vmem:[#allocation15_spill] sm:$0xff] }
 0x1ea   : > { %v1442_v49 = vadd.f32 %v1441_v23, %v1440_v58  ;;  %v1541_v62 = vadd.f32 %v1540_v42, %v1539_v59 }
 0x1ec   : > { %v1444_v12 = vadd.f32 %v1443_v57, %v1442_v49  ;;  %v1543_v51 = vadd.f32 %v1542_v47, %v1541_v62 }
 0x1ee   : > { %v1446_v16 = vadd.f32 %v1445_v37, %v1444_v12  ;;  %v1545_v28 = vadd.f32 %v1544_v56, %v1543_v51  ;;  %v8525_v12 = vld [vmem:[%s16564_s2 + $0x88] sm:$0xff] }
 0x1ef   : > { %2783 = vmatpush.bf16.msrb.mxu1 %v8525_v12 }
 0x1f0   : > { %v1448_v61 = vadd.f32 %v1447_v34, %v1446_v16  ;;  %v1547_v46 = vadd.f32 %v1546_v40, %v1545_v28  ;;  %v10814_v40 = vperm.slane %v16643_v36, 1 }
 0x1f2   : > { %v1450_v60 = vadd.f32 %v1449_v53, %v1448_v61  ;;  %v1549_v17 = vadd.f32 %v1548_v26, %v1547_v46  ;;  %v10817_v61 = vperm.slane %v16643_v36, 2  ;;  %v16644_v46 = vld [vmem:[#allocation16_spill] sm:$0xff] }
 0x1f4   : > { %v1452_v44 = vadd.f32 %v1451_v21, %v1450_v60  ;;  %v1551_v3 = vadd.f32 %v1550_v6, %v1549_v17  ;;  %v16646_v60 = vld [vmem:[#allocation17_spill] sm:$0xff]  ;;  %v16647_v6 = vld [vmem:[#allocation19_spill] sm:$0xff] }
 0x1f6   : > { %v1453_v13 = vrot.slane %v1452_v44, 4  ;;  %v1553_v45 = vadd.f32 %v1552_v7, %v1551_v3 }
 0x1f8   : > { %v1454_v20 = vadd.f32 %v1453_v13, %v1452_v44  ;;  %v1554_v15 = vrot.slane %v1553_v45, 4 }
 0x1fa   : > { %v1455_v5 = vrot.slane %v1454_v20, 2  ;;  %v1555_v2 = vadd.f32 %v1554_v15, %v1553_v45 }
 0x1fc   : > { %v1456_v59 = vadd.f32 %v1455_v5, %v1454_v20  ;;  %v1556_v58 = vrot.slane %v1555_v2, 2  ;;  %v16648_v20 = vld [vmem:[#allocation20_spill] sm:$0xff]  ;;  %v16649_v5 = vld [vmem:[#allocation21_spill] sm:$0xff] }
 0x1fe   : > { %v1457_v23 = vrot.slane %v1456_v59, 1  ;;  %v1557_v19 = vadd.f32 %v1556_v58, %v1555_v2 }
 0x200   : > { %v1458_v42 = vadd.f32 %v1457_v23, %v1456_v59  ;;  %v1558_v49 = vrot.slane %v1557_v19, 1 }
 0x202   : > { %7888 = vmatmul.msk.f32.vlgmr.msrb.gmra.mxu3 %vm1389_vm8, %v1458_v42  ;;  %v1559_v62 = vadd.f32 %v1558_v49, %v1557_v19 }
 0x20a   : > { %7889 = vmatmul.msk.f32.vlgmr.msra.gmra.mxu3 %vm1389_vm8, %v1559_v62 }
 0x285   : > { %v1580_v47 = vpop.f32.mrf.mxu3 }
 0x286   : > { %v1606_v1 = vmul.f32 %v1580_v47, %v1580_v47  ;;  %v10811_v16 = vperm.slane %v1580_v47, 0 }
 0x288   : > { %v1620_v53 = vsub.f32 %v16644_v46, %v10811_v16  ;;  %v1621_v26 = vsub.f32 %v16645_v9, %v10811_v16  ;;  %v1622_v17 = vsub.f32 %v16646_v60, %v10811_v16  ;;  %v1623_v21 = vsub.f32 %v16647_v6, %v10811_v16 }
 0x289   : > { %v1624_v44 = vsub.f32 %v10477_v35, %v10811_v16  ;;  %v1625_v7 = vsub.f32 %v10496_v52, %v10811_v16  ;;  %v1626_v13 = vsub.f32 %v10508_v43, %v10811_v16  ;;  %v1627_v45 = vsub.f32 %v10511_v11, %v10811_v16 }
 0x28a   : > { %v1628_v15 = vsub.f32 %v16648_v20, %v10811_v16  ;;  %v1629_v2 = vsub.f32 %v16649_v5, %v10811_v16  ;;  %v1630_v35 = vsub.f32 %v10550_v54, %v10811_v16  ;;  %v1631_v52 = vsub.f32 %v10567_v33, %v10811_v16 }
 0x28b   : > { %v1632_v43 = vsub.f32 %v10579_v22, %v10811_v16  ;;  %v1633_v11 = vsub.f32 %v10596_v48, %v10811_v16  ;;  %v1634_v58 = vsub.f32 %v10606_v41, %v10811_v16  ;;  %v1635_v23 = vsub.f32 %v10612_v39, %v10811_v16 }
 0x28c   : > { %v1636_v54 = vsub.f32 %v10628_v27, %v10811_v16  ;;  %v1637_v19 = vsub.f32 %v10640_v38, %v10811_v16  ;;  %v1638_v22 = vsub.f32 %v10643_v32, %v10811_v16  ;;  %v1639_v48 = vsub.f32 %v10658_v10, %v10811_v16  ;;  %v8513_v10 = vld [vmem:[%s16564_s2 + $0x58] sm:$0xff] }
 0x28d   : > { %v1603_v57 = vpop.f32.mrf.mxu3  ;;  %v1640_v41 = vsub.f32 %v10667_v18, %v10811_v16  ;;  %v1641_v39 = vsub.f32 %v10707_v14, %v10811_v16  ;;  %v1642_v27 = vsub.f32 %v10693_v55, %v10811_v16  ;;  %v1643_v38 = vsub.f32 %v10704_v50, %v10811_v16  ;;  %2645 = vmatpush.bf16.msrb.mxu0 %v8513_v10 }
 0x28e   : > { %v1607_v51 = vsub.f32 %v1603_v57, %v1606_v1  ;;  %v1644_v32 = vsub.f32 %v10719_v31, %v10811_v16  ;;  %v1645_v18 = vsub.f32 %v10733_v24, %v10811_v16  ;;  %v1646_v49 = vsub.f32 %v10739_v30, %v10811_v16 }
 0x28f   : > { %v1647_v14 = vsub.f32 %v10750_v29, %v10811_v16  ;;  %v1648_v55 = vsub.f32 %v10764_v63, %v10811_v16  ;;  %v1649_v50 = vsub.f32 %v10774_v8, %v10811_v16  ;;  %v1650_v31 = vsub.f32 %v10777_v25, %v10811_v16 }
 0x290   : > { %v1608_v56 = vadd.f32 1e-05, %v1607_v51  ;;  %v1651_v62 = vsub.f32 %v10785_v4, %v10811_v16 }
 0x292   : > { %9512 = vrsqrt.f32 %v1608_v56  ;;  %vm1615_vm10 = vweird.f32 %v1608_v56 }
 0x298   : > { %v9513_v37 = vpop.eup %9512 }
 0x299   : > { %v1610_v0 = vmul.f32 %v9513_v37, %v1608_v56  ;;  %vm1616_vm9 = vweird.f32 %v9513_v37 }
 0x29a   : > { %vm1617_vm11 = vmor %vm1615_vm10, %vm1616_vm9 }
 0x29b   : > { %v1611_v28 = vmul.f32 %v9513_v37, %v1610_v0 }
 0x29d   : > { %v1612_v34 = vmul.f32 0.5, %v1611_v28 }
 0x29f   : > { %v1613_v3 = vsub.f32 1.5, %v1612_v34 }
 0x2a1   : > { %v1614_v59 = vmul.f32 %v9513_v37, %v1613_v3 }
 0x2a3   : > { %v1618_v33 = vsel %vm1617_vm11, %v9513_v37, %v1614_v59 }
 0x2a4   : > { %v10861_v42 = vperm.slane %v1618_v33, 0 }
 0x2a6   : > { %v10889_v24 = vmul.f32 %v10861_v42, %v1620_v53  ;;  %v1655_v30 = vmul.f32 %v10861_v42, %v1622_v17  ;;  %v1656_v29 = vmul.f32 %v10861_v42, %v1623_v21  ;;  %v1657_v47 = vmul.f32 %v10861_v42, %v1624_v44 }
 0x2a7   : > { %v1658_v63 = vmul.f32 %v10861_v42, %v1625_v7  ;;  %v1659_v8 = vmul.f32 %v10861_v42, %v1626_v13  ;;  %v10897_v57 = vmul.f32 %v10861_v42, %v1627_v45  ;;  %v1661_v25 = vmul.f32 %v10861_v42, %v1628_v15 }
 0x2a8   : > { %v10901_v4 = vmul.f32 %v10861_v42, %v1629_v2  ;;  %v1663_v1 = vmul.f32 %v10861_v42, %v1630_v35  ;;  %v1664_v12 = vmul.f32 %v10861_v42, %v1631_v52  ;;  %v1665_v51 = vmul.f32 %v10861_v42, %v1632_v43 }
 0x2a9   : > { %v10907_v56 = vmul.f32 %v10861_v42, %v1633_v11  ;;  %v1667_v37 = vmul.f32 %v10861_v42, %v1634_v58  ;;  %v10911_v0 = vmul.f32 %v10861_v42, %v1635_v23  ;;  %v1669_v28 = vmul.f32 %v10861_v42, %v1636_v54 }
 0x2aa   : > { %v1670_v36 = vmul.f32 %v10861_v42, %v1637_v19  ;;  %v10916_v34 = vmul.f32 %v10861_v42, %v1645_v18  ;;  %v1679_v46 = vmul.f32 %v10861_v42, %v1646_v49  ;;  %v10920_v53 = vmul.f32 %v10861_v42, %v1647_v14 }
 0x2ab   : > { %v1681_v60 = vmul.f32 %v10861_v42, %v1648_v55  ;;  %v1671_v17 = vmul.f32 %v10861_v42, %v1638_v22  ;;  %v1682_v6 = vmul.f32 %v10861_v42, %v1649_v50  ;;  %v1683_v21 = vmul.f32 %v10861_v42, %v1650_v31 }
 0x2ac   : > { %v10927_v44 = vmul.f32 %v10861_v42, %v1651_v62  ;;  %v10930_v3 = vmul.f32 %v10861_v42, %v1639_v48  ;;  %v1673_v7 = vmul.f32 %v10861_v42, %v1640_v41  ;;  %v10934_v13 = vmul.f32 %v10861_v42, %v1641_v39 }
 0x2ad   : > { %v1675_v45 = vmul.f32 %v10861_v42, %v1642_v27  ;;  %v1676_v20 = vmul.f32 %v10861_v42, %v1643_v38  ;;  %v1677_v15 = vmul.f32 %v10861_v42, %v1644_v32  ;;  %v1688_v5 = vmul.f32 %v10814_v40, %v1655_v30 }
 0x2ae   : > { %v1690_v2 = vmul.f32 %v10814_v40, %v1657_v47  ;;  %v1691_v35 = vmul.f32 %v10814_v40, %v1658_v63  ;;  %v1692_v59 = vmul.f32 %v10814_v40, %v1659_v8  ;;  %v10944_v52 = vmul.f32 %v10814_v40, %v1661_v25 }
 0x2af   : > { %v1696_v43 = vmul.f32 %v10814_v40, %v1663_v1  ;;  %v1697_v11 = vmul.f32 %v10814_v40, %v1664_v12  ;;  %v1698_v58 = vmul.f32 %v10814_v40, %v1665_v51  ;;  %v10950_v23 = vmul.f32 %v10814_v40, %v1667_v37 }
 0x2b0   : > { %v10953_v54 = vmul.f32 %v10814_v40, %v1679_v46  ;;  %v1714_v19 = vmul.f32 %v10814_v40, %v1681_v60  ;;  %v1715_v33 = vmul.f32 %v10814_v40, %v1682_v6  ;;  %v1716_v22 = vmul.f32 %v10814_v40, %v1683_v21 }
 0x2b1   : > { %v1689_v48 = vmul.f32 %v10814_v40, %v1656_v29  ;;  %v1702_v41 = vmul.f32 %v10814_v40, %v1669_v28  ;;  %v1703_v39 = vmul.f32 %v10814_v40, %v1670_v36  ;;  %v1704_v27 = vmul.f32 %v10814_v40, %v1671_v17 }
 0x2b2   : > { %v1721_v38 = vadd.f32 %v10817_v61, %v1688_v5  ;;  %v10964_v32 = vmul.f32 %v10814_v40, %v1673_v7  ;;  %v1708_v10 = vmul.f32 %v10814_v40, %v1675_v45  ;;  %v10968_v18 = vmul.f32 %v10814_v40, %v1676_v20 }
 0x2b3   : > { %v1722_v49 = vadd.f32 %v10817_v61, %v1689_v48  ;;  %v1710_v14 = vmul.f32 %v10814_v40, %v1677_v15  ;;  %v1723_v50 = vadd.f32 %v10817_v61, %v1690_v2  ;;  %v1724_v31 = vadd.f32 %v10817_v61, %v1691_v35 }
 0x2b4   : > { %v1753_v55 = vmax.f32 %v1721_v38, 0.0  ;;  %v1725_v30 = vadd.f32 %v10817_v61, %v1692_v59  ;;  %v1731_v29 = vadd.f32 %v10817_v61, %v1698_v58  ;;  %v10977_v47 = vadd.f32 %v10817_v61, %v1714_v19 }
 0x2b5   : > { %v1754_v62 = vmax.f32 %v1722_v49, 0.0  ;;  %v10980_v8 = vadd.f32 %v10817_v61, %v1715_v33  ;;  %v10983_v25 = vadd.f32 %v10817_v61, %v1716_v22  ;;  %v1654_v1 = vmul.f32 %v10861_v42, %v1621_v26 }
 0x2b6   : > { %v1785_v63 = vpack.c.bf16 %v1753_v55, %v1753_v55  ;;  %v1729_v51 = vadd.f32 %v10817_v61, %v1696_v43  ;;  %v10991_v37 = vadd.f32 %v10817_v61, %v1697_v11  ;;  %v1686_v28 = vmul.f32 %v10814_v40, %v10889_v24 }
 0x2b7   : > { %v1786_v12 = vpack.c.bf16 %v1754_v62, %v1754_v62  ;;  %v10998_v46 = vadd.f32 %v10817_v61, %v1702_v41  ;;  %v1737_v60 = vadd.f32 %v10817_v61, %v1704_v27  ;;  %v1687_v16 = vmul.f32 %v10814_v40, %v1654_v1 }
 0x2b8   : > { %v10995_v36 = vunpack.c.l.bf16 %v1785_v63  ;;  %v1719_v26 = vadd.f32 %v10817_v61, %v1686_v28  ;;  %v1755_v42 = vmax.f32 %v1723_v50, 0.0  ;;  %v1757_v17 = vmax.f32 %v1725_v30, 0.0 }
 0x2b9   : > { %v11002_v9 = vunpack.c.l.bf16 %v1786_v12  ;;  %v11006_v6 = vadd.f32 %v10817_v61, %v1703_v39  ;;  %v11009_v24 = vadd.f32 %v10817_v61, %v1710_v14  ;;  %v1720_v21 = vadd.f32 %v10817_v61, %v1687_v16 }
 0x2ba   : > { %v1763_v7 = vmax.f32 %v1731_v29, 0.0  ;;  %v11015_v20 = vadd.f32 %v10817_v61, %v1708_v10  ;;  %v1751_v15 = vmax.f32 %v1719_v26, 0.0  ;;  %v1761_v5 = vmax.f32 %v1729_v51, 0.0 }
 0x2bb   : > { %v8881_v45 = vpack.i.bf16 %v11002_v9, %v10995_v36  ;;  %v1752_v2 = vmax.f32 %v1720_v21, 0.0  ;;  %v1756_v35 = vmax.f32 %v1724_v31, 0.0  ;;  %v1762_v59 = vmax.f32 %v10991_v37, 0.0  ;;  %v8512_v21 = vld [vmem:[%s16564_s2 + $0x50] sm:$0xff] }
 0x2bc   : > { %v1769_v43 = vmax.f32 %v1737_v60, 0.0  ;;  %v1783_v11 = vpack.c.bf16 %v1751_v15, %v1751_v15  ;;  %v1767_v58 = vmax.f32 %v10998_v46, 0.0  ;;  %v1787_v19 = vpack.c.bf16 %v1755_v42, %v1755_v42  ;;  %2646 = vmatpush.bf16.msrb.mxu0 %v8512_v21 }
 0x2bd   : > { %8882 = vrot.lane.b32.xlu1 %v8881_v45, %s9595_s19  ;;  %v1789_v33 = vpack.c.bf16 %v1757_v17, %v1757_v17  ;;  %v1784_v22 = vpack.c.bf16 %v1752_v2, %v1752_v2  ;;  %v1768_v48 = vmax.f32 %v11006_v6, 0.0  ;;  %v1775_v41 = vmax.f32 %v11009_v24, 0.0 }
 0x2be   : > { %v1795_v39 = vpack.c.bf16 %v1763_v7, %v1763_v7  ;;  %v11022_v27 = vunpack.c.l.bf16 %v1783_v11  ;;  %v1779_v38 = vmax.f32 %v10977_v47, 0.0  ;;  %v1781_v10 = vmax.f32 %v10983_v25, 0.0  ;;  %v8524_v47 = vld [vmem:[%s16564_s2 + $0x80] sm:$0xff]  ;;  %v16651_v7 = vld [vmem:[#allocation7_spill] sm:$0xff] }
 0x2bf   : > { %v1793_v49 = vpack.c.bf16 %v1761_v5, %v1761_v5  ;;  %v11026_v14 = vunpack.c.l.bf16 %v1784_v22  ;;  %v11028_v55 = vpack.c.bf16 %v1769_v43, %v1769_v43  ;;  %v1945_v50 = vrot.slane %v10995_v36, 1  ;;  %2784 = vmatpush.bf16.msrb.mxu1 %v8524_v47 }
 0x2c0   : > { %v11031_v31 = vunpack.c.l.bf16 %v1789_v33  ;;  %v1943_v62 = vrot.slane %v11022_v27, 1  ;;  %v1788_v30 = vpack.c.bf16 %v1756_v35, %v1756_v35  ;;  %v11034_v29 = vunpack.c.l.bf16 %v1787_v19 }
 0x2c1   : > { %v1946_v63 = vrot.slane %v11002_v9, 1  ;;  %v8871_v1 = vpack.i.bf16 %v11026_v14, %v11022_v27  ;;  %v1944_v12 = vrot.slane %v11026_v14, 1  ;;  %v11043_v51 = vunpack.c.l.bf16 %v1795_v39 }
 0x2c2   : > { %v1695_v37 = vmul.f32 %v10814_v40, %v10901_v4  ;;  %v11047_v28 = vunpack.c.l.bf16 %v1788_v30  ;;  %v1947_v46 = vrot.slane %v11034_v29, 1  ;;  %v1949_v60 = vrot.slane %v11031_v31, 1 }
 0x2c3   : > { %v1727_v16 = vadd.f32 %v10817_v61, %v10944_v52  ;;  %8872 = vrot.lane.b32.xlu2 %v8871_v1, %s9595_s19  ;;  %v2004_v42 = vsel %vm492_vm2, %v1944_v12, %v1945_v50  ;;  %v2003_v17 = vsel %vm492_vm2, %v1945_v50, %v1946_v63  ;;  %v1693_v24 = vmul.f32 %v10814_v40, %v10897_v57 }
 0x2c4   : > { %v1728_v4 = vadd.f32 %v10817_v61, %v1695_v37  ;;  %v2005_v52 = vsel %vm492_vm2, %v1943_v62, %v1944_v12  ;;  %v2008_v45 = vmul.f32 %v16651_v7, %v2004_v42  ;;  %v1948_v15 = vrot.slane %v11047_v28, 1 }
 0x2c5   : > { %v2002_v5 = vsel %vm492_vm2, %v1946_v63, %v1947_v46  ;;  %v1759_v35 = vmax.f32 %v1727_v16, 0.0  ;;  %v1726_v43 = vadd.f32 %v10817_v61, %v1693_v24  ;;  %v1794_v22 = vpack.c.bf16 %v1762_v59, %v1762_v59 }
 0x2c6   : > { %v2010_v2 = vmul.f32 %v16651_v7, %v2002_v5  ;;  %v1760_v57 = vmax.f32 %v1728_v4, 0.0  ;;  %v8876_v11 = vpack.i.bf16 %v2008_v45, %v2005_v52  ;;  %v2000_v19 = vsel %vm492_vm2, %v1948_v15, %v1949_v60 }
 0x2c7   : > { %v2001_v33 = vsel %vm492_vm2, %v1947_v46, %v1948_v15  ;;  %v2012_v39 = vmul.f32 %v16651_v7, %v2000_v19  ;;  %v1791_v30 = vpack.c.bf16 %v1759_v35, %v1759_v35  ;;  %v1758_v47 = vmax.f32 %v1726_v43, 0.0 }
 0x2c8   : > { %v8886_v50 = vpack.i.bf16 %v2010_v2, %v2003_v17  ;;  %v1792_v63 = vpack.c.bf16 %v1760_v57, %v1760_v57  ;;  %8877 = vrot.lane.b32.xlu0 %v8876_v11, %s9596_s8  ;;  %v11082_v1 = vunpack.c.l.bf16 %v1793_v49  ;;  %v11084_v12 = vunpack.c.l.bf16 %v1794_v22 }
 0x2c9   : > { %v1955_v37 = vrot.slane %v11043_v51, 1  ;;  %v8896_v16 = vpack.i.bf16 %v2012_v39, %v2001_v33  ;;  %v11087_v42 = vunpack.c.l.bf16 %v1791_v30  ;;  %v1701_v59 = vmul.f32 %v10814_v40, %v10911_v0 }
 0x2ca   : > { %v11089_v46 = vunpack.c.l.bf16 %v1792_v63  ;;  %v1799_v17 = vpack.c.bf16 %v1767_v58, %v1767_v58  ;;  %v1790_v4 = vpack.c.bf16 %v1758_v47, %v1758_v47  ;;  %v1953_v24 = vrot.slane %v11082_v1, 1 }
 0x2cb   : > { %v1954_v21 = vrot.slane %v11084_v12, 1  ;;  %v11095_v49 = vpack.c.bf16 %v1775_v41, %v1775_v41  ;;  %v11097_v52 = vpack.c.bf16 %v1779_v38, %v1779_v38  ;;  %8897 = vrot.lane.b32.xlu1 %v8896_v16, %s9596_s8  ;;  %8887 = vrot.lane.b32.xlu2 %v8886_v50, %s9596_s8  ;;  %v1733_v15 = vadd.f32 %v10817_v61, %v10950_v23 }
 0x2cc   : > { %v1952_v45 = vrot.slane %v11089_v46, 1  ;;  %v11107_v0 = vpack.c.bf16 %v1781_v10, %v1781_v10  ;;  %v11109_v58 = vunpack.c.l.bf16 %v1790_v4  ;;  %v1951_v41 = vrot.slane %v11087_v42, 1 }
 0x2cd   : > { %v1734_v38 = vadd.f32 %v10817_v61, %v1701_v59  ;;  %v11114_v5 = vunpack.c.l.bf16 %v11028_v55  ;;  %v8891_v2 = vpack.i.bf16 %v11047_v28, %v11034_v29  ;;  %v1994_v23 = vsel %vm492_vm2, %v1954_v21, %v1955_v37 }
 0x2ce   : > { %v1765_v25 = vmax.f32 %v1733_v15, 0.0  ;;  %v1950_v10 = vrot.slane %v11109_v58, 1  ;;  %v1996_v35 = vsel %vm492_vm2, %v1952_v45, %v1953_v24  ;;  %v8921_v57 = vpack.i.bf16 %v11084_v12, %v11082_v1 }
 0x2cf   : > { %v1766_v43 = vmax.f32 %v1734_v38, 0.0  ;;  %v8911_v55 = vpack.i.bf16 %v11089_v46, %v11087_v42  ;;  %v1699_v19 = vmul.f32 %v10814_v40, %v10907_v56  ;;  %v1800_v33 = vpack.c.bf16 %v1768_v48, %v1768_v48 }
 0x2d0   : > { %v1797_v11 = vpack.c.bf16 %v1765_v25, %v1765_v25  ;;  %8892 = vrot.lane.b32.xlu0 %v8891_v2, %s9595_s19  ;;  %v8901_v22 = vpack.i.bf16 %v11109_v58, %v11031_v31  ;;  %v1998_v39 = vsel %vm492_vm2, %v1950_v10, %v1951_v41  ;;  %v2018_v50 = vmul.f32 %v16651_v7, %v1994_v23 }
 0x2d1   : > { %v1798_v30 = vpack.c.bf16 %v1766_v43, %v1766_v43  ;;  %v2014_v63 = vmul.f32 %v16651_v7, %v1998_v39  ;;  %v2016_v47 = vmul.f32 %v16651_v7, %v1996_v35  ;;  %v1732_v56 = vadd.f32 %v10817_v61, %v1699_v19 }
 0x2d2   : > { %v11143_v6 = vunpack.c.l.bf16 %v1799_v17  ;;  %v11145_v48 = vunpack.c.l.bf16 %v1797_v11  ;;  %v11149_v59 = vunpack.c.l.bf16 %v1800_v33  ;;  %v1707_v4 = vmul.f32 %v10814_v40, %v10934_v13 }
 0x2d3   : > { %v11147_v16 = vunpack.c.l.bf16 %v1798_v30  ;;  %8912 = vrot.lane.b32.xlu1 %v8911_v55, %s9595_s19  ;;  %8902 = vrot.lane.b32.xlu2 %v8901_v22, %s9595_s19  ;;  %v1995_v15 = vsel %vm492_vm2, %v1953_v24, %v1954_v21  ;;  %v1997_v17 = vsel %vm492_vm2, %v1951_v41, %v1952_v45  ;;  %v1764_v38 = vmax.f32 %v1732_v56, 0.0 }
 0x2d4   : > { %v1961_v2 = vrot.slane %v11114_v5, 1  ;;  %v1999_v23 = vsel %vm492_vm2, %v1949_v60, %v1950_v10  ;;  %v1959_v13 = vrot.slane %v11143_v6, 1  ;;  %v1960_v25 = vrot.slane %v11149_v59, 1 }
 0x2d5   : > { %v1958_v35 = vrot.slane %v11147_v16, 1  ;;  %v1796_v43 = vpack.c.bf16 %v1764_v38, %v1764_v38  ;;  %v1739_v24 = vadd.f32 %v10817_v61, %v10964_v32  ;;  %v1740_v21 = vadd.f32 %v10817_v61, %v1707_v4 }
 0x2d6   : > { %v1705_v45 = vmul.f32 %v10814_v40, %v10930_v3  ;;  %v8906_v41 = vpack.i.bf16 %v2014_v63, %v1999_v23  ;;  %v8926_v55 = vpack.i.bf16 %v2018_v50, %v1995_v15  ;;  %v8916_v11 = vpack.i.bf16 %v2016_v47, %v1997_v17 }
 0x2d7   : > { %v1957_v60 = vrot.slane %v11145_v48, 1  ;;  %v8941_v10 = vpack.i.bf16 %v11147_v16, %v11145_v48  ;;  %v11175_v19 = vunpack.c.l.bf16 %v1796_v43  ;;  %v1988_v32 = vsel %vm492_vm2, %v1960_v25, %v1961_v2 }
 0x2d8   : > { %v1771_v33 = vmax.f32 %v1739_v24, 0.0  ;;  %8907 = vrot.lane.b32.xlu0 %v8906_v41, %s9596_s8  ;;  %v1772_v22 = vmax.f32 %v1740_v21, 0.0  ;;  %v1738_v3 = vadd.f32 %v10817_v61, %v1705_v45  ;;  %v1742_v39 = vadd.f32 %v10817_v61, %v10968_v18 }
 0x2d9   : > { %v1773_v50 = vmax.f32 %v11015_v20, 0.0  ;;  %v1956_v30 = vrot.slane %v11175_v19, 1  ;;  %v11189_v63 = vsel %vm492_vm2, %v1959_v13, %v1960_v25  ;;  %v1990_v47 = vsel %vm492_vm2, %v1958_v35, %v1959_v13 }
 0x2da   : > { %v8951_v56 = vpack.i.bf16 %v11149_v59, %v11143_v6  ;;  %v1803_v4 = vpack.c.bf16 %v1771_v33, %v1771_v33  ;;  %v1804_v15 = vpack.c.bf16 %v1772_v22, %v1772_v22  ;;  %v1770_v17 = vmax.f32 %v1738_v3, 0.0 }
 0x2db   : > { %v1774_v38 = vmax.f32 %v1742_v39, 0.0  ;;  %v1780_v18 = vmax.f32 %v10980_v8, 0.0  ;;  %8927 = vrot.lane.b32.xlu1 %v8926_v55, %s9596_s8  ;;  %8917 = vrot.lane.b32.xlu2 %v8916_v11, %s9596_s8  ;;  %v1992_v20 = vsel %vm492_vm2, %v1956_v30, %v1957_v60  ;;  %v11201_v23 = vmul.f32 %v16651_v7, %v1988_v32 }
 0x2dc   : > { %v1805_v13 = vpack.c.bf16 %v1773_v50, %v1773_v50  ;;  %v11204_v25 = vmul.f32 %v16651_v7, %v1990_v47  ;;  %v11206_v43 = vunpack.c.l.bf16 %v1803_v4  ;;  %v11208_v24 = vunpack.c.l.bf16 %v1804_v15 }
 0x2dd   : > { %v1802_v21 = vpack.c.bf16 %v1770_v17, %v1770_v17  ;;  %v1806_v8 = vpack.c.bf16 %v1774_v38, %v1774_v38  ;;  %v11213_v41 = vunpack.c.l.bf16 %v11095_v49  ;;  %v1713_v55 = vmul.f32 %v10814_v40, %v10920_v53 }
 0x2de   : > { %v11210_v45 = vunpack.c.l.bf16 %v1805_v13  ;;  %v2020_v11 = vmul.f32 %v16651_v7, %v1992_v20  ;;  %v1991_v32 = vsel %vm492_vm2, %v1957_v60, %v1958_v35  ;;  %v1963_v22 = vrot.slane %v11206_v43, 1  ;;  %v8523_v60 = vld [vmem:[%s16564_s2 + $0x78] sm:$0xff] }
 0x2df   : > { %v11220_v33 = vunpack.c.l.bf16 %v1802_v21  ;;  %v11223_v3 = vunpack.c.l.bf16 %v1806_v8  ;;  %v1964_v50 = vrot.slane %v11208_v24, 1  ;;  %v1745_v49 = vadd.f32 %v10817_v61, %v10953_v54  ;;  %2785 = vmatpush.bf16.msrb.mxu1 %v8523_v60 }
 0x2e0   : > { %v1965_v39 = vrot.slane %v11210_v45, 1  ;;  %8922 = vrot.lane.b32.xlu0 %v8921_v57, %s9595_s19  ;;  %v8931_v53 = vpack.i.bf16 %v11175_v19, %v11043_v51  ;;  %v1746_v47 = vadd.f32 %v10817_v61, %v1713_v55  ;;  %v1711_v4 = vmul.f32 %v10814_v40, %v10916_v34 }
 0x2e1   : > { %v1962_v35 = vrot.slane %v11220_v33, 1  ;;  %v1993_v54 = vsel %vm492_vm2, %v1955_v37, %v1956_v30  ;;  %v8956_v57 = vpack.i.bf16 %v11201_v23, %v11189_v63  ;;  %v8946_v15 = vpack.i.bf16 %v11204_v25, %v1991_v32  ;;  %v8511_v25 = vld [vmem:[%s16564_s2 + $0x48] sm:$0xff] }
 0x2e2   : > { %v1967_v17 = vrot.slane %v11213_v41, 1  ;;  %v8936_v38 = vpack.i.bf16 %v2020_v11, %v1993_v54  ;;  %v1966_v20 = vrot.slane %v11223_v3, 1  ;;  %v1984_v34 = vsel %vm492_vm2, %v1964_v50, %v1965_v39  ;;  %2647 = vmatpush.bf16.msrb.mxu0 %v8511_v25 }
 0x2e3   : > { %v1777_v13 = vmax.f32 %v1745_v49, 0.0  ;;  %8942 = vrot.lane.b32.xlu1 %v8941_v10, %s9595_s19  ;;  %8932 = vrot.lane.b32.xlu2 %v8931_v53, %s9595_s19  ;;  %v8971_v37 = vpack.i.bf16 %v11208_v24, %v11206_v43  ;;  %v8961_v30 = vpack.i.bf16 %v11220_v33, %v11114_v5  ;;  %v11263_v63 = vsel %vm492_vm2, %v1963_v22, %v1964_v50 }
 0x2e4   : > { %v1778_v23 = vmax.f32 %v1746_v47, 0.0  ;;  %v1986_v10 = vsel %vm492_vm2, %v1962_v35, %v1963_v22  ;;  %v11274_v21 = vsel %vm492_vm2, %v1961_v2, %v1962_v35  ;;  %v1744_v55 = vadd.f32 %v10817_v61, %v1711_v4 }
 0x2e5   : > { %v1809_v8 = vpack.c.bf16 %v1777_v13, %v1777_v13  ;;  %v11278_v11 = vmul.f32 %v16651_v7, %v1984_v34  ;;  %v1812_v50 = vpack.c.bf16 %v1780_v18, %v1780_v18  ;;  %v11281_v49 = vunpack.c.l.bf16 %v11097_v52 }
 0x2e6   : > { %v1810_v32 = vpack.c.bf16 %v1778_v23, %v1778_v23  ;;  %v1982_v22 = vsel %vm492_vm2, %v1966_v20, %v1967_v17  ;;  %v1776_v2 = vmax.f32 %v1744_v55, 0.0  ;;  %v11290_v35 = vunpack.c.l.bf16 %v11107_v0 }
 0x2e7   : > { %v11287_v53 = vunpack.c.l.bf16 %v1809_v8  ;;  %v11294_v47 = vunpack.c.l.bf16 %v1812_v50  ;;  %v1971_v18 = vrot.slane %v11281_v49, 1  ;;  %v1717_v52 = vmul.f32 %v10814_v40, %v10927_v44 }
 0x2e8   : > { %v11292_v60 = vunpack.c.l.bf16 %v1810_v32  ;;  %8937 = vrot.lane.b32.xlu0 %v8936_v38, %s9596_s8  ;;  %v1808_v4 = vpack.c.bf16 %v1776_v2, %v1776_v2  ;;  %v1973_v34 = vrot.slane %v11290_v35, 1  ;;  %v1848_v13 = vrot.slane %v11026_v14, 7 }
 0x2e9   : > { %v1969_v54 = vrot.slane %v11287_v53, 1  ;;  %v1972_v23 = vrot.slane %v11294_v47, 1  ;;  %v1750_v44 = vadd.f32 %v10817_v61, %v1717_v52  ;;  %v1847_v38 = vrot.slane %v11022_v27, 7 }
 0x2ea   : > { %v1970_v25 = vrot.slane %v11292_v60, 1  ;;  %v11309_v40 = vunpack.c.l.bf16 %v1808_v4  ;;  %v1852_v55 = vrot.slane %v11047_v28, 7  ;;  %v1853_v61 = vrot.slane %v11031_v31, 7 }
 0x2eb   : > { %8957 = vrot.lane.b32.xlu1 %v8956_v57, %s9596_s8  ;;  %8947 = vrot.lane.b32.xlu2 %v8946_v15, %s9596_s8  ;;  %v1976_v14 = vsel %vm492_vm2, %v1972_v23, %v1973_v34  ;;  %v11320_v32 = vsel %vm492_vm2, %v1971_v18, %v1972_v23  ;;  %v1782_v4 = vmax.f32 %v1750_v44, 0.0  ;;  %v1854_v31 = vrot.slane %v11109_v58, 7 }
 0x2ec   : > { %v1978_v50 = vsel %vm492_vm2, %v1970_v25, %v1971_v18  ;;  %v1968_v28 = vrot.slane %v11309_v40, 1  ;;  %v11329_v57 = vmul.f32 %v16651_v7, %v1976_v14  ;;  %v11333_v15 = vsel %vm492_vm2, %v1969_v54, %v1970_v25 }
 0x2ed   : > { %v11336_v52 = vmul.f32 %v16651_v7, %v1978_v50  ;;  %v11340_v18 = vsel %vm395_vm3, %v1847_v38, %v1848_v13  ;;  %v11353_v50 = vsel %vm395_vm3, %v1852_v55, %v1853_v61  ;;  %v1814_v8 = vpack.c.bf16 %v1782_v4, %v1782_v4 }
 0x2ee   : > { %v1980_v23 = vsel %vm492_vm2, %v1968_v28, %v1969_v54  ;;  %v11347_v14 = vsel %vm492_vm2, %v1967_v17, %v1968_v28  ;;  %v11362_v54 = vsel %vm395_vm3, %v1853_v61, %v1854_v31  ;;  %v2026_v17 = vmul.f32 %v16651_v7, %v1986_v10 }
 0x2ef   : > { %v11356_v44 = vmul.f32 %v16651_v7, %v1980_v23  ;;  %v1850_v28 = vrot.slane %v11002_v9, 7  ;;  %v1849_v23 = vrot.slane %v10995_v36, 7  ;;  %v1858_v25 = vrot.slane %v11084_v12, 7 }
 0x2f0   : > { %8952 = vrot.lane.b32.xlu0 %v8951_v56, %s9595_s19  ;;  %v11374_v58 = vunpack.c.l.bf16 %v1814_v8  ;;  %v1859_v61 = vrot.slane %v11043_v51, 7  ;;  %v1860_v2 = vrot.slane %v11175_v19, 7  ;;  %v2030_v0 = vmul.f32 %v16651_v7, %v1982_v22 }
 0x2f1   : > { %v8996_v4 = vpack.i.bf16 %v11356_v44, %v11347_v14  ;;  %v11381_v56 = vsel %vm395_vm3, %v1849_v23, %v1850_v28  ;;  %v11385_v36 = vsel %vm395_vm3, %v1848_v13, %v1849_v23  ;;  %v1851_v9 = vrot.slane %v11034_v29, 7  ;;  %v8517_v44 = vld [vmem:[%s16564_s2 + $0x18] sm:$0xff] }
 0x2f2   : > { %v1878_v51 = vrot.slane %v11374_v58, 7  ;;  %v9021_v12 = vpack.i.bf16 %v11374_v58, %v11290_v35  ;;  %v1974_v19 = vrot.slane %v11374_v58, 1  ;;  %v1855_v10 = vrot.slane %v11087_v42, 7 }
 0x2f3   : > { %8972 = vrot.lane.b32.xlu1 %v8971_v37, %s9595_s19  ;;  %8962 = vrot.lane.b32.xlu2 %v8961_v30, %s9595_s19  ;;  %v11403_v29 = vsel %vm395_vm3, %v1859_v61, %v1860_v2  ;;  %v11407_v37 = vsel %vm395_vm3, %v1858_v25, %v1859_v61  ;;  %v11411_v30 = vsel %vm395_vm3, %v1851_v9, %v1852_v55 }
 0x2f4   : > { %v11415_v22 = vsel %vm395_vm3, %v1850_v28, %v1851_v9  ;;  %v1983_v42 = vsel %vm492_vm2, %v1965_v39, %v1966_v20  ;;  %v11425_v13 = vsel %vm492_vm2, %v1973_v34, %v1974_v19  ;;  %v2006_v8 = vsel %vm492_vm2, %v1974_v19, %v1943_v62 }
 0x2f5   : > { %v11433_v55 = vsel %vm395_vm3, %v1878_v51, %v1847_v38  ;;  %v8966_v28 = vpack.i.bf16 %v2026_v17, %v11274_v21  ;;  %v8976_v23 = vpack.i.bf16 %v11278_v11, %v11263_v63  ;;  %v11439_v39 = vmul.f32 %v16651_v7, %v2006_v8 }
 0x2f6   : > { %v1856_v20 = vrot.slane %v11089_v46, 7  ;;  %v11444_v27 = vsel %vm395_vm3, %v1854_v31, %v1855_v10  ;;  %v1864_v62 = vrot.slane %v11149_v59, 7  ;;  %v1865_v34 = vrot.slane %v11114_v5, 7 }
 0x2f7   : > { %v1866_v38 = vrot.slane %v11220_v33, 7  ;;  %v8986_v21 = vpack.i.bf16 %v2030_v0, %v1983_v42  ;;  %v9026_v63 = vpack.i.bf16 %v11439_v39, %v11425_v13  ;;  %v1857_v46 = vrot.slane %v11082_v1, 7  ;;  %v8522_v39 = vld [vmem:[%s16564_s2 + $0x70] sm:$0xff] }
 0x2f8   : > { %8967 = vrot.lane.b32.xlu0 %v8966_v28, %s9596_s8  ;;  %v11454_v11 = vsel %vm395_vm3, %v1855_v10, %v1856_v20  ;;  %v11463_v5 = vsel %vm395_vm3, %v1864_v62, %v1865_v34  ;;  %v1861_v59 = vrot.slane %v11145_v48, 7  ;;  %v1862_v33 = vrot.slane %v11147_v16, 7  ;;  %2786 = vmatpush.bf16.msrb.mxu1 %v8522_v39  ;;  %v16657_v39 = vld [vmem:[#allocation6_spill] sm:$0xff] }
 0x2f9   : > { %v11459_v31 = vsel %vm395_vm3, %v1865_v34, %v1866_v38  ;;  %v11469_v0 = vsel %vm395_vm3, %v1857_v46, %v1858_v25  ;;  %v11473_v17 = vsel %vm395_vm3, %v1856_v20, %v1857_v46  ;;  %v1870_v1 = vrot.slane %v11223_v3, 7  ;;  %v8510_v20 = vld [vmem:[%s16564_s2 + $0x40] sm:$0xff] }
 0x2fa   : > { %v11480_v61 = vsel %vm395_vm3, %v1861_v59, %v1862_v33  ;;  %v11484_v48 = vsel %vm395_vm3, %v1860_v2, %v1861_v59  ;;  %v1871_v16 = vrot.slane %v11213_v41, 7  ;;  %v1872_v25 = vrot.slane %v11309_v40, 7  ;;  %2648 = vmatpush.bf16.msrb.mxu0 %v8510_v20 }
 0x2fb   : > { %8987 = vrot.lane.b32.xlu1 %v8986_v21, %s9596_s8  ;;  %8977 = vrot.lane.b32.xlu2 %v8976_v23, %s9596_s8  ;;  %v1863_v9 = vrot.slane %v11143_v6, 7  ;;  %v1867_v19 = vrot.slane %v11206_v43, 7  ;;  %v1868_v42 = vrot.slane %v11208_v24, 7  ;;  %v1876_v13 = vrot.slane %v11294_v47, 7 }
 0x2fc   : > { %v11492_v10 = vsel %vm395_vm3, %v1870_v1, %v1871_v16  ;;  %v1877_v8 = vrot.slane %v11290_v35, 7  ;;  %v8981_v2 = vpack.i.bf16 %v11223_v3, %v11210_v45  ;;  %v11501_v28 = vsel %vm395_vm3, %v1871_v16, %v1872_v25  ;;  %v8514_v35 = vld [vmem:[%s16564_s2] sm:$0xff] }
 0x2fd   : > { %v11505_v6 = vsel %vm395_vm3, %v1863_v9, %v1864_v62  ;;  %v11509_v43 = vsel %vm395_vm3, %v1862_v33, %v1863_v9  ;;  %v11513_v24 = vsel %vm395_vm3, %v1867_v19, %v1868_v42  ;;  %v11517_v23 = vsel %vm395_vm3, %v1866_v38, %v1867_v19  ;;  %v9523_v19 = vld [vmem:[%s16566_s4] sm:$0xff] }
 0x2fe   : > { %v11521_v3 = vsel %vm395_vm3, %v1877_v8, %v1878_v51  ;;  %v11532_v62 = vsel %vm395_vm3, %v1876_v13, %v1877_v8  ;;  %v1869_v34 = vrot.slane %v11210_v45, 7  ;;  %v1873_v38 = vrot.slane %v11287_v53, 7 }
 0x2ff   : > { %v1874_v51 = vrot.slane %v11292_v60, 7  ;;  %v1875_v21 = vrot.slane %v11281_v49, 7  ;;  %v16652_v45 = vpack.i.bf16 %v11292_v60, %v11287_v53  ;;  %v16653_v16 = vpack.i.bf16 %v11309_v40, %v11213_v41  ;;  %v8519_v53 = vld [vmem:[%s16564_s2 + $0x28] sm:$0xff]  ;;  %v8518_v41 = vld [vmem:[%s16564_s2 + $0x20] sm:$0xff] }
 0x300   : > { %8982 = vrot.lane.b32.xlu0 %v8981_v2, %s9595_s19  ;;  %v11540_v46 = vsel %vm395_vm3, %v1869_v34, %v1870_v1  ;;  %v11544_v59 = vsel %vm395_vm3, %v1868_v42, %v1869_v34  ;;  %v11548_v33 = vsel %vm395_vm3, %v1872_v25, %v1873_v38  ;;  %2488 = vmatpush.bf16.msrb.mxu3 %v8519_v53 }
 0x301   : > { %v11560_v1 = vsel %vm395_vm3, %v1873_v38, %v1874_v51  ;;  %v11564_v9 = vsel %vm395_vm3, %v1875_v21, %v1876_v13  ;;  %v11568_v25 = vsel %vm395_vm3, %v1874_v51, %v1875_v21  ;;  %v16654_v60 = vpack.i.bf16 %v11329_v57, %v11320_v32  ;;  %v8516_v32 = vld [vmem:[%s16564_s2 + $0x10] sm:$0xff]  ;;  %v8521_v57 = vld [vmem:[%s16564_s2 + $0x68] sm:$0xff] }
 0x302   : > { %v16655_v40 = vpack.i.bf16 %v11336_v52, %v11333_v15  ;;  %v16656_v14 = vpack.i.bf16 %v11294_v47, %v11281_v49  ;;  %v8515_v49 = vld [vmem:[%s16564_s2 + $0x8] sm:$0xff]  ;;  %v8509_v47 = vld [vmem:[%s16564_s2 + $0x38] sm:$0xff]  ;;  %2787 = vmatpush.bf16.msrb.mxu1 %v8521_v57  ;;  %v8508_v15 = vld [vmem:[%s16564_s2 + $0x30] sm:$0xff]  ;;  %v1913_v20 = vmul.f32 %v16657_v39, %v11385_v36 }
 0x303   : > { %9002 = vrot.lane.b32.xlu1 %v16652_v45, %s9595_s19  ;;  %8992 = vrot.lane.b32.xlu2 %v16653_v16, %s9595_s19  ;;  %v8520_v52 = vld [vmem:[%s16564_s2 + $0x60] sm:$0xff] }
 0x304   : > { %2489 = vmatpush.bf16.msrb.mxu3 %v8518_v41  ;;  %2649 = vmatpush.bf16.msrb.mxu0 %v8509_v47 }
 0x306   : > { %2788 = vmatpush.bf16.msrb.mxu1 %v8520_v52 }
 0x308   : > { %8997 = vrot.lane.b32.xlu0 %v8996_v4, %s9596_s8  ;;  %2490 = vmatpush.bf16.msrb.mxu3 %v8517_v44  ;;  %v9520_v4 = vld [vmem:[%s16566_s4 + $0x18] sm:$0xff] }
 0x309   : > { %2650 = vmatpush.bf16.msrb.mxu0 %v8508_v15 }
 0x30a   : > { %4732 = vmatpush.msra.mxu1 %v9520_v4 }
 0x30b   : > { %9017 = vrot.lane.b32.xlu1 %v16654_v60, %s9596_s8  ;;  %9007 = vrot.lane.b32.xlu2 %v16655_v40, %s9596_s8 }
 0x30c   : > { %2491 = vmatpush.bf16.msrb.mxu3 %v8516_v32 }
 0x310   : > { %9012 = vrot.lane.b32.xlu0 %v16656_v14, %s9595_s19  ;;  %2492 = vmatpush.bf16.msrb.mxu3 %v8515_v49  ;;  %v1911_v14 = vmul.f32 %v16657_v39, %v11433_v55 }
 0x313   : > { %9022 = vrot.lane.b32.xlu2 %v9021_v12, %s9595_s19  ;;  %v9521_v12 = vld [vmem:[%s16566_s4 + $0x10] sm:$0xff] }
 0x314   : > { %2493 = vmatpush.bf16.msrb.mxu3 %v8514_v35  ;;  %4733 = vmatpush.msra.mxu1 %v9521_v12 }
 0x318   : > { %9027 = vrot.lane.b32.xlu0 %v9026_v63, %s9596_s8  ;;  %v9522_v63 = vld [vmem:[%s16566_s4 + $0x8] sm:$0xff] }
 0x319   : > { %4734 = vmatpush.msra.mxu1 %v9522_v63 }
 0x31b   : > { %4735 = vmatpush.msra.mxu1 %v9523_v19 }
 0x31d   : > { %v8873_v58 = vpop.permute.xlu2 %8872 }
 0x31e   : > { %v8875_v60 = vunpack.i.h.bf16 %v8873_v58  ;;  %v8874_v40 = vunpack.i.l.bf16 %v8873_v58  ;;  %v1915_v58 = vmul.f32 %v16657_v39, %v11415_v22 }
 0x320   : > { %v2295_v49 = vsel %vm1389_vm8, %v1911_v14, %v8874_v40  ;;  %v2296_v47 = vsel %vm1389_vm8, %v11340_v18, %v8875_v60 }
 0x325   : > { %v8888_v42 = vpop.permute.xlu2 %8887 }
 0x326   : > { %v8890_v34 = vunpack.i.h.bf16 %v8888_v42  ;;  %v8889_v38 = vunpack.i.l.bf16 %v8888_v42 }
 0x32d   : > { %v8903_v41 = vpop.permute.xlu2 %8902 }
 0x32f   : > { %v8883_v13 = vpop.permute.xlu1 %8882 }
 0x330   : > { %v8885_v8 = vunpack.i.h.bf16 %v8883_v13  ;;  %v8884_v2 = vunpack.i.l.bf16 %v8883_v13 }
 0x332   : > { %v2297_v51 = vsel %vm1389_vm8, %v1913_v20, %v8884_v2  ;;  %v2298_v21 = vsel %vm1389_vm8, %v11381_v56, %v8885_v8 }
 0x333   : > { %v2330_v45 = vsel %vm2327_vm12, %v2297_v51, %v8889_v38  ;;  %v2331_v16 = vsel %vm2327_vm12, %v2298_v21, %v8890_v34  ;;  %v8905_v51 = vunpack.i.h.bf16 %v8903_v41 }
 0x334   : > { %v2361_v53 = vpack.c.bf16 %v2331_v16, %v2330_v45 }
 0x335   : > { %v8918_v15 = vpop.permute.xlu2 %8917 }
 0x33a   : > { %v8878_v36 = vpop.permute.xlu0 %8877 }
 0x33b   : > { %v8880_v44 = vunpack.i.h.bf16 %v8878_v36  ;;  %v8879_v32 = vunpack.i.l.bf16 %v8878_v36 }
 0x33d   : > { %v2328_v56 = vsel %vm2327_vm12, %v2295_v49, %v8879_v32  ;;  %v2329_v57 = vsel %vm2327_vm12, %v2296_v47, %v8880_v44  ;;  %v8898_v55 = vpop.permute.xlu1 %8897  ;;  %v8933_v22 = vpop.permute.xlu2 %8932  ;;  %v1923_v47 = vmul.f32 %v16657_v39, %v11407_v37 }
 0x33e   : > { %v2360_v35 = vpack.c.bf16 %v2329_v57, %v2328_v56  ;;  %v8900_v13 = vunpack.i.h.bf16 %v8898_v55  ;;  %v8899_v8 = vunpack.i.l.bf16 %v8898_v55  ;;  %v8935_v44 = vunpack.i.h.bf16 %v8933_v22 }
 0x33f   : > { %v8934_v32 = vunpack.i.l.bf16 %v8933_v22  ;;  %v1919_v56 = vmul.f32 %v16657_v39, %v11444_v27 }
 0x340   : > { %7926 = vmatmul.msk.bf16.vlgmr.msrb.gmra.mxu3 %vm2437_vm13, %v2360_v35  ;;  %7966 = vmatmul.msk.bf16.vlgmr.msrb.gmra.mxu0 %vm2437_vm13, %v2360_v35 }
 0x341   : > { %8018 = vmatmul.msk.bf16.vlgmr.msrb.gmra.mxu1 %vm2437_vm13, %v2360_v35 }
 0x342   : > { %v8893_v52 = vpop.permute.xlu0 %8892  ;;  %4755 = vmatpush.msrb.mxu1 %v9520_v4  ;;  %v8904_v4 = vunpack.i.l.bf16 %v8903_v41 }
 0x343   : > { %v8895_v18 = vunpack.i.h.bf16 %v8893_v52  ;;  %v8894_v42 = vunpack.i.l.bf16 %v8893_v52  ;;  %v2307_v52 = vsel %vm1389_vm8, %v1923_v47, %v8934_v32 }
 0x344   : > { %4756 = vmatpush.msrb.mxu1 %v9521_v12  ;;  %v1917_v12 = vmul.f32 %v16657_v39, %v11353_v50 }
 0x345   : > { %v2300_v2 = vsel %vm1389_vm8, %v11411_v30, %v8895_v18  ;;  %v2299_v20 = vsel %vm1389_vm8, %v1915_v58, %v8894_v42  ;;  %v2302_v30 = vsel %vm1389_vm8, %v11362_v54, %v8905_v51  ;;  %v8913_v41 = vpop.permute.xlu1 %8912  ;;  %v8920_v42 = vunpack.i.h.bf16 %v8918_v15 }
 0x346   : > { %4757 = vmatpush.msrb.mxu1 %v9522_v63  ;;  %v2332_v34 = vsel %vm2327_vm12, %v2299_v20, %v8899_v8  ;;  %v2333_v38 = vsel %vm2327_vm12, %v2300_v2, %v8900_v13  ;;  %v2301_v63 = vsel %vm1389_vm8, %v1917_v12, %v8904_v4  ;;  %v8915_v54 = vunpack.i.h.bf16 %v8913_v41 }
 0x347   : > { %v2362_v21 = vpack.c.bf16 %v2333_v38, %v2332_v34  ;;  %v8914_v49 = vunpack.i.l.bf16 %v8913_v41  ;;  %v8919_v13 = vunpack.i.l.bf16 %v8918_v15 }
 0x348   : > { %4758 = vmatpush.msrb.mxu1 %v9523_v19  ;;  %v11667_v19 = vpop.permute.xlu2 %8947  ;;  %v2304_v58 = vsel %vm1389_vm8, %v11454_v11, %v8915_v54 }
 0x349   : > { %v2303_v18 = vsel %vm1389_vm8, %v1919_v56, %v8914_v49 }
 0x34a   : > { %v8908_v45 = vpop.permute.xlu0 %8907  ;;  %v2336_v34 = vsel %vm2327_vm12, %v2303_v18, %v8919_v13  ;;  %v8950_v18 = vunpack.i.h.bf16 %v11667_v19 }
 0x34b   : > { %v8910_v16 = vunpack.i.h.bf16 %v8908_v45  ;;  %v8909_v60 = vunpack.i.l.bf16 %v8908_v45 }
 0x34d   : > { %v2335_v40 = vsel %vm2327_vm12, %v2302_v30, %v8910_v16  ;;  %v2334_v14 = vsel %vm2327_vm12, %v2301_v63, %v8909_v60  ;;  %v8928_v2 = vpop.permute.xlu1 %8927  ;;  %v1929_v16 = vmul.f32 %v16657_v39, %v11463_v5  ;;  %v1921_v60 = vmul.f32 %v16657_v39, %v11473_v17 }
 0x34e   : > { %v2363_v36 = vpack.c.bf16 %v2335_v40, %v2334_v14  ;;  %v8929_v32 = vunpack.i.l.bf16 %v8928_v2 }
 0x350   : > { %7927 = vmatmul.msk.bf16.gmra.mxu3 %vm2437_vm13, %v2361_v53  ;;  %7967 = vmatmul.msk.bf16.gmra.mxu0 %vm2437_vm13, %v2361_v53  ;;  %v8963_v8 = vpop.permute.xlu2 %8962 }
 0x351   : > { %8019 = vmatmul.msk.bf16.gmra.mxu1 %vm2437_vm13, %v2361_v53  ;;  %v2308_v53 = vsel %vm1389_vm8, %v11403_v29, %v8935_v44  ;;  %v2337_v29 = vsel %vm2327_vm12, %v2304_v58, %v8920_v42  ;;  %v8965_v51 = vunpack.i.h.bf16 %v8963_v8  ;;  %v8964_v4 = vunpack.i.l.bf16 %v8963_v8 }
 0x352   : > { %v8923_v50 = vpop.permute.xlu0 %8922  ;;  %v2364_v11 = vpack.c.bf16 %v2337_v29, %v2336_v34  ;;  %v8930_v44 = vunpack.i.h.bf16 %v8928_v2  ;;  %v8949_v42 = vunpack.i.l.bf16 %v11667_v19 }
 0x353   : > { %v8925_v22 = vunpack.i.h.bf16 %v8923_v50  ;;  %v8924_v12 = vunpack.i.l.bf16 %v8923_v50  ;;  %v2313_v14 = vsel %vm1389_vm8, %v1929_v16, %v8964_v4 }
 0x355   : > { %v8943_v45 = vpop.permute.xlu1 %8942  ;;  %v2306_v41 = vsel %vm1389_vm8, %v11469_v0, %v8925_v22  ;;  %v2305_v50 = vsel %vm1389_vm8, %v1921_v60, %v8924_v12 }
 0x356   : > { %v2338_v49 = vsel %vm2327_vm12, %v2305_v50, %v8929_v32  ;;  %v2339_v47 = vsel %vm2327_vm12, %v2306_v41, %v8930_v44  ;;  %v1931_v41 = vmul.f32 %v16657_v39, %v11517_v23  ;;  %v1941_v23 = vmul.f32 %v16657_v39, %v11532_v62 }
 0x358   : > { %v11690_v38 = vpop.permute.xlu2 %8977 }
 0x35a   : > { %v8938_v57 = vpop.permute.xlu0 %8937 }
 0x35b   : > { %v8940_v35 = vunpack.i.h.bf16 %v8938_v57  ;;  %v8939_v55 = vunpack.i.l.bf16 %v8938_v57 }
 0x35d   : > { %v2341_v37 = vsel %vm2327_vm12, %v2308_v53, %v8940_v35  ;;  %v2340_v27 = vsel %vm2327_vm12, %v2307_v52, %v8939_v55  ;;  %v8958_v56 = vpop.permute.xlu1 %8957  ;;  %v8945_v35 = vunpack.i.h.bf16 %v8943_v45  ;;  %v8944_v55 = vunpack.i.l.bf16 %v8943_v45 }
 0x35e   : > { %v11681_v20 = vpack.c.bf16 %v2341_v37, %v2340_v27  ;;  %v1925_v53 = vmul.f32 %v16657_v39, %v11484_v48 }
 0x35f   : > { %v2310_v52 = vsel %vm1389_vm8, %v11480_v61, %v8945_v35 }
 0x360   : > { %7928 = vmatmul.msk.bf16.gmra.mxu3 %vm2437_vm13, %v2362_v21  ;;  %7968 = vmatmul.msk.bf16.gmra.mxu0 %vm2437_vm13, %v2362_v21  ;;  %v8993_v0 = vpop.permute.xlu2 %8992  ;;  %v2309_v58 = vsel %vm1389_vm8, %v1925_v53, %v8944_v55  ;;  %v2343_v2 = vsel %vm2327_vm12, %v2310_v52, %v8950_v18 }
 0x361   : > { %8020 = vmatmul.msk.bf16.gmra.mxu1 %vm2437_vm13, %v2362_v21  ;;  %v2314_v21 = vsel %vm1389_vm8, %v11459_v31, %v8965_v51  ;;  %v11710_v31 = vpack.c.bf16 %v2339_v47, %v2338_v49  ;;  %v8995_v13 = vunpack.i.h.bf16 %v8993_v0  ;;  %v8994_v8 = vunpack.i.l.bf16 %v8993_v0 }
 0x362   : > { %v11688_v15 = vpop.permute.xlu0 %8952  ;;  %v2342_v27 = vsel %vm2327_vm12, %v2309_v58, %v8949_v42 }
 0x363   : > { %v11728_v29 = vpack.c.bf16 %v2343_v2, %v2342_v27  ;;  %v2320_v51 = vsel %vm1389_vm8, %v11501_v28, %v8995_v13  ;;  %v8955_v45 = vunpack.i.h.bf16 %v11688_v15  ;;  %v8954_v16 = vunpack.i.l.bf16 %v11688_v15 }
 0x364   : > { %v1927_v28 = vmul.f32 %v16657_v39, %v11509_v43  ;;  %v8959_v15 = vunpack.i.l.bf16 %v8958_v56 }
 0x365   : > { %v8973_v4 = vpop.permute.xlu1 %8972 }
 0x368   : > { %v11726_v48 = vpop.permute.xlu2 %9007 }
 0x36a   : > { %v8968_v30 = vpop.permute.xlu0 %8967 }
 0x36b   : > { %v8970_v63 = vunpack.i.h.bf16 %v8968_v30  ;;  %v8969_v40 = vunpack.i.l.bf16 %v8968_v30  ;;  %v8975_v30 = vunpack.i.h.bf16 %v8973_v4 }
 0x36d   : > { %v2347_v5 = vsel %vm2327_vm12, %v2314_v21, %v8970_v63  ;;  %v2346_v54 = vsel %vm2327_vm12, %v2313_v14, %v8969_v40  ;;  %v8974_v63 = vunpack.i.l.bf16 %v8973_v4  ;;  %v2312_v40 = vsel %vm1389_vm8, %v11505_v6, %v8955_v45  ;;  %v8988_v44 = vpop.permute.xlu1 %8987 }
 0x36e   : > { %v11704_v17 = vpack.c.bf16 %v2347_v5, %v2346_v54  ;;  %v2311_v21 = vsel %vm1389_vm8, %v1927_v28, %v8954_v16  ;;  %v8960_v14 = vunpack.i.h.bf16 %v8958_v56  ;;  %v2316_v43 = vsel %vm1389_vm8, %v11513_v24, %v8975_v30 }
 0x36f   : > { %v2315_v32 = vsel %vm1389_vm8, %v1931_v41, %v8974_v63  ;;  %v2344_v5 = vsel %vm2327_vm12, %v2311_v21, %v8959_v15  ;;  %v8979_v54 = vunpack.i.l.bf16 %v11690_v38  ;;  %v1939_v30 = vmul.f32 %v16657_v39, %v11568_v25 }
 0x370   : > { %7929 = vmatmul.msk.bf16.gmra.mxu3 %vm2437_vm13, %v2363_v36  ;;  %7969 = vmatmul.msk.bf16.gmra.mxu0 %vm2437_vm13, %v2363_v36  ;;  %v9023_v50 = vpop.permute.xlu2 %9022  ;;  %v2345_v6 = vsel %vm2327_vm12, %v2312_v40, %v8960_v14 }
 0x371   : > { %8021 = vmatmul.msk.bf16.gmra.mxu1 %vm2437_vm13, %v2363_v36  ;;  %v1935_v36 = vmul.f32 %v16657_v39, %v11492_v10  ;;  %v9025_v49 = vunpack.i.h.bf16 %v9023_v50  ;;  %v9024_v47 = vunpack.i.l.bf16 %v9023_v50  ;;  %v2368_v0 = vpack.c.bf16 %v2345_v6, %v2344_v5 }
 0x372   : > { %v11713_v57 = vpop.permute.xlu0 %8982  ;;  %v2348_v35 = vsel %vm2327_vm12, %v2315_v32, %v8979_v54 }
 0x373   : > { %v2319_v19 = vsel %vm1389_vm8, %v1935_v36, %v8994_v8  ;;  %v2326_v58 = vsel %vm1389_vm8, %v11521_v3, %v9025_v49  ;;  %v8985_v62 = vunpack.i.h.bf16 %v11713_v57  ;;  %v8984_v8 = vunpack.i.l.bf16 %v11713_v57 }
 0x374   : > { %v1933_v3 = vmul.f32 %v16657_v39, %v11544_v59 }
 0x375   : > { %v9003_v36 = vpop.permute.xlu1 %9002  ;;  %v2318_v2 = vsel %vm1389_vm8, %v11540_v46, %v8985_v62  ;;  %v9009_v46 = vunpack.i.l.bf16 %v11726_v48 }
 0x376   : > { %v9004_v27 = vunpack.i.l.bf16 %v9003_v36  ;;  %v2317_v57 = vsel %vm1389_vm8, %v1933_v3, %v8984_v8 }
 0x37a   : > { %v8998_v37 = vpop.permute.xlu0 %8997 }
 0x37b   : > { %v9000_v34 = vunpack.i.h.bf16 %v8998_v37  ;;  %v8999_v61 = vunpack.i.l.bf16 %v8998_v37  ;;  %v9005_v37 = vunpack.i.h.bf16 %v9003_v36 }
 0x37d   : > { %v2353_v22 = vsel %vm2327_vm12, %v2320_v51, %v9000_v34  ;;  %v2352_v10 = vsel %vm2327_vm12, %v2319_v19, %v8999_v61  ;;  %v8990_v34 = vunpack.i.h.bf16 %v8988_v44  ;;  %v8989_v61 = vunpack.i.l.bf16 %v8988_v44 }
 0x37e   : > { %v11735_v12 = vpack.c.bf16 %v2353_v22, %v2352_v10  ;;  %v1937_v51 = vmul.f32 %v16657_v39, %v11548_v33  ;;  %v2322_v19 = vsel %vm1389_vm8, %v11560_v1, %v9005_v37  ;;  %v9010_v22 = vunpack.i.h.bf16 %v11726_v48  ;;  %v9018_v48 = vpop.permute.xlu1 %9017 }
 0x37f   : > { %v2350_v4 = vsel %vm2327_vm12, %v2317_v57, %v8989_v61  ;;  %v2351_v59 = vsel %vm2327_vm12, %v2318_v2, %v8990_v34  ;;  %v9020_v21 = vunpack.i.h.bf16 %v9018_v48 }
 0x380   : > { %7930 = vmatmul.msk.bf16.gmra.mxu3 %vm2437_vm13, %v2364_v11  ;;  %7970 = vmatmul.msk.bf16.gmra.mxu0 %vm2437_vm13, %v2364_v11  ;;  %v2371_v10 = vpack.c.bf16 %v2351_v59, %v2350_v4  ;;  %v2355_v16 = vsel %vm2327_vm12, %v2322_v19, %v9010_v22 }
 0x381   : > { %8022 = vmatmul.msk.bf16.gmra.mxu1 %vm2437_vm13, %v2364_v11  ;;  %v8980_v11 = vunpack.i.h.bf16 %v11690_v38  ;;  %v2325_v38 = vsel %vm1389_vm8, %v1941_v23, %v9024_v47 }
 0x382   : > { %v11744_v60 = vpop.permute.xlu0 %9012 }
 0x383   : > { %v2349_v55 = vsel %vm2327_vm12, %v2316_v43, %v8980_v11  ;;  %v9015_v33 = vunpack.i.h.bf16 %v11744_v60  ;;  %v9014_v1 = vunpack.i.l.bf16 %v11744_v60  ;;  %v9019_v60 = vunpack.i.l.bf16 %v9018_v48 }
 0x384   : > { %v11762_v52 = vpack.c.bf16 %v2349_v55, %v2348_v35 }
 0x385   : > { %v2324_v63 = vsel %vm1389_vm8, %v11564_v9, %v9015_v33  ;;  %v2323_v40 = vsel %vm1389_vm8, %v1939_v30, %v9014_v1 }
 0x386   : > { %v2356_v14 = vsel %vm2327_vm12, %v2323_v40, %v9019_v60  ;;  %v2357_v15 = vsel %vm2327_vm12, %v2324_v63, %v9020_v21 }
 0x387   : > { %v11812_v41 = vpack.c.bf16 %v2357_v15, %v2356_v14 }
 0x38a   : > { %v9028_v56 = vpop.permute.xlu0 %9027 }
 0x38b   : > { %v9030_v24 = vunpack.i.h.bf16 %v9028_v56  ;;  %v9029_v53 = vunpack.i.l.bf16 %v9028_v56 }
 0x38d   : > { %v2359_v18 = vsel %vm2327_vm12, %v2326_v58, %v9030_v24  ;;  %v2358_v42 = vsel %vm2327_vm12, %v2325_v38, %v9029_v53 }
 0x38e   : > { %v11769_v13 = vpack.c.bf16 %v2359_v18, %v2358_v42 }
 0x390   : > { %7931 = vmatmul.msk.bf16.gmra.mxu3 %vm2437_vm13, %v11710_v31  ;;  %7971 = vmatmul.msk.bf16.gmra.mxu0 %vm2437_vm13, %v11710_v31 }
 0x391   : > { %8023 = vmatmul.msk.bf16.gmra.mxu1 %vm2437_vm13, %v11710_v31  ;;  %v2321_v31 = vsel %vm1389_vm8, %v1937_v51, %v9004_v27 }
 0x392   : > { %v2354_v45 = vsel %vm2327_vm12, %v2321_v31, %v9009_v46 }
 0x393   : > { %v11795_v28 = vpack.c.bf16 %v2355_v16, %v2354_v45 }
 0x3a0   : > { %7932 = vmatmul.msk.bf16.gmra.mxu3 %vm2437_vm13, %v11681_v20  ;;  %7972 = vmatmul.msk.bf16.gmra.mxu0 %vm2437_vm13, %v11681_v20 }
 0x3a1   : > { %8024 = vmatmul.msk.bf16.gmra.mxu1 %vm2437_vm13, %v11681_v20 }
 0x3b0   : > { %7933 = vmatmul.msk.bf16.gmra.mxu3 %vm2437_vm13, %v11728_v29  ;;  %7973 = vmatmul.msk.bf16.gmra.mxu0 %vm2437_vm13, %v11728_v29 }
 0x3b1   : > { %8025 = vmatmul.msk.bf16.gmra.mxu1 %vm2437_vm13, %v11728_v29 }
 0x3bd   : > { %v11820_v9 = vpop.f32.mrf.mxu0 }
 0x3be   : > { %v11822_v25 = vpop.f32.mrf.mxu1 }
 0x3bf   : > { %v2900_v26 = vmul.f32 0.0, %v11822_v25 }
 0x3c0   : > { %7934 = vmatmul.msk.bf16.gmra.mxu3 %vm2437_vm13, %v2368_v0  ;;  %7974 = vmatmul.msk.bf16.gmra.mxu0 %vm2437_vm13, %v2368_v0 }
 0x3c1   : > { %8026 = vmatmul.msk.bf16.gmra.mxu1 %vm2437_vm13, %v2368_v0 }
 0x3c3   : > { %v2495_v20 = vpop.f32.mrf.mxu3 }
 0x3c5   : > { %v11827_v50 = vpop.f32.mrf.mxu0 }
 0x3c6   : > { %v11829_v11 = vpop.f32.mrf.mxu1 }
 0x3c7   : > { %16658 = vst [vmem:[#allocation10_spill] sm:$0xff] %v11829_v11 }
 0x3cb   : > { %v2497_v44 = vpop.f32.mrf.mxu3 }
 0x3cd   : > { %v2657_v43 = vpop.f32.mrf.mxu0 }
 0x3ce   : > { %v2658_v32 = vadd.f32 %v2657_v43, %v2495_v20  ;;  %v11831_v5 = vpop.f32.mrf.mxu1 }
 0x3d0   : > { %7935 = vmatmul.msk.bf16.gmra.mxu3 %vm2437_vm13, %v11704_v17  ;;  %7975 = vmatmul.msk.bf16.gmra.mxu0 %vm2437_vm13, %v11704_v17 }
 0x3d1   : > { %8027 = vmatmul.msk.bf16.gmra.mxu1 %vm2437_vm13, %v11704_v17 }
 0x3d3   : > { %v2500_v29 = vpop.f32.mrf.mxu3 }
 0x3d5   : > { %v2659_v6 = vpop.f32.mrf.mxu0 }
 0x3d6   : > { %v2660_v54 = vadd.f32 %v2659_v6, %v2497_v44  ;;  %v11839_v49 = vpop.f32.mrf.mxu1 }
 0x3db   : > { %v2502_v47 = vpop.f32.mrf.mxu3 }
 0x3dd   : > { %v2662_v0 = vpop.f32.mrf.mxu0 }
 0x3de   : > { %v2663_v23 = vadd.f32 %v2662_v0, %v2500_v29  ;;  %v2800_v56 = vpop.f32.mrf.mxu1 }
 0x3df   : > { %v11841_v35 = vadd.f32 %v2800_v56, %v2658_v32 }
 0x3e0   : > { %7936 = vmatmul.msk.bf16.gmra.mxu3 %vm2437_vm13, %v11762_v52  ;;  %7976 = vmatmul.msk.bf16.gmra.mxu0 %vm2437_vm13, %v11762_v52 }
 0x3e1   : > { %8028 = vmatmul.msk.bf16.gmra.mxu1 %vm2437_vm13, %v11762_v52 }
 0x3e3   : > { %v2505_v17 = vpop.f32.mrf.mxu3 }
 0x3e5   : > { %v2664_v55 = vpop.f32.mrf.mxu0 }
 0x3e6   : > { %v2665_v24 = vadd.f32 %v2664_v55, %v2502_v47  ;;  %v2802_v53 = vpop.f32.mrf.mxu1 }
 0x3e7   : > { %v11849_v58 = vadd.f32 %v2802_v53, %v2660_v54 }
 0x3eb   : > { %v2507_v38 = vpop.f32.mrf.mxu3 }
 0x3ed   : > { %v2667_v18 = vpop.f32.mrf.mxu0 }
 0x3ee   : > { %v11851_v42 = vadd.f32 %v2667_v18, %v2505_v17  ;;  %v2805_v62 = vpop.f32.mrf.mxu1 }
 0x3ef   : > { %v11853_v8 = vadd.f32 %v2805_v62, %v2663_v23 }
 0x3f0   : > { %7937 = vmatmul.msk.bf16.gmra.mxu3 %vm2437_vm13, %v2371_v10  ;;  %7977 = vmatmul.msk.bf16.gmra.mxu0 %vm2437_vm13, %v2371_v10 }
 0x3f1   : > { %8029 = vmatmul.msk.bf16.gmra.mxu1 %vm2437_vm13, %v2371_v10 }
 0x3f3   : > { %v2510_v52 = vpop.f32.mrf.mxu3 }
 0x3f5   : > { %v2669_v36 = vpop.f32.mrf.mxu0 }
 0x3f6   : > { %v11858_v3 = vadd.f32 %v2669_v36, %v2507_v38  ;;  %v2807_v37 = vpop.f32.mrf.mxu1 }
 0x3f7   : > { %v11860_v27 = vadd.f32 %v2807_v37, %v2665_v24 }
 0x3fb   : > { %v11862_v2 = vpop.f32.mrf.mxu3 }
 0x3fd   : > { %v2672_v57 = vpop.f32.mrf.mxu0 }
 0x3fe   : > { %v2673_v34 = vadd.f32 %v2672_v57, %v2510_v52  ;;  %v11864_v61 = vpop.f32.mrf.mxu1 }
 0x400   : > { %7938 = vmatmul.msk.bf16.gmra.mxu3 %vm2437_vm13, %v11735_v12  ;;  %7978 = vmatmul.msk.bf16.gmra.mxu0 %vm2437_vm13, %v11735_v12 }
 0x401   : > { %8030 = vmatmul.msk.bf16.gmra.mxu1 %vm2437_vm13, %v11735_v12 }
 0x403   : > { %v2515_v51 = vpop.f32.mrf.mxu3 }
 0x405   : > { %v11872_v19 = vpop.f32.mrf.mxu0 }
 0x406   : > { %v11874_v31 = vpop.f32.mrf.mxu1 }
 0x40b   : > { %v11876_v4 = vpop.f32.mrf.mxu3 }
 0x40d   : > { %v2677_v59 = vpop.f32.mrf.mxu0 }
 0x40e   : > { %v2678_v22 = vadd.f32 %v2677_v59, %v2515_v51  ;;  %v2815_v46 = vpop.f32.mrf.mxu1 }
 0x40f   : > { %v11878_v10 = vadd.f32 %v2815_v46, %v2673_v34 }
 0x410   : > { %7939 = vmatmul.msk.bf16.gmra.mxu3 %vm2437_vm13, %v11795_v28  ;;  %7979 = vmatmul.msk.bf16.gmra.mxu0 %vm2437_vm13, %v11795_v28 }
 0x411   : > { %8031 = vmatmul.msk.bf16.gmra.mxu1 %vm2437_vm13, %v11795_v28 }
 0x413   : > { %v2520_v12 = vpop.f32.mrf.mxu3 }
 0x415   : > { %v11886_v45 = vpop.f32.mrf.mxu0 }
 0x416   : > { %v11888_v16 = vpop.f32.mrf.mxu1 }
 0x41b   : > { %v11890_v33 = vpop.f32.mrf.mxu3 }
 0x41d   : > { %v2682_v1 = vpop.f32.mrf.mxu0 }
 0x41e   : > { %v2683_v48 = vadd.f32 %v2682_v1, %v2520_v12  ;;  %v2820_v30 = vpop.f32.mrf.mxu1 }
 0x41f   : > { %v11892_v63 = vadd.f32 %v2820_v30, %v2678_v22 }
 0x420   : > { %7940 = vmatmul.msk.bf16.gmra.mxu3 %vm2437_vm13, %v11812_v41  ;;  %7980 = vmatmul.msk.bf16.gmra.mxu0 %vm2437_vm13, %v11812_v41 }
 0x421   : > { %8032 = vmatmul.msk.bf16.gmra.mxu1 %vm2437_vm13, %v11812_v41 }
 0x423   : > { %v2525_v28 = vpop.f32.mrf.mxu3 }
 0x425   : > { %v11900_v40 = vpop.f32.mrf.mxu0 }
 0x426   : > { %v11902_v21 = vpop.f32.mrf.mxu1 }
 0x42b   : > { %v11904_v60 = vpop.f32.mrf.mxu3 }
 0x42d   : > { %v2687_v14 = vpop.f32.mrf.mxu0 }
 0x42e   : > { %v2688_v15 = vadd.f32 %v2687_v14, %v2525_v28  ;;  %v2825_v20 = vpop.f32.mrf.mxu1 }
 0x42f   : > { %v11906_v44 = vadd.f32 %v2825_v20, %v2683_v48 }
 0x430   : > { %7941 = vmatmul.msk.bf16.gmra.mxu3 %vm2437_vm13, %v11769_v13  ;;  %7981 = vmatmul.msk.bf16.gmra.mxu0 %vm2437_vm13, %v11769_v13 }
 0x431   : > { %8033 = vmatmul.msk.bf16.gmra.mxu1 %vm2437_vm13, %v11769_v13 }
 0x433   : > { %v2530_v41 = vpop.f32.mrf.mxu3 }
 0x435   : > { %v11914_v43 = vpop.f32.mrf.mxu0 }
 0x436   : > { %v11916_v32 = vpop.f32.mrf.mxu1 }
 0x43b   : > { %v11918_v29 = vpop.f32.mrf.mxu3 }
 0x43d   : > { %v2692_v6 = vpop.f32.mrf.mxu0 }
 0x43e   : > { %v2693_v54 = vadd.f32 %v2692_v6, %v2530_v41  ;;  %v2830_v47 = vpop.f32.mrf.mxu1 }
 0x43f   : > { %v11920_v0 = vadd.f32 %v2830_v47, %v2688_v15 }
 0x443   : > { %v2535_v23 = vpop.f32.mrf.mxu3 }
 0x445   : > { %v11922_v56 = vpop.f32.mrf.mxu0 }
 0x446   : > { %v11924_v17 = vpop.f32.mrf.mxu1 }
 0x44b   : > { %v11926_v55 = vpop.f32.mrf.mxu3 }
 0x44d   : > { %v2697_v13 = vpop.f32.mrf.mxu0 }
 0x44e   : > { %v2698_v24 = vadd.f32 %v2697_v13, %v2535_v23  ;;  %v2835_v53 = vpop.f32.mrf.mxu1 }
 0x44f   : > { %v11928_v38 = vadd.f32 %v2835_v53, %v2693_v54 }
 0x453   : > { %v2540_v18 = vpop.f32.mrf.mxu3 }
 0x455   : > { %v11930_v62 = vpop.f32.mrf.mxu0 }
 0x456   : > { %v11932_v52 = vpop.f32.mrf.mxu1 }
 0x45b   : > { %v11934_v36 = vpop.f32.mrf.mxu3 }
 0x45d   : > { %v2702_v37 = vpop.f32.mrf.mxu0 }
 0x45e   : > { %v11936_v57 = vadd.f32 %v2702_v37, %v2540_v18  ;;  %v2840_v34 = vpop.f32.mrf.mxu1 }
 0x45f   : > { %v11938_v51 = vadd.f32 %v2840_v34, %v2698_v24 }
 0x463   : > { %v11940_v59 = vpop.f32.mrf.mxu3 }
 0x465   : > { %v11942_v22 = vpop.f32.mrf.mxu0 }
 0x466   : > { %v11964_v6 = vpop.f32.mrf.mxu1 }
 0x46b   : > { %v11944_v46 = vpop.f32.mrf.mxu3 }
 0x46d   : > { %v11946_v12 = vpop.f32.mrf.mxu0 }
 0x46e   : > { %v11970_v23 = vpop.f32.mrf.mxu1 }
 0x473   : > { %v11948_v1 = vpop.f32.mrf.mxu3 }
 0x475   : > { %v11950_v48 = vpop.f32.mrf.mxu0 }
 0x476   : > { %v11976_v53 = vpop.f32.mrf.mxu1 }
 0x47b   : > { %v11952_v30 = vpop.f32.mrf.mxu3 }
 0x47d   : > { %v11954_v28 = vpop.f32.mrf.mxu0 }
 0x47e   : > { %v11982_v39 = vpop.f32.mrf.mxu1 }
 0x483   : > { %v11956_v14 = vpop.f32.mrf.mxu3 }
 0x484   : > { %16659 = vst [vmem:[#allocation12_spill] sm:$0xff] %v11956_v14 }
 0x485   : > { %v11958_v15 = vpop.f32.mrf.mxu0 }
 0x48b   : > { %v11960_v20 = vpop.f32.mrf.mxu3 }
 0x48c   : > { %16660 = vst [vmem:[#allocation11_spill] sm:$0xff] %v11960_v20 }
 0x48d   : > { %v11962_v41 = vpop.f32.mrf.mxu0 }
 0x48e   : > { %16661 = vst [vmem:[#allocation13_spill] sm:$0xff] %v11962_v41 }
 0x493   : > { %v11966_v54 = vpop.f32.mrf.mxu3 }
 0x494   : > { %16662 = vst [vmem:[#allocation18_spill] sm:$0xff] %v11966_v54 }
 0x495   : > { %v11968_v47 = vpop.f32.mrf.mxu0 }
 0x496   : > { %16663 = vst [vmem:[#allocation8_spill] sm:$0xff] %v11968_v47 }
 0x49b   : > { %v11972_v13 = vpop.f32.mrf.mxu3 }
 0x49c   : > { %16664 = vst [vmem:[#allocation9_spill] sm:$0xff] %v11972_v13  ;;  %v11987_v13 = vpop.f32.mrf.mxu1 }
 0x49d   : > { %v11974_v24 = vpop.f32.mrf.mxu0 }
 0x49e   : > { %16665 = vst [vmem:[#allocation14_spill] sm:$0xff] %v11974_v24 }
 0x4a3   : > { %v2565_v18 = vpop.f32.mrf.mxu3 }
 0x4a5   : > { %v11978_v37 = vpop.f32.mrf.mxu0 }
 0x4a6   : > { %16666 = vst [vmem:[#allocation16_spill] sm:$0xff] %v11978_v37  ;;  %v11993_v37 = vld [vmem:[%s16565_s3 + $0x4] sm:$0x7] }
 0x4a7   : > { %v11997_v25 = vperm.slane %v11993_v37, 0 }
 0x4ab   : > { %v11980_v34 = vpop.f32.mrf.mxu3 }
 0x4ac   : > { %16667 = vst [vmem:[#allocation15_spill] sm:$0xff] %v11980_v34 }
 0x4ad   : > { %v2727_v7 = vpop.f32.mrf.mxu0 }
 0x4ae   : > { %v2728_v11 = vadd.f32 %v2727_v7, %v2565_v18  ;;  %v12000_v7 = vpop.f32.mrf.mxu1 }
 0x4b0   : > { %v11985_v54 = vadd.f32 %v2900_v26, %v2728_v11 }
 0x4b3   : > { %v2570_v47 = vpop.f32.mrf.mxu3 }
 0x4b4   : > { %v2575_v20 = vmul.f32 0.0, %v2570_v47 }
 0x4b6   : > { %v2653_v24 = vadd.f32 %v11820_v9, %v2575_v20  ;;  %v12008_v20 = vadd.f32 %v11997_v25, %v11841_v35 }
 0x4b8   : > { %v2902_v41 = vadd.f32 %v11831_v5, %v2653_v24  ;;  %16669 = vst [vmem:[#allocation19_spill] sm:$0xff] %v12008_v20  ;;  %v12012_v5 = vadd.f32 %v11997_v25, %v11849_v58  ;;  %v3040_v58 = vmul.f32 %v12008_v20, %v12008_v20 }
 0x4ba   : > { %v12003_v11 = vadd.f32 %v11997_v25, %v2902_v41  ;;  %v2908_v41 = vadd.f32 %v11864_v61, %v11851_v42 }
 0x4bb   : > { %v2572_v34 = vpop.f32.mrf.mxu3 }
 0x4bc   : > { %v2576_v14 = vmul.f32 0.0, %v2572_v34  ;;  %16668 = vst [vmem:[#allocation17_spill] sm:$0xff] %v12003_v11  ;;  %v3041_v34 = vmul.f32 %v12012_v5, %v12012_v5 }
 0x4be   : > { %v2655_v26 = vadd.f32 %v11827_v50, %v2576_v14  ;;  %v3038_v50 = vmul.f32 %v12003_v11, %v12003_v11  ;;  %v12021_v14 = vadd.f32 %v11997_v25, %v11853_v8  ;;  %v2972_v8 = vsel %vm1389_vm8, %v12008_v20, 0.0 }
 0x4c0   : > { %v2903_v9 = vadd.f32 %v11839_v49, %v2655_v26  ;;  %v2969_v49 = vsel %vm1389_vm8, %v12003_v11, 0.0  ;;  %v12039_v26 = vadd.f32 %v11997_v25, %v11860_v27  ;;  %v3070_v11 = vsel %vm1389_vm8, %v3038_v50, 0.0 }
 0x4c1   : > { %v12051_v27 = vadd.f32 %v11997_v25, %v2908_v41 }
 0x4c2   : > { %v12015_v47 = vadd.f32 %v11997_v25, %v2903_v9  ;;  %v2909_v9 = vadd.f32 %v11874_v31, %v11858_v3  ;;  %v2675_v3 = vadd.f32 %v11872_v19, %v11862_v2  ;;  %v12055_v31 = vpop.f32.mrf.mxu1  ;;  %v2978_v19 = vsel %vm1389_vm8, %v12039_v26, 0.0 }
 0x4c4   : > { %16670 = vst [vmem:[#allocation20_spill] sm:$0xff] %v12015_v47  ;;  %v2970_v35 = vsel %vm1389_vm8, %v12015_v47, 0.0  ;;  %v3039_v18 = vmul.f32 %v12015_v47, %v12015_v47  ;;  %v3073_v47 = vsel %vm1389_vm8, %v3040_v58, 0.0  ;;  %v12063_v58 = vadd.f32 %v11997_v25, %v2909_v9 }
 0x4c5   : > { %v2971_v24 = vadd.f32 %v2970_v35, %v2969_v49  ;;  %v2974_v49 = vsel %vm1389_vm8, %v12012_v5, 0.0  ;;  %v3042_v35 = vmul.f32 %v12021_v14, %v12021_v14  ;;  %v2911_v41 = vadd.f32 %v11888_v16, %v2675_v3 }
 0x4c6   : > { %v3071_v61 = vsel %vm1389_vm8, %v3039_v18, 0.0  ;;  %v3043_v18 = vmul.f32 %v12039_v26, %v12039_v26  ;;  %v2980_v9 = vsel %vm1389_vm8, %v12051_v27, 0.0  ;;  %v3045_v3 = vmul.f32 %v12063_v58, %v12063_v58 }
 0x4c7   : > { %v2973_v42 = vadd.f32 %v2972_v8, %v2971_v24  ;;  %v3072_v20 = vadd.f32 %v3071_v61, %v3070_v11  ;;  %v2976_v24 = vsel %vm1389_vm8, %v12021_v14, 0.0  ;;  %v3075_v11 = vsel %vm1389_vm8, %v3041_v34, 0.0 }
 0x4c8   : > { %v3077_v2 = vsel %vm1389_vm8, %v3042_v35, 0.0  ;;  %v3079_v16 = vsel %vm1389_vm8, %v3043_v18, 0.0 }
 0x4c9   : > { %v2975_v50 = vadd.f32 %v2974_v49, %v2973_v42  ;;  %v3074_v8 = vadd.f32 %v3073_v47, %v3072_v20  ;;  %v3044_v49 = vmul.f32 %v12051_v27, %v12051_v27  ;;  %v12073_v20 = vadd.f32 %v11997_v25, %v11878_v10 }
 0x4ca   : > { %v2680_v47 = vadd.f32 %v11886_v45, %v11876_v4  ;;  %v2685_v4 = vadd.f32 %v11900_v40, %v11890_v33 }
 0x4cb   : > { %v2977_v61 = vadd.f32 %v2976_v24, %v2975_v50  ;;  %v3076_v42 = vadd.f32 %v3075_v11, %v3074_v8  ;;  %v12083_v50 = vadd.f32 %v11997_v25, %v2911_v41  ;;  %v2982_v8 = vsel %vm1389_vm8, %v12063_v58, 0.0 }
 0x4cc   : > { %v2913_v24 = vadd.f32 %v11902_v21, %v2680_v47  ;;  %v3081_v18 = vsel %vm1389_vm8, %v3044_v49, 0.0  ;;  %v3046_v11 = vmul.f32 %v12073_v20, %v12073_v20  ;;  %v2984_v21 = vsel %vm1389_vm8, %v12073_v20, 0.0  ;;  %v12106_v49 = vpop.f32.mrf.mxu1 }
 0x4cd   : > { %v2979_v34 = vadd.f32 %v2978_v19, %v2977_v61  ;;  %v3078_v35 = vadd.f32 %v3077_v2, %v3076_v42  ;;  %v12095_v61 = vadd.f32 %v11997_v25, %v11892_v63  ;;  %v2915_v2 = vadd.f32 %v11916_v32, %v2685_v4 }
 0x4ce   : > { %v3083_v42 = vsel %vm1389_vm8, %v3045_v3, 0.0  ;;  %v3047_v33 = vmul.f32 %v12083_v50, %v12083_v50  ;;  %v12104_v40 = vadd.f32 %v11997_v25, %v2913_v24  ;;  %v2986_v63 = vsel %vm1389_vm8, %v12083_v50, 0.0 }
 0x4cf   : > { %v2981_v10 = vadd.f32 %v2980_v9, %v2979_v34  ;;  %v3080_v45 = vadd.f32 %v3079_v16, %v3078_v35  ;;  %v12112_v34 = vadd.f32 %v11997_v25, %v11906_v44  ;;  %v3085_v16 = vsel %vm1389_vm8, %v3046_v11, 0.0 }
 0x4d0   : > { %v3048_v9 = vmul.f32 %v12095_v61, %v12095_v61  ;;  %v2690_v35 = vadd.f32 %v11914_v43, %v11904_v60  ;;  %v2988_v24 = vsel %vm1389_vm8, %v12095_v61, 0.0  ;;  %v3087_v44 = vsel %vm1389_vm8, %v3047_v33, 0.0 }
 0x4d1   : > { %v2983_v41 = vadd.f32 %v2982_v8, %v2981_v10  ;;  %v3082_v19 = vadd.f32 %v3081_v18, %v3080_v45  ;;  %v12122_v10 = vadd.f32 %v11997_v25, %v2915_v2  ;;  %v3049_v4 = vmul.f32 %v12104_v40, %v12104_v40 }
 0x4d2   : > { %v2917_v45 = vadd.f32 %v11924_v17, %v2690_v35  ;;  %v2990_v11 = vsel %vm1389_vm8, %v12104_v40, 0.0  ;;  %v3050_v60 = vmul.f32 %v12112_v34, %v12112_v34  ;;  %v2695_v2 = vadd.f32 %v11922_v56, %v11918_v29 }
 0x4d3   : > { %v2985_v47 = vadd.f32 %v2984_v21, %v2983_v41  ;;  %v3084_v32 = vadd.f32 %v3083_v42, %v3082_v19  ;;  %v3089_v41 = vsel %vm1389_vm8, %v3048_v9, 0.0  ;;  %v12135_v21 = vadd.f32 %v11997_v25, %v11920_v0 }
 0x4d4   : > { %v2992_v17 = vsel %vm1389_vm8, %v12112_v34, 0.0  ;;  %v3051_v42 = vmul.f32 %v12122_v10, %v12122_v10  ;;  %v2994_v29 = vsel %vm1389_vm8, %v12122_v10, 0.0  ;;  %v12155_v35 = vadd.f32 %v11997_v25, %v11928_v38 }
 0x4d5   : > { %v2987_v3 = vadd.f32 %v2986_v63, %v2985_v47  ;;  %v3086_v8 = vadd.f32 %v3085_v16, %v3084_v32  ;;  %v3091_v47 = vsel %vm1389_vm8, %v3049_v4, 0.0  ;;  %v12145_v63 = vadd.f32 %v11997_v25, %v2917_v45 }
 0x4d6   : > { %v2919_v32 = vadd.f32 %v11932_v52, %v2695_v2  ;;  %v3093_v16 = vsel %vm1389_vm8, %v3050_v60, 0.0  ;;  %v3052_v9 = vmul.f32 %v12135_v21, %v12135_v21 }
 0x4d7   : > { %v2989_v18 = vadd.f32 %v2988_v24, %v2987_v3  ;;  %v3088_v43 = vadd.f32 %v3087_v44, %v3086_v8  ;;  %v2700_v3 = vadd.f32 %v11930_v62, %v11926_v55  ;;  %v12159_v24 = vpop.f32.mrf.mxu1  ;;  %v3095_v8 = vsel %vm1389_vm8, %v3051_v42, 0.0 }
 0x4d8   : > { %v2996_v44 = vsel %vm1389_vm8, %v12135_v21, 0.0  ;;  %v3053_v45 = vmul.f32 %v12145_v63, %v12145_v63  ;;  %v2998_v55 = vsel %vm1389_vm8, %v12145_v63, 0.0  ;;  %v3097_v60 = vsel %vm1389_vm8, %v3052_v9, 0.0 }
 0x4d9   : > { %v2991_v19 = vadd.f32 %v2990_v11, %v2989_v18  ;;  %v3090_v33 = vadd.f32 %v3089_v41, %v3088_v43  ;;  %v12167_v18 = vadd.f32 %v11997_v25, %v2919_v32  ;;  %v2921_v38 = vadd.f32 %v11964_v6, %v2700_v3 }
 0x4da   : > { %v3054_v43 = vmul.f32 %v12155_v35, %v12155_v35  ;;  %v12177_v41 = vadd.f32 %v11997_v25, %v11938_v51  ;;  %v2705_v6 = vadd.f32 %v11942_v22, %v11934_v36  ;;  %v2710_v3 = vadd.f32 %v11950_v48, %v11944_v46 }
 0x4db   : > { %v2993_v0 = vadd.f32 %v2992_v17, %v2991_v19  ;;  %v3092_v56 = vadd.f32 %v3091_v47, %v3090_v33  ;;  %v3000_v19 = vsel %vm1389_vm8, %v12155_v35, 0.0  ;;  %v2922_v17 = vadd.f32 %v11970_v23, %v11936_v57 }
 0x4dc   : > { %v3099_v33 = vsel %vm1389_vm8, %v3053_v45, 0.0  ;;  %v3055_v47 = vmul.f32 %v12167_v18, %v12167_v18  ;;  %v12189_v32 = vadd.f32 %v11997_v25, %v2921_v38  ;;  %v2923_v36 = vadd.f32 %v11976_v53, %v2705_v6  ;;  %v16671_v6 = vld [vmem:[#allocation12_spill] sm:$0xff] }
 0x4dd   : > { %v2995_v52 = vadd.f32 %v2994_v29, %v2993_v0  ;;  %v3094_v4 = vadd.f32 %v3093_v16, %v3092_v56  ;;  %v3002_v0 = vsel %vm1389_vm8, %v12167_v18, 0.0  ;;  %v2708_v16 = vadd.f32 %v11946_v12, %v11940_v59 }
 0x4de   : > { %v3101_v57 = vsel %vm1389_vm8, %v3054_v43, 0.0  ;;  %v3004_v23 = vsel %vm1389_vm8, %v12177_v41, 0.0  ;;  %v3056_v29 = vmul.f32 %v12177_v41, %v12177_v41  ;;  %v12202_v9 = vadd.f32 %v11997_v25, %v2922_v17  ;;  %v16672_v17 = vld [vmem:[#allocation13_spill] sm:$0xff] }
 0x4df   : > { %v2997_v11 = vadd.f32 %v2996_v44, %v2995_v52  ;;  %v3096_v62 = vadd.f32 %v3095_v8, %v3094_v4  ;;  %v2924_v59 = vadd.f32 %v11982_v39, %v2708_v16  ;;  %v3103_v53 = vsel %vm1389_vm8, %v3055_v47, 0.0  ;;  %v2865_v8 = vpop.f32.mrf.mxu1  ;;  %v16674_v16 = vld [vmem:[#allocation8_spill] sm:$0xff] }
 0x4e0   : > { %v3006_v52 = vsel %vm1389_vm8, %v12189_v32, 0.0  ;;  %v12211_v4 = vadd.f32 %v11997_v25, %v2923_v36  ;;  %v2713_v45 = vadd.f32 %v11954_v28, %v11948_v1  ;;  %v2925_v38 = vadd.f32 %v11987_v13, %v2710_v3 }
 0x4e1   : > { %v2999_v2 = vadd.f32 %v2998_v55, %v2997_v11  ;;  %v3098_v42 = vadd.f32 %v3097_v60, %v3096_v62  ;;  %v3105_v46 = vsel %vm1389_vm8, %v3056_v29, 0.0  ;;  %v3057_v39 = vmul.f32 %v12189_v32, %v12189_v32 }
 0x4e2   : > { %v3008_v55 = vsel %vm1389_vm8, %v12202_v9, 0.0  ;;  %v12222_v62 = vadd.f32 %v11997_v25, %v2924_v59  ;;  %v2715_v60 = vadd.f32 %v11958_v15, %v11952_v30  ;;  %v2926_v1 = vadd.f32 %v12000_v7, %v2713_v45  ;;  %v16675_v59 = vld [vmem:[#allocation18_spill] sm:$0xff]  ;;  %v2729_v45 = vpop.f32.mrf.mxu0 }
 0x4e3   : > { %v3001_v51 = vadd.f32 %v3000_v19, %v2999_v2  ;;  %v3100_v22 = vadd.f32 %v3099_v33, %v3098_v42  ;;  %v3058_v28 = vmul.f32 %v12202_v9, %v12202_v9  ;;  %v3010_v2 = vsel %vm1389_vm8, %v12211_v4, 0.0 }
 0x4e4   : > { %v12232_v19 = vadd.f32 %v11997_v25, %v2925_v38  ;;  %v2718_v42 = vadd.f32 %v16672_v17, %v16671_v6  ;;  %v2927_v33 = vadd.f32 %v12055_v31, %v2715_v60  ;;  %v3107_v30 = vsel %vm1389_vm8, %v3057_v39, 0.0  ;;  %v16678_v60 = vld [vmem:[#allocation16_spill] sm:$0xff] }
 0x4e5   : > { %v3003_v56 = vadd.f32 %v3002_v0, %v3001_v51  ;;  %v3102_v12 = vadd.f32 %v3101_v57, %v3100_v22  ;;  %v3059_v15 = vmul.f32 %v12211_v4, %v12211_v4  ;;  %v3012_v47 = vsel %vm1389_vm8, %v12222_v62, 0.0  ;;  %v16673_v0 = vld [vmem:[#allocation11_spill] sm:$0xff] }
 0x4e6   : > { %v12243_v51 = vadd.f32 %v11997_v25, %v2926_v1  ;;  %v2720_v36 = vadd.f32 %v16674_v16, %v16673_v0  ;;  %v2928_v22 = vadd.f32 %v12106_v49, %v2718_v42  ;;  %v3109_v57 = vsel %vm1389_vm8, %v3058_v28, 0.0  ;;  %v16679_v42 = vld [vmem:[#allocation15_spill] sm:$0xff] }
 0x4e7   : > { %v3005_v44 = vadd.f32 %v3004_v23, %v3003_v56  ;;  %v3104_v11 = vadd.f32 %v3103_v53, %v3102_v12  ;;  %v3060_v31 = vmul.f32 %v12222_v62, %v12222_v62  ;;  %v3014_v56 = vsel %vm1389_vm8, %v12232_v19, 0.0  ;;  %v16676_v12 = vld [vmem:[#allocation14_spill] sm:$0xff]  ;;  %v2867_v38 = vpop.f32.mrf.mxu1 }
 0x4e8   : > { %v12254_v3 = vadd.f32 %v11997_v25, %v2927_v33  ;;  %v2723_v53 = vadd.f32 %v16676_v12, %v16675_v59  ;;  %v3111_v49 = vsel %vm1389_vm8, %v3059_v15, 0.0  ;;  %v3016_v39 = vsel %vm1389_vm8, %v12243_v51, 0.0  ;;  %v16680_v15 = vld [vmem:[#allocation10_spill] sm:$0xff] }
 0x4e9   : > { %v3007_v48 = vadd.f32 %v3006_v52, %v3005_v44  ;;  %v3106_v13 = vadd.f32 %v3105_v46, %v3104_v11  ;;  %v2929_v52 = vadd.f32 %v12159_v24, %v2720_v36  ;;  %v3061_v44 = vmul.f32 %v12232_v19, %v12232_v19 }
 0x4ea   : > { %v2930_v28 = vadd.f32 %v2865_v8, %v2723_v53  ;;  %v3113_v24 = vsel %vm1389_vm8, %v3060_v31, 0.0  ;;  %v3018_v6 = vsel %vm1389_vm8, %v12254_v3, 0.0  ;;  %v2730_v33 = vadd.f32 %v2729_v45, %v16679_v42 }
 0x4eb   : > { %v3009_v43 = vadd.f32 %v3008_v55, %v3007_v48  ;;  %v3108_v29 = vadd.f32 %v3107_v30, %v3106_v13  ;;  %v12265_v48 = vadd.f32 %v11997_v25, %v2928_v22  ;;  %v16677_v55 = vld [vmem:[#allocation9_spill] sm:$0xff]  ;;  %v3062_v13 = vmul.f32 %v12243_v51, %v12243_v51 }
 0x4ec   : > { %v2725_v1 = vadd.f32 %v16678_v60, %v16677_v55  ;;  %v12275_v17 = vadd.f32 %v11997_v25, %v2929_v52  ;;  %v3115_v0 = vsel %vm1389_vm8, %v3061_v44, 0.0  ;;  %v3063_v16 = vmul.f32 %v12254_v3, %v12254_v3 }
 0x4ed   : > { %v3011_v7 = vadd.f32 %v3010_v2, %v3009_v43  ;;  %v3110_v46 = vadd.f32 %v3109_v57, %v3108_v29  ;;  %v3020_v36 = vsel %vm1389_vm8, %v12265_v48, 0.0  ;;  %v12285_v22 = vadd.f32 %v11997_v25, %v2930_v28  ;;  %v8531_v29 = vld [vmem:[%s16564_s2 + $0xe8] sm:$0xff] }
 0x4ee   : > { %v2931_v30 = vadd.f32 %v2867_v38, %v2725_v1  ;;  %v3117_v57 = vsel %vm1389_vm8, %v3062_v13, 0.0  ;;  %v3064_v59 = vmul.f32 %v12265_v48, %v12265_v48  ;;  %v3022_v12 = vsel %vm1389_vm8, %v12275_v17, 0.0  ;;  %4223 = vmatpush.bf16.msra.mxu3 %v8531_v29 }
 0x4ef   : > { %v3013_v23 = vadd.f32 %v3012_v47, %v3011_v7  ;;  %v3112_v2 = vadd.f32 %v3111_v49, %v3110_v46  ;;  %v2901_v7 = vmul.f32 0.0, %v16680_v15  ;;  %v3119_v45 = vsel %vm1389_vm8, %v3063_v16, 0.0 }
 0x4f0   : > { %v12299_v52 = vadd.f32 %v11997_v25, %v2931_v30  ;;  %v3065_v38 = vmul.f32 %v12275_v17, %v12275_v17  ;;  %v3024_v46 = vsel %vm1389_vm8, %v12285_v22, 0.0  ;;  %v3121_v60 = vsel %vm1389_vm8, %v3064_v59, 0.0 }
 0x4f1   : > { %v3015_v11 = vadd.f32 %v3014_v56, %v3013_v23  ;;  %v3114_v8 = vadd.f32 %v3113_v24, %v3112_v2  ;;  %v8543_v56 = vld [vmem:[%s16564_s2 + $0x118] sm:$0xff]  ;;  %v2933_v53 = vadd.f32 %v2901_v7, %v2730_v33  ;;  %v3066_v1 = vmul.f32 %v12285_v22, %v12285_v22 }
 0x4f2   : > { %4361 = vmatpush.bf16.msra.mxu0 %v8543_v56  ;;  %v3026_v24 = vsel %vm1389_vm8, %v12299_v52, 0.0 }
 0x4f3   : > { %v3017_v43 = vadd.f32 %v3016_v39, %v3015_v11  ;;  %v3116_v23 = vadd.f32 %v3115_v0, %v3114_v8  ;;  %v12306_v11 = vadd.f32 %v11997_v25, %v11985_v54  ;;  %v12314_v28 = vadd.f32 %v11997_v25, %v2933_v53 }
 0x4f4   : > { %v3123_v54 = vsel %vm1389_vm8, %v3065_v38, 0.0  ;;  %v3125_v25 = vsel %vm1389_vm8, %v3066_v1, 0.0 }
 0x4f5   : > { %v3019_v47 = vadd.f32 %v3018_v6, %v3017_v43  ;;  %v3118_v44 = vadd.f32 %v3117_v57, %v3116_v23  ;;  %v3028_v2 = vsel %vm1389_vm8, %v12306_v11, 0.0  ;;  %v3067_v6 = vmul.f32 %v12299_v52, %v12299_v52 }
 0x4f6   : > { %v3068_v30 = vmul.f32 %v12306_v11, %v12306_v11  ;;  %v3030_v15 = vsel %vm1389_vm8, %v12314_v28, 0.0  ;;  %v3069_v8 = vmul.f32 %v12314_v28, %v12314_v28 }
 0x4f7   : > { %v3021_v31 = vadd.f32 %v3020_v36, %v3019_v47  ;;  %v3120_v55 = vadd.f32 %v3119_v45, %v3118_v44  ;;  %v3127_v0 = vsel %vm1389_vm8, %v3067_v6, 0.0 }
 0x4f8   : > { %v3129_v57 = vsel %vm1389_vm8, %v3068_v30, 0.0  ;;  %v3131_v29 = vsel %vm1389_vm8, %v3069_v8, 0.0 }
 0x4f9   : > { %v3023_v49 = vadd.f32 %v3022_v12, %v3021_v31  ;;  %v3122_v43 = vadd.f32 %v3121_v60, %v3120_v55 }
 0x4fb   : > { %v3025_v39 = vadd.f32 %v3024_v46, %v3023_v49  ;;  %v3124_v33 = vadd.f32 %v3123_v54, %v3122_v43 }
 0x4fd   : > { %v3027_v13 = vadd.f32 %v3026_v24, %v3025_v39  ;;  %v3126_v47 = vadd.f32 %v3125_v25, %v3124_v33 }
 0x4ff   : > { %v3029_v42 = vadd.f32 %v3028_v2, %v3027_v13  ;;  %v3128_v36 = vadd.f32 %v3127_v0, %v3126_v47  ;;  %v8530_v13 = vld [vmem:[%s16564_s2 + $0xe0] sm:$0xff]  ;;  %v8542_v2 = vld [vmem:[%s16564_s2 + $0x110] sm:$0xff] }
 0x500   : > { %4224 = vmatpush.bf16.msra.mxu3 %v8530_v13  ;;  %4362 = vmatpush.bf16.msra.mxu0 %v8542_v2  ;;  %v16681_v47 = vld [vmem:[#allocation17_spill] sm:$0xff] }
 0x501   : > { %v3031_v7 = vadd.f32 %v3030_v15, %v3029_v42  ;;  %v3130_v23 = vadd.f32 %v3129_v57, %v3128_v36  ;;  %v12344_v15 = vperm.slane %v11993_v37, 1  ;;  %v16683_v57 = vld [vmem:[#allocation19_spill] sm:$0xff] }
 0x503   : > { %v3032_v16 = vrot.slane %v3031_v7, 4  ;;  %v3132_v59 = vadd.f32 %v3131_v29, %v3130_v23 }
 0x505   : > { %v3033_v31 = vadd.f32 %v3032_v16, %v3031_v7  ;;  %v3133_v53 = vrot.slane %v3132_v59, 4  ;;  %v12347_v7 = vperm.slane %v11993_v37, 2  ;;  %v16682_v16 = vld [vmem:[#allocation20_spill] sm:$0xff] }
 0x507   : > { %v3034_v56 = vrot.slane %v3033_v31, 2  ;;  %v3134_v44 = vadd.f32 %v3133_v53, %v3132_v59 }
 0x509   : > { %v3035_v12 = vadd.f32 %v3034_v56, %v3033_v31  ;;  %v3135_v38 = vrot.slane %v3134_v44, 2 }
 0x50b   : > { %v3036_v49 = vrot.slane %v3035_v12, 1  ;;  %v3136_v46 = vadd.f32 %v3135_v38, %v3134_v44 }
 0x50d   : > { %v3037_v45 = vadd.f32 %v3036_v49, %v3035_v12  ;;  %v3137_v39 = vrot.slane %v3136_v46, 1 }
 0x50f   : > { %8035 = vmatmul.msk.f32.vlgmr.msrb.gmra.mxu2 %vm1389_vm8, %v3037_v45  ;;  %v3138_v55 = vadd.f32 %v3137_v39, %v3136_v46 }
 0x517   : > { %8036 = vmatmul.msk.f32.vlgmr.msra.gmra.mxu2 %vm1389_vm8, %v3138_v55 }
 0x592   : > { %v3159_v60 = vpop.f32.mrf.mxu2 }
 0x593   : > { %v3185_v24 = vmul.f32 %v3159_v60, %v3159_v60  ;;  %v12341_v33 = vperm.slane %v3159_v60, 0 }
 0x595   : > { %v3199_v8 = vsub.f32 %v16681_v47, %v12341_v33  ;;  %v3200_v36 = vsub.f32 %v16682_v16, %v12341_v33  ;;  %v3201_v31 = vsub.f32 %v16683_v57, %v12341_v33  ;;  %v3202_v23 = vsub.f32 %v12012_v5, %v12341_v33 }
 0x596   : > { %v3203_v29 = vsub.f32 %v12021_v14, %v12341_v33  ;;  %v3204_v37 = vsub.f32 %v12039_v26, %v12341_v33  ;;  %v3205_v56 = vsub.f32 %v12051_v27, %v12341_v33  ;;  %v3206_v12 = vsub.f32 %v12063_v58, %v12341_v33 }
 0x597   : > { %v3207_v53 = vsub.f32 %v12073_v20, %v12341_v33  ;;  %v3208_v5 = vsub.f32 %v12083_v50, %v12341_v33  ;;  %v3209_v14 = vsub.f32 %v12095_v61, %v12341_v33  ;;  %v3210_v26 = vsub.f32 %v12104_v40, %v12341_v33 }
 0x598   : > { %v3211_v27 = vsub.f32 %v12112_v34, %v12341_v33  ;;  %v3212_v49 = vsub.f32 %v12122_v10, %v12341_v33  ;;  %v3213_v20 = vsub.f32 %v12135_v21, %v12341_v33  ;;  %v3214_v50 = vsub.f32 %v12145_v63, %v12341_v33 }
 0x599   : > { %v3215_v61 = vsub.f32 %v12155_v35, %v12341_v33  ;;  %v3216_v40 = vsub.f32 %v12167_v18, %v12341_v33  ;;  %v3217_v34 = vsub.f32 %v12177_v41, %v12341_v33  ;;  %v3218_v10 = vsub.f32 %v12189_v32, %v12341_v33 }
 0x59a   : > { %v3182_v1 = vpop.f32.mrf.mxu2  ;;  %v3219_v21 = vsub.f32 %v12202_v9, %v12341_v33  ;;  %v3220_v63 = vsub.f32 %v12211_v4, %v12341_v33  ;;  %v3221_v35 = vsub.f32 %v12222_v62, %v12341_v33  ;;  %v3222_v45 = vsub.f32 %v12232_v19, %v12341_v33 }
 0x59b   : > { %v3186_v43 = vsub.f32 %v3182_v1, %v3185_v24  ;;  %v3223_v18 = vsub.f32 %v12243_v51, %v12341_v33  ;;  %v3224_v41 = vsub.f32 %v12254_v3, %v12341_v33  ;;  %v3225_v32 = vsub.f32 %v12265_v48, %v12341_v33 }
 0x59c   : > { %v3226_v9 = vsub.f32 %v12275_v17, %v12341_v33  ;;  %v3227_v4 = vsub.f32 %v12285_v22, %v12341_v33  ;;  %v3228_v62 = vsub.f32 %v12299_v52, %v12341_v33  ;;  %v3229_v19 = vsub.f32 %v12306_v11, %v12341_v33 }
 0x59d   : > { %v3187_v54 = vadd.f32 1e-05, %v3186_v43  ;;  %v3230_v51 = vsub.f32 %v12314_v28, %v12341_v33 }
 0x59f   : > { %9514 = vrsqrt.f32 %v3187_v54  ;;  %vm3194_vm15 = vweird.f32 %v3187_v54 }
 0x5a5   : > { %v9515_v6 = vpop.eup %9514 }
 0x5a6   : > { %v3189_v42 = vmul.f32 %v9515_v6, %v3187_v54  ;;  %vm3195_vm14 = vweird.f32 %v9515_v6 }
 0x5a7   : > { %vm3196_vm0 = vmor %vm3194_vm15, %vm3195_vm14 }
 0x5a8   : > { %v3190_v30 = vmul.f32 %v9515_v6, %v3189_v42 }
 0x5aa   : > { %v3191_v25 = vmul.f32 0.5, %v3190_v30 }
 0x5ac   : > { %v3192_v0 = vsub.f32 1.5, %v3191_v25 }
 0x5ae   : > { %v3193_v59 = vmul.f32 %v9515_v6, %v3192_v0 }
 0x5b0   : > { %v3197_v58 = vsel %vm3196_vm0, %v9515_v6, %v3193_v59 }
 0x5b1   : > { %v12383_v44 = vperm.slane %v3197_v58, 0 }
 0x5b3   : > { %v12416_v3 = vmul.f32 %v12383_v44, %v3199_v8  ;;  %v3234_v48 = vmul.f32 %v12383_v44, %v3201_v31  ;;  %v3235_v38 = vmul.f32 %v12383_v44, %v3202_v23  ;;  %v3236_v17 = vmul.f32 %v12383_v44, %v3203_v29 }
 0x5b4   : > { %v3237_v22 = vmul.f32 %v12383_v44, %v3204_v37  ;;  %v3238_v46 = vmul.f32 %v12383_v44, %v3205_v56  ;;  %v12424_v52 = vmul.f32 %v12383_v44, %v3206_v12  ;;  %v3240_v11 = vmul.f32 %v12383_v44, %v3207_v53 }
 0x5b5   : > { %v12428_v28 = vmul.f32 %v12383_v44, %v3208_v5  ;;  %v3242_v39 = vmul.f32 %v12383_v44, %v3209_v14  ;;  %v3243_v55 = vmul.f32 %v12383_v44, %v3210_v26  ;;  %v3244_v60 = vmul.f32 %v12383_v44, %v3211_v27  ;;  %v8529_v27 = vld [vmem:[%s16564_s2 + $0xd8] sm:$0xff] }
 0x5b6   : > { %v12434_v1 = vmul.f32 %v12383_v44, %v3212_v49  ;;  %v12437_v24 = vmul.f32 %v12383_v44, %v3224_v41  ;;  %v3258_v13 = vmul.f32 %v12383_v44, %v3225_v32  ;;  %v12441_v43 = vmul.f32 %v12383_v44, %v3226_v9  ;;  %4225 = vmatpush.bf16.msra.mxu3 %v8529_v27 }
 0x5b7   : > { %v3260_v54 = vmul.f32 %v12383_v44, %v3227_v4  ;;  %v3246_v2 = vmul.f32 %v12383_v44, %v3213_v20  ;;  %v3261_v6 = vmul.f32 %v12383_v44, %v3228_v62  ;;  %v3262_v42 = vmul.f32 %v12383_v44, %v3229_v19 }
 0x5b8   : > { %v12448_v30 = vmul.f32 %v12383_v44, %v3230_v51  ;;  %v12451_v25 = vmul.f32 %v12383_v44, %v3214_v50  ;;  %v3248_v47 = vmul.f32 %v12383_v44, %v3215_v61  ;;  %v3249_v8 = vmul.f32 %v12383_v44, %v3216_v40 }
 0x5b9   : > { %v3250_v0 = vmul.f32 %v12383_v44, %v3217_v34  ;;  %v12457_v57 = vmul.f32 %v12383_v44, %v3218_v10  ;;  %v3252_v31 = vmul.f32 %v12383_v44, %v3219_v21  ;;  %v12461_v23 = vmul.f32 %v12383_v44, %v3220_v63 }
 0x5ba   : > { %v3254_v29 = vmul.f32 %v12383_v44, %v3221_v35  ;;  %v3255_v37 = vmul.f32 %v12383_v44, %v3222_v45  ;;  %v3256_v56 = vmul.f32 %v12383_v44, %v3223_v18  ;;  %v3267_v59 = vmul.f32 %v12344_v15, %v3234_v48 }
 0x5bb   : > { %v3269_v12 = vmul.f32 %v12344_v15, %v3236_v17  ;;  %v3270_v53 = vmul.f32 %v12344_v15, %v3237_v22  ;;  %v3271_v5 = vmul.f32 %v12344_v15, %v3238_v46  ;;  %v12471_v14 = vmul.f32 %v12344_v15, %v3240_v11 }
 0x5bc   : > { %v12474_v26 = vmul.f32 %v12344_v15, %v3258_v13  ;;  %v3275_v49 = vmul.f32 %v12344_v15, %v3242_v39  ;;  %v3293_v58 = vmul.f32 %v12344_v15, %v3260_v54  ;;  %v3294_v20 = vmul.f32 %v12344_v15, %v3261_v6  ;;  %v8541_v6 = vld [vmem:[%s16564_s2 + $0x108] sm:$0xff] }
 0x5bd   : > { %v3295_v50 = vmul.f32 %v12344_v15, %v3262_v42  ;;  %v3276_v61 = vmul.f32 %v12344_v15, %v3243_v55  ;;  %v3277_v40 = vmul.f32 %v12344_v15, %v3244_v60  ;;  %v12486_v34 = vmul.f32 %v12344_v15, %v3246_v2  ;;  %4363 = vmatpush.bf16.msra.mxu0 %v8541_v6 }
 0x5be   : > { %v3281_v10 = vmul.f32 %v12344_v15, %v3248_v47  ;;  %v3282_v21 = vmul.f32 %v12344_v15, %v3249_v8  ;;  %v3283_v63 = vmul.f32 %v12344_v15, %v3250_v0  ;;  %v12492_v35 = vmul.f32 %v12344_v15, %v3252_v31 }
 0x5bf   : > { %v3287_v45 = vmul.f32 %v12344_v15, %v3254_v29  ;;  %v3288_v18 = vmul.f32 %v12344_v15, %v3255_v37  ;;  %v3289_v41 = vmul.f32 %v12344_v15, %v3256_v56  ;;  %v3304_v32 = vadd.f32 %v12347_v7, %v3271_v5 }
 0x5c0   : > { %v12499_v9 = vadd.f32 %v12347_v7, %v3293_v58  ;;  %v12502_v4 = vadd.f32 %v12347_v7, %v3294_v20  ;;  %v12505_v62 = vadd.f32 %v12347_v7, %v3295_v50  ;;  %v3268_v19 = vmul.f32 %v12344_v15, %v3235_v38 }
 0x5c1   : > { %v3300_v51 = vadd.f32 %v12347_v7, %v3267_v59  ;;  %v3302_v48 = vadd.f32 %v12347_v7, %v3269_v12  ;;  %v3303_v17 = vadd.f32 %v12347_v7, %v3270_v53  ;;  %v3308_v22 = vadd.f32 %v12347_v7, %v3275_v49 }
 0x5c2   : > { %v12513_v46 = vadd.f32 %v12347_v7, %v3276_v61  ;;  %v3310_v11 = vadd.f32 %v12347_v7, %v3277_v40  ;;  %v3314_v39 = vadd.f32 %v12347_v7, %v3281_v10  ;;  %v3301_v55 = vadd.f32 %v12347_v7, %v3268_v19 }
 0x5c3   : > { %v3332_v60 = vmax.f32 %v3300_v51, 0.0  ;;  %v12519_v38 = vadd.f32 %v12347_v7, %v3282_v21  ;;  %v3316_v13 = vadd.f32 %v12347_v7, %v3283_v63  ;;  %v3320_v54 = vadd.f32 %v12347_v7, %v3287_v45 }
 0x5c4   : > { %v3336_v2 = vmax.f32 %v3304_v32, 0.0  ;;  %v12527_v42 = vadd.f32 %v12347_v7, %v3288_v18  ;;  %v12530_v47 = vadd.f32 %v12347_v7, %v3289_v41  ;;  %v3333_v8 = vmax.f32 %v3301_v55, 0.0 }
 0x5c5   : > { %v3364_v0 = vpack.c.bf16 %v3332_v60, %v3332_v60  ;;  %v3334_v31 = vmax.f32 %v3302_v48, 0.0  ;;  %v3335_v29 = vmax.f32 %v3303_v17, 0.0  ;;  %v3340_v37 = vmax.f32 %v3308_v22, 0.0 }
 0x5c6   : > { %v3233_v56 = vmul.f32 %v12383_v44, %v3200_v36  ;;  %v3365_v59 = vpack.c.bf16 %v3333_v8, %v3333_v8  ;;  %v3341_v53 = vmax.f32 %v12513_v46, 0.0  ;;  %v3265_v5 = vmul.f32 %v12344_v15, %v12416_v3 }
 0x5c7   : > { %v12536_v12 = vunpack.c.l.bf16 %v3364_v0  ;;  %v3342_v27 = vmax.f32 %v3310_v11, 0.0  ;;  %v3346_v49 = vmax.f32 %v3314_v39, 0.0  ;;  %v3368_v20 = vpack.c.bf16 %v3336_v2, %v3336_v2 }
 0x5c8   : > { %v3266_v58 = vmul.f32 %v12344_v15, %v3233_v56  ;;  %v12542_v50 = vunpack.c.l.bf16 %v3365_v59  ;;  %v3347_v33 = vmax.f32 %v12519_v38, 0.0  ;;  %v3348_v16 = vmax.f32 %v3316_v13, 0.0 }
 0x5c9   : > { %v3298_v36 = vadd.f32 %v12347_v7, %v3265_v5  ;;  %v3352_v44 = vmax.f32 %v3320_v54, 0.0  ;;  %v3353_v61 = vmax.f32 %v12527_v42, 0.0  ;;  %v3366_v10 = vpack.c.bf16 %v3334_v31, %v3334_v31 }
 0x5ca   : > { %v3299_v40 = vadd.f32 %v12347_v7, %v3266_v58  ;;  %v9041_v3 = vpack.i.bf16 %v12542_v50, %v12536_v12  ;;  %v3354_v21 = vmax.f32 %v12530_v47, 0.0  ;;  %v3358_v63 = vmax.f32 %v12499_v9, 0.0 }
 0x5cb   : > { %v3330_v45 = vmax.f32 %v3298_v36, 0.0  ;;  %v3359_v18 = vmax.f32 %v12502_v4, 0.0  ;;  %v3360_v41 = vmax.f32 %v12505_v62, 0.0  ;;  %v12554_v19 = vunpack.c.l.bf16 %v3368_v20 }
 0x5cc   : > { %v3331_v32 = vmax.f32 %v3299_v40, 0.0  ;;  %9042 = vrot.lane.b32.xlu0 %v9041_v3, %s9595_s19  ;;  %v3372_v48 = vpack.c.bf16 %v3340_v37, %v3340_v37  ;;  %v3374_v17 = vpack.c.bf16 %v3342_v27, %v3342_v27  ;;  %v3367_v22 = vpack.c.bf16 %v3335_v29, %v3335_v29  ;;  %v16685_v40 = vld [vmem:[#allocation7_spill] sm:$0xff] }
 0x5cd   : > { %v3362_v51 = vpack.c.bf16 %v3330_v45, %v3330_v45  ;;  %v12557_v39 = vunpack.c.l.bf16 %v3366_v10  ;;  %v3528_v55 = vrot.slane %v12554_v19, 1  ;;  %v3525_v9 = vrot.slane %v12542_v50, 1 }
 0x5ce   : > { %v3363_v11 = vpack.c.bf16 %v3331_v32, %v3331_v32  ;;  %v12563_v13 = vunpack.c.l.bf16 %v3367_v22  ;;  %v3274_v54 = vmul.f32 %v12344_v15, %v12428_v28  ;;  %v3306_v2 = vadd.f32 %v12347_v7, %v12471_v14 }
 0x5cf   : > { %v12561_v60 = vunpack.c.l.bf16 %v3362_v51  ;;  %v12571_v47 = vpack.c.bf16 %v3346_v49, %v3346_v49  ;;  %v3524_v8 = vrot.slane %v12536_v12, 1  ;;  %v3526_v0 = vrot.slane %v12557_v39, 1 }
 0x5d0   : > { %v12569_v6 = vunpack.c.l.bf16 %v3363_v11  ;;  %v3380_v31 = vpack.c.bf16 %v3348_v16, %v3348_v16  ;;  %v3527_v29 = vrot.slane %v12563_v13, 1  ;;  %v3307_v37 = vadd.f32 %v12347_v7, %v3274_v54 }
 0x5d1   : > { %v3272_v56 = vmul.f32 %v12344_v15, %v12424_v52  ;;  %v16594_v14 = vrot.slane %v12561_v60, 1  ;;  %v3581_v27 = vsel %vm492_vm2, %v3525_v9, %v3526_v0  ;;  %v12585_v49 = vpack.c.bf16 %v3352_v44, %v3352_v44 }
 0x5d2   : > { %v9031_v28 = vpack.i.bf16 %v12569_v6, %v12561_v60  ;;  %v3523_v59 = vrot.slane %v12569_v6, 1  ;;  %v12587_v58 = vunpack.c.l.bf16 %v3374_v17  ;;  %v3579_v20 = vsel %vm492_vm2, %v3527_v29, %v3528_v55 }
 0x5d3   : > { %v3338_v52 = vmax.f32 %v3306_v2, 0.0  ;;  %v3580_v36 = vsel %vm492_vm2, %v3526_v0, %v3527_v29  ;;  %v3591_v10 = vmul.f32 %v16685_v40, %v3579_v20  ;;  %v3339_v44 = vmax.f32 %v3307_v37, 0.0 }
 0x5d4   : > { %9032 = vrot.lane.b32.xlu1 %v9031_v28, %s9595_s19  ;;  %v3583_v16 = vsel %vm492_vm2, %v3523_v59, %v3524_v8  ;;  %v3589_v45 = vmul.f32 %v16685_v40, %v3581_v27  ;;  %v3305_v51 = vadd.f32 %v12347_v7, %v3272_v56  ;;  %v3584_v17 = vsel %vm492_vm2, %v16594_v14, %v3523_v59 }
 0x5d5   : > { %v3587_v3 = vmul.f32 %v16685_v40, %v3583_v16  ;;  %v3370_v32 = vpack.c.bf16 %v3338_v52, %v3338_v52  ;;  %v9056_v22 = vpack.i.bf16 %v3591_v10, %v3580_v36  ;;  %v3371_v11 = vpack.c.bf16 %v3339_v44, %v3339_v44 }
 0x5d6   : > { %v3373_v54 = vpack.c.bf16 %v3341_v53, %v3341_v53  ;;  %v3386_v2 = vpack.c.bf16 %v3354_v21, %v3354_v21  ;;  %v3337_v29 = vmax.f32 %v3305_v51, 0.0  ;;  %v12609_v37 = vunpack.c.l.bf16 %v3372_v48 }
 0x5d7   : > { %v9036_v0 = vpack.i.bf16 %v3587_v3, %v3584_v17  ;;  %9057 = vrot.lane.b32.xlu0 %v9056_v22, %s9596_s8  ;;  %v12612_v28 = vunpack.c.l.bf16 %v3370_v32  ;;  %v12614_v56 = vunpack.c.l.bf16 %v3371_v11  ;;  %v3280_v59 = vmul.f32 %v12344_v15, %v12451_v25 }
 0x5d8   : > { %v12616_v27 = vunpack.c.l.bf16 %v3373_v54  ;;  %v12620_v20 = vpack.c.bf16 %v3358_v63, %v3358_v63  ;;  %v3582_v46 = vsel %vm492_vm2, %v3524_v8, %v3525_v9  ;;  %v3369_v53 = vpack.c.bf16 %v3337_v29, %v3337_v29 }
 0x5d9   : > { %9037 = vrot.lane.b32.xlu2 %v9036_v0, %s9596_s8  ;;  %v3312_v21 = vadd.f32 %v12347_v7, %v12486_v34  ;;  %v3429_v48 = vrot.slane %v12542_v50, 7  ;;  %v9046_v52 = vpack.i.bf16 %v3589_v45, %v3582_v46  ;;  %v3534_v16 = vrot.slane %v12587_v58, 1 }
 0x5da   : > { %v3278_v36 = vmul.f32 %v12344_v15, %v12434_v1  ;;  %v12631_v25 = vunpack.c.l.bf16 %v3369_v53  ;;  %v3533_v63 = vrot.slane %v12616_v27, 1  ;;  %v3313_v10 = vadd.f32 %v12347_v7, %v3280_v59 }
 0x5db   : > { %v3344_v44 = vmax.f32 %v3312_v21, 0.0  ;;  %v12638_v9 = vpack.c.bf16 %v3360_v41, %v3360_v41  ;;  %v3530_v34 = vrot.slane %v12612_v28, 1  ;;  %v3532_v8 = vrot.slane %v12609_v37, 1 }
 0x5dc   : > { %9047 = vrot.lane.b32.xlu1 %v9046_v52, %s9596_s8  ;;  %v3531_v1 = vrot.slane %v12614_v56, 1  ;;  %v12644_v3 = vunpack.c.l.bf16 %v3380_v31  ;;  %v12646_v45 = vunpack.c.l.bf16 %v3386_v2  ;;  %v9051_v32 = vpack.i.bf16 %v12563_v13, %v12557_v39 }
 0x5dd   : > { %v3529_v62 = vrot.slane %v12631_v25, 1  ;;  %v3427_v41 = vrot.slane %v12569_v6, 7  ;;  %v9071_v51 = vpack.i.bf16 %v12614_v56, %v12612_v28  ;;  %v3345_v17 = vmax.f32 %v3313_v10, 0.0 }
 0x5de   : > { %v3311_v22 = vadd.f32 %v12347_v7, %v3278_v36  ;;  %v3435_v11 = vrot.slane %v12614_v56, 7  ;;  %v3573_v31 = vsel %vm492_vm2, %v3533_v63, %v3534_v16  ;;  %v3376_v54 = vpack.c.bf16 %v3344_v44, %v3344_v44 }
 0x5df   : > { %v3379_v2 = vpack.c.bf16 %v3347_v33, %v3347_v33  ;;  %9072 = vrot.lane.b32.xlu0 %v9071_v51, %s9595_s19  ;;  %v3577_v0 = vsel %vm492_vm2, %v3529_v62, %v3530_v34  ;;  %v3575_v29 = vsel %vm492_vm2, %v3531_v1, %v3532_v8  ;;  %v9081_v59 = vpack.i.bf16 %v12616_v27, %v12609_v37 }
 0x5e0   : > { %v3377_v46 = vpack.c.bf16 %v3345_v17, %v3345_v17  ;;  %v3574_v53 = vsel %vm492_vm2, %v3532_v8, %v3533_v63  ;;  %v3343_v38 = vmax.f32 %v3311_v22, 0.0  ;;  %v12674_v33 = vunpack.c.l.bf16 %v12571_v47 }
 0x5e1   : > { %9052 = vrot.lane.b32.xlu2 %v9051_v32, %s9595_s19  ;;  %v12676_v21 = vunpack.c.l.bf16 %v3379_v2  ;;  %v9061_v52 = vpack.i.bf16 %v12631_v25, %v12554_v19  ;;  %v3597_v36 = vmul.f32 %v16685_v40, %v3573_v31  ;;  %v3286_v44 = vmul.f32 %v12344_v15, %v12461_v23 }
 0x5e2   : > { %v12681_v10 = vunpack.c.l.bf16 %v3377_v46  ;;  %v3593_v32 = vmul.f32 %v16685_v40, %v3577_v0  ;;  %v3595_v63 = vmul.f32 %v16685_v40, %v3575_v29  ;;  %v12687_v8 = vunpack.c.l.bf16 %v3376_v54 }
 0x5e3   : > { %v3375_v47 = vpack.c.bf16 %v3343_v38, %v3343_v38  ;;  %v3576_v51 = vsel %vm492_vm2, %v3530_v34, %v3531_v1  ;;  %v3539_v17 = vrot.slane %v12676_v21, 1  ;;  %v3540_v22 = vrot.slane %v12644_v3, 1 }
 0x5e4   : > { %9062 = vrot.lane.b32.xlu1 %v9061_v52, %s9595_s19  ;;  %v3318_v31 = vadd.f32 %v12347_v7, %v12492_v35  ;;  %v3538_v2 = vrot.slane %v12674_v33, 1  ;;  %v3537_v54 = vrot.slane %v12681_v10, 1  ;;  %v3319_v0 = vadd.f32 %v12347_v7, %v3286_v44 }
 0x5e5   : > { %v12696_v23 = vunpack.c.l.bf16 %v3375_v47  ;;  %v3578_v34 = vsel %vm492_vm2, %v3528_v55, %v3529_v62  ;;  %v9086_v1 = vpack.i.bf16 %v3597_v36, %v3574_v53  ;;  %v9076_v52 = vpack.i.bf16 %v3595_v63, %v3576_v51 }
 0x5e6   : > { %v3350_v46 = vmax.f32 %v3318_v31, 0.0  ;;  %v9066_v38 = vpack.i.bf16 %v3593_v32, %v3578_v34  ;;  %v3536_v47 = vrot.slane %v12687_v8, 1  ;;  %v3567_v44 = vsel %vm492_vm2, %v3539_v17, %v3540_v22  ;;  %v8528_v32 = vld [vmem:[%s16564_s2 + $0xd0] sm:$0xff] }
 0x5e7   : > { %v3535_v35 = vrot.slane %v12696_v23, 1  ;;  %9087 = vrot.lane.b32.xlu0 %v9086_v1, %s9596_s8  ;;  %v9111_v14 = vpack.i.bf16 %v12676_v21, %v12674_v33  ;;  %v3351_v29 = vmax.f32 %v3319_v0, 0.0  ;;  %v3284_v55 = vmul.f32 %v12344_v15, %v12457_v57  ;;  %4226 = vmatpush.bf16.msra.mxu3 %v8528_v32 }
 0x5e8   : > { %v9101_v53 = vpack.i.bf16 %v12681_v10, %v12687_v8  ;;  %v3569_v36 = vsel %vm492_vm2, %v3537_v54, %v3538_v2  ;;  %v3385_v63 = vpack.c.bf16 %v3353_v61, %v3353_v61  ;;  %v12731_v57 = vsel %vm492_vm2, %v3538_v2, %v3539_v17 }
 0x5e9   : > { %9067 = vrot.lane.b32.xlu2 %v9066_v38, %s9596_s8  ;;  %v3382_v51 = vpack.c.bf16 %v3350_v46, %v3350_v46  ;;  %v3383_v31 = vpack.c.bf16 %v3351_v29, %v3351_v29  ;;  %v3317_v0 = vadd.f32 %v12347_v7, %v3284_v55  ;;  %v3571_v34 = vsel %vm492_vm2, %v3535_v35, %v3536_v47  ;;  %v8540_v46 = vld [vmem:[%s16564_s2 + $0x100] sm:$0xff] }
 0x5ea   : > { %v3603_v1 = vmul.f32 %v16685_v40, %v3567_v44  ;;  %v12737_v38 = vunpack.c.l.bf16 %v3385_v63  ;;  %v3292_v42 = vmul.f32 %v12344_v15, %v12441_v43  ;;  %v12743_v61 = vmul.f32 %v16685_v40, %v3569_v36  ;;  %4364 = vmatpush.bf16.msra.mxu0 %v8540_v46 }
 0x5eb   : > { %v12745_v17 = vunpack.c.l.bf16 %v3383_v31  ;;  %v3349_v2 = vmax.f32 %v3317_v0, 0.0  ;;  %v12748_v29 = vunpack.c.l.bf16 %v12585_v49  ;;  %v12755_v44 = vsel %vm492_vm2, %v3536_v47, %v3537_v54 }
 0x5ec   : > { %9077 = vrot.lane.b32.xlu1 %v9076_v52, %s9596_s8  ;;  %v3545_v43 = vrot.slane %v12737_v38, 1  ;;  %v3546_v52 = vrot.slane %v12646_v45, 1  ;;  %v3324_v55 = vadd.f32 %v12347_v7, %v12474_v26  ;;  %v9091_v49 = vpack.i.bf16 %v12696_v23, %v12587_v58 }
 0x5ed   : > { %v3599_v32 = vmul.f32 %v16685_v40, %v3571_v34  ;;  %v12765_v63 = vunpack.c.l.bf16 %v3382_v51  ;;  %v9116_v54 = vpack.i.bf16 %v3603_v1, %v12731_v57  ;;  %v3381_v47 = vpack.c.bf16 %v3349_v2, %v3349_v2 }
 0x5ee   : > { %v3325_v31 = vadd.f32 %v12347_v7, %v3292_v42  ;;  %v3356_v0 = vmax.f32 %v3324_v55, 0.0  ;;  %v3572_v26 = vsel %vm492_vm2, %v3534_v16, %v3535_v35  ;;  %v9106_v36 = vpack.i.bf16 %v12743_v61, %v12755_v44 }
 0x5ef   : > { %9102 = vrot.lane.b32.xlu0 %v9101_v53, %s9595_s19  ;;  %v3544_v51 = vrot.slane %v12748_v29, 1  ;;  %v3543_v34 = vrot.slane %v12745_v17, 1  ;;  %v3561_v53 = vsel %vm492_vm2, %v3545_v43, %v3546_v52  ;;  %v3290_v16 = vmul.f32 %v12344_v15, %v12437_v24 }
 0x5f0   : > { %v3357_v57 = vmax.f32 %v3325_v31, 0.0  ;;  %v3388_v1 = vpack.c.bf16 %v3356_v0, %v3356_v0  ;;  %v9096_v35 = vpack.i.bf16 %v3599_v32, %v3572_v26  ;;  %v9131_v61 = vpack.i.bf16 %v12745_v17, %v12765_v63 }
 0x5f1   : > { %9082 = vrot.lane.b32.xlu2 %v9081_v59, %s9595_s19  ;;  %v3542_v2 = vrot.slane %v12765_v63, 1  ;;  %v12792_v46 = vunpack.c.l.bf16 %v3381_v47  ;;  %v3323_v55 = vadd.f32 %v12347_v7, %v3290_v16  ;;  %v12800_v24 = vsel %vm492_vm2, %v3544_v51, %v3545_v43 }
 0x5f2   : > { %v3389_v59 = vpack.c.bf16 %v3357_v57, %v3357_v57  ;;  %v12794_v44 = vunpack.c.l.bf16 %v3388_v1  ;;  %v12803_v32 = vmul.f32 %v16685_v40, %v3561_v53  ;;  %v3391_v31 = vpack.c.bf16 %v3359_v18, %v3359_v18 }
 0x5f3   : > { %v12809_v47 = vunpack.c.l.bf16 %v12620_v20  ;;  %v3563_v0 = vsel %vm492_vm2, %v3543_v34, %v3544_v51  ;;  %v12819_v53 = vunpack.c.l.bf16 %v12638_v9  ;;  %v3296_v18 = vmul.f32 %v12344_v15, %v12448_v30 }
 0x5f4   : > { %9092 = vrot.lane.b32.xlu1 %v9091_v49, %s9595_s19  ;;  %v12813_v26 = vunpack.c.l.bf16 %v3389_v59  ;;  %v3355_v49 = vmax.f32 %v3323_v55, 0.0  ;;  %v3548_v57 = vrot.slane %v12794_v44, 1  ;;  %v12816_v43 = vunpack.c.l.bf16 %v3391_v31 }
 0x5f5   : > { %v3550_v4 = vrot.slane %v12809_v47, 1  ;;  %v3541_v20 = vrot.slane %v12792_v46, 1  ;;  %v12827_v51 = vsel %vm492_vm2, %v3542_v2, %v3543_v34  ;;  %v3552_v59 = vrot.slane %v12819_v53, 1 }
 0x5f6   : > { %v3387_v16 = vpack.c.bf16 %v3355_v49, %v3355_v49  ;;  %v3551_v9 = vrot.slane %v12816_v43, 1  ;;  %v3549_v55 = vrot.slane %v12813_v26, 1  ;;  %v3329_v34 = vadd.f32 %v12347_v7, %v3296_v18 }
 0x5f7   : > { %9117 = vrot.lane.b32.xlu0 %v9116_v54, %s9596_s8  ;;  %v3430_v31 = vrot.slane %v12557_v39, 7  ;;  %v3431_v49 = vrot.slane %v12563_v13, 7  ;;  %v12856_v7 = vmul.f32 %v16685_v40, %v3563_v0  ;;  %v3436_v42 = vrot.slane %v12609_v37, 7 }
 0x5f8   : > { %v12838_v30 = vunpack.c.l.bf16 %v3387_v16  ;;  %v3555_v54 = vsel %vm492_vm2, %v3551_v9, %v3552_v59  ;;  %v12847_v1 = vsel %vm492_vm2, %v3550_v4, %v3551_v9  ;;  %v3557_v15 = vsel %vm492_vm2, %v3549_v55, %v3550_v4 }
 0x5f9   : > { %9097 = vrot.lane.b32.xlu2 %v9096_v35, %s9596_s8  ;;  %v12853_v35 = vsel %vm492_vm2, %v3548_v57, %v3549_v55  ;;  %v12862_v18 = vmul.f32 %v16685_v40, %v3555_v54  ;;  %v12866_v16 = vmul.f32 %v16685_v40, %v3557_v15  ;;  %v3361_v4 = vmax.f32 %v3329_v34, 0.0 }
 0x5fa   : > { %v3547_v13 = vrot.slane %v12838_v30, 1  ;;  %v12870_v9 = vsel %vm395_vm3, %v3430_v31, %v3431_v49  ;;  %v12876_v0 = vsel %vm395_vm3, %v3429_v48, %v3430_v31  ;;  %v3565_v55 = vsel %vm492_vm2, %v3541_v20, %v3542_v2 }
 0x5fb   : > { %v9176_v34 = vpack.i.bf16 %v12862_v18, %v12847_v1  ;;  %v3393_v39 = vpack.c.bf16 %v3361_v4, %v3361_v4  ;;  %v3428_v2 = vrot.slane %v12536_v12, 7  ;;  %v3437_v62 = vrot.slane %v12616_v27, 7  ;;  %v8534_v1 = vld [vmem:[%s16564_s2 + $0xa0] sm:$0xff] }
 0x5fc   : > { %9107 = vrot.lane.b32.xlu1 %v9106_v36, %s9596_s8  ;;  %v3559_v36 = vsel %vm492_vm2, %v3547_v13, %v3548_v57  ;;  %v12888_v15 = vsel %vm492_vm2, %v3546_v52, %v3547_v13  ;;  %v3426_v57 = vrot.slane %v12561_v60, 7  ;;  %v3434_v52 = vrot.slane %v12612_v28, 7 }
 0x5fd   : > { %v12893_v31 = vmul.f32 %v16685_v40, %v3559_v36  ;;  %v12905_v36 = vunpack.c.l.bf16 %v3393_v39  ;;  %v12911_v12 = vsel %vm395_vm3, %v3428_v2, %v3429_v48  ;;  %v12917_v37 = vsel %vm395_vm3, %v3427_v41, %v3428_v2 }
 0x5fe   : > { %v9121_v28 = vpack.i.bf16 %v12792_v46, %v12644_v3  ;;  %v12929_v50 = vsel %vm395_vm3, %v3426_v57, %v3427_v41  ;;  %v12933_v27 = vsel %vm395_vm3, %v3436_v42, %v3437_v62  ;;  %v12939_v48 = vsel %vm395_vm3, %v3435_v11, %v3436_v42 }
 0x5ff   : > { %9132 = vrot.lane.b32.xlu0 %v9131_v61, %s9595_s19  ;;  %v9156_v13 = vpack.i.bf16 %v12893_v31, %v12888_v15  ;;  %v3457_v61 = vrot.slane %v12905_v36, 7  ;;  %v3553_v41 = vrot.slane %v12905_v36, 1  ;;  %v12950_v39 = vsel %vm395_vm3, %v3434_v52, %v3435_v11 }
 0x600   : > { %v16686_v4 = vrot.slane %v12631_v25, 7  ;;  %v3442_v2 = vrot.slane %v12674_v33, 7  ;;  %v3445_v6 = vrot.slane %v12792_v46, 7  ;;  %v16687_v11 = vrot.slane %v12561_v60, 1 }
 0x601   : > { %9112 = vrot.lane.b32.xlu2 %v9111_v14, %s9595_s19  ;;  %v3605_v14 = vmul.f32 %v16685_v40, %v3565_v55  ;;  %v3432_v55 = vrot.slane %v12554_v19, 7  ;;  %v12964_v56 = vsel %vm492_vm2, %v3552_v59, %v3553_v41  ;;  %v9146_v19 = vpack.i.bf16 %v12803_v32, %v12800_v24 }
 0x602   : > { %v12956_v42 = vsel %vm395_vm3, %v16686_v4, %v3434_v52  ;;  %v3585_v54 = vsel %vm492_vm2, %v3553_v41, %v16687_v11  ;;  %v12972_v52 = vsel %vm395_vm3, %v3457_v61, %v3426_v57  ;;  %v3566_v24 = vsel %vm492_vm2, %v3540_v22, %v3541_v20 }
 0x603   : > { %v12977_v33 = vmul.f32 %v16685_v40, %v3585_v54  ;;  %v12987_v60 = vsel %vm395_vm3, %v3431_v49, %v3432_v55  ;;  %v3443_v32 = vrot.slane %v12676_v21, 7  ;;  %v16689_v54 = vrot.slane %v12681_v10, 7 }
 0x604   : > { %9122 = vrot.lane.b32.xlu1 %v9121_v28, %s9595_s19  ;;  %v16688_v28 = vmov %v16686_v4  ;;  %v3440_v57 = vrot.slane %v12687_v8, 7  ;;  %v9126_v41 = vpack.i.bf16 %v3605_v14, %v3566_v24  ;;  %v3438_v46 = vrot.slane %v12587_v58, 7 }
 0x605   : > { %v12983_v59 = vsel %vm395_vm3, %v3432_v55, %v16688_v28  ;;  %v13000_v25 = vsel %vm395_vm3, %v16689_v54, %v3442_v2  ;;  %v9186_v49 = vpack.i.bf16 %v12977_v33, %v12964_v56  ;;  %v3448_v4 = vrot.slane %v12748_v29, 7 }
 0x606   : > { %v13010_v21 = vsel %vm395_vm3, %v3442_v2, %v3443_v32  ;;  %v16690_v22 = vmov %v16689_v54  ;;  %v16691_v8 = vrot.slane %v12696_v23, 7  ;;  %v3449_v58 = vrot.slane %v12737_v38, 7 }
 0x607   : > { %9147 = vrot.lane.b32.xlu0 %v9146_v19, %s9596_s8  ;;  %v13016_v20 = vsel %vm395_vm3, %v3440_v57, %v16690_v22  ;;  %v9136_v55 = vpack.i.bf16 %v12856_v7, %v12827_v51  ;;  %v13036_v56 = vsel %vm395_vm3, %v3437_v62, %v3438_v46  ;;  %v16693_v11 = vrot.slane %v12745_v17, 7 }
 0x608   : > { %v13022_v14 = vsel %vm395_vm3, %v16691_v8, %v3440_v57  ;;  %v16692_v2 = vmov %v16691_v8  ;;  %v3453_v33 = vrot.slane %v12813_v26, 7  ;;  %v3451_v51 = vrot.slane %v12838_v30, 7 }
 0x609   : > { %9127 = vrot.lane.b32.xlu2 %v9126_v41, %s9596_s8  ;;  %v13032_v10 = vsel %vm395_vm3, %v3438_v46, %v16692_v2  ;;  %v13042_v19 = vsel %vm395_vm3, %v16693_v11, %v3448_v4  ;;  %v13048_v23 = vsel %vm395_vm3, %v3448_v4, %v3449_v58  ;;  %v3446_v7 = vrot.slane %v12765_v63, 7 }
 0x60a   : > { %v3444_v28 = vrot.slane %v12644_v3, 7  ;;  %v3454_v62 = vrot.slane %v12809_v47, 7  ;;  %v3455_v24 = vrot.slane %v12816_v43, 7  ;;  %v3452_v54 = vrot.slane %v12794_v44, 7 }
 0x60b   : > { %v16694_v57 = vmov %v16693_v11  ;;  %v13064_v46 = vsel %vm395_vm3, %v3445_v6, %v3446_v7  ;;  %v3450_v3 = vrot.slane %v12646_v45, 7  ;;  %v3456_v63 = vrot.slane %v12819_v53, 7 }
 0x60c   : > { %9137 = vrot.lane.b32.xlu1 %v9136_v55, %s9596_s8  ;;  %v13060_v41 = vsel %vm395_vm3, %v3446_v7, %v16694_v57  ;;  %v13070_v4 = vsel %vm395_vm3, %v3444_v28, %v3445_v6  ;;  %v13074_v22 = vsel %vm395_vm3, %v3443_v32, %v3444_v28  ;;  %v13078_v17 = vsel %vm395_vm3, %v3454_v62, %v3455_v24  ;;  %v16700_v57 = vld [vmem:[#allocation6_spill] sm:$0xff] }
 0x60d   : > { %v13082_v8 = vsel %vm395_vm3, %v3453_v33, %v3454_v62  ;;  %v13086_v55 = vsel %vm395_vm3, %v3452_v54, %v3453_v33  ;;  %v13090_v6 = vsel %vm395_vm3, %v3451_v51, %v3452_v54  ;;  %v9141_v32 = vpack.i.bf16 %v12737_v38, %v12748_v29 }
 0x60e   : > { %v13096_v2 = vsel %vm395_vm3, %v3450_v3, %v3451_v51  ;;  %v13100_v11 = vsel %vm395_vm3, %v3449_v58, %v3450_v3  ;;  %v16695_v33 = vpack.i.bf16 %v12813_v26, %v12794_v44  ;;  %v13108_v7 = vsel %vm395_vm3, %v3456_v63, %v3457_v61  ;;  %v8537_v44 = vld [vmem:[%s16564_s2 + $0xb8] sm:$0xff]  ;;  %v8527_v26 = vld [vmem:[%s16564_s2 + $0xc8] sm:$0xff]  ;;  %v8536_v58 = vld [vmem:[%s16564_s2 + $0xb0] sm:$0xff] }
 0x60f   : > { %v13112_v38 = vsel %vm395_vm3, %v3455_v24, %v3456_v63  ;;  %v16696_v29 = vpack.i.bf16 %v12838_v30, %v12646_v45  ;;  %v8539_v61 = vld [vmem:[%s16564_s2 + $0xf8] sm:$0xff]  ;;  %4066 = vmatpush.bf16.msrb.mxu2 %v8537_v44  ;;  %4227 = vmatpush.bf16.msra.mxu3 %v8527_v26  ;;  %v16697_v45 = vpack.i.bf16 %v12866_v16, %v12853_v35  ;;  %v8535_v30 = vld [vmem:[%s16564_s2 + $0xa8] sm:$0xff]  ;;  %v8532_v16 = vld [vmem:[%s16564_s2 + $0x90] sm:$0xff] }
 0x610   : > { %9162 = vrot.lane.b32.xlu0 %v16695_v33, %s9595_s19  ;;  %4365 = vmatpush.bf16.msra.mxu0 %v8539_v61  ;;  %v16698_v18 = vpack.i.bf16 %v12816_v43, %v12809_v47  ;;  %v16699_v15 = vpack.i.bf16 %v12905_v36, %v12819_v53  ;;  %v8533_v35 = vld [vmem:[%s16564_s2 + $0x98] sm:$0xff]  ;;  %v8526_v47 = vld [vmem:[%s16564_s2 + $0xc0] sm:$0xff]  ;;  %v8538_v43 = vld [vmem:[%s16564_s2 + $0xf0] sm:$0xff]  ;;  %v3490_v3 = vmul.f32 %v16700_v57, %v12972_v52 }
 0x611   : > { %9142 = vrot.lane.b32.xlu2 %v9141_v32, %s9595_s19  ;;  %v9524_v53 = vld [vmem:[%s16566_s4 + $0x18] sm:$0xff]  ;;  %v9527_v36 = vld [vmem:[%s16566_s4] sm:$0xff]  ;;  %v3494_v61 = vmul.f32 %v16700_v57, %v12876_v0 }
 0x613   : > { %4067 = vmatpush.bf16.msrb.mxu2 %v8536_v58  ;;  %4228 = vmatpush.bf16.msra.mxu3 %v8526_v47 }
 0x614   : > { %9152 = vrot.lane.b32.xlu1 %v16696_v29, %s9595_s19  ;;  %4366 = vmatpush.bf16.msra.mxu0 %v8538_v43 }
 0x617   : > { %4068 = vmatpush.bf16.msrb.mxu2 %v8535_v30 }
 0x618   : > { %9177 = vrot.lane.b32.xlu0 %v9176_v34, %s9596_s8  ;;  %6310 = vmatpush.msrb.mxu0 %v9524_v53  ;;  %v9525_v34 = vld [vmem:[%s16566_s4 + $0x10] sm:$0xff] }
 0x619   : > { %9157 = vrot.lane.b32.xlu2 %v9156_v13, %s9596_s8  ;;  %v9526_v13 = vld [vmem:[%s16566_s4 + $0x8] sm:$0xff] }
 0x61a   : > { %6311 = vmatpush.msrb.mxu0 %v9525_v34 }
 0x61b   : > { %4069 = vmatpush.bf16.msrb.mxu2 %v8534_v1 }
 0x61c   : > { %9167 = vrot.lane.b32.xlu1 %v16697_v45, %s9596_s8  ;;  %6312 = vmatpush.msrb.mxu0 %v9526_v13 }
 0x61e   : > { %6313 = vmatpush.msrb.mxu0 %v9527_v36 }
 0x61f   : > { %4070 = vmatpush.bf16.msrb.mxu2 %v8533_v35 }
 0x621   : > { %9172 = vrot.lane.b32.xlu2 %v16698_v18, %s9595_s19 }
 0x623   : > { %4071 = vmatpush.bf16.msrb.mxu2 %v8532_v16 }
 0x624   : > { %9182 = vrot.lane.b32.xlu1 %v16699_v15, %s9595_s19 }
 0x629   : > { %9187 = vrot.lane.b32.xlu2 %v9186_v49, %s9596_s8 }
 0x633   : > { %v9038_v31 = vpop.permute.xlu2 %9037 }
 0x634   : > { %v9040_v63 = vunpack.i.h.bf16 %v9038_v31  ;;  %v9039_v32 = vunpack.i.l.bf16 %v9038_v31  ;;  %v3492_v31 = vmul.f32 %v16700_v57, %v12917_v37 }
 0x63b   : > { %v9053_v49 = vpop.permute.xlu2 %9052 }
 0x63c   : > { %v9055_v33 = vunpack.i.h.bf16 %v9053_v49  ;;  %v9054_v29 = vunpack.i.l.bf16 %v9053_v49 }
 0x63e   : > { %v9043_v51 = vpop.permute.xlu0 %9042  ;;  %v3879_v35 = vsel %vm1389_vm8, %v12870_v9, %v9055_v33  ;;  %v3878_v16 = vsel %vm1389_vm8, %v3494_v61, %v9054_v29 }
 0x63f   : > { %v9045_v47 = vunpack.i.h.bf16 %v9043_v51  ;;  %v9044_v43 = vunpack.i.l.bf16 %v9043_v51 }
 0x641   : > { %v3876_v51 = vsel %vm1389_vm8, %v3492_v31, %v9044_v43 }
 0x643   : > { %v13182_v28 = vpop.permute.xlu2 %9067 }
 0x646   : > { %v9033_v62 = vpop.permute.xlu1 %9032 }
 0x647   : > { %v9035_v24 = vunpack.i.h.bf16 %v9033_v62  ;;  %v9034_v54 = vunpack.i.l.bf16 %v9033_v62 }
 0x649   : > { %v3874_v44 = vsel %vm1389_vm8, %v3490_v3, %v9034_v54  ;;  %v3875_v26 = vsel %vm1389_vm8, %v12929_v50, %v9035_v24  ;;  %v9058_v30 = vpop.permute.xlu0 %9057  ;;  %v3877_v54 = vsel %vm1389_vm8, %v12911_v12, %v9045_v47  ;;  %v9069_v12 = vunpack.i.l.bf16 %v13182_v28 }
 0x64a   : > { %v3906_v58 = vsel %vm2327_vm12, %v3874_v44, %v9039_v32  ;;  %v3907_v45 = vsel %vm2327_vm12, %v3875_v26, %v9040_v63  ;;  %v9060_v52 = vunpack.i.h.bf16 %v9058_v30  ;;  %v9059_v15 = vunpack.i.l.bf16 %v9058_v30 }
 0x64b   : > { %v3938_v1 = vpack.c.bf16 %v3907_v45, %v3906_v58  ;;  %v9083_v18 = vpop.permute.xlu2 %9082  ;;  %v3496_v58 = vmul.f32 %v16700_v57, %v12987_v60  ;;  %v3500_v45 = vmul.f32 %v16700_v57, %v12939_v48  ;;  %v3498_v47 = vmul.f32 %v16700_v57, %v12956_v42 }
 0x64c   : > { %v3910_v0 = vsel %vm2327_vm12, %v3878_v16, %v9059_v15  ;;  %v3911_v50 = vsel %vm2327_vm12, %v3879_v35, %v9060_v52  ;;  %v9085_v44 = vunpack.i.h.bf16 %v9083_v18  ;;  %v9070_v35 = vunpack.i.h.bf16 %v13182_v28 }
 0x64d   : > { %8085 = vmatmul.msk.bf16.vlgmr.msrb.gmra.mxu2 %vm2437_vm13, %v3938_v1  ;;  %8125 = vmatmul.msk.bf16.vlgmr.msra.gmra.mxu3 %vm2437_vm13, %v3938_v1  ;;  %v13203_v49 = vpack.c.bf16 %v3911_v50, %v3910_v0 }
 0x64e   : > { %8177 = vmatmul.msk.bf16.vlgmr.msra.gmra.mxu0 %vm2437_vm13, %v3938_v1  ;;  %v9048_v9 = vpop.permute.xlu1 %9047  ;;  %v3885_v30 = vsel %vm1389_vm8, %v12933_v27, %v9085_v44  ;;  %v3506_v44 = vmul.f32 %v16700_v57, %v13000_v25 }
 0x64f   : > { %v9050_v62 = vunpack.i.h.bf16 %v9048_v9  ;;  %v9049_v24 = vunpack.i.l.bf16 %v9048_v9  ;;  %6333 = vmatpush.msra.mxu0 %v9524_v53  ;;  %v9084_v53 = vunpack.i.l.bf16 %v9083_v18 }
 0x651   : > { %v3909_v3 = vsel %vm2327_vm12, %v3877_v54, %v9050_v62  ;;  %v3908_v63 = vsel %vm2327_vm12, %v3876_v51, %v9049_v24  ;;  %6334 = vmatpush.msra.mxu0 %v9525_v34  ;;  %v9073_v37 = vpop.permute.xlu0 %9072  ;;  %v3884_v52 = vsel %vm1389_vm8, %v3500_v45, %v9084_v53 }
 0x652   : > { %v3939_v32 = vpack.c.bf16 %v3909_v3, %v3908_v63  ;;  %v9075_v18 = vunpack.i.h.bf16 %v9073_v37  ;;  %v9074_v15 = vunpack.i.l.bf16 %v9073_v37 }
 0x653   : > { %v13210_v33 = vpop.permute.xlu2 %9097  ;;  %6335 = vmatpush.msra.mxu0 %v9526_v13 }
 0x654   : > { %v3883_v9 = vsel %vm1389_vm8, %v12950_v39, %v9075_v18  ;;  %v3882_v62 = vsel %vm1389_vm8, %v3498_v47, %v9074_v15 }
 0x655   : > { %6336 = vmatpush.msra.mxu0 %v9527_v36 }
 0x656   : > { %v9063_v29 = vpop.permute.xlu1 %9062 }
 0x657   : > { %v9064_v26 = vunpack.i.l.bf16 %v9063_v29  ;;  %v9065_v61 = vunpack.i.h.bf16 %v9063_v29 }
 0x659   : > { %v9088_v34 = vpop.permute.xlu0 %9087  ;;  %v3880_v13 = vsel %vm1389_vm8, %v3496_v58, %v9064_v26  ;;  %v3881_v60 = vsel %vm1389_vm8, %v12983_v59, %v9065_v61 }
 0x65a   : > { %v9090_v36 = vunpack.i.h.bf16 %v9088_v34  ;;  %v9089_v1 = vunpack.i.l.bf16 %v9088_v34  ;;  %v3912_v59 = vsel %vm2327_vm12, %v3880_v13, %v9069_v12  ;;  %v3913_v31 = vsel %vm2327_vm12, %v3881_v60, %v9070_v35 }
 0x65b   : > { %v9113_v16 = vpop.permute.xlu2 %9112  ;;  %v3941_v24 = vpack.c.bf16 %v3913_v31, %v3912_v59  ;;  %v3502_v59 = vmul.f32 %v16700_v57, %v13036_v56 }
 0x65c   : > { %v3916_v27 = vsel %vm2327_vm12, %v3884_v52, %v9089_v1  ;;  %v3917_v48 = vsel %vm2327_vm12, %v3885_v30, %v9090_v36  ;;  %v9115_v37 = vunpack.i.h.bf16 %v9113_v16  ;;  %v9114_v29 = vunpack.i.l.bf16 %v9113_v16 }
 0x65d   : > { %8086 = vmatmul.msk.bf16.gmra.mxu2 %vm2437_vm13, %v3939_v32  ;;  %8126 = vmatmul.msk.bf16.gmra.mxu3 %vm2437_vm13, %v3939_v32  ;;  %v13231_v43 = vpack.c.bf16 %v3917_v48, %v3916_v27  ;;  %v3504_v30 = vmul.f32 %v16700_v57, %v13022_v14 }
 0x65e   : > { %8178 = vmatmul.msk.bf16.gmra.mxu0 %vm2437_vm13, %v3939_v32  ;;  %v9078_v0 = vpop.permute.xlu1 %9077  ;;  %v3891_v61 = vsel %vm1389_vm8, %v13010_v21, %v9115_v37  ;;  %v3890_v58 = vsel %vm1389_vm8, %v3506_v44, %v9114_v29  ;;  %v9100_v29 = vunpack.i.h.bf16 %v13210_v33  ;;  %v3510_v44 = vmul.f32 %v16700_v57, %v13064_v46 }
 0x65f   : > { %v9080_v28 = vunpack.i.h.bf16 %v9078_v0  ;;  %v9079_v50 = vunpack.i.l.bf16 %v9078_v0 }
 0x661   : > { %v3915_v51 = vsel %vm2327_vm12, %v3883_v9, %v9080_v28  ;;  %v3914_v42 = vsel %vm2327_vm12, %v3882_v62, %v9079_v50  ;;  %v9103_v3 = vpop.permute.xlu0 %9102  ;;  %v3512_v28 = vmul.f32 %v16700_v57, %v13042_v19 }
 0x662   : > { %v13240_v54 = vpack.c.bf16 %v3915_v51, %v3914_v42  ;;  %v9105_v12 = vunpack.i.h.bf16 %v9103_v3  ;;  %v9104_v45 = vunpack.i.l.bf16 %v9103_v3 }
 0x663   : > { %v13242_v32 = vpop.permute.xlu2 %9127 }
 0x664   : > { %v3889_v52 = vsel %vm1389_vm8, %v13016_v20, %v9105_v12  ;;  %v3888_v18 = vsel %vm1389_vm8, %v3504_v30, %v9104_v45  ;;  %v9099_v20 = vunpack.i.l.bf16 %v13210_v33 }
 0x666   : > { %v9093_v63 = vpop.permute.xlu1 %9092 }
 0x667   : > { %v9094_v48 = vunpack.i.l.bf16 %v9093_v63 }
 0x669   : > { %v9118_v26 = vpop.permute.xlu0 %9117  ;;  %v3886_v9 = vsel %vm1389_vm8, %v3502_v59, %v9094_v48 }
 0x66a   : > { %v9120_v39 = vunpack.i.h.bf16 %v9118_v26  ;;  %v9119_v53 = vunpack.i.l.bf16 %v9118_v26 }
 0x66b   : > { %v9143_v15 = vpop.permute.xlu2 %9142 }
 0x66c   : > { %v3922_v34 = vsel %vm2327_vm12, %v3890_v58, %v9119_v53  ;;  %v3923_v25 = vsel %vm2327_vm12, %v3891_v61, %v9120_v39  ;;  %v9145_v47 = vunpack.i.h.bf16 %v9143_v15  ;;  %v9144_v0 = vunpack.i.l.bf16 %v9143_v15 }
 0x66d   : > { %8087 = vmatmul.msk.bf16.gmra.mxu2 %vm2437_vm13, %v13203_v49  ;;  %8127 = vmatmul.msk.bf16.gmra.mxu3 %vm2437_vm13, %v13203_v49  ;;  %v13259_v21 = vpack.c.bf16 %v3923_v25, %v3922_v34  ;;  %v3918_v39 = vsel %vm2327_vm12, %v3886_v9, %v9099_v20 }
 0x66e   : > { %8179 = vmatmul.msk.bf16.gmra.mxu0 %vm2437_vm13, %v13203_v49  ;;  %v9108_v13 = vpop.permute.xlu1 %9107  ;;  %v9095_v49 = vunpack.i.h.bf16 %v9093_v63  ;;  %v3897_v3 = vsel %vm1389_vm8, %v13048_v23, %v9145_v47  ;;  %v3896_v56 = vsel %vm1389_vm8, %v3512_v28, %v9144_v0  ;;  %v3516_v47 = vmul.f32 %v16700_v57, %v13090_v6 }
 0x66f   : > { %v9110_v36 = vunpack.i.h.bf16 %v9108_v13  ;;  %v9109_v1 = vunpack.i.l.bf16 %v9108_v13  ;;  %v3508_v6 = vmul.f32 %v16700_v57, %v13074_v22 }
 0x670   : > { %v3887_v31 = vsel %vm1389_vm8, %v13032_v10, %v9095_v49 }
 0x671   : > { %v3921_v60 = vsel %vm2327_vm12, %v3889_v52, %v9110_v36  ;;  %v3920_v35 = vsel %vm2327_vm12, %v3888_v18, %v9109_v1  ;;  %v9133_v14 = vpop.permute.xlu0 %9132  ;;  %v3919_v61 = vsel %vm2327_vm12, %v3887_v31, %v9100_v29  ;;  %v3518_v52 = vmul.f32 %v16700_v57, %v13082_v8 }
 0x672   : > { %v13266_v16 = vpack.c.bf16 %v3921_v60, %v3920_v35  ;;  %v9135_v63 = vunpack.i.h.bf16 %v9133_v14  ;;  %v9134_v37 = vunpack.i.l.bf16 %v9133_v14  ;;  %v3944_v45 = vpack.c.bf16 %v3919_v61, %v3918_v39 }
 0x673   : > { %v13278_v62 = vpop.permute.xlu2 %9157 }
 0x674   : > { %v3895_v58 = vsel %vm1389_vm8, %v13060_v41, %v9135_v63  ;;  %v3894_v12 = vsel %vm1389_vm8, %v3510_v44, %v9134_v37  ;;  %v9160_v44 = vunpack.i.h.bf16 %v13278_v62 }
 0x676   : > { %v13268_v27 = vpop.permute.xlu1 %9122 }
 0x677   : > { %v9125_v59 = vunpack.i.h.bf16 %v13268_v27  ;;  %v9124_v20 = vunpack.i.l.bf16 %v13268_v27 }
 0x679   : > { %v9148_v50 = vpop.permute.xlu0 %9147  ;;  %v3892_v27 = vsel %vm1389_vm8, %v3508_v6, %v9124_v20 }
 0x67a   : > { %v9150_v51 = vunpack.i.h.bf16 %v9148_v50  ;;  %v9149_v42 = vunpack.i.l.bf16 %v9148_v50 }
 0x67b   : > { %v9173_v30 = vpop.permute.xlu2 %9172 }
 0x67c   : > { %v3928_v10 = vsel %vm2327_vm12, %v3896_v56, %v9149_v42  ;;  %v3929_v19 = vsel %vm2327_vm12, %v3897_v3, %v9150_v51  ;;  %v9175_v36 = vunpack.i.h.bf16 %v9173_v30  ;;  %v9174_v1 = vunpack.i.l.bf16 %v9173_v30 }
 0x67d   : > { %8088 = vmatmul.msk.bf16.gmra.mxu2 %vm2437_vm13, %v3941_v24  ;;  %8128 = vmatmul.msk.bf16.gmra.mxu3 %vm2437_vm13, %v3941_v24  ;;  %v13291_v23 = vpack.c.bf16 %v3929_v19, %v3928_v10  ;;  %v3893_v3 = vsel %vm1389_vm8, %v13070_v4, %v9125_v59  ;;  %v9130_v56 = vunpack.i.h.bf16 %v13242_v32  ;;  %v3514_v10 = vmul.f32 %v16700_v57, %v13100_v11 }
 0x67e   : > { %8180 = vmatmul.msk.bf16.gmra.mxu0 %vm2437_vm13, %v3941_v24  ;;  %v9138_v26 = vpop.permute.xlu1 %9137  ;;  %v3903_v60 = vsel %vm1389_vm8, %v13078_v17, %v9175_v36  ;;  %v3902_v35 = vsel %vm1389_vm8, %v3518_v52, %v9174_v1 }
 0x67f   : > { %v9140_v53 = vunpack.i.h.bf16 %v9138_v26  ;;  %v9139_v33 = vunpack.i.l.bf16 %v9138_v26  ;;  %v3925_v37 = vsel %vm2327_vm12, %v3893_v3, %v9130_v56  ;;  %v9159_v26 = vunpack.i.l.bf16 %v13278_v62 }
 0x681   : > { %v3927_v34 = vsel %vm2327_vm12, %v3895_v58, %v9140_v53  ;;  %v3926_v46 = vsel %vm2327_vm12, %v3894_v12, %v9139_v33  ;;  %v3520_v58 = vmul.f32 %v16700_v57, %v13112_v38 }
 0x682   : > { %v13300_v24 = vpack.c.bf16 %v3927_v34, %v3926_v46  ;;  %v9163_v25 = vpop.permute.xlu0 %9162 }
 0x683   : > { %v9165_v14 = vunpack.i.h.bf16 %v9163_v25  ;;  %v9164_v49 = vunpack.i.l.bf16 %v9163_v25  ;;  %v9188_v61 = vpop.permute.xlu2 %9187 }
 0x684   : > { %v9190_v34 = vunpack.i.h.bf16 %v9188_v61  ;;  %v9189_v46 = vunpack.i.l.bf16 %v9188_v61 }
 0x685   : > { %v3901_v31 = vsel %vm1389_vm8, %v13086_v55, %v9165_v14  ;;  %v3900_v9 = vsel %vm1389_vm8, %v3516_v47, %v9164_v49  ;;  %v9129_v55 = vunpack.i.l.bf16 %v13242_v32 }
 0x686   : > { %v9153_v13 = vpop.permute.xlu1 %9152 }
 0x687   : > { %v3924_v63 = vsel %vm2327_vm12, %v3892_v27, %v9129_v55  ;;  %v9155_v4 = vunpack.i.h.bf16 %v9153_v13  ;;  %v9154_v29 = vunpack.i.l.bf16 %v9153_v13 }
 0x688   : > { %v3947_v22 = vpack.c.bf16 %v3925_v37, %v3924_v63 }
 0x689   : > { %v3899_v32 = vsel %vm1389_vm8, %v13096_v2, %v9155_v4  ;;  %v3898_v19 = vsel %vm1389_vm8, %v3514_v10, %v9154_v29 }
 0x68a   : > { %v9178_v18 = vpop.permute.xlu0 %9177  ;;  %v3930_v39 = vsel %vm2327_vm12, %v3898_v19, %v9159_v26  ;;  %v3931_v53 = vsel %vm2327_vm12, %v3899_v32, %v9160_v44 }
 0x68b   : > { %v9180_v15 = vunpack.i.h.bf16 %v9178_v18  ;;  %v9179_v41 = vunpack.i.l.bf16 %v9178_v18  ;;  %v13352_v33 = vpack.c.bf16 %v3931_v53, %v3930_v39 }
 0x68d   : > { %8089 = vmatmul.msk.bf16.gmra.mxu2 %vm2437_vm13, %v13240_v54  ;;  %8129 = vmatmul.msk.bf16.gmra.mxu3 %vm2437_vm13, %v13240_v54  ;;  %v3934_v48 = vsel %vm2327_vm12, %v3902_v35, %v9179_v41  ;;  %v3935_v8 = vsel %vm2327_vm12, %v3903_v60, %v9180_v15 }
 0x68e   : > { %8181 = vmatmul.msk.bf16.gmra.mxu0 %vm2437_vm13, %v13240_v54  ;;  %v13317_v17 = vpack.c.bf16 %v3935_v8, %v3934_v48  ;;  %v9168_v0 = vpop.permute.xlu1 %9167 }
 0x68f   : > { %v9170_v28 = vunpack.i.h.bf16 %v9168_v0  ;;  %v9169_v50 = vunpack.i.l.bf16 %v9168_v0 }
 0x691   : > { %v3933_v51 = vsel %vm2327_vm12, %v3901_v31, %v9170_v28  ;;  %v3932_v54 = vsel %vm2327_vm12, %v3900_v9, %v9169_v50 }
 0x692   : > { %v13328_v42 = vpack.c.bf16 %v3933_v51, %v3932_v54 }
 0x69d   : > { %8090 = vmatmul.msk.bf16.gmra.mxu2 %vm2437_vm13, %v13231_v43  ;;  %8130 = vmatmul.msk.bf16.gmra.mxu3 %vm2437_vm13, %v13231_v43 }
 0x69e   : > { %8182 = vmatmul.msk.bf16.gmra.mxu0 %vm2437_vm13, %v13231_v43  ;;  %v9183_v43 = vpop.permute.xlu1 %9182 }
 0x69f   : > { %v9185_v2 = vunpack.i.h.bf16 %v9183_v43  ;;  %v9184_v11 = vunpack.i.l.bf16 %v9183_v43 }
 0x6a1   : > { %v3905_v62 = vsel %vm1389_vm8, %v13108_v7, %v9185_v2  ;;  %v3904_v12 = vsel %vm1389_vm8, %v3520_v58, %v9184_v11 }
 0x6a2   : > { %v3936_v25 = vsel %vm2327_vm12, %v3904_v12, %v9189_v46  ;;  %v3937_v30 = vsel %vm2327_vm12, %v3905_v62, %v9190_v34 }
 0x6a3   : > { %v13364_v13 = vpack.c.bf16 %v3937_v30, %v3936_v25 }
 0x6ad   : > { %8091 = vmatmul.msk.bf16.gmra.mxu2 %vm2437_vm13, %v3944_v45  ;;  %8131 = vmatmul.msk.bf16.gmra.mxu3 %vm2437_vm13, %v3944_v45 }
 0x6ae   : > { %8183 = vmatmul.msk.bf16.gmra.mxu0 %vm2437_vm13, %v3944_v45 }
 0x6bd   : > { %8092 = vmatmul.msk.bf16.gmra.mxu2 %vm2437_vm13, %v13266_v16  ;;  %8132 = vmatmul.msk.bf16.gmra.mxu3 %vm2437_vm13, %v13266_v16 }
 0x6be   : > { %8184 = vmatmul.msk.bf16.gmra.mxu0 %vm2437_vm13, %v13266_v16 }
 0x6cb   : > { %v13372_v7 = vpop.f32.mrf.mxu0 }
 0x6cd   : > { %8093 = vmatmul.msk.bf16.gmra.mxu2 %vm2437_vm13, %v13259_v21  ;;  %8133 = vmatmul.msk.bf16.gmra.mxu3 %vm2437_vm13, %v13259_v21 }
 0x6ce   : > { %8185 = vmatmul.msk.bf16.gmra.mxu0 %vm2437_vm13, %v13259_v21 }
 0x6d0   : > { %v4073_v38 = vpop.f32.mrf.mxu2  ;;  %v13380_v45 = vpop.f32.mrf.mxu3 }
 0x6d3   : > { %v13382_v36 = vpop.f32.mrf.mxu0 }
 0x6d4   : > { %16701 = vst [vmem:[#allocation21_spill] sm:$0xff] %v13382_v36  ;;  %v4478_v36 = vmul.f32 0.0, %v13372_v7 }
 0x6d8   : > { %v4075_v1 = vpop.f32.mrf.mxu2  ;;  %v13384_v52 = vpop.f32.mrf.mxu3 }
 0x6db   : > { %v13386_v16 = vpop.f32.mrf.mxu0 }
 0x6dd   : > { %8094 = vmatmul.msk.bf16.gmra.mxu2 %vm2437_vm13, %v3947_v22  ;;  %8134 = vmatmul.msk.bf16.gmra.mxu3 %vm2437_vm13, %v3947_v22 }
 0x6de   : > { %8186 = vmatmul.msk.bf16.gmra.mxu0 %vm2437_vm13, %v3947_v22 }
 0x6e0   : > { %v4078_v18 = vpop.f32.mrf.mxu2  ;;  %v4235_v15 = vpop.f32.mrf.mxu3 }
 0x6e1   : > { %v4236_v41 = vadd.f32 %v4235_v15, %v4073_v38 }
 0x6e3   : > { %v13391_v21 = vpop.f32.mrf.mxu0 }
 0x6e8   : > { %v4080_v60 = vpop.f32.mrf.mxu2  ;;  %v4237_v35 = vpop.f32.mrf.mxu3 }
 0x6e9   : > { %v4238_v14 = vadd.f32 %v4237_v35, %v4075_v1 }
 0x6eb   : > { %v4378_v49 = vpop.f32.mrf.mxu0 }
 0x6ec   : > { %v13393_v48 = vadd.f32 %v4378_v49, %v4236_v41 }
 0x6ed   : > { %8095 = vmatmul.msk.bf16.gmra.mxu2 %vm2437_vm13, %v13300_v24  ;;  %8135 = vmatmul.msk.bf16.gmra.mxu3 %vm2437_vm13, %v13300_v24 }
 0x6ee   : > { %8187 = vmatmul.msk.bf16.gmra.mxu0 %vm2437_vm13, %v13300_v24 }
 0x6f0   : > { %v4083_v8 = vpop.f32.mrf.mxu2  ;;  %v4240_v47 = vpop.f32.mrf.mxu3 }
 0x6f1   : > { %v4241_v0 = vadd.f32 %v4240_v47, %v4078_v18 }
 0x6f3   : > { %v4380_v59 = vpop.f32.mrf.mxu0 }
 0x6f4   : > { %v13401_v20 = vadd.f32 %v4380_v59, %v4238_v14 }
 0x6f8   : > { %v4085_v28 = vpop.f32.mrf.mxu2  ;;  %v4242_v50 = vpop.f32.mrf.mxu3 }
 0x6f9   : > { %v4243_v31 = vadd.f32 %v4242_v50, %v4080_v60 }
 0x6fb   : > { %v4383_v9 = vpop.f32.mrf.mxu0 }
 0x6fc   : > { %v13403_v6 = vadd.f32 %v4383_v9, %v4241_v0 }
 0x6fd   : > { %8096 = vmatmul.msk.bf16.gmra.mxu2 %vm2437_vm13, %v13291_v23  ;;  %8136 = vmatmul.msk.bf16.gmra.mxu3 %vm2437_vm13, %v13291_v23 }
 0x6fe   : > { %8188 = vmatmul.msk.bf16.gmra.mxu0 %vm2437_vm13, %v13291_v23 }
 0x700   : > { %v4088_v24 = vpop.f32.mrf.mxu2  ;;  %v4245_v51 = vpop.f32.mrf.mxu3 }
 0x701   : > { %v13411_v54 = vadd.f32 %v4245_v51, %v4083_v8 }
 0x703   : > { %v4385_v3 = vpop.f32.mrf.mxu0 }
 0x704   : > { %v13413_v27 = vadd.f32 %v4385_v3, %v4243_v31 }
 0x708   : > { %v13415_v56 = vpop.f32.mrf.mxu2  ;;  %v4247_v55 = vpop.f32.mrf.mxu3 }
 0x709   : > { %v13417_v63 = vadd.f32 %v4247_v55, %v4085_v28 }
 0x70b   : > { %v13419_v37 = vpop.f32.mrf.mxu0 }
 0x70d   : > { %8097 = vmatmul.msk.bf16.gmra.mxu2 %vm2437_vm13, %v13352_v33  ;;  %8137 = vmatmul.msk.bf16.gmra.mxu3 %vm2437_vm13, %v13352_v33 }
 0x70e   : > { %8189 = vmatmul.msk.bf16.gmra.mxu0 %vm2437_vm13, %v13352_v33 }
 0x710   : > { %v4093_v23 = vpop.f32.mrf.mxu2  ;;  %v4250_v22 = vpop.f32.mrf.mxu3 }
 0x711   : > { %v4251_v4 = vadd.f32 %v4250_v22, %v4088_v24 }
 0x713   : > { %v13427_v29 = vpop.f32.mrf.mxu0 }
 0x718   : > { %v13429_v10 = vpop.f32.mrf.mxu2  ;;  %v13431_v32 = vpop.f32.mrf.mxu3 }
 0x71b   : > { %v4393_v19 = vpop.f32.mrf.mxu0 }
 0x71c   : > { %v13433_v44 = vadd.f32 %v4393_v19, %v4251_v4 }
 0x71d   : > { %8098 = vmatmul.msk.bf16.gmra.mxu2 %vm2437_vm13, %v13328_v42  ;;  %8138 = vmatmul.msk.bf16.gmra.mxu3 %vm2437_vm13, %v13328_v42 }
 0x71e   : > { %8190 = vmatmul.msk.bf16.gmra.mxu0 %vm2437_vm13, %v13328_v42 }
 0x720   : > { %v4098_v26 = vpop.f32.mrf.mxu2  ;;  %v4255_v39 = vpop.f32.mrf.mxu3 }
 0x721   : > { %v4256_v53 = vadd.f32 %v4255_v39, %v4093_v23 }
 0x723   : > { %v13441_v33 = vpop.f32.mrf.mxu0 }
 0x728   : > { %v13443_v43 = vpop.f32.mrf.mxu2  ;;  %v13445_v2 = vpop.f32.mrf.mxu3 }
 0x72b   : > { %v4398_v11 = vpop.f32.mrf.mxu0 }
 0x72c   : > { %v13447_v61 = vadd.f32 %v4398_v11, %v4256_v53 }
 0x72d   : > { %8099 = vmatmul.msk.bf16.gmra.mxu2 %vm2437_vm13, %v13317_v17  ;;  %8139 = vmatmul.msk.bf16.gmra.mxu3 %vm2437_vm13, %v13317_v17 }
 0x72e   : > { %8191 = vmatmul.msk.bf16.gmra.mxu0 %vm2437_vm13, %v13317_v17 }
 0x730   : > { %v4103_v42 = vpop.f32.mrf.mxu2  ;;  %v4260_v58 = vpop.f32.mrf.mxu3 }
 0x731   : > { %v4261_v62 = vadd.f32 %v4260_v58, %v4098_v26 }
 0x733   : > { %v13455_v12 = vpop.f32.mrf.mxu0 }
 0x738   : > { %v13457_v34 = vpop.f32.mrf.mxu2  ;;  %v13459_v46 = vpop.f32.mrf.mxu3 }
 0x73b   : > { %v4403_v25 = vpop.f32.mrf.mxu0 }
 0x73c   : > { %v13461_v30 = vadd.f32 %v4403_v25, %v4261_v62 }
 0x73d   : > { %8100 = vmatmul.msk.bf16.gmra.mxu2 %vm2437_vm13, %v13364_v13  ;;  %8140 = vmatmul.msk.bf16.gmra.mxu3 %vm2437_vm13, %v13364_v13 }
 0x73e   : > { %8192 = vmatmul.msk.bf16.gmra.mxu0 %vm2437_vm13, %v13364_v13 }
 0x740   : > { %v4108_v17 = vpop.f32.mrf.mxu2  ;;  %v4265_v38 = vpop.f32.mrf.mxu3 }
 0x741   : > { %v4266_v1 = vadd.f32 %v4265_v38, %v4103_v42 }
 0x743   : > { %v13469_v18 = vpop.f32.mrf.mxu0 }
 0x748   : > { %v13471_v15 = vpop.f32.mrf.mxu2  ;;  %v13473_v41 = vpop.f32.mrf.mxu3 }
 0x74b   : > { %v4408_v60 = vpop.f32.mrf.mxu0 }
 0x74c   : > { %v13475_v35 = vadd.f32 %v4408_v60, %v4266_v1 }
 0x750   : > { %v4113_v14 = vpop.f32.mrf.mxu2  ;;  %v4270_v49 = vpop.f32.mrf.mxu3 }
 0x751   : > { %v4271_v8 = vadd.f32 %v4270_v49, %v4108_v17 }
 0x753   : > { %v13477_v47 = vpop.f32.mrf.mxu0 }
 0x758   : > { %v13479_v0 = vpop.f32.mrf.mxu2  ;;  %v13481_v13 = vpop.f32.mrf.mxu3 }
 0x75b   : > { %v4413_v59 = vpop.f32.mrf.mxu0 }
 0x75c   : > { %v13483_v28 = vadd.f32 %v4413_v59, %v4271_v8 }
 0x760   : > { %v4118_v50 = vpop.f32.mrf.mxu2  ;;  %v4275_v31 = vpop.f32.mrf.mxu3 }
 0x761   : > { %v4276_v9 = vadd.f32 %v4275_v31, %v4113_v14 }
 0x763   : > { %v13485_v24 = vpop.f32.mrf.mxu0 }
 0x768   : > { %v13487_v51 = vpop.f32.mrf.mxu2  ;;  %v13489_v3 = vpop.f32.mrf.mxu3 }
 0x76b   : > { %v4418_v55 = vpop.f32.mrf.mxu0 }
 0x76c   : > { %v13491_v23 = vadd.f32 %v4418_v55, %v4276_v9 }
 0x770   : > { %v13493_v22 = vpop.f32.mrf.mxu2  ;;  %v4280_v4 = vpop.f32.mrf.mxu3 }
 0x771   : > { %v13495_v19 = vadd.f32 %v4280_v4, %v4118_v50 }
 0x773   : > { %v13517_v1 = vpop.f32.mrf.mxu0 }
 0x778   : > { %v13497_v26 = vpop.f32.mrf.mxu2  ;;  %v13499_v39 = vpop.f32.mrf.mxu3 }
 0x77b   : > { %v13523_v49 = vpop.f32.mrf.mxu0 }
 0x780   : > { %v13501_v53 = vpop.f32.mrf.mxu2  ;;  %v13503_v11 = vpop.f32.mrf.mxu3 }
 0x783   : > { %v13529_v50 = vpop.f32.mrf.mxu0 }
 0x788   : > { %v13505_v42 = vpop.f32.mrf.mxu2  ;;  %v13507_v58 = vpop.f32.mrf.mxu3 }
 0x78b   : > { %v13533_v55 = vpop.f32.mrf.mxu0 }
 0x790   : > { %v13509_v62 = vpop.f32.mrf.mxu2  ;;  %v13511_v25 = vpop.f32.mrf.mxu3 }
 0x791   : > { %16702 = vst [vmem:[#allocation12_spill] sm:$0xff] %v13509_v62 }
 0x798   : > { %v13513_v17 = vpop.f32.mrf.mxu2  ;;  %v13515_v38 = vpop.f32.mrf.mxu3 }
 0x799   : > { %16703 = vst [vmem:[#allocation13_spill] sm:$0xff] %v13513_v17 }
 0x7a0   : > { %v13519_v60 = vpop.f32.mrf.mxu2  ;;  %v13521_v14 = vpop.f32.mrf.mxu3 }
 0x7a1   : > { %16704 = vst [vmem:[#allocation11_spill] sm:$0xff] %v13519_v60 }
 0x7a2   : > { %16705 = vst [vmem:[#allocation8_spill] sm:$0xff] %v13521_v14 }
 0x7a8   : > { %v13525_v8 = vpop.f32.mrf.mxu2  ;;  %v13527_v59 = vpop.f32.mrf.mxu3 }
 0x7a9   : > { %16706 = vst [vmem:[#allocation18_spill] sm:$0xff] %v13525_v8  ;;  %v13540_v8 = vpop.f32.mrf.mxu0 }
 0x7aa   : > { %16707 = vst [vmem:[#allocation14_spill] sm:$0xff] %v13527_v59 }
 0x7b0   : > { %v4143_v31 = vpop.f32.mrf.mxu2  ;;  %v13531_v9 = vpop.f32.mrf.mxu3 }
 0x7b1   : > { %16708 = vst [vmem:[#allocation9_spill] sm:$0xff] %v13531_v9  ;;  %v13548_v9 = vld [vmem:[%s16565_s3 + $0x8] sm:$0x7] }
 0x7b2   : > { %16711 = vst [vmem:[#allocation10_spill] sm:$0xff] %v13548_v9 }
 0x7b8   : > { %v13535_v4 = vpop.f32.mrf.mxu2  ;;  %v13537_v57 = vpop.f32.mrf.mxu3 }
 0x7b9   : > { %16709 = vst [vmem:[#allocation16_spill] sm:$0xff] %v13535_v4 }
 0x7ba   : > { %16710 = vst [vmem:[#allocation15_spill] sm:$0xff] %v13537_v57  ;;  %v13552_v57 = vperm.slane %v13548_v9, 0 }
 0x7c0   : > { %v4148_v40 = vpop.f32.mrf.mxu2  ;;  %v4305_v5 = vpop.f32.mrf.mxu3 }
 0x7c1   : > { %v4153_v60 = vmul.f32 0.0, %v4148_v40  ;;  %v4306_v17 = vadd.f32 %v4305_v5, %v4143_v31 }
 0x7c3   : > { %v4231_v59 = vadd.f32 %v13380_v45, %v4153_v60  ;;  %v13543_v14 = vadd.f32 %v4478_v36, %v4306_v17  ;;  %v13560_v45 = vadd.f32 %v13552_v57, %v13393_v48  ;;  %v13562_v36 = vpop.f32.mrf.mxu0  ;;  %v13578_v48 = vadd.f32 %v13552_v57, %v13403_v6 }
 0x7c5   : > { %v4480_v4 = vadd.f32 %v13386_v16, %v4231_v59  ;;  %16713 = vst [vmem:[#allocation20_spill] sm:$0xff] %v13560_v45  ;;  %v13567_v16 = vadd.f32 %v13552_v57, %v13401_v20 }
 0x7c7   : > { %v13555_v5 = vadd.f32 %v13552_v57, %v4480_v4  ;;  %v4550_v4 = vsel %vm1389_vm8, %v13560_v45, 0.0 }
 0x7c8   : > { %v4150_v62 = vpop.f32.mrf.mxu2 }
 0x7c9   : > { %v4154_v7 = vmul.f32 0.0, %v4150_v62  ;;  %16712 = vst [vmem:[#allocation17_spill] sm:$0xff] %v13555_v5  ;;  %v4616_v62 = vmul.f32 %v13555_v5, %v13555_v5  ;;  %v4547_v20 = vsel %vm1389_vm8, %v13555_v5, 0.0 }
 0x7cb   : > { %v4233_v40 = vadd.f32 %v13384_v52, %v4154_v7  ;;  %v4618_v52 = vmul.f32 %v13560_v45, %v13560_v45  ;;  %v4487_v7 = vadd.f32 %v13427_v29, %v13417_v63  ;;  %v4552_v63 = vsel %vm1389_vm8, %v13567_v16, 0.0 }
 0x7cd   : > { %v4481_v17 = vadd.f32 %v13391_v21, %v4233_v40  ;;  %v4486_v21 = vadd.f32 %v13419_v37, %v13411_v54  ;;  %v4619_v40 = vmul.f32 %v13567_v16, %v13567_v16  ;;  %v13596_v54 = vadd.f32 %v13552_v57, %v13413_v27 }
 0x7ce   : > { %v4648_v37 = vsel %vm1389_vm8, %v4616_v62, 0.0  ;;  %v4651_v9 = vsel %vm1389_vm8, %v4618_v52, 0.0  ;;  %v4253_v27 = vadd.f32 %v13431_v32, %v13415_v56  ;;  %v13611_v62 = vadd.f32 %v13552_v57, %v4487_v7 }
 0x7cf   : > { %v13572_v60 = vadd.f32 %v13552_v57, %v4481_v17  ;;  %v13606_v29 = vadd.f32 %v13552_v57, %v4486_v21  ;;  %v4554_v52 = vsel %vm1389_vm8, %v13578_v48, 0.0  ;;  %v4556_v7 = vsel %vm1389_vm8, %v13596_v54, 0.0 }
 0x7d0   : > { %v4489_v21 = vadd.f32 %v13441_v33, %v4253_v27  ;;  %v4623_v33 = vmul.f32 %v13611_v62, %v13611_v62 }
 0x7d1   : > { %16714 = vst [vmem:[#allocation19_spill] sm:$0xff] %v13572_v60  ;;  %v4548_v59 = vsel %vm1389_vm8, %v13572_v60, 0.0  ;;  %v4617_v31 = vmul.f32 %v13572_v60, %v13572_v60  ;;  %v4620_v60 = vmul.f32 %v13578_v48, %v13578_v48 }
 0x7d2   : > { %v4549_v6 = vadd.f32 %v4548_v59, %v4547_v20  ;;  %v13613_v20 = vpop.f32.mrf.mxu0  ;;  %v13638_v27 = vadd.f32 %v13552_v57, %v4489_v21 }
 0x7d3   : > { %v4649_v17 = vsel %vm1389_vm8, %v4617_v31, 0.0 }
 0x7d4   : > { %v4551_v5 = vadd.f32 %v4550_v4, %v4549_v6  ;;  %v4650_v45 = vadd.f32 %v4649_v17, %v4648_v37  ;;  %v4653_v4 = vsel %vm1389_vm8, %v4619_v40, 0.0  ;;  %v4621_v6 = vmul.f32 %v13596_v54, %v13596_v54 }
 0x7d5   : > { %v4655_v37 = vsel %vm1389_vm8, %v4620_v60, 0.0 }
 0x7d6   : > { %v4553_v59 = vadd.f32 %v4552_v63, %v4551_v5  ;;  %v4652_v31 = vadd.f32 %v4651_v9, %v4650_v45  ;;  %v4622_v9 = vmul.f32 %v13606_v29, %v13606_v29  ;;  %v13628_v5 = vadd.f32 %v13552_v57, %v13433_v44 }
 0x7d7   : > { %v4258_v45 = vadd.f32 %v13445_v2, %v13429_v10  ;;  %v4657_v17 = vsel %vm1389_vm8, %v4621_v6, 0.0  ;;  %v4558_v63 = vsel %vm1389_vm8, %v13606_v29, 0.0  ;;  %v4560_v10 = vsel %vm1389_vm8, %v13611_v62, 0.0 }
 0x7d8   : > { %v4555_v56 = vadd.f32 %v4554_v52, %v4553_v59  ;;  %v4654_v32 = vadd.f32 %v4653_v4, %v4652_v31  ;;  %v4659_v4 = vsel %vm1389_vm8, %v4622_v9, 0.0  ;;  %v4624_v2 = vmul.f32 %v13628_v5, %v13628_v5 }
 0x7d9   : > { %v4491_v59 = vadd.f32 %v13455_v12, %v4258_v45  ;;  %v13648_v52 = vadd.f32 %v13552_v57, %v13447_v61  ;;  %v4661_v6 = vsel %vm1389_vm8, %v4623_v33, 0.0  ;;  %v4562_v12 = vsel %vm1389_vm8, %v13628_v5, 0.0 }
 0x7da   : > { %v4557_v40 = vadd.f32 %v4556_v7, %v4555_v56  ;;  %v4656_v60 = vadd.f32 %v4655_v37, %v4654_v32  ;;  %v4625_v56 = vmul.f32 %v13638_v27, %v13638_v27  ;;  %v4263_v7 = vadd.f32 %v13459_v46, %v13443_v43  ;;  %v13664_v9 = vpop.f32.mrf.mxu0 }
 0x7db   : > { %v13656_v32 = vadd.f32 %v13552_v57, %v4491_v59  ;;  %v13662_v61 = vadd.f32 %v13552_v57, %v13461_v30  ;;  %v4566_v30 = vsel %vm1389_vm8, %v13648_v52, 0.0 }
 0x7dc   : > { %v4559_v44 = vadd.f32 %v4558_v63, %v4557_v40  ;;  %v4658_v31 = vadd.f32 %v4657_v17, %v4656_v60  ;;  %v4663_v40 = vsel %vm1389_vm8, %v4624_v2, 0.0  ;;  %v4564_v60 = vsel %vm1389_vm8, %v13638_v27, 0.0 }
 0x7dd   : > { %v4626_v17 = vmul.f32 %v13648_v52, %v13648_v52  ;;  %v4493_v63 = vadd.f32 %v13469_v18, %v4263_v7  ;;  %v4665_v46 = vsel %vm1389_vm8, %v4625_v56, 0.0 }
 0x7de   : > { %v4561_v21 = vadd.f32 %v4560_v10, %v4559_v44  ;;  %v4660_v37 = vadd.f32 %v4659_v4, %v4658_v31  ;;  %v4627_v44 = vmul.f32 %v13656_v32, %v13656_v32  ;;  %v4268_v31 = vadd.f32 %v13473_v41, %v13457_v34 }
 0x7df   : > { %v4628_v4 = vmul.f32 %v13662_v61, %v13662_v61  ;;  %v4667_v18 = vsel %vm1389_vm8, %v4626_v17, 0.0  ;;  %v4570_v34 = vsel %vm1389_vm8, %v13662_v61, 0.0  ;;  %v13693_v41 = vadd.f32 %v13552_v57, %v13475_v35 }
 0x7e0   : > { %v4563_v45 = vadd.f32 %v4562_v12, %v4561_v21  ;;  %v4662_v33 = vadd.f32 %v4661_v6, %v4660_v37  ;;  %v4568_v6 = vsel %vm1389_vm8, %v13656_v32, 0.0  ;;  %v13685_v21 = vadd.f32 %v13552_v57, %v4493_v63 }
 0x7e1   : > { %v4495_v37 = vadd.f32 %v13477_v47, %v4268_v31  ;;  %v4669_v7 = vsel %vm1389_vm8, %v4627_v44, 0.0  ;;  %v4630_v44 = vmul.f32 %v13693_v41, %v13693_v41 }
 0x7e2   : > { %v4565_v59 = vadd.f32 %v4564_v60, %v4563_v45  ;;  %v4664_v43 = vadd.f32 %v4663_v40, %v4662_v33  ;;  %v4273_v45 = vadd.f32 %v13481_v13, %v13471_v15  ;;  %v4671_v33 = vsel %vm1389_vm8, %v4628_v4, 0.0  ;;  %v13706_v35 = vpop.f32.mrf.mxu0 }
 0x7e3   : > { %v4572_v47 = vsel %vm1389_vm8, %v13685_v21, 0.0  ;;  %v4629_v17 = vmul.f32 %v13685_v21, %v13685_v21  ;;  %v13703_v63 = vadd.f32 %v13552_v57, %v4495_v37  ;;  %v4574_v15 = vsel %vm1389_vm8, %v13693_v41, 0.0 }
 0x7e4   : > { %v4567_v10 = vadd.f32 %v4566_v30, %v4565_v59  ;;  %v4666_v2 = vadd.f32 %v4665_v46, %v4664_v43  ;;  %v4497_v59 = vadd.f32 %v13485_v24, %v4273_v45  ;;  %v13712_v13 = vadd.f32 %v13552_v57, %v13483_v28 }
 0x7e5   : > { %v4278_v30 = vadd.f32 %v13489_v3, %v13479_v0  ;;  %v4673_v24 = vsel %vm1389_vm8, %v4629_v17, 0.0  ;;  %v4576_v4 = vsel %vm1389_vm8, %v13703_v63, 0.0  ;;  %v13729_v0 = vadd.f32 %v13552_v57, %v13491_v23 }
 0x7e6   : > { %v4569_v12 = vadd.f32 %v4568_v6, %v4567_v10  ;;  %v4668_v56 = vadd.f32 %v4667_v18, %v4666_v2  ;;  %v13722_v10 = vadd.f32 %v13552_v57, %v4497_v59  ;;  %v4578_v6 = vsel %vm1389_vm8, %v13712_v13, 0.0 }
 0x7e7   : > { %v4499_v2 = vadd.f32 %v13517_v1, %v4278_v30  ;;  %v4283_v3 = vadd.f32 %v13499_v39, %v13487_v51  ;;  %v4500_v37 = vadd.f32 %v13523_v49, %v13495_v19  ;;  %v4631_v1 = vmul.f32 %v13703_v63, %v13703_v63 }
 0x7e8   : > { %v4571_v40 = vadd.f32 %v4570_v34, %v4569_v12  ;;  %v4670_v60 = vadd.f32 %v4669_v7, %v4668_v56  ;;  %v4675_v12 = vsel %vm1389_vm8, %v4630_v44, 0.0  ;;  %v4580_v7 = vsel %vm1389_vm8, %v13722_v10, 0.0 }
 0x7e9   : > { %v13741_v34 = vadd.f32 %v13552_v57, %v4499_v2  ;;  %v4286_v23 = vadd.f32 %v13503_v11, %v13493_v22  ;;  %v4501_v51 = vadd.f32 %v13529_v50, %v4283_v3  ;;  %v4582_v19 = vsel %vm1389_vm8, %v13729_v0, 0.0  ;;  %v16716_v2 = vld [vmem:[#allocation8_spill] sm:$0xff] }
 0x7ea   : > { %v4573_v43 = vadd.f32 %v4572_v47, %v4571_v40  ;;  %v4672_v46 = vadd.f32 %v4671_v33, %v4670_v60  ;;  %v13749_v49 = vadd.f32 %v13552_v57, %v4500_v37  ;;  %v4288_v33 = vadd.f32 %v13507_v58, %v13497_v26  ;;  %v4443_v11 = vpop.f32.mrf.mxu0 }
 0x7eb   : > { %v4502_v40 = vadd.f32 %v13533_v55, %v4286_v23  ;;  %v4677_v60 = vsel %vm1389_vm8, %v4631_v1, 0.0  ;;  %v4632_v22 = vmul.f32 %v13712_v13, %v13712_v13  ;;  %v4584_v47 = vsel %vm1389_vm8, %v13741_v34, 0.0  ;;  %v16718_v1 = vld [vmem:[#allocation14_spill] sm:$0xff] }
 0x7ec   : > { %v4575_v31 = vadd.f32 %v4574_v15, %v4573_v43  ;;  %v4674_v28 = vadd.f32 %v4673_v24, %v4672_v46  ;;  %v13760_v17 = vadd.f32 %v13552_v57, %v4501_v51  ;;  %v4291_v59 = vadd.f32 %v13511_v25, %v13501_v53 }
 0x7ed   : > { %v4503_v26 = vadd.f32 %v13540_v8, %v4288_v33  ;;  %v4633_v58 = vmul.f32 %v13722_v10, %v13722_v10  ;;  %v4586_v46 = vsel %vm1389_vm8, %v13749_v49, 0.0  ;;  %v13770_v15 = vadd.f32 %v13552_v57, %v4502_v40  ;;  %v16719_v33 = vld [vmem:[#allocation11_spill] sm:$0xff]  ;;  %v16720_v40 = vld [vmem:[#allocation9_spill] sm:$0xff] }
 0x7ee   : > { %v4577_v18 = vadd.f32 %v4576_v4, %v4575_v31  ;;  %v4676_v39 = vadd.f32 %v4675_v12, %v4674_v28  ;;  %v4293_v30 = vadd.f32 %v13515_v38, %v13505_v42  ;;  %v4504_v44 = vadd.f32 %v13562_v36, %v4291_v59  ;;  %v16715_v4 = vld [vmem:[#allocation12_spill] sm:$0xff]  ;;  %v16717_v12 = vld [vmem:[#allocation13_spill] sm:$0xff]  ;;  %v4307_v59 = vpop.f32.mrf.mxu3 }
 0x7ef   : > { %v4679_v53 = vsel %vm1389_vm8, %v4632_v22, 0.0  ;;  %v4634_v25 = vmul.f32 %v13729_v0, %v13729_v0  ;;  %v4588_v31 = vsel %vm1389_vm8, %v13760_v17, 0.0  ;;  %v13781_v24 = vadd.f32 %v13552_v57, %v4503_v26 }
 0x7f0   : > { %v4579_v56 = vadd.f32 %v4578_v6, %v4577_v18  ;;  %v4678_v55 = vadd.f32 %v4677_v60, %v4676_v39  ;;  %v4296_v18 = vadd.f32 %v16716_v2, %v16715_v4  ;;  %v4505_v28 = vadd.f32 %v13613_v20, %v4293_v30  ;;  %v16722_v30 = vld [vmem:[#allocation15_spill] sm:$0xff] }
 0x7f1   : > { %v4681_v42 = vsel %vm1389_vm8, %v4633_v58, 0.0  ;;  %v4635_v38 = vmul.f32 %v13741_v34, %v13741_v34  ;;  %v4590_v3 = vsel %vm1389_vm8, %v13770_v15, 0.0  ;;  %v13792_v37 = vadd.f32 %v13552_v57, %v4504_v44 }
 0x7f2   : > { %v4581_v45 = vadd.f32 %v4580_v7, %v4579_v56  ;;  %v4680_v6 = vadd.f32 %v4679_v53, %v4678_v55  ;;  %v4298_v56 = vadd.f32 %v16718_v1, %v16717_v12  ;;  %v4506_v7 = vadd.f32 %v13664_v9, %v4296_v18 }
 0x7f3   : > { %v4683_v20 = vsel %vm1389_vm8, %v4634_v25, 0.0  ;;  %v4636_v23 = vmul.f32 %v13749_v49, %v13749_v49  ;;  %v4301_v60 = vadd.f32 %v16720_v40, %v16719_v33  ;;  %v4685_v9 = vsel %vm1389_vm8, %v4635_v38, 0.0  ;;  %v16724_v38 = vld [vmem:[#allocation21_spill] sm:$0xff] }
 0x7f4   : > { %v4583_v50 = vadd.f32 %v4582_v19, %v4581_v45  ;;  %v4682_v39 = vadd.f32 %v4681_v42, %v4680_v6  ;;  %v4592_v45 = vsel %vm1389_vm8, %v13781_v24, 0.0  ;;  %v13803_v19 = vadd.f32 %v13552_v57, %v4505_v28  ;;  %v16723_v28 = vld [vmem:[#allocation16_spill] sm:$0xff] }
 0x7f5   : > { %v4507_v22 = vadd.f32 %v13706_v35, %v4298_v56  ;;  %v4594_v55 = vsel %vm1389_vm8, %v13792_v37, 0.0  ;;  %v4508_v53 = vadd.f32 %v4443_v11, %v4301_v60  ;;  %v4687_v35 = vsel %vm1389_vm8, %v4636_v23, 0.0 }
 0x7f6   : > { %v4585_v43 = vadd.f32 %v4584_v47, %v4583_v50  ;;  %v4637_v50 = vmul.f32 %v13760_v17, %v13760_v17  ;;  %v4445_v47 = vpop.f32.mrf.mxu0  ;;  %v4684_v58 = vadd.f32 %v4683_v20, %v4682_v39  ;;  %v4638_v25 = vmul.f32 %v13770_v15, %v13770_v15 }
 0x7f7   : > { %v4596_v4 = vsel %vm1389_vm8, %v13803_v19, 0.0  ;;  %v13824_v2 = vadd.f32 %v13552_v57, %v4507_v22  ;;  %v4308_v42 = vadd.f32 %v4307_v59, %v16723_v28  ;;  %v4639_v12 = vmul.f32 %v13781_v24, %v13781_v24  ;;  %v8561_v22 = vld [vmem:[%s16564_s2 + $0x1a8] sm:$0xff] }
 0x7f8   : > { %v4587_v8 = vadd.f32 %v4586_v46, %v4585_v43  ;;  %v13814_v43 = vadd.f32 %v13552_v57, %v4506_v7  ;;  %v16721_v46 = vld [vmem:[#allocation18_spill] sm:$0xff]  ;;  %v13834_v56 = vadd.f32 %v13552_v57, %v4508_v53  ;;  %v4691_v7 = vsel %vm1389_vm8, %v4638_v25, 0.0  ;;  %5939 = vmatpush.bf16.msrb.mxu3 %v8561_v22 }
 0x7f9   : > { %v4303_v44 = vadd.f32 %v16722_v30, %v16721_v46  ;;  %v4600_v39 = vsel %vm1389_vm8, %v13824_v2, 0.0 }
 0x7fa   : > { %v4589_v36 = vadd.f32 %v4588_v31, %v4587_v8  ;;  %v4686_v31 = vadd.f32 %v4685_v9, %v4684_v58  ;;  %v4598_v1 = vsel %vm1389_vm8, %v13814_v43, 0.0  ;;  %v8549_v9 = vld [vmem:[%s16564_s2 + $0x178] sm:$0xff]  ;;  %v4602_v59 = vsel %vm1389_vm8, %v13834_v56, 0.0 }
 0x7fb   : > { %v4509_v18 = vadd.f32 %v4445_v47, %v4303_v44  ;;  %v4641_v47 = vmul.f32 %v13803_v19, %v13803_v19  ;;  %5801 = vmatpush.bf16.msra.mxu2 %v8549_v9  ;;  %v4642_v30 = vmul.f32 %v13814_v43, %v13814_v43 }
 0x7fc   : > { %v4591_v51 = vadd.f32 %v4590_v3, %v4589_v36  ;;  %v4479_v36 = vmul.f32 0.0, %v16724_v38  ;;  %v4688_v11 = vadd.f32 %v4687_v35, %v4686_v31  ;;  %v4689_v3 = vsel %vm1389_vm8, %v4637_v50, 0.0 }
 0x7fd   : > { %v4693_v50 = vsel %vm1389_vm8, %v4639_v12, 0.0  ;;  %v4699_v28 = vsel %vm1389_vm8, %v4642_v30, 0.0 }
 0x7fe   : > { %v4593_v26 = vadd.f32 %v4592_v45, %v4591_v51  ;;  %v4690_v23 = vadd.f32 %v4689_v3, %v4688_v11  ;;  %v4640_v51 = vmul.f32 %v13792_v37, %v13792_v37  ;;  %v13842_v45 = vadd.f32 %v13552_v57, %v4509_v18 }
 0x7ff   : > { %v4511_v33 = vadd.f32 %v4479_v36, %v4308_v42  ;;  %v4644_v42 = vmul.f32 %v13834_v56, %v13834_v56 }
 0x800   : > { %v4595_v8 = vadd.f32 %v4594_v55, %v4593_v26  ;;  %v4692_v60 = vadd.f32 %v4691_v7, %v4690_v23  ;;  %v13857_v26 = vadd.f32 %v13552_v57, %v13543_v14  ;;  %v4695_v46 = vsel %vm1389_vm8, %v4640_v51, 0.0 }
 0x801   : > { %v4604_v44 = vsel %vm1389_vm8, %v13842_v45, 0.0  ;;  %v13865_v53 = vadd.f32 %v13552_v57, %v4511_v33  ;;  %v4697_v14 = vsel %vm1389_vm8, %v4641_v47, 0.0  ;;  %v4645_v11 = vmul.f32 %v13842_v45, %v13842_v45 }
 0x802   : > { %v4597_v6 = vadd.f32 %v4596_v4, %v4595_v8  ;;  %v4694_v55 = vadd.f32 %v4693_v50, %v4692_v60  ;;  %v4643_v8 = vmul.f32 %v13824_v2, %v13824_v2  ;;  %v4606_v31 = vsel %vm1389_vm8, %v13857_v26, 0.0 }
 0x803   : > { %v4608_v57 = vsel %vm1389_vm8, %v13865_v53, 0.0  ;;  %v4646_v7 = vmul.f32 %v13857_v26, %v13857_v26  ;;  %v4705_v51 = vsel %vm1389_vm8, %v4645_v11, 0.0 }
 0x804   : > { %v4599_v20 = vadd.f32 %v4598_v1, %v4597_v6  ;;  %v4696_v25 = vadd.f32 %v4695_v46, %v4694_v55  ;;  %v4701_v6 = vsel %vm1389_vm8, %v4643_v8, 0.0  ;;  %v4703_v1 = vsel %vm1389_vm8, %v4644_v42, 0.0  ;;  %v8548_v42 = vld [vmem:[%s16564_s2 + $0x170] sm:$0xff] }
 0x805   : > { %v4707_v60 = vsel %vm1389_vm8, %v4646_v7, 0.0  ;;  %5802 = vmatpush.bf16.msra.mxu2 %v8548_v42  ;;  %v16726_v7 = vld [vmem:[#allocation17_spill] sm:$0xff] }
 0x806   : > { %v4601_v40 = vadd.f32 %v4600_v39, %v4599_v20  ;;  %v4698_v18 = vadd.f32 %v4697_v14, %v4696_v25  ;;  %v4647_v39 = vmul.f32 %v13865_v53, %v13865_v53 }
 0x808   : > { %v4603_v58 = vadd.f32 %v4602_v59, %v4601_v40  ;;  %v4700_v36 = vadd.f32 %v4699_v28, %v4698_v18  ;;  %v4709_v50 = vsel %vm1389_vm8, %v4647_v39, 0.0  ;;  %v16728_v39 = vld [vmem:[#allocation20_spill] sm:$0xff] }
 0x80a   : > { %v4605_v35 = vadd.f32 %v4604_v44, %v4603_v58  ;;  %v4702_v12 = vadd.f32 %v4701_v6, %v4700_v36 }
 0x80c   : > { %v4607_v4 = vadd.f32 %v4606_v31, %v4605_v35  ;;  %v4704_v23 = vadd.f32 %v4703_v1, %v4702_v12 }
 0x80e   : > { %v4609_v38 = vadd.f32 %v4608_v57, %v4607_v4  ;;  %v4706_v40 = vadd.f32 %v4705_v51, %v4704_v23  ;;  %v8560_v4 = vld [vmem:[%s16564_s2 + $0x1a0] sm:$0xff]  ;;  %v16727_v23 = vld [vmem:[#allocation19_spill] sm:$0xff] }
 0x80f   : > { %5940 = vmatpush.bf16.msrb.mxu3 %v8560_v4 }
 0x810   : > { %v4610_v3 = vrot.slane %v4609_v38, 4  ;;  %v4708_v9 = vadd.f32 %v4707_v60, %v4706_v40 }
 0x812   : > { %v4611_v20 = vadd.f32 %v4610_v3, %v4609_v38  ;;  %v4710_v59 = vadd.f32 %v4709_v50, %v4708_v9  ;;  %v16725_v3 = vld [vmem:[#allocation10_spill] sm:$0xff] }
 0x813   : > { %v13899_v12 = vperm.slane %v16725_v3, 1  ;;  %v13902_v1 = vperm.slane %v16725_v3, 2 }
 0x814   : > { %v4612_v33 = vrot.slane %v4611_v20, 2  ;;  %v4711_v55 = vrot.slane %v4710_v59, 4 }
 0x816   : > { %v4613_v22 = vadd.f32 %v4612_v33, %v4611_v20  ;;  %v4712_v46 = vadd.f32 %v4711_v55, %v4710_v59 }
 0x818   : > { %v4614_v47 = vrot.slane %v4613_v22, 1  ;;  %v4713_v30 = vrot.slane %v4712_v46, 2 }
 0x81a   : > { %v4615_v58 = vadd.f32 %v4614_v47, %v4613_v22  ;;  %v4714_v44 = vadd.f32 %v4713_v30, %v4712_v46 }
 0x81c   : > { %8194 = vmatmul.msk.f32.vlgmr.msra.gmra.mxu1 %vm1389_vm8, %v4615_v58  ;;  %v4715_v35 = vrot.slane %v4714_v44, 1 }
 0x81e   : > { %v4716_v25 = vadd.f32 %v4715_v35, %v4714_v44 }
 0x824   : > { %8195 = vmatmul.msk.f32.vlgmr.msrb.gmra.mxu1 %vm1389_vm8, %v4716_v25 }
 0x899   : > { %v4737_v14 = vpop.f32.mrf.mxu1 }
 0x89a   : > { %v4763_v8 = vmul.f32 %v4737_v14, %v4737_v14  ;;  %v13896_v36 = vperm.slane %v4737_v14, 0 }
 0x89c   : > { %v4777_v20 = vsub.f32 %v16726_v7, %v13896_v36  ;;  %v4778_v51 = vsub.f32 %v16727_v23, %v13896_v36  ;;  %v4779_v33 = vsub.f32 %v16728_v39, %v13896_v36  ;;  %v4780_v60 = vsub.f32 %v13567_v16, %v13896_v36 }
 0x89d   : > { %v4781_v22 = vsub.f32 %v13578_v48, %v13896_v36  ;;  %v4782_v9 = vsub.f32 %v13596_v54, %v13896_v36  ;;  %v4783_v50 = vsub.f32 %v13606_v29, %v13896_v36  ;;  %v4784_v47 = vsub.f32 %v13611_v62, %v13896_v36 }
 0x89e   : > { %v4785_v59 = vsub.f32 %v13628_v5, %v13896_v36  ;;  %v4786_v16 = vsub.f32 %v13638_v27, %v13896_v36  ;;  %v4787_v48 = vsub.f32 %v13648_v52, %v13896_v36  ;;  %v4788_v54 = vsub.f32 %v13656_v32, %v13896_v36 }
 0x89f   : > { %v4789_v29 = vsub.f32 %v13662_v61, %v13896_v36  ;;  %v4790_v62 = vsub.f32 %v13685_v21, %v13896_v36  ;;  %v4791_v5 = vsub.f32 %v13693_v41, %v13896_v36  ;;  %v4792_v55 = vsub.f32 %v13703_v63, %v13896_v36 }
 0x8a0   : > { %v4793_v52 = vsub.f32 %v13712_v13, %v13896_v36  ;;  %v4794_v32 = vsub.f32 %v13722_v10, %v13896_v36  ;;  %v4795_v61 = vsub.f32 %v13729_v0, %v13896_v36  ;;  %v4796_v21 = vsub.f32 %v13741_v34, %v13896_v36 }
 0x8a1   : > { %v4760_v31 = vpop.f32.mrf.mxu1  ;;  %v4797_v41 = vsub.f32 %v13749_v49, %v13896_v36  ;;  %v4798_v63 = vsub.f32 %v13760_v17, %v13896_v36  ;;  %v4799_v13 = vsub.f32 %v13770_v15, %v13896_v36  ;;  %v4800_v10 = vsub.f32 %v13781_v24, %v13896_v36 }
 0x8a2   : > { %v4764_v18 = vsub.f32 %v4760_v31, %v4763_v8  ;;  %v4801_v0 = vsub.f32 %v13792_v37, %v13896_v36  ;;  %v4802_v30 = vsub.f32 %v13803_v19, %v13896_v36  ;;  %v4803_v34 = vsub.f32 %v13814_v43, %v13896_v36 }
 0x8a3   : > { %v4804_v49 = vsub.f32 %v13824_v2, %v13896_v36  ;;  %v4805_v17 = vsub.f32 %v13834_v56, %v13896_v36  ;;  %v4806_v15 = vsub.f32 %v13842_v45, %v13896_v36  ;;  %v4807_v24 = vsub.f32 %v13857_v26, %v13896_v36 }
 0x8a4   : > { %v4765_v28 = vadd.f32 1e-05, %v4764_v18  ;;  %v4808_v37 = vsub.f32 %v13865_v53, %v13896_v36 }
 0x8a6   : > { %9516 = vrsqrt.f32 %v4765_v28  ;;  %vm4772_vm4 = vweird.f32 %v4765_v28 }
 0x8ac   : > { %v9517_v57 = vpop.eup %9516 }
 0x8ad   : > { %v4767_v38 = vmul.f32 %v9517_v57, %v4765_v28  ;;  %vm4773_vm1 = vweird.f32 %v9517_v57 }
 0x8ae   : > { %vm4774_vm5 = vmor %vm4772_vm4, %vm4773_vm1 }
 0x8af   : > { %v4768_v6 = vmul.f32 %v9517_v57, %v4767_v38 }
 0x8b1   : > { %v4769_v11 = vmul.f32 0.5, %v4768_v6 }
 0x8b3   : > { %v4770_v40 = vsub.f32 1.5, %v4769_v11 }
 0x8b5   : > { %v4771_v58 = vmul.f32 %v9517_v57, %v4770_v40 }
 0x8b7   : > { %v4775_v27 = vsel %vm4774_vm5, %v9517_v57, %v4771_v58 }
 0x8b8   : > { %v13942_v46 = vperm.slane %v4775_v27, 0 }
 0x8ba   : > { %v13971_v19 = vmul.f32 %v13942_v46, %v4777_v20  ;;  %v4812_v43 = vmul.f32 %v13942_v46, %v4779_v33  ;;  %v4813_v44 = vmul.f32 %v13942_v46, %v4780_v60  ;;  %v4814_v2 = vmul.f32 %v13942_v46, %v4781_v22 }
 0x8bb   : > { %v4815_v56 = vmul.f32 %v13942_v46, %v4782_v9  ;;  %v4816_v35 = vmul.f32 %v13942_v46, %v4783_v50  ;;  %v13979_v45 = vmul.f32 %v13942_v46, %v4784_v47  ;;  %v4818_v26 = vmul.f32 %v13942_v46, %v4785_v59 }
 0x8bc   : > { %v13983_v53 = vmul.f32 %v13942_v46, %v4786_v16  ;;  %v4820_v25 = vmul.f32 %v13942_v46, %v4787_v48  ;;  %v4821_v14 = vmul.f32 %v13942_v46, %v4788_v54  ;;  %v4822_v8 = vmul.f32 %v13942_v46, %v4789_v29 }
 0x8bd   : > { %v13989_v31 = vmul.f32 %v13942_v46, %v4790_v62  ;;  %v4824_v4 = vmul.f32 %v13942_v46, %v4791_v5  ;;  %v13993_v18 = vmul.f32 %v13942_v46, %v4792_v55  ;;  %v13996_v28 = vmul.f32 %v13942_v46, %v4802_v30  ;;  %v8559_v5 = vld [vmem:[%s16564_s2 + $0x198] sm:$0xff]  ;;  %v8547_v55 = vld [vmem:[%s16564_s2 + $0x168] sm:$0xff] }
 0x8be   : > { %v4836_v42 = vmul.f32 %v13942_v46, %v4803_v34  ;;  %v14000_v57 = vmul.f32 %v13942_v46, %v4804_v49  ;;  %v4838_v38 = vmul.f32 %v13942_v46, %v4805_v17  ;;  %v4826_v6 = vmul.f32 %v13942_v46, %v4793_v52  ;;  %5941 = vmatpush.bf16.msrb.mxu3 %v8559_v5 }
 0x8bf   : > { %v4839_v11 = vmul.f32 %v13942_v46, %v4806_v15  ;;  %v4840_v3 = vmul.f32 %v13942_v46, %v4807_v24  ;;  %v14007_v7 = vmul.f32 %v13942_v46, %v4808_v37  ;;  %v4827_v20 = vmul.f32 %v13942_v46, %v4794_v32  ;;  %5803 = vmatpush.bf16.msra.mxu2 %v8547_v55 }
 0x8c0   : > { %v4828_v39 = vmul.f32 %v13942_v46, %v4795_v61  ;;  %v14012_v33 = vmul.f32 %v13942_v46, %v4796_v21  ;;  %v4830_v40 = vmul.f32 %v13942_v46, %v4797_v41  ;;  %v14016_v60 = vmul.f32 %v13942_v46, %v4798_v63 }
 0x8c1   : > { %v4832_v22 = vmul.f32 %v13942_v46, %v4799_v13  ;;  %v4833_v9 = vmul.f32 %v13942_v46, %v4800_v10  ;;  %v4834_v50 = vmul.f32 %v13942_v46, %v4801_v0  ;;  %v4845_v47 = vmul.f32 %v13899_v12, %v4812_v43 }
 0x8c2   : > { %v4847_v59 = vmul.f32 %v13899_v12, %v4814_v2  ;;  %v4848_v58 = vmul.f32 %v13899_v12, %v4815_v56  ;;  %v4849_v16 = vmul.f32 %v13899_v12, %v4816_v35  ;;  %v14026_v48 = vmul.f32 %v13899_v12, %v4818_v26 }
 0x8c3   : > { %v4853_v54 = vmul.f32 %v13899_v12, %v4820_v25  ;;  %v4854_v29 = vmul.f32 %v13899_v12, %v4821_v14  ;;  %v14031_v62 = vmul.f32 %v13899_v12, %v4836_v42  ;;  %v4855_v27 = vmul.f32 %v13899_v12, %v4822_v8 }
 0x8c4   : > { %v4871_v52 = vmul.f32 %v13899_v12, %v4838_v38  ;;  %v4872_v32 = vmul.f32 %v13899_v12, %v4839_v11  ;;  %v4873_v61 = vmul.f32 %v13899_v12, %v4840_v3  ;;  %v14044_v21 = vmul.f32 %v13899_v12, %v4824_v4 }
 0x8c5   : > { %v4859_v41 = vmul.f32 %v13899_v12, %v4826_v6  ;;  %v4860_v63 = vmul.f32 %v13899_v12, %v4827_v20  ;;  %v4861_v13 = vmul.f32 %v13899_v12, %v4828_v39  ;;  %v14050_v10 = vmul.f32 %v13899_v12, %v4830_v40 }
 0x8c6   : > { %v4865_v0 = vmul.f32 %v13899_v12, %v4832_v22  ;;  %v4866_v30 = vmul.f32 %v13899_v12, %v4833_v9  ;;  %v4867_v34 = vmul.f32 %v13899_v12, %v4834_v50  ;;  %v4880_v49 = vadd.f32 %v13902_v1, %v4847_v59 }
 0x8c7   : > { %v4881_v17 = vadd.f32 %v13902_v1, %v4848_v58  ;;  %v4882_v15 = vadd.f32 %v13902_v1, %v4849_v16  ;;  %v14059_v24 = vadd.f32 %v13902_v1, %v4871_v52  ;;  %v14062_v37 = vadd.f32 %v13902_v1, %v4872_v32 }
 0x8c8   : > { %v14065_v43 = vadd.f32 %v13902_v1, %v4873_v61  ;;  %v4846_v2 = vmul.f32 %v13899_v12, %v4813_v44  ;;  %v4878_v56 = vadd.f32 %v13902_v1, %v4845_v47  ;;  %v4886_v35 = vadd.f32 %v13902_v1, %v4853_v54 }
 0x8c9   : > { %v14071_v26 = vadd.f32 %v13902_v1, %v4854_v29  ;;  %v4888_v25 = vadd.f32 %v13902_v1, %v4855_v27  ;;  %v4892_v14 = vadd.f32 %v13902_v1, %v4859_v41  ;;  %v14076_v8 = vadd.f32 %v13902_v1, %v4860_v63 }
 0x8ca   : > { %v4894_v4 = vadd.f32 %v13902_v1, %v4861_v13  ;;  %v4879_v42 = vadd.f32 %v13902_v1, %v4846_v2  ;;  %v4910_v38 = vmax.f32 %v4878_v56, 0.0  ;;  %v4898_v44 = vadd.f32 %v13902_v1, %v4865_v0 }
 0x8cb   : > { %v14082_v6 = vadd.f32 %v13902_v1, %v4866_v30  ;;  %v4900_v11 = vadd.f32 %v13902_v1, %v4867_v34  ;;  %v4914_v3 = vmax.f32 %v4882_v15, 0.0  ;;  %v4912_v40 = vmax.f32 %v4880_v49, 0.0 }
 0x8cc   : > { %v4911_v20 = vmax.f32 %v4879_v42, 0.0  ;;  %v4942_v39 = vpack.c.bf16 %v4910_v38, %v4910_v38  ;;  %v4913_v22 = vmax.f32 %v4881_v17, 0.0  ;;  %v4918_v9 = vmax.f32 %v4886_v35, 0.0 }
 0x8cd   : > { %v4919_v50 = vmax.f32 %v14071_v26, 0.0  ;;  %v4920_v47 = vmax.f32 %v4888_v25, 0.0  ;;  %v4811_v59 = vmul.f32 %v13942_v46, %v4778_v51  ;;  %v4924_v54 = vmax.f32 %v4892_v14, 0.0 }
 0x8ce   : > { %v4943_v58 = vpack.c.bf16 %v4911_v20, %v4911_v20  ;;  %v14090_v16 = vunpack.c.l.bf16 %v4942_v39  ;;  %v4843_v29 = vmul.f32 %v13899_v12, %v13971_v19  ;;  %v4925_v5 = vmax.f32 %v14076_v8, 0.0 }
 0x8cf   : > { %v4926_v55 = vmax.f32 %v4894_v4, 0.0  ;;  %v4844_v27 = vmul.f32 %v13899_v12, %v4811_v59  ;;  %v4946_v52 = vpack.c.bf16 %v4914_v3, %v4914_v3  ;;  %v4930_v61 = vmax.f32 %v4898_v44, 0.0 }
 0x8d0   : > { %v14096_v32 = vunpack.c.l.bf16 %v4943_v58  ;;  %v4876_v36 = vadd.f32 %v13902_v1, %v4843_v29  ;;  %v4944_v23 = vpack.c.bf16 %v4912_v40, %v4912_v40  ;;  %v4931_v51 = vmax.f32 %v14082_v6, 0.0 }
 0x8d1   : > { %v4932_v46 = vmax.f32 %v4900_v11, 0.0  ;;  %v4936_v41 = vmax.f32 %v14059_v24, 0.0  ;;  %v4877_v63 = vadd.f32 %v13902_v1, %v4844_v27  ;;  %v4937_v13 = vmax.f32 %v14062_v37, 0.0 }
 0x8d2   : > { %v9201_v19 = vpack.i.bf16 %v14096_v32, %v14090_v16  ;;  %v4938_v0 = vmax.f32 %v14065_v43, 0.0  ;;  %v4908_v30 = vmax.f32 %v4876_v36, 0.0  ;;  %v4950_v49 = vpack.c.bf16 %v4918_v9, %v4918_v9 }
 0x8d3   : > { %v4909_v34 = vmax.f32 %v4877_v63, 0.0  ;;  %v4952_v17 = vpack.c.bf16 %v4920_v47, %v4920_v47  ;;  %v14106_v15 = vunpack.c.l.bf16 %v4946_v52  ;;  %v14109_v56 = vpack.c.bf16 %v4924_v54, %v4924_v54 }
 0x8d4   : > { %9202 = vrot.lane.b32.xlu2 %v9201_v19, %s9595_s19  ;;  %v4940_v2 = vpack.c.bf16 %v4908_v30, %v4908_v30  ;;  %v4945_v24 = vpack.c.bf16 %v4913_v22, %v4913_v22  ;;  %v14111_v35 = vunpack.c.l.bf16 %v4944_v23  ;;  %v5103_v4 = vrot.slane %v14096_v32, 1 }
 0x8d5   : > { %v4941_v25 = vpack.c.bf16 %v4909_v34, %v4909_v34  ;;  %v5106_v14 = vrot.slane %v14106_v15, 1  ;;  %v4852_v42 = vmul.f32 %v13899_v12, %v13983_v53  ;;  %v4884_v3 = vadd.f32 %v13902_v1, %v14026_v48 }
 0x8d6   : > { %v14117_v38 = vunpack.c.l.bf16 %v4940_v2  ;;  %v14119_v44 = vunpack.c.l.bf16 %v4945_v24  ;;  %v5104_v11 = vrot.slane %v14111_v35, 1  ;;  %v4958_v39 = vpack.c.bf16 %v4926_v55, %v4926_v55 }
 0x8d7   : > { %v14124_v20 = vunpack.c.l.bf16 %v4941_v25  ;;  %v5102_v40 = vrot.slane %v14090_v16, 1  ;;  %v4885_v22 = vadd.f32 %v13902_v1, %v4852_v42  ;;  %v14128_v9 = vpack.c.bf16 %v4930_v61, %v4930_v61 }
 0x8d8   : > { %v5105_v53 = vrot.slane %v14119_v44, 1  ;;  %v5159_v59 = vsel %vm492_vm2, %v5103_v4, %v5104_v11  ;;  %v4850_v58 = vmul.f32 %v13899_v12, %v13979_v45  ;;  %v4964_v54 = vpack.c.bf16 %v4932_v46, %v4932_v46  ;;  %v16730_v46 = vld [vmem:[#allocation7_spill] sm:$0xff] }
 0x8d9   : > { %v9191_v48 = vpack.i.bf16 %v14124_v20, %v14117_v38  ;;  %v16604_v29 = vrot.slane %v14117_v38, 1  ;;  %v5101_v55 = vrot.slane %v14124_v20, 1  ;;  %v14139_v27 = vunpack.c.l.bf16 %v4952_v17 }
 0x8da   : > { %v5157_v52 = vsel %vm492_vm2, %v5105_v53, %v5106_v14  ;;  %v4916_v61 = vmax.f32 %v4884_v3, 0.0  ;;  %v4917_v36 = vmax.f32 %v4885_v22, 0.0  ;;  %v5158_v23 = vsel %vm492_vm2, %v5104_v11, %v5105_v53 }
 0x8db   : > { %9192 = vrot.lane.b32.xlu0 %v9191_v48, %s9595_s19  ;;  %v5161_v45 = vsel %vm492_vm2, %v5101_v55, %v5102_v40  ;;  %v5169_v63 = vmul.f32 %v16730_v46, %v5157_v52  ;;  %v5167_v19 = vmul.f32 %v16730_v46, %v5159_v59  ;;  %v4883_v2 = vadd.f32 %v13902_v1, %v4850_v58 }
 0x8dc   : > { %v5165_v30 = vmul.f32 %v16730_v46, %v5161_v45  ;;  %v4948_v34 = vpack.c.bf16 %v4916_v61, %v4916_v61  ;;  %v4949_v17 = vpack.c.bf16 %v4917_v36, %v4917_v36  ;;  %v5162_v24 = vsel %vm492_vm2, %v16604_v29, %v5101_v55 }
 0x8dd   : > { %v9216_v25 = vpack.i.bf16 %v5169_v63, %v5158_v23  ;;  %v4951_v42 = vpack.c.bf16 %v4919_v50, %v4919_v50  ;;  %v14161_v11 = vunpack.c.l.bf16 %v4950_v49  ;;  %v4915_v59 = vmax.f32 %v4883_v2, 0.0 }
 0x8de   : > { %v9196_v3 = vpack.i.bf16 %v5165_v30, %v5162_v24  ;;  %v14163_v22 = vunpack.c.l.bf16 %v4948_v34  ;;  %v14165_v53 = vunpack.c.l.bf16 %v4949_v17  ;;  %v14167_v48 = vpack.c.bf16 %v4936_v41, %v4936_v41 }
 0x8df   : > { %9217 = vrot.lane.b32.xlu2 %v9216_v25, %s9596_s8  ;;  %v14170_v58 = vunpack.c.l.bf16 %v4951_v42  ;;  %v4858_v55 = vmul.f32 %v13899_v12, %v13993_v18  ;;  %v4890_v26 = vadd.f32 %v13902_v1, %v14044_v21  ;;  %v5160_v50 = vsel %vm492_vm2, %v5102_v40, %v5103_v4 }
 0x8e0   : > { %9197 = vrot.lane.b32.xlu1 %v9196_v3, %s9596_s8  ;;  %v4947_v49 = vpack.c.bf16 %v4915_v59, %v4915_v59  ;;  %v5110_v52 = vrot.slane %v14161_v11, 1  ;;  %v5109_v41 = vrot.slane %v14165_v53, 1  ;;  %v9206_v61 = vpack.i.bf16 %v5167_v19, %v5160_v50 }
 0x8e1   : > { %v5112_v36 = vrot.slane %v14139_v27, 1  ;;  %v4891_v45 = vadd.f32 %v13902_v1, %v4858_v55  ;;  %v4922_v23 = vmax.f32 %v4890_v26, 0.0  ;;  %v5108_v21 = vrot.slane %v14163_v22, 1 }
 0x8e2   : > { %v14183_v18 = vunpack.c.l.bf16 %v4947_v49  ;;  %v5111_v63 = vrot.slane %v14170_v58, 1  ;;  %v4856_v4 = vmul.f32 %v13899_v12, %v13989_v31  ;;  %v14192_v40 = vpack.c.bf16 %v4938_v0, %v4938_v0 }
 0x8e3   : > { %v14194_v19 = vunpack.c.l.bf16 %v4958_v39  ;;  %v14196_v30 = vunpack.c.l.bf16 %v4964_v54  ;;  %9207 = vrot.lane.b32.xlu0 %v9206_v61, %s9596_s8  ;;  %v4923_v34 = vmax.f32 %v4891_v45, 0.0  ;;  %v9211_v2 = vpack.i.bf16 %v14119_v44, %v14111_v35 }
 0x8e4   : > { %v5107_v24 = vrot.slane %v14183_v18, 1  ;;  %v5153_v31 = vsel %vm492_vm2, %v5109_v41, %v5110_v52  ;;  %v9231_v43 = vpack.i.bf16 %v14165_v53, %v14163_v22  ;;  %v4954_v0 = vpack.c.bf16 %v4922_v23, %v4922_v23 }
 0x8e5   : > { %v4955_v39 = vpack.c.bf16 %v4923_v34, %v4923_v34  ;;  %v4889_v54 = vadd.f32 %v13902_v1, %v4856_v4  ;;  %v5151_v42 = vsel %vm492_vm2, %v5111_v63, %v5112_v36  ;;  %v9241_v3 = vpack.i.bf16 %v14170_v58, %v14161_v11 }
 0x8e6   : > { %v5155_v25 = vsel %vm492_vm2, %v5107_v24, %v5108_v21  ;;  %v4957_v59 = vpack.c.bf16 %v4925_v5, %v4925_v5  ;;  %v5154_v55 = vsel %vm492_vm2, %v5108_v21, %v5109_v41  ;;  %v5173_v26 = vmul.f32 %v16730_v46, %v5153_v31 }
 0x8e7   : > { %9232 = vrot.lane.b32.xlu2 %v9231_v43, %s9595_s19  ;;  %v14223_v50 = vunpack.c.l.bf16 %v4955_v39  ;;  %v4921_v49 = vmax.f32 %v4889_v54, 0.0  ;;  %v14226_v61 = vunpack.c.l.bf16 %v4954_v0  ;;  %v14229_v45 = vunpack.c.l.bf16 %v14109_v56  ;;  %v8558_v54 = vld [vmem:[%s16564_s2 + $0x190] sm:$0xff] }
 0x8e8   : > { %9212 = vrot.lane.b32.xlu1 %v9211_v2, %s9595_s19  ;;  %v14231_v8 = vunpack.c.l.bf16 %v4957_v59  ;;  %v4864_v5 = vmul.f32 %v13899_v12, %v14016_v60  ;;  %v9221_v41 = vpack.i.bf16 %v14183_v18, %v14106_v15  ;;  %v5171_v23 = vmul.f32 %v16730_v46, %v5155_v25  ;;  %v8546_v25 = vld [vmem:[%s16564_s2 + $0x160] sm:$0xff]  ;;  %5942 = vmatpush.bf16.msrb.mxu3 %v8558_v54 }
 0x8e9   : > { %v5175_v21 = vmul.f32 %v16730_v46, %v5151_v42  ;;  %v4953_v4 = vpack.c.bf16 %v4921_v49, %v4921_v49  ;;  %v5116_v34 = vrot.slane %v14229_v45, 1  ;;  %v5118_v56 = vrot.slane %v14194_v19, 1  ;;  %5804 = vmatpush.bf16.msra.mxu2 %v8546_v25 }
 0x8ea   : > { %v5117_v2 = vrot.slane %v14231_v8, 1  ;;  %v5115_v31 = vrot.slane %v14223_v50, 1  ;;  %v4896_v60 = vadd.f32 %v13902_v1, %v14050_v10  ;;  %v4897_v0 = vadd.f32 %v13902_v1, %v4864_v5 }
 0x8eb   : > { %9222 = vrot.lane.b32.xlu0 %v9221_v41, %s9595_s19  ;;  %v14244_v43 = vunpack.c.l.bf16 %v4953_v4  ;;  %v4862_v39 = vmul.f32 %v13899_v12, %v14012_v33  ;;  %v5156_v10 = vsel %vm492_vm2, %v5106_v14, %v5107_v24  ;;  %v5152_v59 = vsel %vm492_vm2, %v5110_v52, %v5111_v63 }
 0x8ec   : > { %v5114_v33 = vrot.slane %v14226_v61, 1  ;;  %v9226_v49 = vpack.i.bf16 %v5171_v23, %v5156_v10  ;;  %v9246_v5 = vpack.i.bf16 %v5175_v21, %v5152_v59  ;;  %v9236_v41 = vpack.i.bf16 %v5173_v26, %v5154_v55 }
 0x8ed   : > { %v5113_v4 = vrot.slane %v14244_v43, 1  ;;  %v5145_v29 = vsel %vm492_vm2, %v5117_v2, %v5118_v56  ;;  %v4928_v42 = vmax.f32 %v4896_v60, 0.0  ;;  %v4929_v17 = vmax.f32 %v4897_v0, 0.0 }
 0x8ee   : > { %v4895_v14 = vadd.f32 %v13902_v1, %v4862_v39  ;;  %v9261_v52 = vpack.i.bf16 %v14223_v50, %v14226_v61  ;;  %v5147_v63 = vsel %vm492_vm2, %v5115_v31, %v5116_v34  ;;  %v9271_v24 = vpack.i.bf16 %v14231_v8, %v14229_v45 }
 0x8ef   : > { %9247 = vrot.lane.b32.xlu2 %v9246_v5, %s9596_s8  ;;  %v4963_v55 = vpack.c.bf16 %v4931_v51, %v4931_v51  ;;  %v5149_v26 = vsel %vm492_vm2, %v5113_v4, %v5114_v33  ;;  %v14286_v23 = vsel %vm492_vm2, %v5116_v34, %v5117_v2  ;;  %v4960_v21 = vpack.c.bf16 %v4928_v42, %v4928_v42 }
 0x8f0   : > { %9227 = vrot.lane.b32.xlu1 %v9226_v49, %s9596_s8  ;;  %v4961_v60 = vpack.c.bf16 %v4929_v17, %v4929_v17  ;;  %v5181_v0 = vmul.f32 %v16730_v46, %v5145_v29  ;;  %v4927_v39 = vmax.f32 %v4895_v14, 0.0  ;;  %v14290_v54 = vunpack.c.l.bf16 %v14128_v9 }
 0x8f1   : > { %v14292_v6 = vunpack.c.l.bf16 %v4963_v55  ;;  %v14295_v51 = vmul.f32 %v16730_v46, %v5147_v63  ;;  %v5124_v10 = vrot.slane %v14196_v30, 1  ;;  %v4870_v34 = vmul.f32 %v13899_v12, %v14000_v57 }
 0x8f2   : > { %v14297_v25 = vunpack.c.l.bf16 %v4961_v60  ;;  %v5177_v29 = vmul.f32 %v16730_v46, %v5149_v26  ;;  %v14304_v17 = vunpack.c.l.bf16 %v4960_v21  ;;  %v4959_v9 = vpack.c.bf16 %v4927_v39, %v4927_v39 }
 0x8f3   : > { %9237 = vrot.lane.b32.xlu0 %v9236_v41, %s9596_s8  ;;  %v5123_v2 = vrot.slane %v14292_v6, 1  ;;  %v5017_v42 = vrot.slane %v14244_v43, 7  ;;  %v14310_v59 = vsel %vm492_vm2, %v5114_v33, %v5115_v31  ;;  %v5122_v49 = vrot.slane %v14290_v54, 1 }
 0x8f4   : > { %v4902_v57 = vadd.f32 %v13902_v1, %v14031_v62  ;;  %v9251_v5 = vpack.i.bf16 %v14244_v43, %v14139_v27  ;;  %v14317_v41 = vunpack.c.l.bf16 %v4959_v9  ;;  %v5121_v14 = vrot.slane %v14297_v25, 1 }
 0x8f5   : > { %v4903_v63 = vadd.f32 %v13902_v1, %v4870_v34  ;;  %v5150_v31 = vsel %vm492_vm2, %v5112_v36, %v5113_v4  ;;  %v9276_v33 = vpack.i.bf16 %v5181_v0, %v14286_v23  ;;  %v5139_v62 = vsel %vm492_vm2, %v5123_v2, %v5124_v10 }
 0x8f6   : > { %v4934_v55 = vmax.f32 %v4902_v57, 0.0  ;;  %v9256_v26 = vpack.i.bf16 %v5177_v29, %v5150_v31  ;;  %v9266_v21 = vpack.i.bf16 %v14295_v51, %v14310_v59  ;;  %v9291_v60 = vpack.i.bf16 %v14297_v25, %v14304_v17 }
 0x8f7   : > { %9262 = vrot.lane.b32.xlu2 %v9261_v52, %s9595_s19  ;;  %v5120_v39 = vrot.slane %v14304_v17, 1  ;;  %v14342_v36 = vsel %vm492_vm2, %v5122_v49, %v5123_v2  ;;  %v4935_v4 = vmax.f32 %v4903_v63, 0.0  ;;  %v4868_v23 = vmul.f32 %v13899_v12, %v13996_v28 }
 0x8f8   : > { %9242 = vrot.lane.b32.xlu1 %v9241_v3, %s9595_s19  ;;  %v4966_v52 = vpack.c.bf16 %v4934_v55, %v4934_v55  ;;  %v5023_v0 = vrot.slane %v14317_v41, 7  ;;  %v14348_v51 = vmul.f32 %v16730_v46, %v5139_v62  ;;  %v5141_v34 = vsel %vm492_vm2, %v5121_v14, %v5122_v49 }
 0x8f9   : > { %v4969_v3 = vpack.c.bf16 %v4937_v13, %v4937_v13  ;;  %v9281_v29 = vpack.i.bf16 %v14317_v41, %v14194_v19  ;;  %v4967_v9 = vpack.c.bf16 %v4935_v4, %v4935_v4  ;;  %v4901_v28 = vadd.f32 %v13902_v1, %v4868_v23 }
 0x8fa   : > { %v14359_v2 = vunpack.c.l.bf16 %v4966_v52  ;;  %v14364_v59 = vunpack.c.l.bf16 %v14167_v48  ;;  %v14369_v49 = vunpack.c.l.bf16 %v14192_v40  ;;  %v4874_v37 = vmul.f32 %v13899_v12, %v14007_v7 }
 0x8fb   : > { %9252 = vrot.lane.b32.xlu0 %v9251_v5, %s9595_s19  ;;  %v14366_v57 = vunpack.c.l.bf16 %v4969_v3  ;;  %v5119_v13 = vrot.slane %v14317_v41, 1  ;;  %v14374_v63 = vunpack.c.l.bf16 %v4967_v9  ;;  %v4933_v31 = vmax.f32 %v4901_v28, 0.0 }
 0x8fc   : > { %v5126_v62 = vrot.slane %v14359_v2, 1  ;;  %v5128_v5 = vrot.slane %v14364_v59, 1  ;;  %v5130_v55 = vrot.slane %v14369_v49, 1  ;;  %v4907_v52 = vadd.f32 %v13902_v1, %v4874_v37 }
 0x8fd   : > { %v5129_v48 = vrot.slane %v14366_v57, 1  ;;  %v4965_v12 = vpack.c.bf16 %v4933_v31, %v4933_v31  ;;  %v5127_v7 = vrot.slane %v14374_v63, 1  ;;  %v5007_v9 = vrot.slane %v14096_v32, 7 }
 0x8fe   : > { %v5006_v28 = vrot.slane %v14090_v16, 7  ;;  %v4939_v32 = vmax.f32 %v4907_v52, 0.0  ;;  %v5004_v52 = vrot.slane %v14117_v38, 7  ;;  %v5021_v43 = vrot.slane %v14231_v8, 7 }
 0x8ff   : > { %9277 = vrot.lane.b32.xlu2 %v9276_v33, %s9596_s8  ;;  %v5133_v23 = vsel %vm492_vm2, %v5129_v48, %v5130_v55  ;;  %v14391_v3 = vsel %vm492_vm2, %v5128_v5, %v5129_v48  ;;  %v14396_v31 = vunpack.c.l.bf16 %v4965_v12  ;;  %v5135_v1 = vsel %vm492_vm2, %v5127_v7, %v5128_v5 }
 0x900   : > { %9257 = vrot.lane.b32.xlu1 %v9256_v26, %s9596_s8  ;;  %v14399_v40 = vmul.f32 %v16730_v46, %v5133_v23  ;;  %v14405_v33 = vsel %vm492_vm2, %v5126_v62, %v5127_v7  ;;  %v14408_v37 = vmul.f32 %v16730_v46, %v5135_v1  ;;  %v14412_v16 = vsel %vm395_vm3, %v5006_v28, %v5007_v9 }
 0x901   : > { %v16731_v26 = vrot.slane %v14124_v20, 7  ;;  %v14421_v5 = vmul.f32 %v16730_v46, %v5141_v34  ;;  %v5125_v7 = vrot.slane %v14396_v31, 1  ;;  %v9306_v23 = vpack.i.bf16 %v14348_v51, %v14342_v36 }
 0x902   : > { %v4971_v1 = vpack.c.bf16 %v4939_v32, %v4939_v32  ;;  %v5012_v34 = vrot.slane %v14163_v22, 7  ;;  %v16732_v22 = vrot.slane %v14183_v18, 7  ;;  %v5018_v32 = vrot.slane %v14226_v61, 7 }
 0x903   : > { %v14418_v48 = vsel %vm395_vm3, %v16731_v26, %v5006_v28  ;;  %9267 = vrot.lane.b32.xlu0 %v9266_v21, %s9596_s8  ;;  %v5137_v26 = vsel %vm492_vm2, %v5125_v7, %v5126_v62  ;;  %v14440_v12 = vsel %vm492_vm2, %v5124_v10, %v5125_v7  ;;  %v5013_v21 = vrot.slane %v14165_v53, 7 }
 0x904   : > { %v14445_v36 = vmul.f32 %v16730_v46, %v5137_v26  ;;  %v14447_v51 = vunpack.c.l.bf16 %v4971_v1  ;;  %v14453_v62 = vsel %vm395_vm3, %v16732_v22, %v5012_v34  ;;  %v5143_v53 = vsel %vm492_vm2, %v5119_v13, %v5120_v39 }
 0x905   : > { %v14462_v10 = vsel %vm395_vm3, %v5012_v34, %v5013_v21  ;;  %v16733_v7 = vrot.slane %v14124_v20, 7  ;;  %v5019_v26 = vrot.slane %v14223_v50, 7  ;;  %v5009_v34 = vrot.slane %v14119_v44, 7 }
 0x906   : > { %v16605_v22 = vrot.slane %v14447_v51, 7  ;;  %v5131_v20 = vrot.slane %v14447_v51, 1  ;;  %v5144_v28 = vsel %vm492_vm2, %v5118_v56, %v5119_v13  ;;  %v16734_v61 = vrot.slane %v14117_v38, 1 }
 0x907   : > { %v14468_v1 = vsel %vm395_vm3, %v5004_v52, %v16733_v7  ;;  %9292 = vrot.lane.b32.xlu2 %v9291_v60, %s9595_s19  ;;  %v14487_v50 = vsel %vm395_vm3, %v5018_v32, %v5019_v26  ;;  %v14493_v60 = vsel %vm395_vm3, %v5017_v42, %v5018_v32  ;;  %v5008_v7 = vrot.slane %v14111_v35, 7 }
 0x908   : > { %9272 = vrot.lane.b32.xlu1 %v9271_v24, %s9595_s19  ;;  %v14503_v24 = vsel %vm492_vm2, %v5130_v55, %v5131_v20  ;;  %v5163_v4 = vsel %vm492_vm2, %v5131_v20, %v16734_v61  ;;  %v14513_v35 = vsel %vm395_vm3, %v16605_v22, %v5004_v52  ;;  %v5183_v44 = vmul.f32 %v16730_v46, %v5143_v53 }
 0x909   : > { %v14517_v32 = vmul.f32 %v16730_v46, %v5163_v4  ;;  %v14521_v56 = vsel %vm395_vm3, %v5008_v7, %v5009_v34  ;;  %v14525_v38 = vsel %vm395_vm3, %v5007_v9, %v5008_v7  ;;  %v5029_v13 = vrot.slane %v14396_v31, 7  ;;  %v15075_v46 = vld [vmem:[%s16565_s3 + $0xc] sm:$0x7] }
 0x90a   : > { %v5010_v55 = vrot.slane %v14106_v15, 7  ;;  %v5024_v4 = vrot.slane %v14304_v17, 7  ;;  %v5025_v52 = vrot.slane %v14297_v25, 7  ;;  %v5014_v61 = vrot.slane %v14161_v11, 7  ;;  %16752 = vst [vmem:[#allocation15_spill] sm:$0xff] %v15075_v46 }
 0x90b   : > { %9282 = vrot.lane.b32.xlu0 %v9281_v29, %s9595_s19  ;;  %v9346_v53 = vpack.i.bf16 %v14517_v32, %v14503_v24  ;;  %v5015_v9 = vrot.slane %v14170_v58, 7  ;;  %v5016_v20 = vrot.slane %v14139_v27, 7  ;;  %v16735_v7 = vrot.slane %v14183_v18, 7 }
 0x90c   : > { %v14548_v15 = vsel %vm395_vm3, %v5009_v34, %v5010_v55  ;;  %v14552_v22 = vsel %vm395_vm3, %v5024_v4, %v5025_v52  ;;  %v14558_v11 = vsel %vm395_vm3, %v5023_v0, %v5024_v4  ;;  %v9286_v27 = vpack.i.bf16 %v5183_v44, %v5144_v28 }
 0x90d   : > { %v14544_v29 = vsel %vm395_vm3, %v5010_v55, %v16735_v7  ;;  %v14562_v58 = vsel %vm395_vm3, %v5014_v61, %v5015_v9  ;;  %v14566_v18 = vsel %vm395_vm3, %v5013_v21, %v5014_v61  ;;  %v5142_v34 = vsel %vm492_vm2, %v5120_v39, %v5121_v14  ;;  %v8545_v39 = vld [vmem:[%s16564_s2 + $0x158] sm:$0xff] }
 0x90e   : > { %v14579_v28 = vsel %vm395_vm3, %v5016_v20, %v5017_v42  ;;  %v14583_v44 = vsel %vm395_vm3, %v5015_v9, %v5016_v20  ;;  %v5030_v21 = vrot.slane %v14359_v2, 7  ;;  %v9296_v25 = vpack.i.bf16 %v14421_v5, %v5142_v34  ;;  %v8557_v42 = vld [vmem:[%s16564_s2 + $0x188] sm:$0xff]  ;;  %5805 = vmatpush.bf16.msra.mxu2 %v8545_v39 }
 0x90f   : > { %9307 = vrot.lane.b32.xlu2 %v9306_v23, %s9596_s8  ;;  %v5031_v17 = vrot.slane %v14374_v63, 7  ;;  %v5020_v14 = vrot.slane %v14229_v45, 7  ;;  %v5022_v5 = vrot.slane %v14194_v19, 7  ;;  %v5026_v55 = vrot.slane %v14290_v54, 7  ;;  %5943 = vmatpush.bf16.msrb.mxu3 %v8557_v42 }
 0x910   : > { %9287 = vrot.lane.b32.xlu1 %v9286_v27, %s9596_s8  ;;  %v14599_v23 = vsel %vm395_vm3, %v5029_v13, %v5030_v21  ;;  %v5027_v45 = vrot.slane %v14292_v6, 7  ;;  %v5028_v20 = vrot.slane %v14196_v30, 7  ;;  %v5032_v41 = vrot.slane %v14364_v59, 7 }
 0x911   : > { %v14606_v8 = vsel %vm395_vm3, %v5030_v21, %v5031_v17  ;;  %v14610_v4 = vsel %vm395_vm3, %v5020_v14, %v5021_v43  ;;  %v14614_v61 = vsel %vm395_vm3, %v5019_v26, %v5020_v14  ;;  %v14621_v19 = vsel %vm395_vm3, %v5022_v5, %v5023_v0 }
 0x912   : > { %v14625_v9 = vsel %vm395_vm3, %v5021_v43, %v5022_v5  ;;  %v14630_v26 = vsel %vm395_vm3, %v5026_v55, %v5027_v45  ;;  %v14634_v7 = vsel %vm395_vm3, %v5025_v52, %v5026_v55  ;;  %v14639_v0 = vsel %vm395_vm3, %v5028_v20, %v5029_v13 }
 0x913   : > { %9297 = vrot.lane.b32.xlu0 %v9296_v25, %s9596_s8  ;;  %v14643_v27 = vsel %vm395_vm3, %v5027_v45, %v5028_v20  ;;  %v5033_v34 = vrot.slane %v14366_v57, 7  ;;  %v9301_v21 = vpack.i.bf16 %v14292_v6, %v14290_v54  ;;  %v14650_v25 = vsel %vm395_vm3, %v5031_v17, %v5032_v41  ;;  %v8554_v17 = vld [vmem:[%s16564_s2 + $0x140] sm:$0xff] }
 0x914   : > { %v5034_v52 = vrot.slane %v14369_v49, 7  ;;  %v16736_v13 = vpack.i.bf16 %v14374_v63, %v14359_v2  ;;  %v16737_v43 = vrot.slane %v14447_v51, 7  ;;  %v8555_v2 = vld [vmem:[%s16564_s2 + $0x148] sm:$0xff]  ;;  %v16738_v63 = vpack.i.bf16 %v14396_v31, %v14196_v30  ;;  %v8553_v31 = vld [vmem:[%s16564_s2 + $0x138] sm:$0xff] }
 0x915   : > { %v14659_v14 = vsel %vm395_vm3, %v5032_v41, %v5033_v34  ;;  %5644 = vmatpush.bf16.msra.mxu1 %v8555_v2  ;;  %v16739_v42 = vpack.i.bf16 %v14399_v40, %v14391_v3  ;;  %v16740_v39 = vpack.i.bf16 %v14445_v36, %v14440_v12  ;;  %v16741_v30 = vpack.i.bf16 %v14408_v37, %v14405_v33  ;;  %v8552_v40 = vld [vmem:[%s16564_s2 + $0x130] sm:$0xff]  ;;  %v8551_v37 = vld [vmem:[%s16564_s2 + $0x128] sm:$0xff] }
 0x916   : > { %v14666_v54 = vsel %vm395_vm3, %v5034_v52, %v16737_v43  ;;  %v14670_v6 = vsel %vm395_vm3, %v5033_v34, %v5034_v52  ;;  %v16742_v3 = vpack.i.bf16 %v14366_v57, %v14364_v59  ;;  %v16743_v33 = vpack.i.bf16 %v14447_v51, %v14369_v49  ;;  %v8550_v59 = vld [vmem:[%s16564_s2 + $0x120] sm:$0xff]  ;;  %v8544_v57 = vld [vmem:[%s16564_s2 + $0x150] sm:$0xff] }
 0x917   : > { %9322 = vrot.lane.b32.xlu2 %v16736_v13, %s9595_s19  ;;  %v8556_v49 = vld [vmem:[%s16564_s2 + $0x180] sm:$0xff]  ;;  %5806 = vmatpush.bf16.msra.mxu2 %v8544_v57 }
 0x918   : > { %9302 = vrot.lane.b32.xlu1 %v9301_v21, %s9595_s19  ;;  %5944 = vmatpush.bf16.msrb.mxu3 %v8556_v49 }
 0x919   : > { %5645 = vmatpush.bf16.msra.mxu1 %v8554_v17 }
 0x91b   : > { %9312 = vrot.lane.b32.xlu0 %v16738_v63, %s9595_s19 }
 0x91d   : > { %5646 = vmatpush.bf16.msra.mxu1 %v8553_v31 }
 0x91f   : > { %9337 = vrot.lane.b32.xlu2 %v16739_v42, %s9596_s8 }
 0x920   : > { %9317 = vrot.lane.b32.xlu1 %v16740_v39, %s9596_s8 }
 0x921   : > { %5647 = vmatpush.bf16.msra.mxu1 %v8552_v40 }
 0x923   : > { %9327 = vrot.lane.b32.xlu0 %v16741_v30, %s9596_s8 }
 0x925   : > { %5648 = vmatpush.bf16.msra.mxu1 %v8551_v37 }
 0x928   : > { %9332 = vrot.lane.b32.xlu1 %v16742_v3, %s9595_s19 }
 0x929   : > { %5649 = vmatpush.bf16.msra.mxu1 %v8550_v59 }
 0x92b   : > { %9342 = vrot.lane.b32.xlu0 %v16743_v33, %s9595_s19 }
 0x92e   : > { %v9203_v12 = vpop.permute.xlu2 %9202 }
 0x92f   : > { %v9205_v45 = vunpack.i.h.bf16 %v9203_v12  ;;  %v9204_v20 = vunpack.i.l.bf16 %v9203_v12 }
 0x930   : > { %9347 = vrot.lane.b32.xlu1 %v9346_v53, %s9596_s8  ;;  %v16744_v53 = vld [vmem:[#allocation6_spill] sm:$0xff] }
 0x931   : > { %v5068_v5 = vmul.f32 %v16744_v53, %v14513_v35  ;;  %v5070_v43 = vmul.f32 %v16744_v53, %v14418_v48  ;;  %v5455_v31 = vsel %vm1389_vm8, %v14412_v16, %v9205_v45  ;;  %v5072_v33 = vmul.f32 %v16744_v53, %v14525_v38 }
 0x932   : > { %v5074_v38 = vmul.f32 %v16744_v53, %v14548_v15 }
 0x933   : > { %v5454_v30 = vsel %vm1389_vm8, %v5070_v43, %v9204_v20 }
 0x939   : > { %v9218_v36 = vpop.permute.xlu2 %9217 }
 0x93a   : > { %v9220_v57 = vunpack.i.h.bf16 %v9218_v36  ;;  %v9219_v49 = vunpack.i.l.bf16 %v9218_v36 }
 0x941   : > { %v9233_v41 = vpop.permute.xlu2 %9232 }
 0x942   : > { %v9235_v36 = vunpack.i.h.bf16 %v9233_v41 }
 0x949   : > { %v14743_v16 = vpop.permute.xlu2 %9247 }
 0x94d   : > { %v9193_v51 = vpop.permute.xlu0 %9192 }
 0x94e   : > { %v9195_v24 = vunpack.i.h.bf16 %v9193_v51  ;;  %v9194_v32 = vunpack.i.l.bf16 %v9193_v51 }
 0x950   : > { %v5452_v52 = vsel %vm1389_vm8, %v5068_v5, %v9194_v32  ;;  %v5453_v13 = vsel %vm1389_vm8, %v14468_v1, %v9195_v24 }
 0x952   : > { %v9198_v55 = vpop.permute.xlu1 %9197 }
 0x953   : > { %v9200_v34 = vunpack.i.h.bf16 %v9198_v55  ;;  %v9199_v21 = vunpack.i.l.bf16 %v9198_v55 }
 0x955   : > { %v5484_v2 = vsel %vm2327_vm12, %v5452_v52, %v9199_v21  ;;  %v5485_v63 = vsel %vm2327_vm12, %v5453_v13, %v9200_v34  ;;  %v9208_v17 = vpop.permute.xlu0 %9207  ;;  %v9234_v21 = vunpack.i.l.bf16 %v9233_v41  ;;  %v5461_v41 = vsel %vm1389_vm8, %v14462_v10, %v9235_v36 }
 0x956   : > { %v5516_v35 = vpack.c.bf16 %v5485_v63, %v5484_v2  ;;  %v9210_v42 = vunpack.i.h.bf16 %v9208_v17  ;;  %v9209_v39 = vunpack.i.l.bf16 %v9208_v17  ;;  %v5076_v2 = vmul.f32 %v16744_v53, %v14453_v62 }
 0x958   : > { %v5487_v40 = vsel %vm2327_vm12, %v5455_v31, %v9210_v42  ;;  %v5486_v1 = vsel %vm2327_vm12, %v5454_v30, %v9209_v39  ;;  %8244 = vmatmul.msk.bf16.vlgmr.msra.gmra.mxu1 %vm2437_vm13, %v5516_v35  ;;  %8284 = vmatmul.msk.bf16.vlgmr.msra.gmra.mxu2 %vm2437_vm13, %v5516_v35  ;;  %v5460_v30 = vsel %vm1389_vm8, %v5076_v2, %v9234_v21 }
 0x959   : > { %v5517_v48 = vpack.c.bf16 %v5487_v40, %v5486_v1  ;;  %8336 = vmatmul.msk.bf16.vlgmr.msrb.gmra.mxu3 %vm2437_vm13, %v5516_v35 }
 0x95a   : > { %v9213_v3 = vpop.permute.xlu1 %9212 }
 0x95b   : > { %v9215_v37 = vunpack.i.h.bf16 %v9213_v3  ;;  %v9214_v59 = vunpack.i.l.bf16 %v9213_v3 }
 0x95d   : > { %v5457_v12 = vsel %vm1389_vm8, %v14521_v56, %v9215_v37  ;;  %v5456_v51 = vsel %vm1389_vm8, %v5072_v33, %v9214_v59  ;;  %v9223_v24 = vpop.permute.xlu0 %9222  ;;  %v5080_v59 = vmul.f32 %v16744_v53, %v14583_v44 }
 0x95e   : > { %v5488_v32 = vsel %vm2327_vm12, %v5456_v51, %v9219_v49  ;;  %v5489_v5 = vsel %vm2327_vm12, %v5457_v12, %v9220_v57  ;;  %v9225_v45 = vunpack.i.h.bf16 %v9223_v24  ;;  %v9224_v20 = vunpack.i.l.bf16 %v9223_v24 }
 0x95f   : > { %v5518_v55 = vpack.c.bf16 %v5489_v5, %v5488_v32 }
 0x960   : > { %v5459_v56 = vsel %vm1389_vm8, %v14544_v29, %v9225_v45  ;;  %v5458_v43 = vsel %vm1389_vm8, %v5074_v38, %v9224_v20  ;;  %v9263_v29 = vpop.permute.xlu2 %9262 }
 0x961   : > { %v9265_v49 = vunpack.i.h.bf16 %v9263_v29  ;;  %v9264_v12 = vunpack.i.l.bf16 %v9263_v29 }
 0x962   : > { %v9228_v34 = vpop.permute.xlu1 %9227 }
 0x963   : > { %v9230_v52 = vunpack.i.h.bf16 %v9228_v34  ;;  %v9229_v13 = vunpack.i.l.bf16 %v9228_v34  ;;  %v5467_v21 = vsel %vm1389_vm8, %v14487_v50, %v9265_v49 }
 0x965   : > { %v5491_v63 = vsel %vm2327_vm12, %v5459_v56, %v9230_v52  ;;  %v5490_v17 = vsel %vm2327_vm12, %v5458_v43, %v9229_v13  ;;  %v9238_v35 = vpop.permute.xlu0 %9237 }
 0x966   : > { %v14759_v42 = vpack.c.bf16 %v5491_v63, %v5490_v17  ;;  %v9240_v15 = vunpack.i.h.bf16 %v9238_v35  ;;  %v9239_v39 = vunpack.i.l.bf16 %v9238_v35 }
 0x968   : > { %v5493_v31 = vsel %vm2327_vm12, %v5461_v41, %v9240_v15  ;;  %v5492_v40 = vsel %vm2327_vm12, %v5460_v30, %v9239_v39  ;;  %8245 = vmatmul.msk.bf16.gmra.mxu1 %vm2437_vm13, %v5517_v48  ;;  %8285 = vmatmul.msk.bf16.gmra.mxu2 %vm2437_vm13, %v5517_v48  ;;  %v14771_v10 = vpop.permute.xlu2 %9277  ;;  %v5078_v15 = vmul.f32 %v16744_v53, %v14566_v18 }
 0x969   : > { %v14768_v62 = vpack.c.bf16 %v5493_v31, %v5492_v40  ;;  %8337 = vmatmul.msk.bf16.gmra.mxu3 %vm2437_vm13, %v5517_v48  ;;  %v5082_v48 = vmul.f32 %v16744_v53, %v14493_v60  ;;  %v5086_v41 = vmul.f32 %v16744_v53, %v14625_v9  ;;  %v5088_v9 = vmul.f32 %v16744_v53, %v14558_v11 }
 0x96a   : > { %v9243_v1 = vpop.permute.xlu1 %9242 }
 0x96b   : > { %v5466_v52 = vsel %vm1389_vm8, %v5082_v48, %v9264_v12  ;;  %v9244_v63 = vunpack.i.l.bf16 %v9243_v1  ;;  %v9245_v50 = vunpack.i.h.bf16 %v9243_v1 }
 0x96d   : > { %v9253_v3 = vpop.permute.xlu0 %9252  ;;  %v5462_v31 = vsel %vm1389_vm8, %v5078_v15, %v9244_v63  ;;  %v5463_v1 = vsel %vm1389_vm8, %v14562_v58, %v9245_v50  ;;  %v5094_v15 = vmul.f32 %v16744_v53, %v14599_v23 }
 0x96e   : > { %v9255_v33 = vunpack.i.h.bf16 %v9253_v3  ;;  %v9254_v37 = vunpack.i.l.bf16 %v9253_v3  ;;  %v9249_v3 = vunpack.i.l.bf16 %v14743_v16 }
 0x970   : > { %v5465_v32 = vsel %vm1389_vm8, %v14579_v28, %v9255_v33  ;;  %v5464_v5 = vsel %vm1389_vm8, %v5080_v59, %v9254_v37  ;;  %v9293_v43 = vpop.permute.xlu2 %9292  ;;  %v9250_v37 = vunpack.i.h.bf16 %v14743_v16 }
 0x971   : > { %v9295_v39 = vunpack.i.h.bf16 %v9293_v43  ;;  %v9294_v29 = vunpack.i.l.bf16 %v9293_v43 }
 0x972   : > { %v9258_v57 = vpop.permute.xlu1 %9257  ;;  %v5495_v11 = vsel %vm2327_vm12, %v5463_v1, %v9250_v37 }
 0x973   : > { %v9260_v51 = vunpack.i.h.bf16 %v9258_v57  ;;  %v9259_v24 = vunpack.i.l.bf16 %v9258_v57  ;;  %v5472_v16 = vsel %vm1389_vm8, %v5088_v9, %v9294_v29 }
 0x975   : > { %v5497_v45 = vsel %vm2327_vm12, %v5465_v32, %v9260_v51  ;;  %v5496_v20 = vsel %vm2327_vm12, %v5464_v5, %v9259_v24  ;;  %v9268_v38 = vpop.permute.xlu0 %9267  ;;  %v5473_v32 = vsel %vm1389_vm8, %v14552_v22, %v9295_v39 }
 0x976   : > { %v14782_v34 = vpack.c.bf16 %v5497_v45, %v5496_v20  ;;  %v9270_v44 = vunpack.i.h.bf16 %v9268_v38  ;;  %v9269_v36 = vunpack.i.l.bf16 %v9268_v38 }
 0x978   : > { %v5499_v28 = vsel %vm2327_vm12, %v5467_v21, %v9270_v44  ;;  %v5498_v13 = vsel %vm2327_vm12, %v5466_v52, %v9269_v36  ;;  %8246 = vmatmul.msk.bf16.gmra.mxu1 %vm2437_vm13, %v5518_v55  ;;  %8286 = vmatmul.msk.bf16.gmra.mxu2 %vm2437_vm13, %v5518_v55  ;;  %v14810_v59 = vpop.permute.xlu2 %9307 }
 0x979   : > { %v14791_v60 = vpack.c.bf16 %v5499_v28, %v5498_v13  ;;  %8338 = vmatmul.msk.bf16.gmra.mxu3 %vm2437_vm13, %v5518_v55  ;;  %v5092_v28 = vmul.f32 %v16744_v53, %v14643_v27 }
 0x97a   : > { %v14794_v56 = vpop.permute.xlu1 %9272 }
 0x97d   : > { %v9283_v2 = vpop.permute.xlu0 %9282 }
 0x97e   : > { %v9285_v17 = vunpack.i.h.bf16 %v9283_v2  ;;  %v9284_v35 = vunpack.i.l.bf16 %v9283_v2  ;;  %v9275_v2 = vunpack.i.h.bf16 %v14794_v56 }
 0x980   : > { %v5471_v33 = vsel %vm1389_vm8, %v14621_v19, %v9285_v17  ;;  %v5470_v18 = vsel %vm1389_vm8, %v5086_v41, %v9284_v35  ;;  %v5494_v19 = vsel %vm2327_vm12, %v5462_v31, %v9249_v3  ;;  %v9323_v44 = vpop.permute.xlu2 %9322  ;;  %v9274_v17 = vunpack.i.l.bf16 %v14794_v56 }
 0x981   : > { %v14827_v45 = vpack.c.bf16 %v5495_v11, %v5494_v19  ;;  %v9325_v52 = vunpack.i.h.bf16 %v9323_v44  ;;  %v9324_v43 = vunpack.i.l.bf16 %v9323_v44  ;;  %v5469_v23 = vsel %vm1389_vm8, %v14610_v4, %v9275_v2 }
 0x982   : > { %v9288_v30 = vpop.permute.xlu1 %9287 }
 0x983   : > { %v9290_v55 = vunpack.i.h.bf16 %v9288_v30  ;;  %v9289_v40 = vunpack.i.l.bf16 %v9288_v30  ;;  %v5084_v30 = vmul.f32 %v16744_v53, %v14614_v61  ;;  %v9280_v61 = vunpack.i.h.bf16 %v14771_v10 }
 0x985   : > { %v5503_v57 = vsel %vm2327_vm12, %v5471_v33, %v9290_v55  ;;  %v5502_v49 = vsel %vm2327_vm12, %v5470_v18, %v9289_v40  ;;  %v9298_v12 = vpop.permute.xlu0 %9297  ;;  %v5478_v55 = vsel %vm1389_vm8, %v5094_v15, %v9324_v43  ;;  %v5468_v40 = vsel %vm1389_vm8, %v5084_v30, %v9274_v17 }
 0x986   : > { %v14814_v51 = vpack.c.bf16 %v5503_v57, %v5502_v49  ;;  %v9300_v58 = vunpack.i.h.bf16 %v9298_v12  ;;  %v9299_v24 = vunpack.i.l.bf16 %v9298_v12  ;;  %v5501_v37 = vsel %vm2327_vm12, %v5469_v23, %v9280_v61 }
 0x987   : > { %v5096_v43 = vmul.f32 %v16744_v53, %v14650_v25 }
 0x988   : > { %v5505_v5 = vsel %vm2327_vm12, %v5473_v32, %v9300_v58  ;;  %v5504_v48 = vsel %vm2327_vm12, %v5472_v16, %v9299_v24  ;;  %8247 = vmatmul.msk.bf16.gmra.mxu1 %vm2437_vm13, %v14759_v42  ;;  %8287 = vmatmul.msk.bf16.gmra.mxu2 %vm2437_vm13, %v14759_v42  ;;  %v5098_v58 = vmul.f32 %v16744_v53, %v14670_v6 }
 0x989   : > { %v14829_v20 = vpack.c.bf16 %v5505_v5, %v5504_v48  ;;  %8339 = vmatmul.msk.bf16.gmra.mxu3 %vm2437_vm13, %v14759_v42 }
 0x98a   : > { %v9303_v22 = vpop.permute.xlu1 %9302 }
 0x98b   : > { %v9305_v32 = vunpack.i.h.bf16 %v9303_v22  ;;  %v9304_v16 = vunpack.i.l.bf16 %v9303_v22  ;;  %v9309_v22 = vunpack.i.l.bf16 %v14810_v59 }
 0x98d   : > { %v9313_v38 = vpop.permute.xlu0 %9312  ;;  %v5475_v6 = vsel %vm1389_vm8, %v14630_v26, %v9305_v32 }
 0x98e   : > { %v9315_v36 = vunpack.i.h.bf16 %v9313_v38  ;;  %v9314_v21 = vunpack.i.l.bf16 %v9313_v38  ;;  %v5090_v38 = vmul.f32 %v16744_v53, %v14634_v7 }
 0x990   : > { %v5477_v42 = vsel %vm1389_vm8, %v14639_v0, %v9315_v36  ;;  %v5476_v35 = vsel %vm1389_vm8, %v5092_v28, %v9314_v21  ;;  %v5479_v0 = vsel %vm1389_vm8, %v14606_v8, %v9325_v52  ;;  %v9279_v8 = vunpack.i.l.bf16 %v14771_v10 }
 0x991   : > { %v5474_v36 = vsel %vm1389_vm8, %v5090_v38, %v9304_v16 }
 0x992   : > { %v9318_v13 = vpop.permute.xlu1 %9317  ;;  %v5500_v18 = vsel %vm2327_vm12, %v5468_v40, %v9279_v8  ;;  %v5506_v7 = vsel %vm2327_vm12, %v5474_v36, %v9309_v22 }
 0x993   : > { %v9320_v63 = vunpack.i.h.bf16 %v9318_v13  ;;  %v9319_v50 = vunpack.i.l.bf16 %v9318_v13  ;;  %v5524_v9 = vpack.c.bf16 %v5501_v37, %v5500_v18  ;;  %v9338_v13 = vpop.permute.xlu2 %9337 }
 0x995   : > { %v5509_v39 = vsel %vm2327_vm12, %v5477_v42, %v9320_v63  ;;  %v5508_v27 = vsel %vm2327_vm12, %v5476_v35, %v9319_v50  ;;  %v9328_v41 = vpop.permute.xlu0 %9327 }
 0x996   : > { %v14846_v29 = vpack.c.bf16 %v5509_v39, %v5508_v27  ;;  %v9330_v31 = vunpack.i.h.bf16 %v9328_v41  ;;  %v9329_v56 = vunpack.i.l.bf16 %v9328_v41 }
 0x998   : > { %v5511_v3 = vsel %vm2327_vm12, %v5479_v0, %v9330_v31  ;;  %v5510_v1 = vsel %vm2327_vm12, %v5478_v55, %v9329_v56  ;;  %8248 = vmatmul.msk.bf16.gmra.mxu1 %vm2437_vm13, %v14768_v62  ;;  %8288 = vmatmul.msk.bf16.gmra.mxu2 %vm2437_vm13, %v14768_v62 }
 0x999   : > { %v14862_v33 = vpack.c.bf16 %v5511_v3, %v5510_v1  ;;  %8340 = vmatmul.msk.bf16.gmra.mxu3 %vm2437_vm13, %v14768_v62 }
 0x99a   : > { %v9333_v4 = vpop.permute.xlu1 %9332 }
 0x99b   : > { %v9335_v52 = vunpack.i.h.bf16 %v9333_v4  ;;  %v9334_v28 = vunpack.i.l.bf16 %v9333_v4 }
 0x99d   : > { %v9343_v57 = vpop.permute.xlu0 %9342  ;;  %v5481_v2 = vsel %vm1389_vm8, %v14659_v14, %v9335_v52  ;;  %v5480_v63 = vsel %vm1389_vm8, %v5096_v43, %v9334_v28 }
 0x99e   : > { %v9345_v49 = vunpack.i.h.bf16 %v9343_v57  ;;  %v9344_v12 = vunpack.i.l.bf16 %v9343_v57 }
 0x9a0   : > { %v5483_v62 = vsel %vm1389_vm8, %v14666_v54, %v9345_v49  ;;  %v5482_v11 = vsel %vm1389_vm8, %v5098_v58, %v9344_v12  ;;  %v9310_v54 = vunpack.i.h.bf16 %v14810_v59  ;;  %v9340_v59 = vunpack.i.h.bf16 %v9338_v13 }
 0x9a2   : > { %v9348_v24 = vpop.permute.xlu1 %9347  ;;  %v5507_v21 = vsel %vm2327_vm12, %v5475_v6, %v9310_v54  ;;  %v5513_v25 = vsel %vm2327_vm12, %v5481_v2, %v9340_v59 }
 0x9a3   : > { %v9350_v19 = vunpack.i.h.bf16 %v9348_v24  ;;  %v9349_v10 = vunpack.i.l.bf16 %v9348_v24  ;;  %v5527_v26 = vpack.c.bf16 %v5507_v21, %v5506_v7 }
 0x9a5   : > { %v5515_v5 = vsel %vm2327_vm12, %v5483_v62, %v9350_v19  ;;  %v5514_v48 = vsel %vm2327_vm12, %v5482_v11, %v9349_v10 }
 0x9a6   : > { %v14877_v44 = vpack.c.bf16 %v5515_v5, %v5514_v48 }
 0x9a8   : > { %8249 = vmatmul.msk.bf16.gmra.mxu1 %vm2437_vm13, %v14827_v45  ;;  %8289 = vmatmul.msk.bf16.gmra.mxu2 %vm2437_vm13, %v14827_v45 }
 0x9a9   : > { %8341 = vmatmul.msk.bf16.gmra.mxu3 %vm2437_vm13, %v14827_v45  ;;  %v9339_v45 = vunpack.i.l.bf16 %v9338_v13 }
 0x9ab   : > { %v5512_v50 = vsel %vm2327_vm12, %v5480_v63, %v9339_v45 }
 0x9ac   : > { %v14905_v17 = vpack.c.bf16 %v5513_v25, %v5512_v50 }
 0x9b8   : > { %8250 = vmatmul.msk.bf16.gmra.mxu1 %vm2437_vm13, %v14782_v34  ;;  %8290 = vmatmul.msk.bf16.gmra.mxu2 %vm2437_vm13, %v14782_v34 }
 0x9b9   : > { %8342 = vmatmul.msk.bf16.gmra.mxu3 %vm2437_vm13, %v14782_v34 }
 0x9c8   : > { %8251 = vmatmul.msk.bf16.gmra.mxu1 %vm2437_vm13, %v14791_v60  ;;  %8291 = vmatmul.msk.bf16.gmra.mxu2 %vm2437_vm13, %v14791_v60 }
 0x9c9   : > { %8343 = vmatmul.msk.bf16.gmra.mxu3 %vm2437_vm13, %v14791_v60 }
 0x9d5   : > { %v5651_v14 = vpop.f32.mrf.mxu1 }
 0x9d8   : > { %8252 = vmatmul.msk.bf16.gmra.mxu1 %vm2437_vm13, %v5524_v9  ;;  %8292 = vmatmul.msk.bf16.gmra.mxu2 %vm2437_vm13, %v5524_v9 }
 0x9d9   : > { %8344 = vmatmul.msk.bf16.gmra.mxu3 %vm2437_vm13, %v5524_v9 }
 0x9db   : > { %v14916_v34 = vpop.f32.mrf.mxu2 }
 0x9dc   : > { %v14918_v42 = vpop.f32.mrf.mxu3 }
 0x9dd   : > { %v5653_v35 = vpop.f32.mrf.mxu1 }
 0x9e3   : > { %v14920_v15 = vpop.f32.mrf.mxu2 }
 0x9e4   : > { %v14922_v39 = vpop.f32.mrf.mxu3 }
 0x9e5   : > { %16745 = vst [vmem:[#allocation12_spill] sm:$0xff] %v14922_v39  ;;  %v5656_v27 = vpop.f32.mrf.mxu1  ;;  %v6056_v39 = vmul.f32 0.0, %v14918_v42 }
 0x9e8   : > { %8253 = vmatmul.msk.bf16.gmra.mxu1 %vm2437_vm13, %v14814_v51  ;;  %8293 = vmatmul.msk.bf16.gmra.mxu2 %vm2437_vm13, %v14814_v51 }
 0x9e9   : > { %8345 = vmatmul.msk.bf16.gmra.mxu3 %vm2437_vm13, %v14814_v51 }
 0x9eb   : > { %v5813_v60 = vpop.f32.mrf.mxu2 }
 0x9ec   : > { %v5814_v41 = vadd.f32 %v5813_v60, %v5651_v14  ;;  %v14930_v30 = vpop.f32.mrf.mxu3 }
 0x9ed   : > { %v5658_v31 = vpop.f32.mrf.mxu1 }
 0x9f3   : > { %v5815_v56 = vpop.f32.mrf.mxu2 }
 0x9f4   : > { %v5816_v0 = vadd.f32 %v5815_v56, %v5653_v35  ;;  %v14932_v55 = vpop.f32.mrf.mxu3 }
 0x9f5   : > { %v5661_v23 = vpop.f32.mrf.mxu1 }
 0x9f8   : > { %8254 = vmatmul.msk.bf16.gmra.mxu1 %vm2437_vm13, %v14829_v20  ;;  %8294 = vmatmul.msk.bf16.gmra.mxu2 %vm2437_vm13, %v14829_v20 }
 0x9f9   : > { %8346 = vmatmul.msk.bf16.gmra.mxu3 %vm2437_vm13, %v14829_v20 }
 0x9fb   : > { %v5818_v51 = vpop.f32.mrf.mxu2 }
 0x9fc   : > { %v5819_v40 = vadd.f32 %v5818_v51, %v5656_v27  ;;  %v5956_v3 = vpop.f32.mrf.mxu3 }
 0x9fd   : > { %v14940_v1 = vadd.f32 %v5956_v3, %v5814_v41  ;;  %v5663_v61 = vpop.f32.mrf.mxu1 }
 0xa03   : > { %v5820_v8 = vpop.f32.mrf.mxu2 }
 0xa04   : > { %v5821_v4 = vadd.f32 %v5820_v8, %v5658_v31  ;;  %v5958_v18 = vpop.f32.mrf.mxu3 }
 0xa05   : > { %v14942_v37 = vadd.f32 %v5958_v18, %v5816_v0  ;;  %v5666_v9 = vpop.f32.mrf.mxu1 }
 0xa08   : > { %8255 = vmatmul.msk.bf16.gmra.mxu1 %vm2437_vm13, %v5527_v26  ;;  %8295 = vmatmul.msk.bf16.gmra.mxu2 %vm2437_vm13, %v5527_v26 }
 0xa09   : > { %8347 = vmatmul.msk.bf16.gmra.mxu3 %vm2437_vm13, %v5527_v26 }
 0xa0b   : > { %v5823_v57 = vpop.f32.mrf.mxu2 }
 0xa0c   : > { %v5824_v20 = vadd.f32 %v5823_v57, %v5661_v23  ;;  %v5961_v49 = vpop.f32.mrf.mxu3 }
 0xa0d   : > { %v14947_v12 = vadd.f32 %v5961_v49, %v5819_v40  ;;  %v5668_v58 = vpop.f32.mrf.mxu1 }
 0xa13   : > { %v5825_v24 = vpop.f32.mrf.mxu2 }
 0xa14   : > { %v5826_v19 = vadd.f32 %v5825_v24, %v5663_v61  ;;  %v5963_v10 = vpop.f32.mrf.mxu3 }
 0xa15   : > { %v14949_v32 = vadd.f32 %v5963_v10, %v5821_v4  ;;  %v5671_v16 = vpop.f32.mrf.mxu1 }
 0xa18   : > { %8256 = vmatmul.msk.bf16.gmra.mxu1 %vm2437_vm13, %v14846_v29  ;;  %8296 = vmatmul.msk.bf16.gmra.mxu2 %vm2437_vm13, %v14846_v29 }
 0xa19   : > { %8348 = vmatmul.msk.bf16.gmra.mxu3 %vm2437_vm13, %v14846_v29 }
 0xa1b   : > { %v5828_v62 = vpop.f32.mrf.mxu2 }
 0xa1c   : > { %v5829_v11 = vadd.f32 %v5828_v62, %v5666_v9  ;;  %v5966_v5 = vpop.f32.mrf.mxu3 }
 0xa1d   : > { %v14957_v48 = vadd.f32 %v5966_v5, %v5824_v20  ;;  %v14959_v38 = vpop.f32.mrf.mxu1 }
 0xa23   : > { %v5830_v6 = vpop.f32.mrf.mxu2 }
 0xa24   : > { %v5968_v36 = vpop.f32.mrf.mxu3  ;;  %v5831_v28 = vadd.f32 %v5830_v6, %v5668_v58 }
 0xa25   : > { %v14961_v54 = vadd.f32 %v5968_v36, %v5826_v19  ;;  %v5676_v22 = vpop.f32.mrf.mxu1 }
 0xa28   : > { %8257 = vmatmul.msk.bf16.gmra.mxu1 %vm2437_vm13, %v14862_v33  ;;  %8297 = vmatmul.msk.bf16.gmra.mxu2 %vm2437_vm13, %v14862_v33 }
 0xa29   : > { %8349 = vmatmul.msk.bf16.gmra.mxu3 %vm2437_vm13, %v14862_v33 }
 0xa2b   : > { %v5833_v29 = vpop.f32.mrf.mxu2 }
 0xa2c   : > { %v5834_v7 = vadd.f32 %v5833_v29, %v5671_v16  ;;  %v5971_v21 = vpop.f32.mrf.mxu3 }
 0xa2d   : > { %v14969_v26 = vadd.f32 %v5971_v21, %v5829_v11  ;;  %v14971_v52 = vpop.f32.mrf.mxu1 }
 0xa33   : > { %v14973_v13 = vpop.f32.mrf.mxu2 }
 0xa34   : > { %v5973_v43 = vpop.f32.mrf.mxu3 }
 0xa35   : > { %v14975_v2 = vadd.f32 %v5973_v43, %v5831_v28  ;;  %v5681_v63 = vpop.f32.mrf.mxu1 }
 0xa38   : > { %8258 = vmatmul.msk.bf16.gmra.mxu1 %vm2437_vm13, %v14905_v17  ;;  %8298 = vmatmul.msk.bf16.gmra.mxu2 %vm2437_vm13, %v14905_v17 }
 0xa39   : > { %8350 = vmatmul.msk.bf16.gmra.mxu3 %vm2437_vm13, %v14905_v17 }
 0xa3b   : > { %v5838_v33 = vpop.f32.mrf.mxu2 }
 0xa3c   : > { %v5839_v59 = vadd.f32 %v5838_v33, %v5676_v22  ;;  %v5976_v45 = vpop.f32.mrf.mxu3 }
 0xa3d   : > { %v14983_v50 = vadd.f32 %v5976_v45, %v5834_v7  ;;  %v14985_v25 = vpop.f32.mrf.mxu1 }
 0xa43   : > { %v14987_v14 = vpop.f32.mrf.mxu2 }
 0xa44   : > { %v14989_v35 = vpop.f32.mrf.mxu3 }
 0xa45   : > { %v5686_v27 = vpop.f32.mrf.mxu1 }
 0xa48   : > { %8259 = vmatmul.msk.bf16.gmra.mxu1 %vm2437_vm13, %v14877_v44  ;;  %8299 = vmatmul.msk.bf16.gmra.mxu2 %vm2437_vm13, %v14877_v44 }
 0xa49   : > { %8351 = vmatmul.msk.bf16.gmra.mxu3 %vm2437_vm13, %v14877_v44 }
 0xa4b   : > { %v5843_v17 = vpop.f32.mrf.mxu2 }
 0xa4c   : > { %v5844_v60 = vadd.f32 %v5843_v17, %v5681_v63  ;;  %v5981_v41 = vpop.f32.mrf.mxu3 }
 0xa4d   : > { %v14997_v31 = vadd.f32 %v5981_v41, %v5839_v59  ;;  %v14999_v56 = vpop.f32.mrf.mxu1 }
 0xa53   : > { %v15001_v0 = vpop.f32.mrf.mxu2 }
 0xa54   : > { %v15003_v23 = vpop.f32.mrf.mxu3 }
 0xa55   : > { %v5691_v51 = vpop.f32.mrf.mxu1 }
 0xa5b   : > { %v5848_v40 = vpop.f32.mrf.mxu2 }
 0xa5c   : > { %v5849_v3 = vadd.f32 %v5848_v40, %v5686_v27  ;;  %v5986_v61 = vpop.f32.mrf.mxu3 }
 0xa5d   : > { %v15005_v8 = vadd.f32 %v5986_v61, %v5844_v60  ;;  %v15007_v4 = vpop.f32.mrf.mxu1 }
 0xa63   : > { %v15009_v44 = vpop.f32.mrf.mxu2 }
 0xa64   : > { %v15011_v18 = vpop.f32.mrf.mxu3 }
 0xa65   : > { %v5696_v9 = vpop.f32.mrf.mxu1 }
 0xa6b   : > { %v5853_v57 = vpop.f32.mrf.mxu2 }
 0xa6c   : > { %v5854_v20 = vadd.f32 %v5853_v57, %v5691_v51  ;;  %v5991_v49 = vpop.f32.mrf.mxu3 }
 0xa6d   : > { %v15013_v58 = vadd.f32 %v5991_v49, %v5849_v3  ;;  %v15015_v24 = vpop.f32.mrf.mxu1 }
 0xa73   : > { %v15017_v19 = vpop.f32.mrf.mxu2 }
 0xa74   : > { %v15019_v10 = vpop.f32.mrf.mxu3 }
 0xa75   : > { %v15021_v16 = vpop.f32.mrf.mxu1 }
 0xa7b   : > { %v5858_v62 = vpop.f32.mrf.mxu2 }
 0xa7c   : > { %v15023_v11 = vadd.f32 %v5858_v62, %v5696_v9  ;;  %v5996_v5 = vpop.f32.mrf.mxu3 }
 0xa7d   : > { %v15025_v6 = vadd.f32 %v5996_v5, %v5854_v20  ;;  %v15027_v36 = vpop.f32.mrf.mxu1 }
 0xa83   : > { %v15029_v22 = vpop.f32.mrf.mxu2 }
 0xa84   : > { %v15045_v59 = vpop.f32.mrf.mxu3 }
 0xa85   : > { %v15031_v29 = vpop.f32.mrf.mxu1 }
 0xa8b   : > { %v15033_v7 = vpop.f32.mrf.mxu2 }
 0xa8c   : > { %v15051_v17 = vpop.f32.mrf.mxu3 }
 0xa8d   : > { %v15035_v21 = vpop.f32.mrf.mxu1 }
 0xa93   : > { %v15037_v28 = vpop.f32.mrf.mxu2 }
 0xa94   : > { %v15057_v51 = vpop.f32.mrf.mxu3 }
 0xa95   : > { %v15039_v43 = vpop.f32.mrf.mxu1 }
 0xa9b   : > { %v15041_v63 = vpop.f32.mrf.mxu2 }
 0xa9c   : > { %v15063_v9 = vpop.f32.mrf.mxu3 }
 0xa9d   : > { %v15043_v33 = vpop.f32.mrf.mxu1 }
 0xaa3   : > { %v15047_v45 = vpop.f32.mrf.mxu2 }
 0xaa4   : > { %v15069_v5 = vpop.f32.mrf.mxu3 }
 0xaa5   : > { %v15049_v27 = vpop.f32.mrf.mxu1 }
 0xaa6   : > { %16746 = vst [vmem:[#allocation8_spill] sm:$0xff] %v15049_v27 }
 0xaab   : > { %v15053_v60 = vpop.f32.mrf.mxu2 }
 0xaac   : > { %v15092_v42 = vpop.f32.mrf.mxu3 }
 0xaad   : > { %v15055_v41 = vpop.f32.mrf.mxu1 }
 0xaae   : > { %16747 = vst [vmem:[#allocation13_spill] sm:$0xff] %v15055_v41 }
 0xab3   : > { %v15059_v40 = vpop.f32.mrf.mxu2 }
 0xab4   : > { %16748 = vst [vmem:[#allocation14_spill] sm:$0xff] %v15059_v40 }
 0xab5   : > { %v5721_v3 = vpop.f32.mrf.mxu1 }
 0xabb   : > { %v15061_v61 = vpop.f32.mrf.mxu2 }
 0xabc   : > { %16749 = vst [vmem:[#allocation11_spill] sm:$0xff] %v15061_v61 }
 0xabd   : > { %v15065_v57 = vpop.f32.mrf.mxu1 }
 0xabe   : > { %16750 = vst [vmem:[#allocation9_spill] sm:$0xff] %v15065_v57  ;;  %v15080_v57 = vperm.slane %v15075_v46, 0 }
 0xac0   : > { %v15090_v40 = vadd.f32 %v15080_v57, %v14940_v1  ;;  %v15108_v1 = vadd.f32 %v15080_v57, %v14947_v12 }
 0xac2   : > { %16754 = vst [vmem:[#allocation21_spill] sm:$0xff] %v15090_v40 }
 0xac3   : > { %v15067_v20 = vpop.f32.mrf.mxu2 }
 0xac4   : > { %16751 = vst [vmem:[#allocation18_spill] sm:$0xff] %v15067_v20 }
 0xac5   : > { %v5726_v49 = vpop.f32.mrf.mxu1 }
 0xac6   : > { %v5731_v62 = vmul.f32 0.0, %v5726_v49 }
 0xac8   : > { %v5809_v53 = vadd.f32 %v14916_v34, %v5731_v62 }
 0xaca   : > { %v6058_v41 = vadd.f32 %v14930_v30, %v5809_v53  ;;  %v15097_v53 = vadd.f32 %v15080_v57, %v14942_v37 }
 0xacb   : > { %v5883_v47 = vpop.f32.mrf.mxu2 }
 0xacc   : > { %v5884_v61 = vadd.f32 %v5883_v47, %v5721_v3  ;;  %v15085_v34 = vadd.f32 %v15080_v57, %v6058_v41  ;;  %16755 = vst [vmem:[#allocation10_spill] sm:$0xff] %v15097_v53  ;;  %v15118_v41 = vadd.f32 %v15080_v57, %v14949_v32  ;;  %v6197_v12 = vmul.f32 %v15097_v53, %v15097_v53 }
 0xacd   : > { %v5728_v20 = vpop.f32.mrf.mxu1  ;;  %v6198_v32 = vmul.f32 %v15108_v1, %v15108_v1 }
 0xace   : > { %v15082_v49 = vadd.f32 %v6056_v39, %v5884_v61  ;;  %v5732_v27 = vmul.f32 0.0, %v5728_v20  ;;  %16753 = vst [vmem:[#allocation16_spill] sm:$0xff] %v15085_v34  ;;  %v6194_v39 = vmul.f32 %v15085_v34, %v15085_v34  ;;  %v6128_v61 = vsel %vm1389_vm8, %v15090_v40, 0.0 }
 0xad0   : > { %v5811_v62 = vadd.f32 %v14920_v15, %v5732_v27  ;;  %v6196_v15 = vmul.f32 %v15090_v40, %v15090_v40  ;;  %v6226_v20 = vsel %vm1389_vm8, %v6194_v39, 0.0  ;;  %v15137_v39 = vpop.f32.mrf.mxu3  ;;  %v6134_v40 = vsel %vm1389_vm8, %v15118_v41, 0.0 }
 0xad2   : > { %v6059_v47 = vadd.f32 %v14932_v55, %v5811_v62  ;;  %v6125_v55 = vsel %vm1389_vm8, %v15085_v34, 0.0  ;;  %v6229_v46 = vsel %vm1389_vm8, %v6196_v15, 0.0  ;;  %v6132_v15 = vsel %vm1389_vm8, %v15108_v1, 0.0 }
 0xad4   : > { %v15102_v30 = vadd.f32 %v15080_v57, %v6059_v47 }
 0xad6   : > { %16756 = vst [vmem:[#allocation17_spill] sm:$0xff] %v15102_v30  ;;  %v6126_v37 = vsel %vm1389_vm8, %v15102_v30, 0.0  ;;  %v6195_v27 = vmul.f32 %v15102_v30, %v15102_v30  ;;  %v6130_v30 = vsel %vm1389_vm8, %v15097_v53, 0.0 }
 0xad7   : > { %v6127_v3 = vadd.f32 %v6126_v37, %v6125_v55  ;;  %v15133_v55 = vadd.f32 %v15080_v57, %v14957_v48  ;;  %v6199_v37 = vmul.f32 %v15118_v41, %v15118_v41  ;;  %v6233_v48 = vsel %vm1389_vm8, %v6198_v32, 0.0 }
 0xad8   : > { %v6227_v62 = vsel %vm1389_vm8, %v6195_v27, 0.0 }
 0xad9   : > { %v6129_v47 = vadd.f32 %v6128_v61, %v6127_v3  ;;  %v6228_v34 = vadd.f32 %v6227_v62, %v6226_v20  ;;  %v6231_v61 = vsel %vm1389_vm8, %v6197_v12, 0.0  ;;  %v15144_v20 = vadd.f32 %v15080_v57, %v14961_v54 }
 0xada   : > { %v6136_v54 = vsel %vm1389_vm8, %v15133_v55, 0.0 }
 0xadb   : > { %v6131_v27 = vadd.f32 %v6130_v30, %v6129_v47  ;;  %v6230_v3 = vadd.f32 %v6229_v46, %v6228_v34  ;;  %v6200_v30 = vmul.f32 %v15133_v55, %v15133_v55  ;;  %v15153_v46 = vadd.f32 %v15080_v57, %v14969_v26 }
 0xadc   : > { %v6235_v34 = vsel %vm1389_vm8, %v6199_v37, 0.0  ;;  %v6201_v32 = vmul.f32 %v15144_v20, %v15144_v20 }
 0xadd   : > { %v6133_v62 = vadd.f32 %v6132_v15, %v6131_v27  ;;  %v6232_v53 = vadd.f32 %v6231_v61, %v6230_v3  ;;  %v5836_v27 = vadd.f32 %v14973_v13, %v14959_v38  ;;  %v15164_v3 = vadd.f32 %v15080_v57, %v14975_v2 }
 0xade   : > { %v6237_v15 = vsel %vm1389_vm8, %v6200_v30, 0.0  ;;  %v6239_v2 = vsel %vm1389_vm8, %v6201_v32, 0.0 }
 0xadf   : > { %v6135_v12 = vadd.f32 %v6134_v40, %v6133_v62  ;;  %v6234_v47 = vadd.f32 %v6233_v48, %v6232_v53  ;;  %v6138_v40 = vsel %vm1389_vm8, %v15144_v20, 0.0  ;;  %v6202_v53 = vmul.f32 %v15153_v46, %v15153_v46 }
 0xae0   : > { %v6069_v37 = vadd.f32 %v14989_v35, %v5836_v27  ;;  %v15174_v62 = vadd.f32 %v15080_v57, %v14983_v50  ;;  %v6140_v48 = vsel %vm1389_vm8, %v15153_v46, 0.0  ;;  %v6203_v30 = vmul.f32 %v15164_v3, %v15164_v3 }
 0xae1   : > { %v6137_v61 = vadd.f32 %v6136_v54, %v6135_v12  ;;  %v6236_v26 = vadd.f32 %v6235_v34, %v6234_v47  ;;  %v5841_v34 = vadd.f32 %v14987_v14, %v14971_v52  ;;  %v15183_v12 = vpop.f32.mrf.mxu3  ;;  %v6241_v50 = vsel %vm1389_vm8, %v6202_v53, 0.0 }
 0xae2   : > { %v6142_v54 = vsel %vm1389_vm8, %v15164_v3, 0.0  ;;  %v15189_v32 = vadd.f32 %v15080_v57, %v6069_v37  ;;  %v6243_v52 = vsel %vm1389_vm8, %v6203_v30, 0.0  ;;  %v6144_v14 = vsel %vm1389_vm8, %v15174_v62, 0.0 }
 0xae3   : > { %v6139_v38 = vadd.f32 %v6138_v40, %v6137_v61  ;;  %v6238_v13 = vadd.f32 %v6237_v15, %v6236_v26  ;;  %v6071_v27 = vadd.f32 %v15003_v23, %v5841_v34  ;;  %v6204_v61 = vmul.f32 %v15174_v62, %v15174_v62 }
 0xae4   : > { %v15199_v40 = vadd.f32 %v15080_v57, %v14997_v31  ;;  %v5846_v53 = vadd.f32 %v15001_v0, %v14985_v25  ;;  %v6146_v23 = vsel %vm1389_vm8, %v15189_v32, 0.0  ;;  %v6205_v31 = vmul.f32 %v15189_v32, %v15189_v32 }
 0xae5   : > { %v6141_v35 = vadd.f32 %v6140_v48, %v6139_v38  ;;  %v6240_v47 = vadd.f32 %v6239_v2, %v6238_v13  ;;  %v15206_v13 = vadd.f32 %v15080_v57, %v6071_v27  ;;  %v6245_v48 = vsel %vm1389_vm8, %v6204_v61, 0.0 }
 0xae6   : > { %v6073_v2 = vadd.f32 %v15011_v18, %v5846_v53  ;;  %v6148_v34 = vsel %vm1389_vm8, %v15199_v40, 0.0  ;;  %v15216_v25 = vadd.f32 %v15080_v57, %v15005_v8  ;;  %v5851_v0 = vadd.f32 %v15009_v44, %v14999_v56 }
 0xae7   : > { %v6143_v26 = vadd.f32 %v6142_v54, %v6141_v35  ;;  %v6242_v15 = vadd.f32 %v6241_v50, %v6240_v47  ;;  %v6150_v18 = vsel %vm1389_vm8, %v15206_v13, 0.0  ;;  %v6206_v27 = vmul.f32 %v15199_v40, %v15199_v40 }
 0xae8   : > { %v15223_v50 = vadd.f32 %v15080_v57, %v6073_v2  ;;  %v6075_v54 = vadd.f32 %v15019_v10, %v5851_v0  ;;  %v6152_v56 = vsel %vm1389_vm8, %v15216_v25, 0.0  ;;  %v15235_v44 = vadd.f32 %v15080_v57, %v15013_v58 }
 0xae9   : > { %v6145_v37 = vadd.f32 %v6144_v14, %v6143_v26  ;;  %v6244_v38 = vadd.f32 %v6243_v52, %v6242_v15  ;;  %v15228_v61 = vpop.f32.mrf.mxu3  ;;  %v6247_v26 = vsel %vm1389_vm8, %v6205_v31, 0.0  ;;  %v5856_v15 = vadd.f32 %v15017_v19, %v15007_v4 }
 0xaea   : > { %v6154_v14 = vsel %vm1389_vm8, %v15223_v50, 0.0  ;;  %v15242_v53 = vadd.f32 %v15080_v57, %v6075_v54  ;;  %v6156_v2 = vsel %vm1389_vm8, %v15235_v44, 0.0  ;;  %v15252_v4 = vadd.f32 %v15080_v57, %v15025_v6 }
 0xaeb   : > { %v6147_v30 = vadd.f32 %v6146_v23, %v6145_v37  ;;  %v6246_v47 = vadd.f32 %v6245_v48, %v6244_v38  ;;  %v6077_v37 = vadd.f32 %v15045_v59, %v5856_v15  ;;  %v6249_v38 = vsel %vm1389_vm8, %v6206_v27, 0.0 }
 0xaec   : > { %v6207_v23 = vmul.f32 %v15206_v13, %v15206_v13  ;;  %v5861_v19 = vadd.f32 %v15029_v22, %v15015_v24  ;;  %v6078_v48 = vadd.f32 %v15051_v17, %v15023_v11  ;;  %v6158_v31 = vsel %vm1389_vm8, %v15242_v53, 0.0 }
 0xaed   : > { %v6149_v35 = vadd.f32 %v6148_v34, %v6147_v30  ;;  %v6248_v52 = vadd.f32 %v6247_v26, %v6246_v47  ;;  %v15261_v34 = vadd.f32 %v15080_v57, %v6077_v37  ;;  %v5864_v0 = vadd.f32 %v15033_v7, %v15021_v16 }
 0xaee   : > { %v6079_v6 = vadd.f32 %v15057_v51, %v5861_v19  ;;  %v6208_v24 = vmul.f32 %v15216_v25, %v15216_v25  ;;  %v6160_v11 = vsel %vm1389_vm8, %v15252_v4, 0.0  ;;  %v15272_v17 = vadd.f32 %v15080_v57, %v6078_v48 }
 0xaef   : > { %v6151_v8 = vadd.f32 %v6150_v18, %v6149_v35  ;;  %v6250_v59 = vadd.f32 %v6249_v38, %v6248_v52  ;;  %v6251_v35 = vsel %vm1389_vm8, %v6207_v23, 0.0  ;;  %v5866_v47 = vadd.f32 %v15037_v28, %v15027_v36 }
 0xaf0   : > { %v6080_v18 = vadd.f32 %v15063_v9, %v5864_v0  ;;  %v6209_v16 = vmul.f32 %v15223_v50, %v15223_v50  ;;  %v6162_v27 = vsel %vm1389_vm8, %v15261_v34, 0.0  ;;  %v5869_v26 = vadd.f32 %v15041_v63, %v15031_v29 }
 0xaf1   : > { %v6153_v10 = vadd.f32 %v6152_v56, %v6151_v8  ;;  %v6021_v7 = vpop.f32.mrf.mxu3  ;;  %v6252_v51 = vadd.f32 %v6251_v35, %v6250_v59  ;;  %v15282_v8 = vadd.f32 %v15080_v57, %v6079_v6  ;;  %v6081_v56 = vadd.f32 %v15069_v5, %v5866_v47 }
 0xaf2   : > { %v6253_v36 = vsel %vm1389_vm8, %v6208_v24, 0.0  ;;  %v6210_v28 = vmul.f32 %v15235_v44, %v15235_v44  ;;  %v6164_v15 = vsel %vm1389_vm8, %v15272_v17, 0.0  ;;  %v15293_v52 = vadd.f32 %v15080_v57, %v6080_v18 }
 0xaf3   : > { %v6155_v58 = vadd.f32 %v6154_v14, %v6153_v10  ;;  %v5871_v10 = vadd.f32 %v15047_v45, %v15035_v21  ;;  %v6082_v14 = vadd.f32 %v15092_v42, %v5869_v26  ;;  %v6255_v29 = vsel %vm1389_vm8, %v6209_v16, 0.0  ;;  %v5885_v16 = vpop.f32.mrf.mxu2 }
 0xaf4   : > { %v6211_v63 = vmul.f32 %v15242_v53, %v15242_v53  ;;  %v6254_v37 = vadd.f32 %v6253_v36, %v6252_v51  ;;  %v6166_v38 = vsel %vm1389_vm8, %v15282_v8, 0.0  ;;  %v15304_v23 = vadd.f32 %v15080_v57, %v6081_v56  ;;  %v16760_v36 = vld [vmem:[#allocation13_spill] sm:$0xff] }
 0xaf5   : > { %v6157_v30 = vadd.f32 %v6156_v2, %v6155_v58  ;;  %v5874_v58 = vadd.f32 %v15053_v60, %v15039_v43  ;;  %v6083_v21 = vadd.f32 %v15137_v39, %v5871_v10  ;;  %v6257_v45 = vsel %vm1389_vm8, %v6210_v28, 0.0  ;;  %v16761_v28 = vld [vmem:[#allocation18_spill] sm:$0xff] }
 0xaf6   : > { %v6212_v42 = vmul.f32 %v15252_v4, %v15252_v4  ;;  %v6256_v19 = vadd.f32 %v6255_v29, %v6254_v37  ;;  %v6168_v48 = vsel %vm1389_vm8, %v15293_v52, 0.0  ;;  %v15315_v59 = vadd.f32 %v15080_v57, %v6082_v14  ;;  %v16762_v37 = vld [vmem:[#allocation9_spill] sm:$0xff] }
 0xaf7   : > { %v6159_v22 = vadd.f32 %v6158_v31, %v6157_v30  ;;  %v16757_v30 = vld [vmem:[#allocation14_spill] sm:$0xff]  ;;  %v6084_v43 = vadd.f32 %v15183_v12, %v5874_v58  ;;  %v6259_v60 = vsel %vm1389_vm8, %v6211_v63, 0.0  ;;  %v6213_v39 = vmul.f32 %v15261_v34, %v15261_v34 }
 0xaf8   : > { %v5876_v31 = vadd.f32 %v16757_v30, %v15043_v33  ;;  %v6258_v6 = vadd.f32 %v6257_v45, %v6256_v19  ;;  %v6170_v35 = vsel %vm1389_vm8, %v15304_v23, 0.0  ;;  %v15326_v24 = vadd.f32 %v15080_v57, %v6083_v21  ;;  %v16763_v21 = vld [vmem:[#allocation12_spill] sm:$0xff] }
 0xaf9   : > { %v6161_v54 = vadd.f32 %v6160_v11, %v6159_v22  ;;  %v16758_v22 = vld [vmem:[#allocation8_spill] sm:$0xff]  ;;  %v16759_v11 = vld [vmem:[#allocation11_spill] sm:$0xff]  ;;  %v6261_v12 = vsel %vm1389_vm8, %v6212_v42, 0.0  ;;  %v6214_v18 = vmul.f32 %v15272_v17, %v15272_v17  ;;  %v6023_v51 = vpop.f32.mrf.mxu3  ;;  %v6172_v26 = vsel %vm1389_vm8, %v15315_v59, 0.0 }
 0xafa   : > { %v5879_v47 = vadd.f32 %v16759_v11, %v16758_v22  ;;  %v6085_v33 = vadd.f32 %v15228_v61, %v5876_v31  ;;  %v15337_v56 = vadd.f32 %v15080_v57, %v6084_v43  ;;  %v6263_v61 = vsel %vm1389_vm8, %v6213_v39, 0.0 }
 0xafb   : > { %v6163_v9 = vadd.f32 %v6162_v27, %v6161_v54  ;;  %v6260_v27 = vadd.f32 %v6259_v60, %v6258_v6  ;;  %v6215_v10 = vmul.f32 %v15282_v8, %v15282_v8  ;;  %v6174_v63 = vsel %vm1389_vm8, %v15326_v24, 0.0 }
 0xafc   : > { %v6057_v45 = vmul.f32 0.0, %v16763_v21  ;;  %v6216_v19 = vmul.f32 %v15293_v52, %v15293_v52  ;;  %v6217_v39 = vmul.f32 %v15304_v23, %v15304_v23 }
 0xafd   : > { %v6165_v5 = vadd.f32 %v6164_v15, %v6163_v9  ;;  %v5881_v9 = vadd.f32 %v16761_v28, %v16760_v36  ;;  %v6086_v15 = vadd.f32 %v6021_v7, %v5879_v47  ;;  %v6262_v29 = vadd.f32 %v6261_v12, %v6260_v27  ;;  %v8567_v27 = vld [vmem:[%s16567_s5 + $0x58] sm:$0xff] }
 0xafe   : > { %v6267_v31 = vsel %vm1389_vm8, %v6215_v10, 0.0  ;;  %v6269_v47 = vsel %vm1389_vm8, %v6216_v19, 0.0  ;;  %v15372_v12 = vadd.f32 %v15080_v57, %v15082_v49  ;;  %v6219_v36 = vmul.f32 %v15326_v24, %v15326_v24  ;;  %7378 = vmatpush.bf16.msrb.mxu1 %v8567_v27  ;;  %v8566_v10 = vld [vmem:[%s16567_s5 + $0x50] sm:$0xff] }
 0xaff   : > { %v6167_v2 = vadd.f32 %v6166_v38, %v6165_v5  ;;  %v15347_v5 = vadd.f32 %v15080_v57, %v6085_v33  ;;  %v5886_v38 = vadd.f32 %v5885_v16, %v16762_v37  ;;  %v6087_v58 = vadd.f32 %v6023_v51, %v5881_v9 }
 0xb00   : > { %v6264_v7 = vadd.f32 %v6263_v61, %v6262_v29  ;;  %v15357_v30 = vadd.f32 %v15080_v57, %v6086_v15  ;;  %v6218_v33 = vmul.f32 %v15315_v59, %v15315_v59  ;;  %v8578_v61 = vld [vmem:[%s16567_s5 + $0x80] sm:$0xff]  ;;  %v6184_v29 = vsel %vm1389_vm8, %v15372_v12, 0.0 }
 0xb01   : > { %v6169_v0 = vadd.f32 %v6168_v48, %v6167_v2  ;;  %v6265_v2 = vsel %vm1389_vm8, %v6214_v18, 0.0  ;;  %v6176_v48 = vsel %vm1389_vm8, %v15337_v56, 0.0  ;;  %v6089_v6 = vadd.f32 %v6057_v45, %v5886_v38 }
 0xb02   : > { %v6266_v60 = vadd.f32 %v6265_v2, %v6264_v7  ;;  %v6180_v18 = vsel %vm1389_vm8, %v15357_v30, 0.0  ;;  %v6275_v38 = vsel %vm1389_vm8, %v6219_v36, 0.0  ;;  %7379 = vmatpush.bf16.msrb.mxu1 %v8566_v10  ;;  %v6222_v2 = vmul.f32 %v15357_v30, %v15357_v30 }
 0xb03   : > { %v6171_v54 = vadd.f32 %v6170_v35, %v6169_v0  ;;  %v6178_v0 = vsel %vm1389_vm8, %v15347_v5, 0.0  ;;  %v15365_v35 = vadd.f32 %v15080_v57, %v6087_v58  ;;  %v15386_v49 = vadd.f32 %v15080_v57, %v6089_v6 }
 0xb04   : > { %v6268_v11 = vadd.f32 %v6267_v31, %v6266_v60  ;;  %v6220_v57 = vmul.f32 %v15337_v56, %v15337_v56  ;;  %v6221_v58 = vmul.f32 %v15347_v5, %v15347_v5  ;;  %v6281_v6 = vsel %vm1389_vm8, %v6222_v2, 0.0 }
 0xb05   : > { %v6173_v14 = vadd.f32 %v6172_v26, %v6171_v54  ;;  %v8579_v54 = vld [vmem:[%s16567_s5 + $0x88] sm:$0xff]  ;;  %v6271_v26 = vsel %vm1389_vm8, %v6217_v39, 0.0  ;;  %v6182_v28 = vsel %vm1389_vm8, %v15365_v35, 0.0  ;;  %v6186_v21 = vsel %vm1389_vm8, %v15386_v49, 0.0 }
 0xb06   : > { %v6270_v51 = vadd.f32 %v6269_v47, %v6268_v11  ;;  %7516 = vmatpush.bf16.msrb.mxu2 %v8579_v54  ;;  %v6277_v7 = vsel %vm1389_vm8, %v6220_v57, 0.0  ;;  %v6279_v31 = vsel %vm1389_vm8, %v6221_v58, 0.0  ;;  %v6225_v47 = vmul.f32 %v15386_v49, %v15386_v49 }
 0xb07   : > { %v6175_v42 = vadd.f32 %v6174_v63, %v6173_v14  ;;  %v6273_v14 = vsel %vm1389_vm8, %v6218_v33, 0.0 }
 0xb08   : > { %v6272_v15 = vadd.f32 %v6271_v26, %v6270_v51  ;;  %v6287_v26 = vsel %vm1389_vm8, %v6225_v47, 0.0 }
 0xb09   : > { %v6177_v43 = vadd.f32 %v6176_v48, %v6175_v42 }
 0xb0a   : > { %v6274_v37 = vadd.f32 %v6273_v14, %v6272_v15  ;;  %7517 = vmatpush.bf16.msrb.mxu2 %v8578_v61 }
 0xb0b   : > { %v6179_v22 = vadd.f32 %v6178_v0, %v6177_v43  ;;  %v6223_v43 = vmul.f32 %v15365_v35, %v15365_v35  ;;  %v6224_v0 = vmul.f32 %v15372_v12, %v15372_v12 }
 0xb0c   : > { %v6276_v42 = vadd.f32 %v6275_v38, %v6274_v37 }
 0xb0d   : > { %v6181_v16 = vadd.f32 %v6180_v18, %v6179_v22  ;;  %v6283_v33 = vsel %vm1389_vm8, %v6223_v43, 0.0  ;;  %v6285_v51 = vsel %vm1389_vm8, %v6224_v0, 0.0  ;;  %v16764_v43 = vld [vmem:[#allocation15_spill] sm:$0xff] }
 0xb0e   : > { %v6278_v48 = vadd.f32 %v6277_v7, %v6276_v42  ;;  %v15437_v0 = vperm.slane %v16764_v43, 2 }
 0xb0f   : > { %v6183_v9 = vadd.f32 %v6182_v28, %v6181_v16 }
 0xb10   : > { %v6280_v39 = vadd.f32 %v6279_v31, %v6278_v48 }
 0xb11   : > { %v6185_v63 = vadd.f32 %v6184_v29, %v6183_v9  ;;  %v8577_v29 = vld [vmem:[%s16567_s5 + $0x78] sm:$0xff] }
 0xb12   : > { %v6282_v11 = vadd.f32 %v6281_v6, %v6280_v39  ;;  %7518 = vmatpush.bf16.msrb.mxu2 %v8577_v29  ;;  %v16765_v6 = vld [vmem:[#allocation16_spill] sm:$0xff] }
 0xb13   : > { %v6187_v45 = vadd.f32 %v6186_v21, %v6185_v63  ;;  %v8565_v63 = vld [vmem:[%s16567_s5 + $0x48] sm:$0xff]  ;;  %v8576_v21 = vld [vmem:[%s16567_s5 + $0x70] sm:$0xff] }
 0xb14   : > { %v6284_v16 = vadd.f32 %v6283_v33, %v6282_v11  ;;  %7380 = vmatpush.bf16.msrb.mxu1 %v8565_v63  ;;  %v16766_v11 = vld [vmem:[#allocation17_spill] sm:$0xff] }
 0xb15   : > { %v6188_v19 = vrot.slane %v6187_v45, 4  ;;  %v16767_v33 = vld [vmem:[#allocation21_spill] sm:$0xff] }
 0xb16   : > { %v6286_v27 = vadd.f32 %v6285_v51, %v6284_v16  ;;  %7519 = vmatpush.bf16.msrb.mxu2 %v8576_v21  ;;  %v16768_v16 = vld [vmem:[#allocation10_spill] sm:$0xff] }
 0xb17   : > { %v6189_v60 = vadd.f32 %v6188_v19, %v6187_v45 }
 0xb18   : > { %v6288_v36 = vadd.f32 %v6287_v26, %v6286_v27 }
 0xb19   : > { %v6190_v22 = vrot.slane %v6189_v60, 2 }
 0xb1a   : > { %v6289_v9 = vrot.slane %v6288_v36, 4 }
 0xb1b   : > { %v6191_v18 = vadd.f32 %v6190_v22, %v6189_v60  ;;  %v15434_v60 = vperm.slane %v16764_v43, 1 }
 0xb1c   : > { %v6290_v15 = vadd.f32 %v6289_v9, %v6288_v36 }
 0xb1d   : > { %v6192_v54 = vrot.slane %v6191_v18, 1 }
 0xb1e   : > { %v6291_v61 = vrot.slane %v6290_v15, 2 }
 0xb1f   : > { %v6193_v28 = vadd.f32 %v6192_v54, %v6191_v18 }
 0xb20   : > { %v6292_v10 = vadd.f32 %v6291_v61, %v6290_v15 }
 0xb21   : > { %8353 = vmatmul.msk.f32.vlgmr.msrb.gmra.mxu0 %vm1389_vm8, %v6193_v28 }
 0xb22   : > { %v6293_v14 = vrot.slane %v6292_v10, 1 }
 0xb24   : > { %v6294_v57 = vadd.f32 %v6293_v14, %v6292_v10 }
 0xb29   : > { %8354 = vmatmul.msk.f32.vlgmr.msra.gmra.mxu0 %vm1389_vm8, %v6294_v57 }
 0xb9e   : > { %v6315_v37 = vpop.f32.mrf.mxu0 }
 0xb9f   : > { %v6341_v38 = vmul.f32 %v6315_v37, %v6315_v37  ;;  %v15431_v48 = vperm.slane %v6315_v37, 0 }
 0xba1   : > { %v6355_v22 = vsub.f32 %v16765_v6, %v15431_v48  ;;  %v6356_v47 = vsub.f32 %v16766_v11, %v15431_v48  ;;  %v6357_v18 = vsub.f32 %v16767_v33, %v15431_v48  ;;  %v6358_v51 = vsub.f32 %v16768_v16, %v15431_v48 }
 0xba2   : > { %v6359_v54 = vsub.f32 %v15108_v1, %v15431_v48  ;;  %v6360_v26 = vsub.f32 %v15118_v41, %v15431_v48  ;;  %v6361_v36 = vsub.f32 %v15133_v55, %v15431_v48  ;;  %v6362_v28 = vsub.f32 %v15144_v20, %v15431_v48 }
 0xba3   : > { %v6363_v9 = vsub.f32 %v15153_v46, %v15431_v48  ;;  %v6364_v15 = vsub.f32 %v15164_v3, %v15431_v48  ;;  %v6365_v1 = vsub.f32 %v15174_v62, %v15431_v48  ;;  %v6366_v61 = vsub.f32 %v15189_v32, %v15431_v48 }
 0xba4   : > { %v6367_v55 = vsub.f32 %v15199_v40, %v15431_v48  ;;  %v6368_v20 = vsub.f32 %v15206_v13, %v15431_v48  ;;  %v6369_v46 = vsub.f32 %v15216_v25, %v15431_v48  ;;  %v6370_v10 = vsub.f32 %v15223_v50, %v15431_v48 }
 0xba5   : > { %v6371_v3 = vsub.f32 %v15235_v44, %v15431_v48  ;;  %v6372_v62 = vsub.f32 %v15242_v53, %v15431_v48  ;;  %v6373_v32 = vsub.f32 %v15252_v4, %v15431_v48  ;;  %v6374_v40 = vsub.f32 %v15261_v34, %v15431_v48 }
 0xba6   : > { %v6338_v58 = vpop.f32.mrf.mxu0  ;;  %v6375_v13 = vsub.f32 %v15272_v17, %v15431_v48  ;;  %v6376_v25 = vsub.f32 %v15282_v8, %v15431_v48  ;;  %v6377_v50 = vsub.f32 %v15293_v52, %v15431_v48  ;;  %v6378_v44 = vsub.f32 %v15304_v23, %v15431_v48 }
 0xba7   : > { %v6342_v45 = vsub.f32 %v6338_v58, %v6341_v38  ;;  %v6379_v53 = vsub.f32 %v15315_v59, %v15431_v48  ;;  %v6380_v4 = vsub.f32 %v15326_v24, %v15431_v48  ;;  %v6381_v34 = vsub.f32 %v15337_v56, %v15431_v48 }
 0xba8   : > { %v6382_v17 = vsub.f32 %v15347_v5, %v15431_v48  ;;  %v6383_v8 = vsub.f32 %v15357_v30, %v15431_v48  ;;  %v6384_v52 = vsub.f32 %v15365_v35, %v15431_v48  ;;  %v6385_v23 = vsub.f32 %v15372_v12, %v15431_v48  ;;  %v8564_v12 = vld [vmem:[%s16567_s5 + $0x40] sm:$0xff] }
 0xba9   : > { %v6343_v42 = vadd.f32 1e-05, %v6342_v45  ;;  %v6386_v59 = vsub.f32 %v15386_v49, %v15431_v48  ;;  %7381 = vmatpush.bf16.msrb.mxu1 %v8564_v12 }
 0xbab   : > { %9518 = vrsqrt.f32 %v6343_v42  ;;  %vm6350_vm7 = vweird.f32 %v6343_v42 }
 0xbb1   : > { %v9519_v7 = vpop.eup %9518 }
 0xbb2   : > { %v6345_v2 = vmul.f32 %v9519_v7, %v6343_v42  ;;  %vm6351_vm6 = vweird.f32 %v9519_v7 }
 0xbb3   : > { %vm6352_vm9 = vmor %vm6350_vm7, %vm6351_vm6 }
 0xbb4   : > { %v6346_v19 = vmul.f32 %v9519_v7, %v6345_v2 }
 0xbb6   : > { %v6347_v31 = vmul.f32 0.5, %v6346_v19 }
 0xbb8   : > { %v6348_v39 = vsub.f32 1.5, %v6347_v31 }
 0xbba   : > { %v6349_v27 = vmul.f32 %v9519_v7, %v6348_v39 }
 0xbbc   : > { %v6353_v41 = vsel %vm6352_vm9, %v9519_v7, %v6349_v27 }
 0xbbd   : > { %v15477_v14 = vperm.slane %v6353_v41, 0 }
 0xbbf   : > { %v15506_v24 = vmul.f32 %v15477_v14, %v6355_v22  ;;  %v6390_v56 = vmul.f32 %v15477_v14, %v6357_v18  ;;  %v6391_v57 = vmul.f32 %v15477_v14, %v6358_v51  ;;  %v6392_v5 = vmul.f32 %v15477_v14, %v6359_v54 }
 0xbc0   : > { %v6393_v30 = vmul.f32 %v15477_v14, %v6360_v26  ;;  %v6394_v29 = vmul.f32 %v15477_v14, %v6361_v36  ;;  %v6395_v35 = vmul.f32 %v15477_v14, %v6362_v28  ;;  %v6396_v49 = vmul.f32 %v15477_v14, %v6363_v9 }
 0xbc1   : > { %v6397_v63 = vmul.f32 %v15477_v14, %v6364_v15  ;;  %v6398_v37 = vmul.f32 %v15477_v14, %v6365_v1  ;;  %v6399_v38 = vmul.f32 %v15477_v14, %v6366_v61  ;;  %v6413_v58 = vmul.f32 %v15477_v14, %v6380_v4 }
 0xbc2   : > { %v6414_v21 = vmul.f32 %v15477_v14, %v6381_v34  ;;  %v6415_v45 = vmul.f32 %v15477_v14, %v6382_v17  ;;  %v6416_v42 = vmul.f32 %v15477_v14, %v6383_v8  ;;  %v6400_v7 = vmul.f32 %v15477_v14, %v6367_v55 }
 0xbc3   : > { %v6417_v2 = vmul.f32 %v15477_v14, %v6384_v52  ;;  %v6418_v19 = vmul.f32 %v15477_v14, %v6385_v23  ;;  %v6419_v31 = vmul.f32 %v15477_v14, %v6386_v59  ;;  %v6401_v43 = vmul.f32 %v15477_v14, %v6368_v20 }
 0xbc4   : > { %v6402_v39 = vmul.f32 %v15477_v14, %v6369_v46  ;;  %v6403_v6 = vmul.f32 %v15477_v14, %v6370_v10  ;;  %v6404_v22 = vmul.f32 %v15477_v14, %v6371_v3  ;;  %v6405_v33 = vmul.f32 %v15477_v14, %v6372_v62 }
 0xbc5   : > { %v6406_v18 = vmul.f32 %v15477_v14, %v6373_v32  ;;  %v6407_v16 = vmul.f32 %v15477_v14, %v6374_v40  ;;  %v6408_v51 = vmul.f32 %v15477_v14, %v6375_v13  ;;  %v6409_v54 = vmul.f32 %v15477_v14, %v6376_v25 }
 0xbc6   : > { %v6410_v27 = vmul.f32 %v15477_v14, %v6377_v50  ;;  %v6411_v26 = vmul.f32 %v15477_v14, %v6378_v44  ;;  %v6412_v36 = vmul.f32 %v15477_v14, %v6379_v53  ;;  %v6423_v28 = vmul.f32 %v15434_v60, %v6390_v56 }
 0xbc7   : > { %v6425_v9 = vmul.f32 %v15434_v60, %v6392_v5  ;;  %v6426_v15 = vmul.f32 %v15434_v60, %v6393_v30  ;;  %v6427_v1 = vmul.f32 %v15434_v60, %v6394_v29  ;;  %v15546_v61 = vmul.f32 %v15434_v60, %v6395_v35 }
 0xbc8   : > { %v15549_v41 = vmul.f32 %v15434_v60, %v6396_v49  ;;  %v15552_v55 = vmul.f32 %v15434_v60, %v6397_v63  ;;  %v6431_v20 = vmul.f32 %v15434_v60, %v6398_v37  ;;  %v6432_v46 = vmul.f32 %v15434_v60, %v6399_v38 }
 0xbc9   : > { %v6446_v10 = vmul.f32 %v15434_v60, %v6413_v58  ;;  %v6447_v3 = vmul.f32 %v15434_v60, %v6414_v21  ;;  %v6448_v62 = vmul.f32 %v15434_v60, %v6415_v45  ;;  %v6449_v32 = vmul.f32 %v15434_v60, %v6416_v42 }
 0xbca   : > { %v6450_v40 = vmul.f32 %v15434_v60, %v6417_v2  ;;  %v6451_v13 = vmul.f32 %v15434_v60, %v6418_v19  ;;  %v15563_v25 = vmul.f32 %v15434_v60, %v6419_v31  ;;  %v6433_v50 = vmul.f32 %v15434_v60, %v6400_v7 }
 0xbcb   : > { %v15567_v44 = vmul.f32 %v15434_v60, %v6401_v43  ;;  %v6424_v53 = vmul.f32 %v15434_v60, %v6391_v57  ;;  %v6456_v4 = vadd.f32 %v15437_v0, %v6423_v28  ;;  %v15572_v34 = vmul.f32 %v15434_v60, %v6402_v39 }
 0xbcc   : > { %v15575_v17 = vmul.f32 %v15434_v60, %v6403_v6  ;;  %v6437_v8 = vmul.f32 %v15434_v60, %v6404_v22  ;;  %v6438_v52 = vmul.f32 %v15434_v60, %v6405_v33  ;;  %v6439_v23 = vmul.f32 %v15434_v60, %v6406_v18 }
 0xbcd   : > { %v15581_v59 = vmul.f32 %v15434_v60, %v6407_v16  ;;  %v6457_v56 = vadd.f32 %v15437_v0, %v6424_v53  ;;  %v6488_v57 = vmax.f32 %v6456_v4, 0.0  ;;  %v6441_v5 = vmul.f32 %v15434_v60, %v6408_v51 }
 0xbce   : > { %v6442_v30 = vmul.f32 %v15434_v60, %v6409_v54  ;;  %v6443_v29 = vmul.f32 %v15434_v60, %v6410_v27  ;;  %v6444_v35 = vmul.f32 %v15434_v60, %v6411_v26  ;;  %v6445_v12 = vmul.f32 %v15434_v60, %v6412_v36 }
 0xbcf   : > { %v6489_v49 = vmax.f32 %v6457_v56, 0.0  ;;  %v6520_v63 = vpack.c.bf16 %v6488_v57, %v6488_v57  ;;  %v6460_v37 = vadd.f32 %v15437_v0, %v6427_v1  ;;  %v15591_v38 = vadd.f32 %v15437_v0, %v6446_v10 }
 0xbd0   : > { %v15594_v58 = vadd.f32 %v15437_v0, %v6447_v3  ;;  %v15597_v21 = vadd.f32 %v15437_v0, %v6448_v62  ;;  %v15600_v45 = vadd.f32 %v15437_v0, %v6449_v32  ;;  %v15605_v2 = vadd.f32 %v15437_v0, %v6450_v40 }
 0xbd1   : > { %v6521_v42 = vpack.c.bf16 %v6489_v49, %v6489_v49  ;;  %v15602_v7 = vunpack.c.l.bf16 %v6520_v63  ;;  %v15608_v19 = vadd.f32 %v15437_v0, %v6451_v13  ;;  %v6458_v31 = vadd.f32 %v15437_v0, %v6425_v9 }
 0xbd2   : > { %v6459_v43 = vadd.f32 %v15437_v0, %v6426_v15  ;;  %v6389_v39 = vmul.f32 %v15477_v14, %v6356_v47  ;;  %v6421_v6 = vmul.f32 %v15434_v60, %v15506_v24  ;;  %v6464_v33 = vadd.f32 %v15437_v0, %v6431_v20 }
 0xbd3   : > { %v15618_v22 = vunpack.c.l.bf16 %v6521_v42  ;;  %v6465_v18 = vadd.f32 %v15437_v0, %v6432_v46  ;;  %v6466_v16 = vadd.f32 %v15437_v0, %v6433_v50  ;;  %v6470_v51 = vadd.f32 %v15437_v0, %v6437_v8 }
 0xbd4   : > { %v6471_v54 = vadd.f32 %v15437_v0, %v6438_v52  ;;  %v6422_v27 = vmul.f32 %v15434_v60, %v6389_v39  ;;  %v6454_v48 = vadd.f32 %v15437_v0, %v6421_v6  ;;  %v6472_v47 = vadd.f32 %v15437_v0, %v6439_v23 }
 0xbd5   : > { %v9361_v11 = vpack.i.bf16 %v15618_v22, %v15602_v7  ;;  %v15631_v14 = vadd.f32 %v15437_v0, %v6441_v5  ;;  %v6492_v24 = vmax.f32 %v6460_v37, 0.0  ;;  %v15634_v26 = vadd.f32 %v15437_v0, %v6442_v30 }
 0xbd6   : > { %v6476_v36 = vadd.f32 %v15437_v0, %v6443_v29  ;;  %v6455_v28 = vadd.f32 %v15437_v0, %v6422_v27  ;;  %v6486_v9 = vmax.f32 %v6454_v48, 0.0  ;;  %v6477_v60 = vadd.f32 %v15437_v0, %v6444_v35  ;;  %v16770_v48 = vld [vmem:[#allocation7_spill] sm:$0xff] }
 0xbd7   : > { %9362 = vrot.lane.b32.xlu1 %v9361_v11, %s9595_s19  ;;  %v6478_v15 = vadd.f32 %v15437_v0, %v6445_v12  ;;  %v6490_v1 = vmax.f32 %v6458_v31, 0.0  ;;  %v6491_v20 = vmax.f32 %v6459_v43, 0.0  ;;  %v6496_v3 = vmax.f32 %v6464_v33, 0.0 }
 0xbd8   : > { %v6487_v46 = vmax.f32 %v6455_v28, 0.0  ;;  %v6518_v10 = vpack.c.bf16 %v6486_v9, %v6486_v9  ;;  %v6497_v62 = vmax.f32 %v6465_v18, 0.0  ;;  %v6498_v32 = vmax.f32 %v6466_v16, 0.0  ;;  %v8572_v16 = vld [vmem:[%s16567_s5 + $0x20] sm:$0xff] }
 0xbd9   : > { %v6502_v40 = vmax.f32 %v6470_v51, 0.0  ;;  %v6503_v13 = vmax.f32 %v6471_v54, 0.0  ;;  %v6524_v50 = vpack.c.bf16 %v6492_v24, %v6492_v24  ;;  %v6504_v8 = vmax.f32 %v6472_v47, 0.0 }
 0xbda   : > { %v6519_v53 = vpack.c.bf16 %v6487_v46, %v6487_v46  ;;  %v15641_v4 = vunpack.c.l.bf16 %v6518_v10  ;;  %v6508_v52 = vmax.f32 %v6476_v36, 0.0  ;;  %v6509_v23 = vmax.f32 %v6477_v60, 0.0 }
 0xbdb   : > { %v6510_v56 = vmax.f32 %v6478_v15, 0.0  ;;  %v6514_v57 = vmax.f32 %v15600_v45, 0.0  ;;  %v6515_v5 = vmax.f32 %v15605_v2, 0.0  ;;  %v6516_v29 = vmax.f32 %v15608_v19, 0.0 }
 0xbdc   : > { %v15645_v30 = vunpack.c.l.bf16 %v6519_v53  ;;  %v6522_v35 = vpack.c.bf16 %v6490_v1, %v6490_v1  ;;  %v6680_v12 = vrot.slane %v15602_v7, 1  ;;  %v6528_v49 = vpack.c.bf16 %v6496_v3, %v6496_v3 }
 0xbdd   : > { %v6529_v63 = vpack.c.bf16 %v6497_v62, %v6497_v62  ;;  %v6530_v37 = vpack.c.bf16 %v6498_v32, %v6498_v32  ;;  %v15649_v42 = vunpack.c.l.bf16 %v6524_v50  ;;  %v15653_v43 = vpack.c.bf16 %v6502_v40, %v6502_v40  ;;  %v8575_v50 = vld [vmem:[%s16567_s5 + $0x68] sm:$0xff] }
 0xbde   : > { %v9351_v31 = vpack.i.bf16 %v15645_v30, %v15641_v4  ;;  %v6678_v45 = vrot.slane %v15641_v4, 1  ;;  %v6679_v2 = vrot.slane %v15645_v30, 1  ;;  %v15657_v39 = vpack.c.bf16 %v6503_v13, %v6503_v13  ;;  %7520 = vmatpush.bf16.msrb.mxu2 %v8575_v50 }
 0xbdf   : > { %v6536_v19 = vpack.c.bf16 %v6504_v8, %v6504_v8  ;;  %v6540_v6 = vpack.c.bf16 %v6508_v52, %v6508_v52  ;;  %v6523_v33 = vpack.c.bf16 %v6491_v20, %v6491_v20  ;;  %v6541_v18 = vpack.c.bf16 %v6509_v23, %v6509_v23 }
 0xbe0   : > { %9352 = vrot.lane.b32.xlu2 %v9351_v31, %s9595_s19  ;;  %v6739_v51 = vsel %vm492_vm2, %v6679_v2, %v6680_v12  ;;  %v15662_v54 = vunpack.c.l.bf16 %v6522_v35  ;;  %v6684_v27 = vrot.slane %v15649_v42, 1  ;;  %v6681_v24 = vrot.slane %v15618_v22, 1 }
 0xbe1   : > { %v6743_v11 = vmul.f32 %v16770_v48, %v6739_v51  ;;  %v15666_v47 = vunpack.c.l.bf16 %v6523_v33  ;;  %v6462_v36 = vadd.f32 %v15437_v0, %v15549_v41  ;;  %v6740_v28 = vsel %vm492_vm2, %v6678_v45, %v6679_v2 }
 0xbe2   : > { %v6682_v9 = vrot.slane %v15662_v54, 1  ;;  %v6463_v60 = vadd.f32 %v15437_v0, %v15552_v55  ;;  %v6461_v15 = vadd.f32 %v15437_v0, %v15546_v61  ;;  %v6542_v1 = vpack.c.bf16 %v6510_v56, %v6510_v56 }
 0xbe3   : > { %v9356_v20 = vpack.i.bf16 %v6743_v11, %v6740_v28  ;;  %v15680_v46 = vunpack.c.l.bf16 %v6530_v37  ;;  %v6683_v10 = vrot.slane %v15666_v47, 1  ;;  %v6494_v3 = vmax.f32 %v6462_v36, 0.0 }
 0xbe4   : > { %v6737_v41 = vsel %vm492_vm2, %v6681_v24, %v6682_v9  ;;  %v6495_v62 = vmax.f32 %v6463_v60, 0.0  ;;  %v6493_v32 = vmax.f32 %v6461_v15, 0.0  ;;  %v6738_v61 = vsel %vm492_vm2, %v6680_v12, %v6681_v24 }
 0xbe5   : > { %9357 = vrot.lane.b32.xlu0 %v9356_v20, %s9596_s8  ;;  %v6735_v55 = vsel %vm492_vm2, %v6683_v10, %v6684_v27  ;;  %v6745_v40 = vmul.f32 %v16770_v48, %v6737_v41  ;;  %v15693_v13 = vunpack.c.l.bf16 %v6529_v63  ;;  %v6526_v8 = vpack.c.bf16 %v6494_v3, %v6494_v3 }
 0xbe6   : > { %v6747_v53 = vmul.f32 %v16770_v48, %v6735_v55  ;;  %v6527_v52 = vpack.c.bf16 %v6495_v62, %v6495_v62  ;;  %v6525_v23 = vpack.c.bf16 %v6493_v32, %v6493_v32  ;;  %v15699_v56 = vpack.c.bf16 %v6514_v57, %v6514_v57 }
 0xbe7   : > { %v6736_v35 = vsel %vm492_vm2, %v6682_v9, %v6683_v10  ;;  %v9366_v37 = vpack.i.bf16 %v6745_v40, %v6738_v61  ;;  %v15703_v12 = vunpack.c.l.bf16 %v6528_v49  ;;  %v15705_v31 = vunpack.c.l.bf16 %v6526_v8 }
 0xbe8   : > { %v9376_v63 = vpack.i.bf16 %v6747_v53, %v6736_v35  ;;  %v15707_v2 = vunpack.c.l.bf16 %v6527_v52  ;;  %v15709_v33 = vunpack.c.l.bf16 %v6525_v23  ;;  %v6547_v51 = vpack.c.bf16 %v6515_v5, %v6515_v5  ;;  %v8563_v5 = vld [vmem:[%s16567_s5 + $0x38] sm:$0xff] }
 0xbe9   : > { %9367 = vrot.lane.b32.xlu2 %v9366_v37, %s9596_s8  ;;  %v6689_v57 = vrot.slane %v15693_v13, 1  ;;  %v6690_v11 = vrot.slane %v15680_v46, 1  ;;  %v6468_v24 = vadd.f32 %v15437_v0, %v15572_v34  ;;  %v6548_v49 = vpack.c.bf16 %v6516_v29, %v6516_v29  ;;  %7382 = vmatpush.bf16.msrb.mxu1 %v8563_v5 }
 0xbea   : > { %9377 = vrot.lane.b32.xlu1 %v9376_v63, %s9596_s8  ;;  %v9371_v36 = vpack.i.bf16 %v15666_v47, %v15662_v54  ;;  %v6685_v28 = vrot.slane %v15709_v33, 1  ;;  %v6686_v9 = vrot.slane %v15705_v31, 1  ;;  %v6688_v60 = vrot.slane %v15703_v12, 1 }
 0xbeb   : > { %v6687_v15 = vrot.slane %v15707_v2, 1  ;;  %v6469_v34 = vadd.f32 %v15437_v0, %v15575_v17  ;;  %v6500_v29 = vmax.f32 %v6468_v24, 0.0  ;;  %v15728_v20 = vunpack.c.l.bf16 %v6536_v19 }
 0xbec   : > { %v15730_v10 = vunpack.c.l.bf16 %v6540_v6  ;;  %v6733_v41 = vsel %vm492_vm2, %v6685_v28, %v6686_v9  ;;  %v6467_v3 = vadd.f32 %v15437_v0, %v15567_v44  ;;  %v15736_v62 = vunpack.c.l.bf16 %v6541_v18 }
 0xbed   : > { %v15738_v32 = vunpack.c.l.bf16 %v6542_v1  ;;  %9372 = vrot.lane.b32.xlu0 %v9371_v36, %s9595_s19  ;;  %v9391_v17 = vpack.i.bf16 %v15707_v2, %v15705_v31  ;;  %v6729_v19 = vsel %vm492_vm2, %v6689_v57, %v6690_v11  ;;  %v9381_v6 = vpack.i.bf16 %v15709_v33, %v15649_v42 }
 0xbee   : > { %v6501_v55 = vmax.f32 %v6469_v34, 0.0  ;;  %v6532_v44 = vpack.c.bf16 %v6500_v29, %v6500_v29  ;;  %v6499_v61 = vmax.f32 %v6467_v3, 0.0  ;;  %v6749_v18 = vmul.f32 %v16770_v48, %v6733_v41 }
 0xbef   : > { %v6731_v1 = vsel %vm492_vm2, %v6687_v15, %v6688_v60  ;;  %v15753_v40 = vunpack.c.l.bf16 %v15653_v43  ;;  %v15756_v50 = vunpack.c.l.bf16 %v15657_v39  ;;  %v16616_v23 = vrot.slane %v15728_v20, 1 }
 0xbf0   : > { %v6533_v53 = vpack.c.bf16 %v6501_v55, %v6501_v55  ;;  %v15758_v8 = vunpack.c.l.bf16 %v6532_v44  ;;  %v6531_v52 = vpack.c.bf16 %v6499_v61, %v6499_v61  ;;  %v6734_v35 = vsel %vm492_vm2, %v6684_v27, %v6685_v28 }
 0xbf1   : > { %9382 = vrot.lane.b32.xlu2 %v9381_v6, %s9595_s19  ;;  %v6695_v37 = vrot.slane %v15756_v50, 1  ;;  %v6506_v43 = vmax.f32 %v15631_v14, 0.0  ;;  %v6507_v39 = vmax.f32 %v15634_v26, 0.0  ;;  %v6473_v5 = vadd.f32 %v15437_v0, %v15581_v59 }
 0xbf2   : > { %9392 = vrot.lane.b32.xlu1 %v9391_v17, %s9595_s19  ;;  %v15770_v63 = vunpack.c.l.bf16 %v6533_v53  ;;  %v15772_v24 = vunpack.c.l.bf16 %v6531_v52  ;;  %v6692_v36 = vrot.slane %v15758_v8, 1  ;;  %v9386_v34 = vpack.i.bf16 %v6749_v18, %v6734_v35 }
 0xbf3   : > { %v6753_v27 = vmul.f32 %v16770_v48, %v6729_v19  ;;  %v6751_v28 = vmul.f32 %v16770_v48, %v6731_v1  ;;  %v6694_v14 = vrot.slane %v15753_v40, 1  ;;  %v6723_v29 = vsel %vm492_vm2, %v6695_v37, %v16616_v23 }
 0xbf4   : > { %v6691_v26 = vrot.slane %v15772_v24, 1  ;;  %v6538_v41 = vpack.c.bf16 %v6506_v43, %v6506_v43  ;;  %v6539_v3 = vpack.c.bf16 %v6507_v39, %v6507_v39  ;;  %v15786_v17 = vunpack.c.l.bf16 %v15699_v56 }
 0xbf5   : > { %v15788_v59 = vunpack.c.l.bf16 %v6547_v51  ;;  %9387 = vrot.lane.b32.xlu0 %v9386_v34, %s9596_s8  ;;  %v6693_v19 = vrot.slane %v15770_v63, 1  ;;  %v6505_v6 = vmax.f32 %v6473_v5, 0.0  ;;  %v15792_v55 = vunpack.c.l.bf16 %v6548_v49 }
 0xbf6   : > { %v6730_v44 = vsel %vm492_vm2, %v6688_v60, %v6689_v57  ;;  %v6732_v61 = vsel %vm492_vm2, %v6686_v9, %v6687_v15  ;;  %v6727_v18 = vsel %vm492_vm2, %v6691_v26, %v6692_v36  ;;  %v9401_v51 = vpack.i.bf16 %v15693_v13, %v15703_v12 }
 0xbf7   : > { %v9396_v56 = vpack.i.bf16 %v6751_v28, %v6732_v61  ;;  %v15803_v1 = vmul.f32 %v16770_v48, %v6723_v29  ;;  %v6725_v49 = vsel %vm492_vm2, %v6693_v19, %v6694_v14  ;;  %v9406_v53 = vpack.i.bf16 %v6753_v27, %v6730_v44 }
 0xbf8   : > { %v6755_v52 = vmul.f32 %v16770_v48, %v6727_v18  ;;  %v15808_v57 = vunpack.c.l.bf16 %v6538_v41  ;;  %v15810_v60 = vunpack.c.l.bf16 %v6539_v3  ;;  %v9421_v9 = vpack.i.bf16 %v15770_v63, %v15758_v8 }
 0xbf9   : > { %9397 = vrot.lane.b32.xlu2 %v9396_v56, %s9596_s8  ;;  %v15817_v15 = vsel %vm492_vm2, %v6694_v14, %v6695_v37  ;;  %v6537_v43 = vpack.c.bf16 %v6505_v6, %v6505_v6  ;;  %v9411_v39 = vpack.i.bf16 %v15772_v24, %v15680_v46  ;;  %v6728_v5 = vsel %vm492_vm2, %v6690_v11, %v6691_v26 }
 0xbfa   : > { %9407 = vrot.lane.b32.xlu1 %v9406_v53, %s9596_s8  ;;  %v6757_v34 = vmul.f32 %v16770_v48, %v6725_v49  ;;  %v6512_v27 = vmax.f32 %v15594_v58, 0.0  ;;  %v9436_v37 = vpack.i.bf16 %v15803_v1, %v15817_v15  ;;  %v6700_v28 = vrot.slane %v15730_v10, 1 }
 0xbfb   : > { %v6701_v14 = vrot.slane %v15736_v62, 1  ;;  %v6513_v29 = vmax.f32 %v15597_v21, 0.0  ;;  %v9416_v41 = vpack.i.bf16 %v6755_v52, %v6728_v5  ;;  %v6726_v3 = vsel %vm492_vm2, %v6692_v36, %v6693_v19 }
 0xbfc   : > { %v6698_v26 = vrot.slane %v15808_v57, 1  ;;  %v15841_v58 = vunpack.c.l.bf16 %v6537_v43  ;;  %v6544_v6 = vpack.c.bf16 %v6512_v27, %v6512_v27  ;;  %v6511_v61 = vmax.f32 %v15591_v38, 0.0 }
 0xbfd   : > { %9402 = vrot.lane.b32.xlu0 %v9401_v51, %s9595_s19  ;;  %v6545_v44 = vpack.c.bf16 %v6513_v29, %v6513_v29  ;;  %v9426_v18 = vpack.i.bf16 %v6757_v34, %v6726_v3  ;;  %v6702_v21 = vrot.slane %v15738_v32, 1  ;;  %v6699_v56 = vrot.slane %v15810_v60, 1 }
 0xbfe   : > { %v6706_v36 = vrot.slane %v15786_v17, 1  ;;  %v15851_v19 = vsel %vm492_vm2, %v6700_v28, %v6701_v14  ;;  %v15853_v51 = vunpack.c.l.bf16 %v6544_v6  ;;  %v6543_v53 = vpack.c.bf16 %v6511_v61, %v6511_v61 }
 0xbff   : > { %v15855_v49 = vunpack.c.l.bf16 %v6545_v44  ;;  %v6707_v38 = vrot.slane %v15788_v59, 1  ;;  %v6708_v52 = vrot.slane %v15792_v55, 1  ;;  %v6485_v5 = vadd.f32 %v15437_v0, %v15563_v25 }
 0xc00   : > { %v6697_v34 = vrot.slane %v15841_v58, 1  ;;  %v15867_v29 = vunpack.c.l.bf16 %v6543_v53  ;;  %v6704_v3 = vrot.slane %v15853_v51, 1  ;;  %v6588_v11 = vrot.slane %v15649_v42, 7 }
 0xc01   : > { %9412 = vrot.lane.b32.xlu2 %v9411_v39, %s9595_s19  ;;  %v6711_v6 = vsel %vm492_vm2, %v6707_v38, %v6708_v52  ;;  %v15875_v44 = vsel %vm492_vm2, %v6706_v36, %v6707_v38  ;;  %v6705_v0 = vrot.slane %v15855_v49, 1  ;;  %v6517_v25 = vmax.f32 %v6485_v5, 0.0 }
 0xc02   : > { %9422 = vrot.lane.b32.xlu1 %v9421_v9, %s9595_s19  ;;  %v6703_v61 = vrot.slane %v15867_v29, 1  ;;  %v15882_v53 = vmul.f32 %v16770_v48, %v6711_v6  ;;  %v6583_v9 = vrot.slane %v15645_v30, 7  ;;  %v6582_v5 = vrot.slane %v15641_v4, 7 }
 0xc03   : > { %v6713_v43 = vsel %vm492_vm2, %v6705_v0, %v6706_v36  ;;  %v15889_v38 = vsel %vm492_vm2, %v6704_v3, %v6705_v0  ;;  %v6549_v27 = vpack.c.bf16 %v6517_v25, %v6517_v25  ;;  %v6589_v30 = vrot.slane %v15709_v33, 7 }
 0xc04   : > { %v6715_v39 = vsel %vm492_vm2, %v6703_v61, %v6704_v3  ;;  %v15897_v6 = vsel %vm492_vm2, %v6702_v21, %v6703_v61  ;;  %v15902_v36 = vmul.f32 %v16770_v48, %v6713_v43  ;;  %v6587_v3 = vrot.slane %v15666_v47, 7 }
 0xc05   : > { %9417 = vrot.lane.b32.xlu0 %v9416_v41, %s9596_s8  ;;  %v15905_v0 = vmul.f32 %v16770_v48, %v6715_v39  ;;  %v15907_v25 = vunpack.c.l.bf16 %v6549_v27  ;;  %v15911_v41 = vsel %vm395_vm3, %v6582_v5, %v6583_v9  ;;  %v6585_v43 = vrot.slane %v15618_v22, 7 }
 0xc06   : > { %v6717_v47 = vsel %vm492_vm2, %v6701_v14, %v6702_v21  ;;  %v15930_v42 = vsel %vm395_vm3, %v6588_v11, %v6589_v30  ;;  %v15934_v22 = vsel %vm395_vm3, %v6587_v3, %v6588_v11  ;;  %v6584_v33 = vrot.slane %v15602_v7, 7 }
 0xc07   : > { %v9476_v39 = vpack.i.bf16 %v15905_v0, %v15897_v6  ;;  %v6709_v23 = vrot.slane %v15907_v25, 1  ;;  %v6613_v35 = vrot.slane %v15907_v25, 7  ;;  %v6593_v7 = vrot.slane %v15693_v13, 7 }
 0xc08   : > { %v6719_v1 = vsel %vm492_vm2, %v6699_v56, %v6700_v28  ;;  %v6721_v13 = vsel %vm492_vm2, %v6697_v34, %v6698_v26  ;;  %v6594_v15 = vrot.slane %v15680_v46, 7  ;;  %v6586_v28 = vrot.slane %v15662_v54, 7 }
 0xc09   : > { %9427 = vrot.lane.b32.xlu2 %v9426_v18, %s9596_s8  ;;  %v15943_v18 = vsel %vm492_vm2, %v6708_v52, %v6709_v23  ;;  %v6741_v14 = vsel %vm492_vm2, %v6709_v23, %v6678_v45  ;;  %v15953_v11 = vsel %vm395_vm3, %v6613_v35, %v6582_v5  ;;  %v15967_v45 = vsel %vm395_vm3, %v6584_v33, %v6585_v43 }
 0xc0a   : > { %9437 = vrot.lane.b32.xlu1 %v9436_v37, %s9596_s8  ;;  %v15963_v4 = vmul.f32 %v16770_v48, %v6741_v14  ;;  %v15971_v23 = vsel %vm395_vm3, %v6583_v9, %v6584_v33  ;;  %v6595_v37 = vrot.slane %v15772_v24, 7  ;;  %v16771_v21 = vpack.i.bf16 %v15756_v50, %v15753_v40 }
 0xc0b   : > { %v6590_v9 = vrot.slane %v15705_v31, 7  ;;  %v6591_v5 = vrot.slane %v15707_v2, 7  ;;  %v6599_v33 = vrot.slane %v15756_v50, 7  ;;  %v15997_v54 = vsel %vm395_vm3, %v6593_v7, %v6594_v15 }
 0xc0c   : > { %v15993_v46 = vsel %vm395_vm3, %v6594_v15, %v6595_v37  ;;  %v16001_v24 = vsel %vm395_vm3, %v6586_v28, %v6587_v3  ;;  %v16005_v14 = vsel %vm395_vm3, %v6585_v43, %v6586_v28  ;;  %v9441_v31 = vpack.i.bf16 %v15841_v58, %v15728_v20 }
 0xc0d   : > { %9432 = vrot.lane.b32.xlu0 %v16771_v21, %s9595_s19  ;;  %v6761_v2 = vmul.f32 %v16770_v48, %v6721_v13  ;;  %v16012_v50 = vsel %vm395_vm3, %v6590_v9, %v6591_v5  ;;  %v16016_v15 = vsel %vm395_vm3, %v6589_v30, %v6590_v9  ;;  %v16772_v3 = vrot.slane %v15728_v20, 1  ;;  %v8574_v30 = vld [vmem:[%s16567_s5 + $0x60] sm:$0xff] }
 0xc0e   : > { %v6600_v28 = vrot.slane %v15728_v20, 7  ;;  %v6601_v21 = vrot.slane %v15841_v58, 7  ;;  %v6592_v13 = vrot.slane %v15703_v12, 7  ;;  %v6596_v9 = vrot.slane %v15758_v8, 7  ;;  %7521 = vmatpush.bf16.msrb.mxu2 %v8574_v30 }
 0xc0f   : > { %v6722_v43 = vsel %vm492_vm2, %v16772_v3, %v6697_v34  ;;  %v6597_v52 = vrot.slane %v15770_v63, 7  ;;  %v6605_v27 = vrot.slane %v15736_v62, 7  ;;  %v6606_v34 = vrot.slane %v15738_v32, 7 }
 0xc10   : > { %v16773_v20 = vpack.i.bf16 %v15810_v60, %v15808_v57  ;;  %v16041_v12 = vsel %vm395_vm3, %v6600_v28, %v6601_v21  ;;  %v16045_v58 = vsel %vm395_vm3, %v6599_v33, %v6600_v28  ;;  %v16049_v8 = vsel %vm395_vm3, %v6592_v13, %v6593_v7 }
 0xc11   : > { %9442 = vrot.lane.b32.xlu2 %v9441_v31, %s9595_s19  ;;  %v16053_v63 = vsel %vm395_vm3, %v6591_v5, %v6592_v13  ;;  %v9446_v31 = vpack.i.bf16 %v6761_v2, %v6722_v43  ;;  %v6763_v3 = vmul.f32 %v16770_v48, %v6719_v1  ;;  %v16062_v28 = vsel %vm395_vm3, %v6595_v37, %v6596_v9 }
 0xc12   : > { %9452 = vrot.lane.b32.xlu1 %v16773_v20, %s9595_s19  ;;  %v16058_v20 = vsel %vm395_vm3, %v6596_v9, %v6597_v52  ;;  %v6765_v61 = vmul.f32 %v16770_v48, %v6717_v47  ;;  %v6607_v7 = vrot.slane %v15867_v29, 7  ;;  %v16068_v5 = vsel %vm395_vm3, %v6605_v27, %v6606_v34  ;;  %v8562_v48 = vld [vmem:[%s16567_s5 + $0x30] sm:$0xff] }
 0xc13   : > { %v6598_v2 = vrot.slane %v15753_v40, 7  ;;  %v6720_v1 = vsel %vm492_vm2, %v6698_v26, %v6699_v56  ;;  %v6602_v47 = vrot.slane %v15808_v57, 7  ;;  %v6603_v37 = vrot.slane %v15810_v60, 7  ;;  %7383 = vmatpush.bf16.msrb.mxu1 %v8562_v48 }
 0xc14   : > { %v6611_v43 = vrot.slane %v15788_v59, 7  ;;  %v16086_v40 = vsel %vm395_vm3, %v6606_v34, %v6607_v7  ;;  %v6612_v56 = vrot.slane %v15792_v55, 7  ;;  %v9456_v30 = vpack.i.bf16 %v6763_v3, %v6720_v1 }
 0xc15   : > { %9447 = vrot.lane.b32.xlu0 %v9446_v31, %s9596_s8  ;;  %v16090_v13 = vsel %vm395_vm3, %v6598_v2, %v6599_v33  ;;  %v16094_v26 = vsel %vm395_vm3, %v6597_v52, %v6598_v2  ;;  %v16099_v57 = vsel %vm395_vm3, %v6602_v47, %v6603_v37  ;;  %v16103_v60 = vsel %vm395_vm3, %v6601_v21, %v6602_v47 }
 0xc16   : > { %v6604_v9 = vrot.slane %v15730_v10, 7  ;;  %v9466_v33 = vpack.i.bf16 %v6765_v61, %v15851_v19  ;;  %v16111_v52 = vsel %vm395_vm3, %v6612_v56, %v6613_v35  ;;  %v16115_v34 = vsel %vm395_vm3, %v6611_v43, %v6612_v56 }
 0xc17   : > { %v6608_v31 = vrot.slane %v15853_v51, 7  ;;  %v6609_v61 = vrot.slane %v15855_v49, 7  ;;  %v6610_v3 = vrot.slane %v15786_v17, 7  ;;  %v9461_v2 = vpack.i.bf16 %v15736_v62, %v15730_v10  ;;  %v8573_v62 = vld [vmem:[%s16567_s5 + $0x28] sm:$0xff] }
 0xc18   : > { %v16121_v21 = vsel %vm395_vm3, %v6604_v9, %v6605_v27  ;;  %v16125_v19 = vsel %vm395_vm3, %v6603_v37, %v6604_v9  ;;  %v16775_v10 = vpack.i.bf16 %v15855_v49, %v15853_v51  ;;  %7221 = vmatpush.bf16.msrb.mxu0 %v8573_v62  ;;  %v16777_v51 = vpack.i.bf16 %v15882_v53, %v15875_v44  ;;  %v8568_v53 = vld [vmem:[%s16567_s5] sm:$0xff] }
 0xc19   : > { %9457 = vrot.lane.b32.xlu2 %v9456_v30, %s9596_s8  ;;  %v16131_v35 = vsel %vm395_vm3, %v6607_v7, %v6608_v31  ;;  %v16138_v27 = vsel %vm395_vm3, %v6608_v31, %v6609_v61  ;;  %v16142_v1 = vsel %vm395_vm3, %v6610_v3, %v6611_v43  ;;  %v16146_v48 = vsel %vm395_vm3, %v6609_v61, %v6610_v3 }
 0xc1a   : > { %9467 = vrot.lane.b32.xlu1 %v9466_v33, %s9596_s8  ;;  %v16774_v7 = vpack.i.bf16 %v15867_v29, %v15738_v32  ;;  %v16776_v32 = vpack.i.bf16 %v15902_v36, %v15889_v38  ;;  %v16778_v49 = vpack.i.bf16 %v15788_v59, %v15786_v17  ;;  %v8571_v29 = vld [vmem:[%s16567_s5 + $0x18] sm:$0xff]  ;;  %v8570_v38 = vld [vmem:[%s16567_s5 + $0x10] sm:$0xff]  ;;  %v16779_v44 = vpack.i.bf16 %v15907_v25, %v15792_v55  ;;  %v8569_v17 = vld [vmem:[%s16567_s5 + $0x8] sm:$0xff] }
 0xc1b   : > { %v16780_v59 = vpack.i.bf16 %v15963_v4, %v15943_v18 }
 0xc1c   : > { %7222 = vmatpush.bf16.msrb.mxu0 %v8572_v16 }
 0xc1d   : > { %9462 = vrot.lane.b32.xlu0 %v9461_v2, %s9595_s19 }
 0xc20   : > { %7223 = vmatpush.bf16.msrb.mxu0 %v8571_v29 }
 0xc21   : > { %9472 = vrot.lane.b32.xlu2 %v16774_v7, %s9595_s19 }
 0xc22   : > { %9482 = vrot.lane.b32.xlu1 %v16775_v10, %s9595_s19 }
 0xc24   : > { %7224 = vmatpush.bf16.msrb.mxu0 %v8570_v38 }
 0xc25   : > { %9477 = vrot.lane.b32.xlu0 %v9476_v39, %s9596_s8  ;;  %v16781_v39 = vld [vmem:[#allocation6_spill] sm:$0xff] }
 0xc26   : > { %v6648_v47 = vmul.f32 %v16781_v39, %v15971_v23  ;;  %v6646_v3 = vmul.f32 %v16781_v39, %v15953_v11  ;;  %v6650_v29 = vmul.f32 %v16781_v39, %v16005_v14  ;;  %v6652_v14 = vmul.f32 %v16781_v39, %v15934_v22 }
 0xc28   : > { %7225 = vmatpush.bf16.msrb.mxu0 %v8569_v17 }
 0xc29   : > { %9487 = vrot.lane.b32.xlu2 %v16776_v32, %s9596_s8 }
 0xc2a   : > { %9497 = vrot.lane.b32.xlu1 %v16777_v51, %s9596_s8 }
 0xc2c   : > { %7226 = vmatpush.bf16.msrb.mxu0 %v8568_v53 }
 0xc2d   : > { %9492 = vrot.lane.b32.xlu0 %v16778_v49, %s9595_s19 }
 0xc31   : > { %9502 = vrot.lane.b32.xlu2 %v16779_v44, %s9595_s19  ;;  %s269_s19 = sand.u32 1, %s9582_s25  }
 0xc32   : > { %s7736_s13 = scalar_lea.sflag [#allocation3], %s269_s19 }
 0xc35   : > { %9507 = vrot.lane.b32.xlu0 %v16780_v59, %s9596_s8  ;;  %s7817_s8 = sshll.u32 %s269_s19, 8 }
 0xc36   : > { %s16426_s17 = scalar_lea.vmem [#allocation2], %s7817_s8 }
 0xc37   : > { %s7748_s9 = sshll.u32 %s16426_s17, 4  ;;  %s7749_s9 = int_to_ptr.vmem [resolvable:$true] %s7748_s9 }
 0xc3a   : > { %v9353_v6 = vpop.permute.xlu2 %9352 }
 0xc3b   : > { %v9355_v31 = vunpack.i.h.bf16 %v9353_v6  ;;  %v9354_v61 = vunpack.i.l.bf16 %v9353_v6 }
 0xc3d   : > { %v7030_v10 = vsel %vm1389_vm8, %v6646_v3, %v9354_v61  ;;  %v7031_v62 = vsel %vm1389_vm8, %v15911_v41, %v9355_v31 }
 0xc43   : > { %v9368_v36 = vpop.permute.xlu2 %9367 }
 0xc44   : > { %v9370_v37 = vunpack.i.h.bf16 %v9368_v36  ;;  %v9369_v43 = vunpack.i.l.bf16 %v9368_v36 }
 0xc49   : > { %v9363_v55 = vpop.permute.xlu1 %9362 }
 0xc4a   : > { %v9365_v0 = vunpack.i.h.bf16 %v9363_v55  ;;  %v9364_v25 = vunpack.i.l.bf16 %v9363_v55 }
 0xc4b   : > { %v9383_v33 = vpop.permute.xlu2 %9382 }
 0xc4c   : > { %v7032_v56 = vsel %vm1389_vm8, %v6648_v47, %v9364_v25  ;;  %v7033_v18 = vsel %vm1389_vm8, %v15967_v45, %v9365_v0  ;;  %v9385_v0 = vunpack.i.h.bf16 %v9383_v33  ;;  %v9384_v25 = vunpack.i.l.bf16 %v9383_v33 }
 0xc4d   : > { %v7064_v4 = vsel %vm2327_vm12, %v7032_v56, %v9369_v43  ;;  %v7065_v30 = vsel %vm2327_vm12, %v7033_v18, %v9370_v37 }
 0xc4e   : > { %v7095_v9 = vpack.c.bf16 %v7065_v30, %v7064_v4  ;;  %v7037_v18 = vsel %vm1389_vm8, %v15930_v42, %v9385_v0 }
 0xc53   : > { %v9398_v51 = vpop.permute.xlu2 %9397 }
 0xc57   : > { %v9358_v2 = vpop.permute.xlu0 %9357 }
 0xc58   : > { %v9360_v23 = vunpack.i.h.bf16 %v9358_v2  ;;  %v9359_v7 = vunpack.i.l.bf16 %v9358_v2 }
 0xc5a   : > { %v7062_v45 = vsel %vm2327_vm12, %v7030_v10, %v9359_v7  ;;  %v7063_v16 = vsel %vm2327_vm12, %v7031_v62, %v9360_v23  ;;  %v6658_v10 = vmul.f32 %v16781_v39, %v15997_v54 }
 0xc5b   : > { %v7094_v32 = vpack.c.bf16 %v7063_v16, %v7062_v45  ;;  %v9413_v47 = vpop.permute.xlu2 %9412  ;;  %v6654_v45 = vmul.f32 %v16781_v39, %v16016_v15 }
 0xc5c   : > { %v9378_v49 = vpop.permute.xlu1 %9377  ;;  %v9415_v3 = vunpack.i.h.bf16 %v9413_v47  ;;  %v9414_v42 = vunpack.i.l.bf16 %v9413_v47 }
 0xc5d   : > { %8391 = vmatmul.msk.bf16.vlgmr.msrb.gmra.mxu0 %vm2437_vm13, %v7094_v32  ;;  %8431 = vmatmul.msk.bf16.vlgmr.msrb.gmra.mxu1 %vm2437_vm13, %v7094_v32  ;;  %v9380_v41 = vunpack.i.h.bf16 %v9378_v49  ;;  %v9379_v17 = vunpack.i.l.bf16 %v9378_v49 }
 0xc5e   : > { %8483 = vmatmul.msk.bf16.vlgmr.msrb.gmra.mxu2 %vm2437_vm13, %v7094_v32  ;;  %v7042_v49 = vsel %vm1389_vm8, %v6658_v10, %v9414_v42 }
 0xc5f   : > { %v9373_v11 = vpop.permute.xlu0 %9372 }
 0xc60   : > { %v9375_v38 = vunpack.i.h.bf16 %v9373_v11  ;;  %v9374_v44 = vunpack.i.l.bf16 %v9373_v11 }
 0xc62   : > { %v7035_v59 = vsel %vm1389_vm8, %v16001_v24, %v9375_v38  ;;  %v7034_v53 = vsel %vm1389_vm8, %v6650_v29, %v9374_v44  ;;  %v7036_v24 = vsel %vm1389_vm8, %v6652_v14, %v9384_v25  ;;  %v6656_v14 = vmul.f32 %v16781_v39, %v16053_v63 }
 0xc63   : > { %v7066_v6 = vsel %vm2327_vm12, %v7034_v53, %v9379_v17  ;;  %v7067_v36 = vsel %vm2327_vm12, %v7035_v59, %v9380_v41  ;;  %v16235_v33 = vpop.permute.xlu2 %9427  ;;  %v9400_v41 = vunpack.i.h.bf16 %v9398_v51  ;;  %v9399_v17 = vunpack.i.l.bf16 %v9398_v51 }
 0xc64   : > { %v7096_v55 = vpack.c.bf16 %v7067_v36, %v7066_v6  ;;  %v9393_v61 = vpop.permute.xlu1 %9392 }
 0xc65   : > { %v9395_v2 = vunpack.i.h.bf16 %v9393_v61  ;;  %v9394_v23 = vunpack.i.l.bf16 %v9393_v61 }
 0xc67   : > { %v9388_v37 = vpop.permute.xlu0 %9387  ;;  %v7039_v11 = vsel %vm1389_vm8, %v16012_v50, %v9395_v2  ;;  %v7038_v29 = vsel %vm1389_vm8, %v6654_v45, %v9394_v23 }
 0xc68   : > { %v9390_v43 = vunpack.i.h.bf16 %v9388_v37  ;;  %v9389_v56 = vunpack.i.l.bf16 %v9388_v37  ;;  %v7071_v59 = vsel %vm2327_vm12, %v7039_v11, %v9400_v41  ;;  %v6664_v37 = vmul.f32 %v16781_v39, %v16045_v58 }
 0xc6a   : > { %v7069_v4 = vsel %vm2327_vm12, %v7037_v18, %v9390_v43  ;;  %v7068_v30 = vsel %vm2327_vm12, %v7036_v24, %v9389_v56 }
 0xc6b   : > { %v16230_v31 = vpack.c.bf16 %v7069_v4, %v7068_v30  ;;  %v9443_v38 = vpop.permute.xlu2 %9442 }
 0xc6c   : > { %v9408_v7 = vpop.permute.xlu1 %9407  ;;  %v9445_v51 = vunpack.i.h.bf16 %v9443_v38  ;;  %v9444_v47 = vunpack.i.l.bf16 %v9443_v38 }
 0xc6d   : > { %8392 = vmatmul.msk.bf16.gmra.mxu0 %vm2437_vm13, %v7095_v9  ;;  %8432 = vmatmul.msk.bf16.gmra.mxu1 %vm2437_vm13, %v7095_v9  ;;  %v9410_v4 = vunpack.i.h.bf16 %v9408_v7  ;;  %v9409_v30 = vunpack.i.l.bf16 %v9408_v7 }
 0xc6e   : > { %8484 = vmatmul.msk.bf16.gmra.mxu2 %vm2437_vm13, %v7095_v9  ;;  %v7043_v9 = vsel %vm1389_vm8, %v15993_v46, %v9415_v3  ;;  %v7070_v46 = vsel %vm2327_vm12, %v7038_v29, %v9399_v17  ;;  %v7049_v61 = vsel %vm1389_vm8, %v16041_v12, %v9445_v51  ;;  %v6660_v12 = vmul.f32 %v16781_v39, %v16062_v28 }
 0xc6f   : > { %v9403_v22 = vpop.permute.xlu0 %9402  ;;  %v16256_v50 = vpack.c.bf16 %v7071_v59, %v7070_v46  ;;  %v9429_v28 = vunpack.i.l.bf16 %v16235_v33 }
 0xc70   : > { %v9405_v36 = vunpack.i.h.bf16 %v9403_v22  ;;  %v9404_v0 = vunpack.i.l.bf16 %v9403_v22  ;;  %v7048_v22 = vsel %vm1389_vm8, %v6664_v37, %v9444_v47 }
 0xc72   : > { %v7040_v56 = vsel %vm1389_vm8, %v6656_v14, %v9404_v0  ;;  %v6662_v0 = vmul.f32 %v16781_v39, %v16094_v26 }
 0xc73   : > { %v16258_v25 = vpop.permute.xlu2 %9457 }
 0xc74   : > { %v9423_v6 = vpop.permute.xlu1 %9422 }
 0xc75   : > { %v9425_v3 = vunpack.i.h.bf16 %v9423_v6  ;;  %v9424_v2 = vunpack.i.l.bf16 %v9423_v6 }
 0xc77   : > { %v9418_v62 = vpop.permute.xlu0 %9417  ;;  %v7045_v45 = vsel %vm1389_vm8, %v16058_v20, %v9425_v3  ;;  %v6670_v20 = vmul.f32 %v16781_v39, %v16068_v5 }
 0xc78   : > { %v9420_v16 = vunpack.i.h.bf16 %v9418_v62  ;;  %v9419_v32 = vunpack.i.l.bf16 %v9418_v62 }
 0xc7a   : > { %v7075_v44 = vsel %vm2327_vm12, %v7043_v9, %v9420_v16  ;;  %v7074_v54 = vsel %vm2327_vm12, %v7042_v49, %v9419_v32  ;;  %v7044_v16 = vsel %vm1389_vm8, %v6660_v12, %v9424_v2  ;;  %v9430_v9 = vunpack.i.h.bf16 %v16235_v33 }
 0xc7b   : > { %v16249_v15 = vpack.c.bf16 %v7075_v44, %v7074_v54  ;;  %v9473_v7 = vpop.permute.xlu2 %9472  ;;  %v7076_v49 = vsel %vm2327_vm12, %v7044_v16, %v9429_v28  ;;  %v6676_v2 = vmul.f32 %v16781_v39, %v16115_v34  ;;  %v6668_v28 = vmul.f32 %v16781_v39, %v16125_v19 }
 0xc7c   : > { %v9438_v63 = vpop.permute.xlu1 %9437  ;;  %v7077_v11 = vsel %vm2327_vm12, %v7045_v45, %v9430_v9  ;;  %v9475_v44 = vunpack.i.h.bf16 %v9473_v7 }
 0xc7d   : > { %8393 = vmatmul.msk.bf16.gmra.mxu0 %vm2437_vm13, %v7096_v55  ;;  %8433 = vmatmul.msk.bf16.gmra.mxu1 %vm2437_vm13, %v7096_v55  ;;  %v16295_v29 = vpack.c.bf16 %v7077_v11, %v7076_v49 }
 0xc7e   : > { %8485 = vmatmul.msk.bf16.gmra.mxu2 %vm2437_vm13, %v7096_v55  ;;  %v7041_v55 = vsel %vm1389_vm8, %v16049_v8, %v9405_v36  ;;  %v7072_v8 = vsel %vm2327_vm12, %v7040_v56, %v9409_v30  ;;  %v7055_v33 = vsel %vm1389_vm8, %v16086_v40, %v9475_v44  ;;  %v9439_v40 = vunpack.i.l.bf16 %v9438_v63 }
 0xc7f   : > { %v9433_v53 = vpop.permute.xlu0 %9432  ;;  %v7073_v10 = vsel %vm2327_vm12, %v7041_v55, %v9410_v4  ;;  %v9440_v55 = vunpack.i.h.bf16 %v9438_v63  ;;  %v6666_v56 = vmul.f32 %v16781_v39, %v16103_v60  ;;  %v9460_v30 = vunpack.i.h.bf16 %v16258_v25 }
 0xc80   : > { %v16276_v62 = vpack.c.bf16 %v7073_v10, %v7072_v8  ;;  %v9435_v41 = vunpack.i.h.bf16 %v9433_v53  ;;  %v9434_v17 = vunpack.i.l.bf16 %v9433_v53 }
 0xc82   : > { %v7047_v53 = vsel %vm1389_vm8, %v16090_v13, %v9435_v41 }
 0xc83   : > { %v16299_v46 = vpop.permute.xlu2 %9487  ;;  %v7079_v60 = vsel %vm2327_vm12, %v7047_v53, %v9440_v55 }
 0xc84   : > { %v9453_v38 = vpop.permute.xlu1 %9452 }
 0xc85   : > { %v9455_v5 = vunpack.i.h.bf16 %v9453_v38  ;;  %v9454_v14 = vunpack.i.l.bf16 %v9453_v38 }
 0xc87   : > { %v9448_v43 = vpop.permute.xlu0 %9447  ;;  %v7051_v13 = vsel %vm1389_vm8, %v16099_v57, %v9455_v5 }
 0xc88   : > { %v9450_v18 = vunpack.i.h.bf16 %v9448_v43  ;;  %v9449_v24 = vunpack.i.l.bf16 %v9448_v43  ;;  %v7046_v43 = vsel %vm1389_vm8, %v6662_v0, %v9434_v17 }
 0xc89   : > { %v7078_v4 = vsel %vm2327_vm12, %v7046_v43, %v9439_v40 }
 0xc8a   : > { %v7081_v42 = vsel %vm2327_vm12, %v7049_v61, %v9450_v18  ;;  %v7080_v58 = vsel %vm2327_vm12, %v7048_v22, %v9449_v24  ;;  %v7050_v18 = vsel %vm1389_vm8, %v6666_v56, %v9454_v14  ;;  %v9459_v61 = vunpack.i.l.bf16 %v16258_v25 }
 0xc8b   : > { %v16272_v23 = vpack.c.bf16 %v7081_v42, %v7080_v58  ;;  %v7102_v22 = vpack.c.bf16 %v7079_v60, %v7078_v4  ;;  %v9503_v3 = vpop.permute.xlu2 %9502 }
 0xc8c   : > { %v9468_v26 = vpop.permute.xlu1 %9467  ;;  %v7082_v63 = vsel %vm2327_vm12, %v7050_v18, %v9459_v61  ;;  %v9505_v57 = vunpack.i.h.bf16 %v9503_v3  ;;  %v9504_v58 = vunpack.i.l.bf16 %v9503_v3 }
 0xc8d   : > { %8394 = vmatmul.msk.bf16.gmra.mxu0 %vm2437_vm13, %v16230_v31  ;;  %8434 = vmatmul.msk.bf16.gmra.mxu1 %vm2437_vm13, %v16230_v31 }
 0xc8e   : > { %8486 = vmatmul.msk.bf16.gmra.mxu2 %vm2437_vm13, %v16230_v31  ;;  %v9474_v31 = vunpack.i.l.bf16 %v9473_v7  ;;  %v7061_v16 = vsel %vm1389_vm8, %v16111_v52, %v9505_v57  ;;  %v7060_v9 = vsel %vm1389_vm8, %v6676_v2, %v9504_v58  ;;  %v9469_v52 = vunpack.i.l.bf16 %v9468_v26 }
 0xc8f   : > { %v16289_v32 = vpop.permute.xlu0 %9462 }
 0xc90   : > { %v7054_v36 = vsel %vm1389_vm8, %v6670_v20, %v9474_v31  ;;  %v9465_v10 = vunpack.i.h.bf16 %v16289_v32  ;;  %v9464_v12 = vunpack.i.l.bf16 %v16289_v32  ;;  %v9470_v20 = vunpack.i.h.bf16 %v9468_v26 }
 0xc92   : > { %v7053_v32 = vsel %vm1389_vm8, %v16121_v21, %v9465_v10  ;;  %v7052_v31 = vsel %vm1389_vm8, %v6668_v28, %v9464_v12 }
 0xc93   : > { %v7084_v41 = vsel %vm2327_vm12, %v7052_v31, %v9469_v52  ;;  %v7085_v17 = vsel %vm2327_vm12, %v7053_v32, %v9470_v20 }
 0xc94   : > { %v9483_v7 = vpop.permute.xlu1 %9482 }
 0xc95   : > { %v9485_v11 = vunpack.i.h.bf16 %v9483_v7  ;;  %v9484_v38 = vunpack.i.l.bf16 %v9483_v7 }
 0xc97   : > { %v9478_v54 = vpop.permute.xlu0 %9477  ;;  %v7057_v19 = vsel %vm1389_vm8, %v16138_v27, %v9485_v11 }
 0xc98   : > { %v9480_v59 = vunpack.i.h.bf16 %v9478_v54  ;;  %v9479_v6 = vunpack.i.l.bf16 %v9478_v54  ;;  %v6672_v54 = vmul.f32 %v16781_v39, %v16131_v35  ;;  %v9490_v35 = vunpack.i.h.bf16 %v16299_v46 }
 0xc9a   : > { %v7087_v51 = vsel %vm2327_vm12, %v7055_v33, %v9480_v59  ;;  %v7086_v47 = vsel %vm2327_vm12, %v7054_v36, %v9479_v6  ;;  %v7056_v21 = vsel %vm1389_vm8, %v6672_v54, %v9484_v38  ;;  %v9489_v59 = vunpack.i.l.bf16 %v16299_v46 }
 0xc9b   : > { %v16308_v37 = vpack.c.bf16 %v7087_v51, %v7086_v47  ;;  %v16363_v6 = vpack.c.bf16 %v7085_v17, %v7084_v41  ;;  %v7089_v36 = vsel %vm2327_vm12, %v7057_v19, %v9490_v35  ;;  %v6674_v47 = vmul.f32 %v16781_v39, %v16146_v48 }
 0xc9c   : > { %v7088_v33 = vsel %vm2327_vm12, %v7056_v21, %v9489_v59  ;;  %v9498_v51 = vpop.permute.xlu1 %9497 }
 0xc9d   : > { %8395 = vmatmul.msk.bf16.gmra.mxu0 %vm2437_vm13, %v16256_v50  ;;  %8435 = vmatmul.msk.bf16.gmra.mxu1 %vm2437_vm13, %v16256_v50  ;;  %v9500_v46 = vunpack.i.h.bf16 %v9498_v51  ;;  %v9499_v53 = vunpack.i.l.bf16 %v9498_v51 }
 0xc9e   : > { %8487 = vmatmul.msk.bf16.gmra.mxu2 %vm2437_vm13, %v16256_v50  ;;  %v7083_v50 = vsel %vm2327_vm12, %v7051_v13, %v9460_v30 }
 0xc9f   : > { %v9493_v24 = vpop.permute.xlu0 %9492  ;;  %v16330_v42 = vpack.c.bf16 %v7083_v50, %v7082_v63 }
 0xca0   : > { %v9495_v0 = vunpack.i.h.bf16 %v9493_v24  ;;  %v9494_v27 = vunpack.i.l.bf16 %v9493_v24 }
 0xca2   : > { %v7059_v5 = vsel %vm1389_vm8, %v16142_v1, %v9495_v0  ;;  %v7058_v14 = vsel %vm1389_vm8, %v6674_v47, %v9494_v27 }
 0xca3   : > { %v7090_v43 = vsel %vm2327_vm12, %v7058_v14, %v9499_v53  ;;  %v7091_v48 = vsel %vm2327_vm12, %v7059_v5, %v9500_v46 }
 0xca4   : > { %v16382_v39 = vpack.c.bf16 %v7091_v48, %v7090_v43 }
 0xca7   : > { %v9508_v8 = vpop.permute.xlu0 %9507 }
 0xca8   : > { %v9510_v25 = vunpack.i.h.bf16 %v9508_v8  ;;  %v9509_v45 = vunpack.i.l.bf16 %v9508_v8 }
 0xcaa   : > { %v7093_v49 = vsel %vm2327_vm12, %v7061_v16, %v9510_v25  ;;  %v7092_v34 = vsel %vm2327_vm12, %v7060_v9, %v9509_v45 }
 0xcab   : > { %v16343_v44 = vpack.c.bf16 %v7093_v49, %v7092_v34 }
 0xcad   : > { %8396 = vmatmul.msk.bf16.gmra.mxu0 %vm2437_vm13, %v16276_v62  ;;  %8436 = vmatmul.msk.bf16.gmra.mxu1 %vm2437_vm13, %v16276_v62 }
 0xcae   : > { %8488 = vmatmul.msk.bf16.gmra.mxu2 %vm2437_vm13, %v16276_v62  ;;  %v16367_v62 = vpack.c.bf16 %v7089_v36, %v7088_v33 }
 0xcbd   : > { %8397 = vmatmul.msk.bf16.gmra.mxu0 %vm2437_vm13, %v16249_v15  ;;  %8437 = vmatmul.msk.bf16.gmra.mxu1 %vm2437_vm13, %v16249_v15 }
 0xcbe   : > { %8489 = vmatmul.msk.bf16.gmra.mxu2 %vm2437_vm13, %v16249_v15 }
 0xccd   : > { %8398 = vmatmul.msk.bf16.gmra.mxu0 %vm2437_vm13, %v16295_v29  ;;  %8438 = vmatmul.msk.bf16.gmra.mxu1 %vm2437_vm13, %v16295_v29 }
 0xcce   : > { %8490 = vmatmul.msk.bf16.gmra.mxu2 %vm2437_vm13, %v16295_v29 }
 0xcda   : > { %v7228_v1 = vpop.f32.mrf.mxu0  ;;  %v16390_v55 = vpop.f32.mrf.mxu1 }
 0xcdd   : > { %8399 = vmatmul.msk.bf16.gmra.mxu0 %vm2437_vm13, %v7102_v22  ;;  %8439 = vmatmul.msk.bf16.gmra.mxu1 %vm2437_vm13, %v7102_v22 }
 0xcde   : > { %8491 = vmatmul.msk.bf16.gmra.mxu2 %vm2437_vm13, %v7102_v22 }
 0xce1   : > { %v16395_v15 = vpop.f32.mrf.mxu2 }
 0xce2   : > { %v7230_v40 = vpop.f32.mrf.mxu0  ;;  %v16397_v56 = vpop.f32.mrf.mxu1 }
 0xce9   : > { %v16399_v26 = vpop.f32.mrf.mxu2 }
 0xcea   : > { %v7233_v13 = vpop.f32.mrf.mxu0  ;;  %v7390_v29 = vpop.f32.mrf.mxu1 }
 0xceb   : > { %v7391_v22 = vadd.f32 %v7390_v29, %v7228_v1 }
 0xced   : > { %8400 = vmatmul.msk.bf16.gmra.mxu0 %vm2437_vm13, %v16272_v23  ;;  %8440 = vmatmul.msk.bf16.gmra.mxu1 %vm2437_vm13, %v16272_v23 }
 0xcee   : > { %8492 = vmatmul.msk.bf16.gmra.mxu2 %vm2437_vm13, %v16272_v23  ;;  %v16423_v23 = vld [vmem:[%s16568_s6] ss:$0 sm:$0xff] }
 0xcf1   : > { %v16407_v18 = vpop.f32.mrf.mxu2 }
 0xcf2   : > { %v7235_v24 = vpop.f32.mrf.mxu0  ;;  %v7392_v4 = vpop.f32.mrf.mxu1 }
 0xcf9   : > { %v16409_v60 = vpop.f32.mrf.mxu2 }
 0xcfa   : > { %v7238_v30 = vpop.f32.mrf.mxu0  ;;  %v7395_v61 = vpop.f32.mrf.mxu1 }
 0xcfb   : > { %v7396_v25 = vadd.f32 %v7395_v61, %v7233_v13 }
 0xcfd   : > { %8401 = vmatmul.msk.bf16.gmra.mxu0 %vm2437_vm13, %v16330_v42  ;;  %8441 = vmatmul.msk.bf16.gmra.mxu1 %vm2437_vm13, %v16330_v42 }
 0xcfe   : > { %8493 = vmatmul.msk.bf16.gmra.mxu2 %vm2437_vm13, %v16330_v42  ;;  %v7393_v42 = vadd.f32 %v7392_v4, %v7230_v40 }
 0xd01   : > { %v7533_v3 = vpop.f32.mrf.mxu2 }
 0xd02   : > { %v7637_v63 = vadd.f32 %v7533_v3, %v7391_v22  ;;  %v7240_v50 = vpop.f32.mrf.mxu0  ;;  %v7397_v57 = vpop.f32.mrf.mxu1 }
 0xd03   : > { %v7398_v34 = vadd.f32 %v7397_v57, %v7235_v24 }
 0xd04   : > { %v7673_v58 = vadd.f32 %v16423_v23, %v7637_v63 }
 0xd06   : > { %7705 = vst [vmem:[%s16426_s17 + $0x10] sm:$0xff] %v7673_v58 }
 0xd09   : > { %v7535_v2 = vpop.f32.mrf.mxu2 }
 0xd0a   : > { %v7638_v8 = vadd.f32 %v7535_v2, %v7393_v42  ;;  %v7243_v10 = vpop.f32.mrf.mxu0  ;;  %v7400_v12 = vpop.f32.mrf.mxu1 }
 0xd0b   : > { %v7401_v52 = vadd.f32 %v7400_v12, %v7238_v30 }
 0xd0c   : > { %v7674_v7 = vadd.f32 %v16423_v23, %v7638_v8 }
 0xd0d   : > { %8402 = vmatmul.msk.bf16.gmra.mxu0 %vm2437_vm13, %v16363_v6  ;;  %8442 = vmatmul.msk.bf16.gmra.mxu1 %vm2437_vm13, %v16363_v6 }
 0xd0e   : > { %7706 = vst [vmem:[%s16426_s17 + $0x18] sm:$0xff] %v7674_v7  ;;  %8494 = vmatmul.msk.bf16.gmra.mxu2 %vm2437_vm13, %v16363_v6 }
 0xd11   : > { %v7538_v45 = vpop.f32.mrf.mxu2 }
 0xd12   : > { %v7639_v16 = vadd.f32 %v7538_v45, %v7396_v25  ;;  %v7245_v9 = vpop.f32.mrf.mxu0  ;;  %v7402_v28 = vpop.f32.mrf.mxu1 }
 0xd13   : > { %v7403_v35 = vadd.f32 %v7402_v28, %v7240_v50 }
 0xd14   : > { %v7675_v49 = vadd.f32 %v16423_v23, %v7639_v16 }
 0xd16   : > { %7707 = vst [vmem:[%s16426_s17 + $0x20] sm:$0xff] %v7675_v49 }
 0xd19   : > { %v7540_v11 = vpop.f32.mrf.mxu2 }
 0xd1a   : > { %v7640_v38 = vadd.f32 %v7540_v11, %v7398_v34  ;;  %v7248_v32 = vpop.f32.mrf.mxu0  ;;  %v7405_v31 = vpop.f32.mrf.mxu1 }
 0xd1c   : > { %v7676_v20 = vadd.f32 %v16423_v23, %v7640_v38 }
 0xd1d   : > { %8403 = vmatmul.msk.bf16.gmra.mxu0 %vm2437_vm13, %v16308_v37  ;;  %8443 = vmatmul.msk.bf16.gmra.mxu1 %vm2437_vm13, %v16308_v37 }
 0xd1e   : > { %7708 = vst [vmem:[%s16426_s17 + $0x28] sm:$0xff] %v7676_v20  ;;  %8495 = vmatmul.msk.bf16.gmra.mxu2 %vm2437_vm13, %v16308_v37  ;;  %v7406_v37 = vadd.f32 %v7405_v31, %v7243_v10 }
 0xd21   : > { %v7543_v54 = vpop.f32.mrf.mxu2 }
 0xd22   : > { %v7641_v19 = vadd.f32 %v7543_v54, %v7401_v52  ;;  %v7250_v21 = vpop.f32.mrf.mxu0  ;;  %v7407_v41 = vpop.f32.mrf.mxu1 }
 0xd23   : > { %v7408_v46 = vadd.f32 %v7407_v41, %v7245_v9 }
 0xd24   : > { %v7677_v17 = vadd.f32 %v16423_v23, %v7641_v19 }
 0xd26   : > { %7709 = vst [vmem:[%s16426_s17 + $0x30] sm:$0xff] %v7677_v17 }
 0xd29   : > { %v7545_v59 = vpop.f32.mrf.mxu2 }
 0xd2a   : > { %v7642_v6 = vadd.f32 %v7545_v59, %v7403_v35  ;;  %v7253_v33 = vpop.f32.mrf.mxu0  ;;  %v7410_v36 = vpop.f32.mrf.mxu1 }
 0xd2c   : > { %v7678_v0 = vadd.f32 %v16423_v23, %v7642_v6 }
 0xd2d   : > { %8404 = vmatmul.msk.bf16.gmra.mxu0 %vm2437_vm13, %v16367_v62  ;;  %8444 = vmatmul.msk.bf16.gmra.mxu1 %vm2437_vm13, %v16367_v62 }
 0xd2e   : > { %7710 = vst [vmem:[%s16426_s17 + $0x38] sm:$0xff] %v7678_v0  ;;  %8496 = vmatmul.msk.bf16.gmra.mxu2 %vm2437_vm13, %v16367_v62  ;;  %v7411_v62 = vadd.f32 %v7410_v36, %v7248_v32 }
 0xd31   : > { %v7548_v27 = vpop.f32.mrf.mxu2 }
 0xd32   : > { %v7643_v51 = vadd.f32 %v7548_v27, %v7406_v37  ;;  %v7255_v47 = vpop.f32.mrf.mxu0  ;;  %v7412_v5 = vpop.f32.mrf.mxu1 }
 0xd33   : > { %v7413_v61 = vadd.f32 %v7412_v5, %v7250_v21 }
 0xd34   : > { %v7679_v14 = vadd.f32 %v16423_v23, %v7643_v51 }
 0xd36   : > { %7711 = vst [vmem:[%s16426_s17 + $0x40] sm:$0xff] %v7679_v14 }
 0xd39   : > { %v7550_v53 = vpop.f32.mrf.mxu2 }
 0xd3a   : > { %v7644_v43 = vadd.f32 %v7550_v53, %v7408_v46  ;;  %v7258_v48 = vpop.f32.mrf.mxu0  ;;  %v7415_v1 = vpop.f32.mrf.mxu1 }
 0xd3c   : > { %v7680_v40 = vadd.f32 %v16423_v23, %v7644_v43 }
 0xd3d   : > { %8405 = vmatmul.msk.bf16.gmra.mxu0 %vm2437_vm13, %v16382_v39  ;;  %8445 = vmatmul.msk.bf16.gmra.mxu1 %vm2437_vm13, %v16382_v39 }
 0xd3e   : > { %7712 = vst [vmem:[%s16426_s17 + $0x48] sm:$0xff] %v7680_v40  ;;  %8497 = vmatmul.msk.bf16.gmra.mxu2 %vm2437_vm13, %v16382_v39  ;;  %v7416_v39 = vadd.f32 %v7415_v1, %v7253_v33 }
 0xd41   : > { %v7553_v13 = vpop.f32.mrf.mxu2 }
 0xd42   : > { %v7645_v29 = vadd.f32 %v7553_v13, %v7411_v62  ;;  %v7260_v24 = vpop.f32.mrf.mxu0  ;;  %v7417_v4 = vpop.f32.mrf.mxu1 }
 0xd43   : > { %v7418_v12 = vadd.f32 %v7417_v4, %v7255_v47 }
 0xd44   : > { %v7681_v30 = vadd.f32 %v16423_v23, %v7645_v29 }
 0xd46   : > { %7713 = vst [vmem:[%s16426_s17 + $0x50] sm:$0xff] %v7681_v30 }
 0xd49   : > { %v7555_v22 = vpop.f32.mrf.mxu2 }
 0xd4a   : > { %v7646_v3 = vadd.f32 %v7555_v22, %v7413_v61  ;;  %v7263_v63 = vpop.f32.mrf.mxu0  ;;  %v7420_v50 = vpop.f32.mrf.mxu1 }
 0xd4b   : > { %v7421_v28 = vadd.f32 %v7420_v50, %v7258_v48 }
 0xd4c   : > { %v7682_v57 = vadd.f32 %v16423_v23, %v7646_v3 }
 0xd4d   : > { %8406 = vmatmul.msk.bf16.gmra.mxu0 %vm2437_vm13, %v16343_v44  ;;  %8446 = vmatmul.msk.bf16.gmra.mxu1 %vm2437_vm13, %v16343_v44 }
 0xd4e   : > { %7714 = vst [vmem:[%s16426_s17 + $0x58] sm:$0xff] %v7682_v57  ;;  %8498 = vmatmul.msk.bf16.gmra.mxu2 %vm2437_vm13, %v16343_v44 }
 0xd51   : > { %v7558_v58 = vpop.f32.mrf.mxu2 }
 0xd52   : > { %v7647_v42 = vadd.f32 %v7558_v58, %v7416_v39  ;;  %v7265_v2 = vpop.f32.mrf.mxu0  ;;  %v7422_v8 = vpop.f32.mrf.mxu1 }
 0xd53   : > { %v7423_v32 = vadd.f32 %v7422_v8, %v7260_v24 }
 0xd54   : > { %v7683_v10 = vadd.f32 %v16423_v23, %v7647_v42 }
 0xd56   : > { %7715 = vst [vmem:[%s16426_s17 + $0x60] sm:$0xff] %v7683_v10 }
 0xd59   : > { %v7560_v7 = vpop.f32.mrf.mxu2 }
 0xd5a   : > { %v7648_v25 = vadd.f32 %v7560_v7, %v7418_v12  ;;  %v7268_v45 = vpop.f32.mrf.mxu0  ;;  %v7425_v16 = vpop.f32.mrf.mxu1 }
 0xd5b   : > { %v7426_v21 = vadd.f32 %v7425_v16, %v7263_v63 }
 0xd5c   : > { %v7684_v9 = vadd.f32 %v16423_v23, %v7648_v25 }
 0xd5e   : > { %7716 = vst [vmem:[%s16426_s17 + $0x68] sm:$0xff] %v7684_v9 }
 0xd61   : > { %v7563_v44 = vpop.f32.mrf.mxu2 }
 0xd62   : > { %v7649_v49 = vadd.f32 %v7563_v44, %v7421_v28  ;;  %v7270_v34 = vpop.f32.mrf.mxu0  ;;  %v7427_v11 = vpop.f32.mrf.mxu1 }
 0xd63   : > { %v7428_v33 = vadd.f32 %v7427_v11, %v7265_v2 }
 0xd64   : > { %v7685_v38 = vadd.f32 %v16423_v23, %v7649_v49 }
 0xd66   : > { %7717 = vst [vmem:[%s16426_s17 + $0x70] sm:$0xff] %v7685_v38 }
 0xd69   : > { %v7565_v31 = vpop.f32.mrf.mxu2 }
 0xd6a   : > { %v7650_v20 = vadd.f32 %v7565_v31, %v7423_v32  ;;  %v7273_v52 = vpop.f32.mrf.mxu0  ;;  %v7430_v54 = vpop.f32.mrf.mxu1 }
 0xd6b   : > { %v7431_v47 = vadd.f32 %v7430_v54, %v7268_v45 }
 0xd6c   : > { %v7686_v19 = vadd.f32 %v16423_v23, %v7650_v20 }
 0xd6e   : > { %7718 = vst [vmem:[%s16426_s17 + $0x78] sm:$0xff] %v7686_v19 }
 0xd71   : > { %v7568_v41 = vpop.f32.mrf.mxu2 }
 0xd72   : > { %v7651_v17 = vadd.f32 %v7568_v41, %v7426_v21  ;;  %v7275_v35 = vpop.f32.mrf.mxu0  ;;  %v7432_v59 = vpop.f32.mrf.mxu1 }
 0xd73   : > { %v7433_v48 = vadd.f32 %v7432_v59, %v7270_v34 }
 0xd74   : > { %v7687_v6 = vadd.f32 %v16423_v23, %v7651_v17 }
 0xd76   : > { %7719 = vst [vmem:[%s16426_s17 + $0x80] sm:$0xff] %v7687_v6 }
 0xd79   : > { %v7570_v36 = vpop.f32.mrf.mxu2 }
 0xd7a   : > { %v7652_v0 = vadd.f32 %v7570_v36, %v7428_v33  ;;  %v7278_v37 = vpop.f32.mrf.mxu0  ;;  %v7435_v27 = vpop.f32.mrf.mxu1 }
 0xd7b   : > { %v7436_v24 = vadd.f32 %v7435_v27, %v7273_v52 }
 0xd7c   : > { %v7688_v51 = vadd.f32 %v16423_v23, %v7652_v0 }
 0xd7e   : > { %7720 = vst [vmem:[%s16426_s17 + $0x88] sm:$0xff] %v7688_v51 }
 0xd81   : > { %v7573_v5 = vpop.f32.mrf.mxu2 }
 0xd82   : > { %v7653_v14 = vadd.f32 %v7573_v5, %v7431_v47  ;;  %v7280_v46 = vpop.f32.mrf.mxu0  ;;  %v7437_v53 = vpop.f32.mrf.mxu1 }
 0xd83   : > { %v7438_v63 = vadd.f32 %v7437_v53, %v7275_v35 }
 0xd84   : > { %v7689_v43 = vadd.f32 %v16423_v23, %v7653_v14  ;;  %v7633_v14 = vmul.f32 0.0, %v16395_v15 }
 0xd86   : > { %7721 = vst [vmem:[%s16426_s17 + $0x90] sm:$0xff] %v7689_v43 }
 0xd89   : > { %v7575_v1 = vpop.f32.mrf.mxu2 }
 0xd8a   : > { %v7654_v40 = vadd.f32 %v7575_v1, %v7433_v48  ;;  %v7283_v62 = vpop.f32.mrf.mxu0  ;;  %v7440_v13 = vpop.f32.mrf.mxu1 }
 0xd8b   : > { %v7441_v2 = vadd.f32 %v7440_v13, %v7278_v37 }
 0xd8c   : > { %v7690_v29 = vadd.f32 %v16423_v23, %v7654_v40 }
 0xd8e   : > { %7722 = vst [vmem:[%s16426_s17 + $0x98] sm:$0xff] %v7690_v29 }
 0xd91   : > { %v7578_v4 = vpop.f32.mrf.mxu2 }
 0xd92   : > { %v7655_v30 = vadd.f32 %v7578_v4, %v7436_v24  ;;  %v7285_v61 = vpop.f32.mrf.mxu0  ;;  %v7442_v22 = vpop.f32.mrf.mxu1 }
 0xd93   : > { %v7443_v45 = vadd.f32 %v7442_v22, %v7280_v46 }
 0xd94   : > { %v7691_v3 = vadd.f32 %v16423_v23, %v7655_v30 }
 0xd96   : > { %7723 = vst [vmem:[%s16426_s17 + $0xa0] sm:$0xff] %v7691_v3 }
 0xd99   : > { %v7580_v50 = vpop.f32.mrf.mxu2 }
 0xd9a   : > { %v7656_v57 = vadd.f32 %v7580_v50, %v7438_v63  ;;  %v7288_v39 = vpop.f32.mrf.mxu0  ;;  %v7445_v58 = vpop.f32.mrf.mxu1 }
 0xd9b   : > { %v7446_v34 = vadd.f32 %v7445_v58, %v7283_v62 }
 0xd9c   : > { %v7692_v42 = vadd.f32 %v16423_v23, %v7656_v57 }
 0xd9e   : > { %7724 = vst [vmem:[%s16426_s17 + $0xa8] sm:$0xff] %v7692_v42 }
 0xda1   : > { %v7583_v8 = vpop.f32.mrf.mxu2 }
 0xda2   : > { %v7657_v10 = vadd.f32 %v7583_v8, %v7441_v2  ;;  %v7290_v12 = vpop.f32.mrf.mxu0  ;;  %v7447_v7 = vpop.f32.mrf.mxu1 }
 0xda3   : > { %v7448_v52 = vadd.f32 %v7447_v7, %v7285_v61 }
 0xda4   : > { %v7693_v25 = vadd.f32 %v16423_v23, %v7657_v10 }
 0xda6   : > { %7725 = vst [vmem:[%s16426_s17 + $0xb0] sm:$0xff] %v7693_v25 }
 0xda9   : > { %v7585_v16 = vpop.f32.mrf.mxu2 }
 0xdaa   : > { %v7658_v9 = vadd.f32 %v7585_v16, %v7443_v45  ;;  %v7293_v28 = vpop.f32.mrf.mxu0  ;;  %v7450_v44 = vpop.f32.mrf.mxu1 }
 0xdab   : > { %v7451_v35 = vadd.f32 %v7450_v44, %v7288_v39 }
 0xdac   : > { %v7694_v49 = vadd.f32 %v16423_v23, %v7658_v9 }
 0xdae   : > { %7726 = vst [vmem:[%s16426_s17 + $0xb8] sm:$0xff] %v7694_v49 }
 0xdb1   : > { %v7588_v11 = vpop.f32.mrf.mxu2 }
 0xdb2   : > { %v7659_v38 = vadd.f32 %v7588_v11, %v7446_v34  ;;  %v7295_v32 = vpop.f32.mrf.mxu0  ;;  %v7452_v31 = vpop.f32.mrf.mxu1 }
 0xdb3   : > { %v7453_v37 = vadd.f32 %v7452_v31, %v7290_v12 }
 0xdb4   : > { %v7695_v20 = vadd.f32 %v16423_v23, %v7659_v38 }
 0xdb6   : > { %7727 = vst [vmem:[%s16426_s17 + $0xc0] sm:$0xff] %v7695_v20 }
 0xdb9   : > { %v7590_v54 = vpop.f32.mrf.mxu2 }
 0xdba   : > { %v7660_v19 = vadd.f32 %v7590_v54, %v7448_v52  ;;  %v7298_v21 = vpop.f32.mrf.mxu0  ;;  %v7455_v41 = vpop.f32.mrf.mxu1 }
 0xdbb   : > { %v7456_v13 = vadd.f32 %v7455_v41, %v7293_v28 }
 0xdbc   : > { %v7696_v17 = vadd.f32 %v16423_v23, %v7660_v19 }
 0xdbe   : > { %7728 = vst [vmem:[%s16426_s17 + $0xc8] sm:$0xff] %v7696_v17 }
 0xdc1   : > { %v7593_v59 = vpop.f32.mrf.mxu2 }
 0xdc2   : > { %v7661_v6 = vadd.f32 %v7593_v59, %v7451_v35  ;;  %v7300_v33 = vpop.f32.mrf.mxu0  ;;  %v7457_v36 = vpop.f32.mrf.mxu1 }
 0xdc3   : > { %v7458_v57 = vadd.f32 %v7457_v36, %v7295_v32 }
 0xdc4   : > { %v7697_v0 = vadd.f32 %v16423_v23, %v7661_v6 }
 0xdc6   : > { %7729 = vst [vmem:[%s16426_s17 + $0xd0] sm:$0xff] %v7697_v0 }
 0xdc9   : > { %v7595_v27 = vpop.f32.mrf.mxu2 }
 0xdca   : > { %v7662_v51 = vadd.f32 %v7595_v27, %v7453_v37  ;;  %v7303_v47 = vpop.f32.mrf.mxu0  ;;  %v7460_v5 = vpop.f32.mrf.mxu1 }
 0xdcb   : > { %v7308_v46 = vmul.f32 0.0, %v7303_v47  ;;  %v7461_v53 = vadd.f32 %v7460_v5, %v7298_v21 }
 0xdcc   : > { %v7698_v43 = vadd.f32 %v16423_v23, %v7662_v51 }
 0xdcd   : > { %v7386_v48 = vadd.f32 %v16390_v55, %v7308_v46  ;;  %v7665_v1 = vadd.f32 %v7633_v14, %v7461_v53  ;;  %v7634_v55 = vmul.f32 0.0, %v16399_v26 }
 0xdce   : > { %7730 = vst [vmem:[%s16426_s17 + $0xd8] sm:$0xff] %v7698_v43 }
 0xdcf   : > { %v7635_v40 = vadd.f32 %v16407_v18, %v7386_v48  ;;  %v7701_v62 = vadd.f32 %v16423_v23, %v7665_v1 }
 0xdd1   : > { %v7671_v29 = vadd.f32 %v16423_v23, %v7635_v40  ;;  %7733 = vst [vmem:[%s16426_s17 + $0xf0] sm:$0xff] %v7701_v62  ;;  %v7598_v15 = vpop.f32.mrf.mxu2 }
 0xdd2   : > { %v7663_v24 = vadd.f32 %v7598_v15, %v7456_v13  ;;  %v7305_v4 = vpop.f32.mrf.mxu0  ;;  %v7462_v30 = vpop.f32.mrf.mxu1 }
 0xdd3   : > { %7703 = vst [vmem:[%s16426_s17] sm:$0xff] %v7671_v29  ;;  %v7309_v61 = vmul.f32 0.0, %v7305_v4  ;;  %v7463_v22 = vadd.f32 %v7462_v30, %v7300_v33 }
 0xdd4   : > { %v7699_v18 = vadd.f32 %v16423_v23, %v7663_v24 }
 0xdd5   : > { %v7388_v3 = vadd.f32 %v16397_v56, %v7309_v61  ;;  %v7666_v63 = vadd.f32 %v7634_v55, %v7463_v22 }
 0xdd6   : > { %7731 = vst [vmem:[%s16426_s17 + $0xe0] sm:$0xff] %v7699_v18 }
 0xdd7   : > { %v7636_v50 = vadd.f32 %v16409_v60, %v7388_v3  ;;  %v7702_v26 = vadd.f32 %v16423_v23, %v7666_v63 }
 0xdd9   : > { %v7672_v39 = vadd.f32 %v16423_v23, %v7636_v50  ;;  %7734 = vst [vmem:[%s16426_s17 + $0xf8] sm:$0xff] %v7702_v26  ;;  %v7600_v58 = vpop.f32.mrf.mxu2 }
 0xdda   : > { %v7664_v56 = vadd.f32 %v7600_v58, %v7458_v57 }
 0xddb   : > { %7704 = vst [vmem:[%s16426_s17 + $0x8] sm:$0xff] %v7672_v39 }
 0xddc   : > { %v7700_v42 = vadd.f32 %v16423_v23, %v7664_v56 }
 0xdde   : > { %7732 = vst [vmem:[%s16426_s17 + $0xe8] sm:$0xff] %v7700_v42 }
 0xddf   : > { %9555 = shalt.err (!%p9552_p3)
}
 0xde0   : > { %s9597_s19 = smov 128  }
 0xde1   : > { %8666 = dma.vmem_to_hbm [thread:$0]  (%p9676_p5), %s7749_s9, 4096, %s7751_s28, %s7736_s13, %s9597_s19, %s9597_s19, %s9593_s18  }
 0xde2 PF: > { %p8672_p4 = scmp.ge.s32.totalorder %s9590_s27, 2  ;;  %s7765_s17 = sand.u32 1, %s9578_s24  }
 0xde3   : > { %s7766_s23 = scalar_lea.sflag [#allocation3], %s7765_s17 }
 0xde4   : > { %p8669_p7 = pnand %p8672_p4, %p9680_p6 }
 0xde6   : > { %p8670_p8 = pneg %p8669_p7 }
 0xde8   : > { %9573 = dma.done.wait (%p8670_p8), %s7766_s23, 4096  }
 0xde9   : > { %9575 = vsyncadd (%p8670_p8), %s7766_s23, 4294963200  ;;  %p17_p9 = scmp.ge.s32.totalorder %s9663_s30, 4   ;;  %s16782_s24 = smov %s9582_s25 }
 0xdea   : > { %s16783_s25 = smov %s9586_s26  ;;  %s16784_s26 = smov %s9674_s10 }
 0xdeb   : > { %s16785_s27 = smov %s9663_s30  ;;  %19 = sbr.rel (!%p17_p9) target bundleno = 3 (0x3), region = 98 }
 0xdf0   :  { %7772 = vsyncpa [#allocation3], 1 }
 0xdf1   :  { %7774 = vsyncpa [#allocation3 + $0x1], 1 }

</bundles_post_ra>
